<compile_context>
chip_gen: v7x
topology: tpu7x:2x2x1
jax: 0.10.0
libtpu: 0.0.40
codegen_flags: <defaults>
</compile_context>

<pallas_src>
import numpy as np
import jax
import jax.numpy as jnp
from jax.experimental import pallas as pl
from jax.experimental.pallas import tpu as pltpu

# ----------------------------- configuration --------------------------------
LATENT_DIM = 32          # total neurons in the AutoNCP wiring (= state size)
N_VARS = 1               # x feature dim; dt adds one more feature
N_SENSORY = N_VARS + 1   # CfC input size
SEQ = 8
BATCH_CHUNK = 32         # sequences per grid step (per TensorCore on v7x)
N_CHUNKS = 2             # parallel grid size (v7x: one chunk per TensorCore)
BATCH = BATCH_CHUNK * N_CHUNKS   # 64 independent sequences per kernel call
LANE_PAD = 128           # lane-group width used for all CfC padding


# ------------------------ AutoNCP wiring construction -----------------------
def build_autoncp_masks(n_sensory, latent_dim, seed=22222, sparsity_level=0.5):
    """Deterministically build the NCP layer sparsity masks (same fanout scheme
    as ncps.wirings.AutoNCP).  Returns per-layer masks of shape
    (in_features + hidden, hidden) and the layer sizes [inter, command, motor]."""
    output_size = int(0.3 * latent_dim)
    density = 1.0 - sparsity_level
    inter_and_command = latent_dim - output_size
    n_command = max(int(0.4 * inter_and_command), 1)
    n_inter = inter_and_command - n_command
    n_motor = output_size
    sensory_fanout = max(int(n_inter * density), 1)
    inter_fanout = max(int(n_command * density), 1)
    recurrent_command = max(int(n_command * density * 2), 1)
    motor_fanin = max(int(n_command * density), 1)

    rng = np.random.RandomState(seed)
    motor = list(range(0, n_motor))
    command = list(range(n_motor, n_motor + n_command))
    inter = list(range(n_motor + n_command, latent_dim))
    sensory = list(range(n_sensory))

    adj = np.zeros((latent_dim, latent_dim), dtype=np.float32)
    sens_adj = np.zeros((n_sensory, latent_dim), dtype=np.float32)

    # sensory -> inter
    unreachable = set(inter)
    for src in sensory:
        for dest in rng.choice(inter, size=sensory_fanout, replace=False):
            unreachable.discard(int(dest))
            sens_adj[src, int(dest)] = rng.choice([-1, 1])
    mean_fanin = int(np.clip(int(n_sensory * sensory_fanout / n_inter), 1, n_sensory))
    for dest in sorted(unreachable):
        for src in rng.choice(sensory, size=mean_fanin, replace=False):
            sens_adj[int(src), dest] = rng.choice([-1, 1])

    # inter -> command
    unreachable = set(command)
    for src in inter:
        for dest in rng.choice(command, size=inter_fanout, replace=False):
            unreachable.discard(int(dest))
            adj[src, int(dest)] = rng.choice([-1, 1])
    mean_fanin = int(np.clip(int(n_inter * inter_fanout / n_command), 1, n_command))
    for dest in sorted(unreachable):
        for src in rng.choice(inter, size=mean_fanin, replace=False):
            adj[int(src), dest] = rng.choice([-1, 1])

    # recurrent command -> command (unused by WiredCfCCell masks, kept for parity)
    for _ in range(recurrent_command):
        src = int(rng.choice(command))
        dest = int(rng.choice(command))
        adj[src, dest] = rng.choice([-1, 1])

    # command -> motor
    unreachable = set(command)
    for dest in motor:
        for src in rng.choice(command, size=motor_fanin, replace=False):
            unreachable.discard(int(src))
            adj[int(src), dest] = rng.choice([-1, 1])
    mean_fanout = int(np.clip(int(n_motor * motor_fanin / n_command), 1, n_motor))
    for src in sorted(unreachable):
        for dest in rng.choice(motor, size=mean_fanout, replace=False):
            adj[src, int(dest)] = rng.choice([-1, 1])

    layers = [inter, command, motor]
    masks = []
    for l, hidden_units in enumerate(layers):
        if l == 0:
            input_sparsity = sens_adj[:, hidden_units]
        else:
            input_sparsity = adj[np.ix_(layers[l - 1], hidden_units)]
        input_sparsity = np.concatenate(
            [input_sparsity,
             np.ones((len(hidden_units), len(hidden_units)), dtype=np.float32)],
            axis=0)
        masks.append(np.abs(input_sparsity).astype(np.float32))
    layer_sizes = [len(inter), len(command), len(motor)]
    return masks, layer_sizes


MASKS, LAYER_SIZES = build_autoncp_masks(N_SENSORY, LATENT_DIM)
ROW_OFFS = [0]
for _h in LAYER_SIZES:
    ROW_OFFS.append(ROW_OFFS[-1] + _h)


# ------------------------------ parameters -----------------------------------
def init_params(key):
    """Deterministic synthetic parameters (ncps init is random anyway).
    Weights stored transposed vs torch Linear, i.e. (in, out), so math is
    x @ W + b.  Sparsity masks are pre-applied to ff1/ff2 weights.
    Values are snapped to bf16-representable numbers so the kernel's bf16 MXU
    operands are (near-)lossless vs. the f32 reference."""
    H = LATENT_DIM
    keys = iter(jax.random.split(key, 64))

    def lin(shape):
        fan_in = shape[0]
        s = 1.0 / np.sqrt(max(fan_in, 1))
        w = jax.random.uniform(next(keys), shape, jnp.float32, -s, s)
        return w.astype(jnp.bfloat16).astype(jnp.float32)

    params = {
        "lstm_wi": lin((N_SENSORY, 4 * H)),
        "lstm_bi": lin((1, 4 * H)),
        "lstm_wr": lin((H, 4 * H)),
        "cfc": [],
    }
    in_f = N_SENSORY
    for l, h in enumerate(LAYER_SIZES):
        d = in_f + h
        mask = jnp.asarray(MASKS[l])  # (d, h)
        params["cfc"].append({
            "w1": lin((d, h)) * mask,
            "b1": lin((1, h)),
            "w2": lin((d, h)) * mask,
            "b2": lin((1, h)),
            "wa": lin((d, h)),
            "ba": lin((1, h)),
            "wb": lin((d, h)),
            "bb": lin((1, h)),
        })
        in_f = h
    return params


# ------------------- host-side repacking for the kernel ----------------------
def pack_params(params):
    """Fuse / pre-scale / lane-pad weights so the kernel's serial chain is
    minimal.  sigmoid(u) = 0.5*(1 + tanh(u/2)) -> the 0.5 pre-scale (and the
    LSTM's +1.0 forget bias) is folded into weights & biases here.  Per-layer
    ff1/ff2/t columns are scattered into their own 128-lane groups; recurrent
    weights are zero-padded so every per-step slice is lane-group aligned and
    there is one fused recurrent dot per step.  Recurrent-path weights are
    stored as bf16 (MXU operands); biases stay f32 (VPU adds)."""
    H = LATENT_DIM
    G = LANE_PAD
    GW = 3 * G
    n_layers = len(LAYER_SIZES)

    # ---- LSTM: columns [H:4H] feed sigmoids -> scale by 0.5; fold +1 forget bias
    lscale = np.ones((1, 4 * H), np.float32)
    lscale[:, H:] = 0.5
    boff = np.zeros((1, 4 * H), np.float32)
    boff[:, 2 * H:3 * H] = 1.0
    lstm_wx = np.asarray(params["lstm_wi"]) * lscale                  # (F, 4H)
    lstm_bx = (np.asarray(params["lstm_bi"]) + boff) * lscale         # (1, 4H)
    wr_scaled = np.asarray(params["lstm_wr"]) * lscale                # (H, 4H)
    # fused, lane-padded recurrent weight: rows [G*l : G*l+h_l] <- layer-l state
    wr_pad = np.zeros((n_layers * G, 4 * H), np.float32)
    for l, h in enumerate(LAYER_SIZES):
        wr_pad[G * l:G * l + h, :] = wr_scaled[ROW_OFFS[l]:ROW_OFFS[l + 1], :]

    # ---- CfC layers: fuse (w1 | w2 | wa+wb), pre-scale t-columns by 0.5, and
    # scatter each sub-block into its own 128-lane group.
    def pad_cols(m, h):   # (rows, 3h) -> (rows, 3G): sub-block s -> lanes [G*s:G*s+h]
        out = np.zeros((m.shape[0], GW), np.float32)
        for s in range(3):
            out[:, G * s:G * s + h] = m[:, h * s:h * (s + 1)]
        return out

    whid_cols = []
    win_pad, b_pad = [], []
    x0w = x0b = None
    in_f = N_SENSORY
    for l, h in enumerate(LAYER_SIZES):
        p = params["cfc"][l]
        wf = np.concatenate([np.asarray(p["w1"]), np.asarray(p["w2"]),
                             np.asarray(p["wa"]) + np.asarray(p["wb"])], axis=1)  # (d, 3h)
        bf = np.concatenate([np.asarray(p["b1"]), np.asarray(p["b2"]),
                             np.asarray(p["ba"]) + np.asarray(p["bb"])], axis=1)  # (1, 3h)
        wf[:, 2 * h:] *= 0.5
        bf[:, 2 * h:] *= 0.5
        wf_p = pad_cols(wf, h)                     # (d, 3G)
        bf_p = pad_cols(bf, h)                     # (1, 3G)
        # hidden-side rows placed at this layer's neuron rows of the full H state
        whid = np.zeros((H, GW), np.float32)
        whid[ROW_OFFS[l]:ROW_OFFS[l + 1], :] = wf_p[in_f:, :]
        whid_cols.append(whid)
        if l == 0:
            x0w, x0b = wf_p[:in_f, :], bf_p        # folded into the hoisted projection
        else:
            w_in = np.zeros((G, GW), np.float32)   # rows padded to the 128-wide block
            w_in[:in_f, :] = wf_p[:in_f, :]
            win_pad.append(w_in)
            b_pad.append(bf_p)
        in_f = h
    whid_all = np.concatenate(whid_cols, axis=1)   # (H, n_layers*3G) = (32, 1152)

    # ---- fused pre-loop projection: [LSTM gates | CfC layer-0], split at 4H=128
    xw_all = np.concatenate([lstm_wx, x0w], axis=1)   # (F, 4H + 3G) = (2, 512)
    xb_all = np.concatenate([lstm_bx, x0b], axis=1)   # (1, 512)

    return {
        "xw_all": jnp.asarray(xw_all, jnp.float32),
        "xb_all": jnp.asarray(xb_all, jnp.float32),
        "wr_pad": jnp.asarray(wr_pad, jnp.bfloat16),
        "whid_all": jnp.asarray(whid_all, jnp.bfloat16),
        "win_pad": [jnp.asarray(w, jnp.bfloat16) for w in win_pad],
        "b_pad": [jnp.asarray(b, jnp.float32) for b in b_pad],
    }


# ------------------------------ Pallas kernel --------------------------------
def make_encoder_kernel(seq_len, bc, latent_dim, layer_sizes, lane_pad):
    n_layers = len(layer_sizes)
    H = latent_dim
    G = lane_pad
    GW = 3 * G          # per-layer fused column-group width (ff1|ff2|t, each 128)

    def kernel(xin_ref, xw_ref, xb_ref, wr_ref, whid_ref, *rest):
        n_wb = 2 * (n_layers - 1)
        wb_refs = rest[:n_wb]
        h_out_ref = rest[n_wb]
        c_out_ref = rest[n_wb + 1]
        xproj_scr = rest[n_wb + 2]

        # ---- one-time loads (tiny, VMEM resident) ----
        xin = xin_ref[0]                                   # (T*Bc, F)
        wr = wr_ref[...]                                   # (3G, 4H)   bf16
        whid = whid_ref[...]                               # (H, 3*3G)  bf16
        win = [None] + [wb_refs[2 * i][...] for i in range(n_layers - 1)]
        bias_b = [None] + [jnp.broadcast_to(wb_refs[2 * i + 1][...], (bc, GW))
                           for i in range(n_layers - 1)]   # hoisted broadcasts

        # ---- hoisted fused input projection (LSTM + CfC layer-0), all T at once,
        # staged into VMEM scratch so it doesn't hold vregs across the unrolled loop
        xproj_scr[...] = (jnp.dot(xin, xw_ref[...], preferred_element_type=jnp.float32)
                          + xb_ref[...])                   # (T*Bc, 4H + 3G)

        # CfC state: padded (Bc, 3G) layout, layer l in lanes [G*l, G*l+h_l)
        h_bf = jnp.zeros((bc, n_layers * G), jnp.bfloat16)
        blocks = [jnp.zeros((bc, G), jnp.float32) for _ in range(n_layers)]
        c = jnp.zeros((bc, H), jnp.float32)

        # Fully-unrolled time loop (seq_len small & static).
        for t in range(seq_len):
            proj_t = xproj_scr[pl.ds(t * bc, bc), :]       # aligned (Bc, 512) load
            x_lstm = proj_t[:, 0:4 * H]                    # (Bc, 128)
            x_cfc0 = proj_t[:, 4 * H:]                     # (Bc, 384), group aligned

            # ---- LSTM cell (mixed memory): ONE fused recurrent dot ----
            z = x_lstm + jnp.dot(h_bf, wr, preferred_element_type=jnp.float32)
            tz = jnp.tanh(z)                               # one EUP push, all 4 gates
            i_act = tz[:, 0:H]
            gates = 0.5 + 0.5 * tz[:, H:4 * H]             # sigmoid via tanh (folded)
            i_gate = gates[:, 0:H]
            f_gate = gates[:, H:2 * H]
            o_gate = gates[:, 2 * H:3 * H]
            c = c * f_gate + i_act * i_gate
            h_lstm = jnp.tanh(c) * o_gate                  # (Bc, H)

            # ---- Wired CfC: one hidden-side dot serving all layers ----
            hid_all = jnp.dot(h_lstm.astype(jnp.bfloat16), whid,
                              preferred_element_type=jnp.float32)   # (Bc, 3*3G)

            new_blocks = []
            for l in range(n_layers):
                pre = hid_all[:, GW * l:GW * (l + 1)]      # lane-group aligned slice
                if l == 0:
                    pre = pre + x_cfc0
                else:
                    pre = pre + bias_b[l] + jnp.dot(
                        new_blocks[l - 1].astype(jnp.bfloat16), win[l],
                        preferred_element_type=jnp.float32)
                th = jnp.tanh(pre)                         # one EUP push per layer
                ff1 = th[:, 0:G]                           # 128-aligned sub-slices
                ff2 = th[:, G:2 * G]
                ti = 0.5 + 0.5 * th[:, 2 * G:3 * G]        # sigmoid(ta+tb), ts=1
                new_blocks.append(ff1 + ti * (ff2 - ff1))  # pad lanes stay 0
            blocks = new_blocks
            # lane-group aligned concat -> next-step state (bf16 for the MXU)
            h_bf = jnp.concatenate(blocks, axis=1).astype(jnp.bfloat16)

        # final hidden tuple in original neuron order (single unaligned concat, once)
        h_out_ref[...] = jnp.concatenate(
            [blocks[l][:, 0:layer_sizes[l]] for l in range(n_layers)], axis=1)
        c_out_ref[...] = c

    return kernel


# -------------------------------- wrapper ------------------------------------
def _encoder_forward_impl(packed, x, dt):
    """x: (B, T, n_vars), dt: (B, T, 1) -> (h_state, c_state), each (B, latent_dim)."""
    B, T = x.shape[0], x.shape[1]
    Bc = BATCH_CHUNK
    n_chunks = B // Bc
    F = N_SENSORY
    H = LATENT_DIM
    G = LANE_PAD

    combined = jnp.concatenate([x, dt], axis=-1).astype(jnp.float32)      # (B, T, F)
    # chunk-major, time-major rows: chunk c holds original batch rows [c*Bc,(c+1)*Bc)
    xin = (combined.reshape(n_chunks, Bc, T, F)
           .transpose(0, 2, 1, 3)
           .reshape(n_chunks, T * Bc, F))

    weights = [packed["xw_all"], packed["xb_all"], packed["wr_pad"], packed["whid_all"]]
    for l in range(len(LAYER_SIZES) - 1):
        weights += [packed["win_pad"][l], packed["b_pad"][l]]

    def full_spec(a):
        return pl.BlockSpec(a.shape, lambda i: (0,) * a.ndim)

    in_specs = [pl.BlockSpec((1, T * Bc, F), lambda i: (i, 0, 0))]
    in_specs += [full_spec(w) for w in weights]
    out_spec = pl.BlockSpec((Bc, H), lambda i: (i, 0))

    kernel = make_encoder_kernel(T, Bc, H, LAYER_SIZES, G)
    h, c = pl.pallas_call(
        kernel,
        out_shape=(jax.ShapeDtypeStruct((B, H), jnp.float32),
                   jax.ShapeDtypeStruct((B, H), jnp.float32)),
        grid=(n_chunks,),
        in_specs=in_specs,
        out_specs=(out_spec, out_spec),
        scratch_shapes=[pltpu.VMEM((T * Bc, 4 * H + 3 * G), jnp.float32)],
        compiler_params=pltpu.CompilerParams(
            dimension_semantics=("parallel",)),   # v7x: one batch chunk per TC
    )(xin, *weights)
    return h, c


# concat/transpose/reshape folded into the same compiled program as pallas_call.
encoder_forward = jax.jit(_encoder_forward_impl)


# --------------------------- pure-JAX reference -------------------------------
def encoder_reference(params, x, dt):
    combined = jnp.concatenate([x, dt], axis=-1).astype(jnp.float32)
    B, T = x.shape[0], x.shape[1]
    H = LATENT_DIM
    h = jnp.zeros((B, H), jnp.float32)
    c = jnp.zeros((B, H), jnp.float32)
    for t in range(T):
        xt = combined[:, t, :]
        z = xt @ params["lstm_wi"] + params["lstm_bi"] + h @ params["lstm_wr"]
        i_act = jnp.tanh(z[:, 0:H])
        i_gate = jax.nn.sigmoid(z[:, H:2 * H])
        f_gate = jax.nn.sigmoid(z[:, 2 * H:3 * H] + 1.0)
        o_gate = jax.nn.sigmoid(z[:, 3 * H:4 * H])
        c = c * f_gate + i_act * i_gate
        h_lstm = jnp.tanh(c) * o_gate
        offs = 0
        inp = xt
        new_states = []
        for l, hs in enumerate(LAYER_SIZES):
            hl = h_lstm[:, offs:offs + hs]
            offs += hs
            p = params["cfc"][l]
            xx = jnp.concatenate([inp, hl], axis=1)
            ff1 = jnp.tanh(xx @ p["w1"] + p["b1"])
            ff2 = jnp.tanh(xx @ p["w2"] + p["b2"])
            ti = jax.nn.sigmoid((xx @ p["wa"] + p["ba"]) + (xx @ p["wb"] + p["bb"]))
            nh = ff1 * (1.0 - ti) + ti * ff2
            new_states.append(nh)
            inp = nh
        h = jnp.concatenate(new_states, axis=1)
    return h, c


# ----------------------------------- main -------------------------------------
if __name__ == "__main__":
    key = jax.random.PRNGKey(0)
    k_param, k_x, k_dt = jax.random.split(key, 3)

    params = init_params(k_param)
    packed = pack_params(params)
    x = jax.random.normal(k_x, (BATCH, SEQ, N_VARS), jnp.float32)
    dt = jax.random.uniform(k_dt, (BATCH, SEQ, 1), jnp.float32, 0.1, 1.0)

    h, c = encoder_forward(packed, x, dt)
    jax.block_until_ready((h, c))

    h_ref, c_ref = encoder_reference(params, x, dt)
    # bf16 MXU operands (f32 accumulate) on an 8-step recurrence: tolerance
    # widened slightly vs. a pure-f32 kernel; real bugs would be O(1) off.
    np.testing.assert_allclose(np.asarray(h), np.asarray(h_ref), rtol=3e-2, atol=3e-2)
    np.testing.assert_allclose(np.asarray(c), np.asarray(c_ref), rtol=3e-2, atol=3e-2)

    print("KERNEL_OK")
</pallas_src>

<mosaic_0001>
module attributes {stable_mosaic.version = 11 : i64} {
  func.func @kernel(%arg0: i32, %arg1: memref<1x256x2xf32, #tpu.memory_space<vmem>>, %arg2: memref<2x512xf32, #tpu.memory_space<vmem>>, %arg3: memref<1x512xf32, #tpu.memory_space<vmem>>, %arg4: memref<384x128xbf16, #tpu.memory_space<vmem>>, %arg5: memref<32x1152xbf16, #tpu.memory_space<vmem>>, %arg6: memref<128x384xbf16, #tpu.memory_space<vmem>>, %arg7: memref<1x384xf32, #tpu.memory_space<vmem>>, %arg8: memref<128x384xbf16, #tpu.memory_space<vmem>>, %arg9: memref<1x384xf32, #tpu.memory_space<vmem>>, %arg10: memref<32x32xf32, #tpu.memory_space<vmem>>, %arg11: memref<32x32xf32, #tpu.memory_space<vmem>>, %arg12: memref<256x512xf32, #tpu.memory_space<vmem>>) attributes {dimension_semantics = [#tpu.dimension_semantics<parallel>], iteration_bounds = array<i64: 2>, scalar_prefetch = 0 : i64, scratch_operands = 1 : i64, tpu.core_type = #tpu.core_type<tc>, window_params = [{transform_indices = @transform_0, window_bounds = array<i64: 1, 256, 2>}, {pipeline_mode = #tpu.pipeline_mode<synchronous>, transform_indices = @transform_1, window_bounds = array<i64: 2, 512>}, {pipeline_mode = #tpu.pipeline_mode<synchronous>, transform_indices = @transform_2, window_bounds = array<i64: 1, 512>}, {pipeline_mode = #tpu.pipeline_mode<synchronous>, transform_indices = @transform_3, window_bounds = array<i64: 384, 128>}, {pipeline_mode = #tpu.pipeline_mode<synchronous>, transform_indices = @transform_4, window_bounds = array<i64: 32, 1152>}, {pipeline_mode = #tpu.pipeline_mode<synchronous>, transform_indices = @transform_5, window_bounds = array<i64: 128, 384>}, {pipeline_mode = #tpu.pipeline_mode<synchronous>, transform_indices = @transform_6, window_bounds = array<i64: 1, 384>}, {pipeline_mode = #tpu.pipeline_mode<synchronous>, transform_indices = @transform_7, window_bounds = array<i64: 128, 384>}, {pipeline_mode = #tpu.pipeline_mode<synchronous>, transform_indices = @transform_8, window_bounds = array<i64: 1, 384>}, {transform_indices = @transform_9, window_bounds = array<i64: 32, 32>}, {transform_indices = @transform_10, window_bounds = array<i64: 32, 32>}]} {
    %c0 = arith.constant 0 : index
    %c0_0 = arith.constant 0 : index
    %c0_1 = arith.constant 0 : index
    %0 = vector.load %arg1[%c0, %c0_0, %c0_1] : memref<1x256x2xf32, #tpu.memory_space<vmem>>, vector<1x256x2xf32>
    %1 = vector.shape_cast %0 : vector<1x256x2xf32> to vector<256x2xf32>
    %c0_2 = arith.constant 0 : index
    %c0_3 = arith.constant 0 : index
    %2 = vector.load %arg4[%c0_2, %c0_3] : memref<384x128xbf16, #tpu.memory_space<vmem>>, vector<384x128xbf16>
    %c0_4 = arith.constant 0 : index
    %c0_5 = arith.constant 0 : index
    %3 = vector.load %arg5[%c0_4, %c0_5] : memref<32x1152xbf16, #tpu.memory_space<vmem>>, vector<32x1152xbf16>
    %c0_6 = arith.constant 0 : index
    %c0_7 = arith.constant 0 : index
    %4 = vector.load %arg6[%c0_6, %c0_7] : memref<128x384xbf16, #tpu.memory_space<vmem>>, vector<128x384xbf16>
    %c0_8 = arith.constant 0 : index
    %c0_9 = arith.constant 0 : index
    %5 = vector.load %arg8[%c0_8, %c0_9] : memref<128x384xbf16, #tpu.memory_space<vmem>>, vector<128x384xbf16>
    %c0_10 = arith.constant 0 : index
    %c0_11 = arith.constant 0 : index
    %6 = vector.load %arg7[%c0_10, %c0_11] : memref<1x384xf32, #tpu.memory_space<vmem>>, vector<1x384xf32>
    %7 = vector.shape_cast %6 : vector<1x384xf32> to vector<1x384xf32>
    %8 = vector.broadcast %7 : vector<1x384xf32> to vector<32x384xf32>
    %c0_12 = arith.constant 0 : index
    %c0_13 = arith.constant 0 : index
    %9 = vector.load %arg9[%c0_12, %c0_13] : memref<1x384xf32, #tpu.memory_space<vmem>>, vector<1x384xf32>
    %10 = vector.shape_cast %9 : vector<1x384xf32> to vector<1x384xf32>
    %11 = vector.broadcast %10 : vector<1x384xf32> to vector<32x384xf32>
    %c0_14 = arith.constant 0 : index
    %c0_15 = arith.constant 0 : index
    %12 = vector.load %arg2[%c0_14, %c0_15] : memref<2x512xf32, #tpu.memory_space<vmem>>, vector<2x512xf32>
    %cst = arith.constant dense<0.000000e+00> : vector<256x512xf32>
    %13 = tpu.matmul %1, %12, %cst {dimension_numbers = #tpu.dot_dimension_numbers<[1], [0], [0], [1], [0, 0, 1, 1], [], []>} : vector<256x2xf32>, vector<2x512xf32>, vector<256x512xf32> -> vector<256x512xf32>
    %c0_16 = arith.constant 0 : index
    %c0_17 = arith.constant 0 : index
    %14 = vector.load %arg3[%c0_16, %c0_17] : memref<1x512xf32, #tpu.memory_space<vmem>>, vector<1x512xf32>
    %15 = vector.broadcast %14 : vector<1x512xf32> to vector<256x512xf32>
    %16 = arith.addf %13, %15 : vector<256x512xf32>
    %c0_18 = arith.constant 0 : index
    %c0_19 = arith.constant 0 : index
    %17 = vector.load %arg12[%c0_18, %c0_19] : memref<256x512xf32, #tpu.memory_space<vmem>>, vector<256x512xf32>
    tpu.vector_store %arg12[%c0_18, %c0_19], %16 {strides = array<i32>} : memref<256x512xf32, #tpu.memory_space<vmem>>, vector<256x512xf32>,
    %cst_20 = arith.constant 0.000000e+00 : bf16
    %18 = vector.broadcast %cst_20 : bf16 to vector<32x384xbf16>
    %cst_21 = arith.constant 0.000000e+00 : f32
    %19 = vector.broadcast %cst_21 : f32 to vector<32x32xf32>
    %c0_22 = arith.constant 0 : index
    %c0_23 = arith.constant 0 : index
    %20 = vector.load %arg12[%c0_22, %c0_23] : memref<256x512xf32, #tpu.memory_space<vmem>>, vector<32x512xf32>
    %21 = vector.extract_strided_slice %20 {offsets = [0, 0], sizes = [32, 128], strides = [1, 1]} : vector<32x512xf32> to vector<32x128xf32>
    %22 = vector.extract_strided_slice %20 {offsets = [0, 128], sizes = [32, 384], strides = [1, 1]} : vector<32x512xf32> to vector<32x384xf32>
    %cst_24 = arith.constant dense<0.000000e+00> : vector<32x128xf32>
    %23 = tpu.matmul %18, %2, %cst_24 {dimension_numbers = #tpu.dot_dimension_numbers<[1], [0], [0], [1], [0, 0, 1, 1], [], []>} : vector<32x384xbf16>, vector<384x128xbf16>, vector<32x128xf32> -> vector<32x128xf32>
    %24 = arith.addf %21, %23 : vector<32x128xf32>
    %25 = math.tanh %24 : vector<32x128xf32>
    %26 = vector.extract_strided_slice %25 {offsets = [0, 0], sizes = [32, 32], strides = [1, 1]} : vector<32x128xf32> to vector<32x32xf32>
    %27 = vector.extract_strided_slice %25 {offsets = [0, 32], sizes = [32, 96], strides = [1, 1]} : vector<32x128xf32> to vector<32x96xf32>
    %cst_25 = arith.constant 5.000000e-01 : f32
    %28 = vector.broadcast %cst_25 : f32 to vector<32x96xf32>
    %29 = arith.mulf %28, %27 : vector<32x96xf32>
    %cst_26 = arith.constant 5.000000e-01 : f32
    %30 = vector.broadcast %cst_26 : f32 to vector<32x96xf32>
    %31 = arith.addf %30, %29 : vector<32x96xf32>
    %32 = vector.extract_strided_slice %31 {offsets = [0, 0], sizes = [32, 32], strides = [1, 1]} : vector<32x96xf32> to vector<32x32xf32>
    %33 = vector.extract_strided_slice %31 {offsets = [0, 32], sizes = [32, 32], strides = [1, 1]} : vector<32x96xf32> to vector<32x32xf32>
    %34 = vector.extract_strided_slice %31 {offsets = [0, 64], sizes = [32, 32], strides = [1, 1]} : vector<32x96xf32> to vector<32x32xf32>
    %35 = arith.mulf %19, %33 : vector<32x32xf32>
    %36 = arith.mulf %26, %32 : vector<32x32xf32>
    %37 = arith.addf %35, %36 : vector<32x32xf32>
    %38 = math.tanh %37 : vector<32x32xf32>
    %39 = arith.mulf %38, %34 : vector<32x32xf32>
    %40 = arith.truncf %39 : vector<32x32xf32> to vector<32x32xbf16>
    %cst_27 = arith.constant dense<0.000000e+00> : vector<32x1152xf32>
    %41 = tpu.matmul %40, %3, %cst_27 {dimension_numbers = #tpu.dot_dimension_numbers<[1], [0], [0], [1], [0, 0, 1, 1], [], []>} : vector<32x32xbf16>, vector<32x1152xbf16>, vector<32x1152xf32> -> vector<32x1152xf32>
    %42 = vector.extract_strided_slice %41 {offsets = [0, 0], sizes = [32, 384], strides = [1, 1]} : vector<32x1152xf32> to vector<32x384xf32>
    %43 = arith.addf %42, %22 : vector<32x384xf32>
    %44 = math.tanh %43 : vector<32x384xf32>
    %45 = vector.extract_strided_slice %44 {offsets = [0, 0], sizes = [32, 128], strides = [1, 1]} : vector<32x384xf32> to vector<32x128xf32>
    %46 = vector.extract_strided_slice %44 {offsets = [0, 128], sizes = [32, 128], strides = [1, 1]} : vector<32x384xf32> to vector<32x128xf32>
    %47 = vector.extract_strided_slice %44 {offsets = [0, 256], sizes = [32, 128], strides = [1, 1]} : vector<32x384xf32> to vector<32x128xf32>
    %cst_28 = arith.constant 5.000000e-01 : f32
    %48 = vector.broadcast %cst_28 : f32 to vector<32x128xf32>
    %49 = arith.mulf %48, %47 : vector<32x128xf32>
    %cst_29 = arith.constant 5.000000e-01 : f32
    %50 = vector.broadcast %cst_29 : f32 to vector<32x128xf32>
    %51 = arith.addf %50, %49 : vector<32x128xf32>
    %52 = arith.subf %46, %45 : vector<32x128xf32>
    %53 = arith.mulf %51, %52 : vector<32x128xf32>
    %54 = arith.addf %45, %53 : vector<32x128xf32>
    %55 = vector.extract_strided_slice %41 {offsets = [0, 384], sizes = [32, 384], strides = [1, 1]} : vector<32x1152xf32> to vector<32x384xf32>
    %56 = arith.addf %55, %8 : vector<32x384xf32>
    %57 = arith.truncf %54 : vector<32x128xf32> to vector<32x128xbf16>
    %cst_30 = arith.constant dense<0.000000e+00> : vector<32x384xf32>
    %58 = tpu.matmul %57, %4, %cst_30 {dimension_numbers = #tpu.dot_dimension_numbers<[1], [0], [0], [1], [0, 0, 1, 1], [], []>} : vector<32x128xbf16>, vector<128x384xbf16>, vector<32x384xf32> -> vector<32x384xf32>
    %59 = arith.addf %56, %58 : vector<32x384xf32>
    %60 = math.tanh %59 : vector<32x384xf32>
    %61 = vector.extract_strided_slice %60 {offsets = [0, 0], sizes = [32, 128], strides = [1, 1]} : vector<32x384xf32> to vector<32x128xf32>
    %62 = vector.extract_strided_slice %60 {offsets = [0, 128], sizes = [32, 128], strides = [1, 1]} : vector<32x384xf32> to vector<32x128xf32>
    %63 = vector.extract_strided_slice %60 {offsets = [0, 256], sizes = [32, 128], strides = [1, 1]} : vector<32x384xf32> to vector<32x128xf32>
    %cst_31 = arith.constant 5.000000e-01 : f32
    %64 = vector.broadcast %cst_31 : f32 to vector<32x128xf32>
    %65 = arith.mulf %64, %63 : vector<32x128xf32>
    %cst_32 = arith.constant 5.000000e-01 : f32
    %66 = vector.broadcast %cst_32 : f32 to vector<32x128xf32>
    %67 = arith.addf %66, %65 : vector<32x128xf32>
    %68 = arith.subf %62, %61 : vector<32x128xf32>
    %69 = arith.mulf %67, %68 : vector<32x128xf32>
    %70 = arith.addf %61, %69 : vector<32x128xf32>
    %71 = vector.extract_strided_slice %41 {offsets = [0, 768], sizes = [32, 384], strides = [1, 1]} : vector<32x1152xf32> to vector<32x384xf32>
    %72 = arith.addf %71, %11 : vector<32x384xf32>
    %73 = arith.truncf %70 : vector<32x128xf32> to vector<32x128xbf16>
    %cst_33 = arith.constant dense<0.000000e+00> : vector<32x384xf32>
    %74 = tpu.matmul %73, %5, %cst_33 {dimension_numbers = #tpu.dot_dimension_numbers<[1], [0], [0], [1], [0, 0, 1, 1], [], []>} : vector<32x128xbf16>, vector<128x384xbf16>, vector<32x384xf32> -> vector<32x384xf32>
    %75 = arith.addf %72, %74 : vector<32x384xf32>
    %76 = math.tanh %75 : vector<32x384xf32>
    %77 = vector.extract_strided_slice %76 {offsets = [0, 0], sizes = [32, 128], strides = [1, 1]} : vector<32x384xf32> to vector<32x128xf32>
    %78 = vector.extract_strided_slice %76 {offsets = [0, 128], sizes = [32, 128], strides = [1, 1]} : vector<32x384xf32> to vector<32x128xf32>
    %79 = vector.extract_strided_slice %76 {offsets = [0, 256], sizes = [32, 128], strides = [1, 1]} : vector<32x384xf32> to vector<32x128xf32>
    %cst_34 = arith.constant 5.000000e-01 : f32
    %80 = vector.broadcast %cst_34 : f32 to vector<32x128xf32>
    %81 = arith.mulf %80, %79 : vector<32x128xf32>
    %cst_35 = arith.constant 5.000000e-01 : f32
    %82 = vector.broadcast %cst_35 : f32 to vector<32x128xf32>
    %83 = arith.addf %82, %81 : vector<32x128xf32>
    %84 = arith.subf %78, %77 : vector<32x128xf32>
    %85 = arith.mulf %83, %84 : vector<32x128xf32>
    %86 = arith.addf %77, %85 : vector<32x128xf32>
    %87 = tpu.concatenate %54, %70, %86 in 1 : vector<32x128xf32>, vector<32x128xf32>, vector<32x128xf32> -> vector<32x384xf32>
    %88 = arith.truncf %87 : vector<32x384xf32> to vector<32x384xbf16>
    %c32 = arith.constant 32 : index
    %c0_36 = arith.constant 0 : index
    %89 = vector.load %arg12[%c32, %c0_36] : memref<256x512xf32, #tpu.memory_space<vmem>>, vector<32x512xf32>
    %90 = vector.extract_strided_slice %89 {offsets = [0, 0], sizes = [32, 128], strides = [1, 1]} : vector<32x512xf32> to vector<32x128xf32>
    %91 = vector.extract_strided_slice %89 {offsets = [0, 128], sizes = [32, 384], strides = [1, 1]} : vector<32x512xf32> to vector<32x384xf32>
    %cst_37 = arith.constant dense<0.000000e+00> : vector<32x128xf32>
    %92 = tpu.matmul %88, %2, %cst_37 {dimension_numbers = #tpu.dot_dimension_numbers<[1], [0], [0], [1], [0, 0, 1, 1], [], []>} : vector<32x384xbf16>, vector<384x128xbf16>, vector<32x128xf32> -> vector<32x128xf32>
    %93 = arith.addf %90, %92 : vector<32x128xf32>
    %94 = math.tanh %93 : vector<32x128xf32>
    %95 = vector.extract_strided_slice %94 {offsets = [0, 0], sizes = [32, 32], strides = [1, 1]} : vector<32x128xf32> to vector<32x32xf32>
    %96 = vector.extract_strided_slice %94 {offsets = [0, 32], sizes = [32, 96], strides = [1, 1]} : vector<32x128xf32> to vector<32x96xf32>
    %cst_38 = arith.constant 5.000000e-01 : f32
    %97 = vector.broadcast %cst_38 : f32 to vector<32x96xf32>
    %98 = arith.mulf %97, %96 : vector<32x96xf32>
    %cst_39 = arith.constant 5.000000e-01 : f32
    %99 = vector.broadcast %cst_39 : f32 to vector<32x96xf32>
    %100 = arith.addf %99, %98 : vector<32x96xf32>
    %101 = vector.extract_strided_slice %100 {offsets = [0, 0], sizes = [32, 32], strides = [1, 1]} : vector<32x96xf32> to vector<32x32xf32>
    %102 = vector.extract_strided_slice %100 {offsets = [0, 32], sizes = [32, 32], strides = [1, 1]} : vector<32x96xf32> to vector<32x32xf32>
    %103 = vector.extract_strided_slice %100 {offsets = [0, 64], sizes = [32, 32], strides = [1, 1]} : vector<32x96xf32> to vector<32x32xf32>
    %104 = arith.mulf %37, %102 : vector<32x32xf32>
    %105 = arith.mulf %95, %101 : vector<32x32xf32>
    %106 = arith.addf %104, %105 : vector<32x32xf32>
    %107 = math.tanh %106 : vector<32x32xf32>
    %108 = arith.mulf %107, %103 : vector<32x32xf32>
    %109 = arith.truncf %108 : vector<32x32xf32> to vector<32x32xbf16>
    %cst_40 = arith.constant dense<0.000000e+00> : vector<32x1152xf32>
    %110 = tpu.matmul %109, %3, %cst_40 {dimension_numbers = #tpu.dot_dimension_numbers<[1], [0], [0], [1], [0, 0, 1, 1], [], []>} : vector<32x32xbf16>, vector<32x1152xbf16>, vector<32x1152xf32> -> vector<32x1152xf32>
    %111 = vector.extract_strided_slice %110 {offsets = [0, 0], sizes = [32, 384], strides = [1, 1]} : vector<32x1152xf32> to vector<32x384xf32>
    %112 = arith.addf %111, %91 : vector<32x384xf32>
    %113 = math.tanh %112 : vector<32x384xf32>
    %114 = vector.extract_strided_slice %113 {offsets = [0, 0], sizes = [32, 128], strides = [1, 1]} : vector<32x384xf32> to vector<32x128xf32>
    %115 = vector.extract_strided_slice %113 {offsets = [0, 128], sizes = [32, 128], strides = [1, 1]} : vector<32x384xf32> to vector<32x128xf32>
    %116 = vector.extract_strided_slice %113 {offsets = [0, 256], sizes = [32, 128], strides = [1, 1]} : vector<32x384xf32> to vector<32x128xf32>
    %cst_41 = arith.constant 5.000000e-01 : f32
    %117 = vector.broadcast %cst_41 : f32 to vector<32x128xf32>
    %118 = arith.mulf %117, %116 : vector<32x128xf32>
    %cst_42 = arith.constant 5.000000e-01 : f32
    %119 = vector.broadcast %cst_42 : f32 to vector<32x128xf32>
    %120 = arith.addf %119, %118 : vector<32x128xf32>
    %121 = arith.subf %115, %114 : vector<32x128xf32>
    %122 = arith.mulf %120, %121 : vector<32x128xf32>
    %123 = arith.addf %114, %122 : vector<32x128xf32>
    %124 = vector.extract_strided_slice %110 {offsets = [0, 384], sizes = [32, 384], strides = [1, 1]} : vector<32x1152xf32> to vector<32x384xf32>
    %125 = arith.addf %124, %8 : vector<32x384xf32>
    %126 = arith.truncf %123 : vector<32x128xf32> to vector<32x128xbf16>
    %cst_43 = arith.constant dense<0.000000e+00> : vector<32x384xf32>
    %127 = tpu.matmul %126, %4, %cst_43 {dimension_numbers = #tpu.dot_dimension_numbers<[1], [0], [0], [1], [0, 0, 1, 1], [], []>} : vector<32x128xbf16>, vector<128x384xbf16>, vector<32x384xf32> -> vector<32x384xf32>
    %128 = arith.addf %125, %127 : vector<32x384xf32>
    %129 = math.tanh %128 : vector<32x384xf32>
    %130 = vector.extract_strided_slice %129 {offsets = [0, 0], sizes = [32, 128], strides = [1, 1]} : vector<32x384xf32> to vector<32x128xf32>
    %131 = vector.extract_strided_slice %129 {offsets = [0, 128], sizes = [32, 128], strides = [1, 1]} : vector<32x384xf32> to vector<32x128xf32>
    %132 = vector.extract_strided_slice %129 {offsets = [0, 256], sizes = [32, 128], strides = [1, 1]} : vector<32x384xf32> to vector<32x128xf32>
    %cst_44 = arith.constant 5.000000e-01 : f32
    %133 = vector.broadcast %cst_44 : f32 to vector<32x128xf32>
    %134 = arith.mulf %133, %132 : vector<32x128xf32>
    %cst_45 = arith.constant 5.000000e-01 : f32
    %135 = vector.broadcast %cst_45 : f32 to vector<32x128xf32>
    %136 = arith.addf %135, %134 : vector<32x128xf32>
    %137 = arith.subf %131, %130 : vector<32x128xf32>
    %138 = arith.mulf %136, %137 : vector<32x128xf32>
    %139 = arith.addf %130, %138 : vector<32x128xf32>
    %140 = vector.extract_strided_slice %110 {offsets = [0, 768], sizes = [32, 384], strides = [1, 1]} : vector<32x1152xf32> to vector<32x384xf32>
    %141 = arith.addf %140, %11 : vector<32x384xf32>
    %142 = arith.truncf %139 : vector<32x128xf32> to vector<32x128xbf16>
    %cst_46 = arith.constant dense<0.000000e+00> : vector<32x384xf32>
    %143 = tpu.matmul %142, %5, %cst_46 {dimension_numbers = #tpu.dot_dimension_numbers<[1], [0], [0], [1], [0, 0, 1, 1], [], []>} : vector<32x128xbf16>, vector<128x384xbf16>, vector<32x384xf32> -> vector<32x384xf32>
    %144 = arith.addf %141, %143 : vector<32x384xf32>
    %145 = math.tanh %144 : vector<32x384xf32>
    %146 = vector.extract_strided_slice %145 {offsets = [0, 0], sizes = [32, 128], strides = [1, 1]} : vector<32x384xf32> to vector<32x128xf32>
    %147 = vector.extract_strided_slice %145 {offsets = [0, 128], sizes = [32, 128], strides = [1, 1]} : vector<32x384xf32> to vector<32x128xf32>
    %148 = vector.extract_strided_slice %145 {offsets = [0, 256], sizes = [32, 128], strides = [1, 1]} : vector<32x384xf32> to vector<32x128xf32>
    %cst_47 = arith.constant 5.000000e-01 : f32
    %149 = vector.broadcast %cst_47 : f32 to vector<32x128xf32>
    %150 = arith.mulf %149, %148 : vector<32x128xf32>
    %cst_48 = arith.constant 5.000000e-01 : f32
    %151 = vector.broadcast %cst_48 : f32 to vector<32x128xf32>
    %152 = arith.addf %151, %150 : vector<32x128xf32>
    %153 = arith.subf %147, %146 : vector<32x128xf32>
    %154 = arith.mulf %152, %153 : vector<32x128xf32>
    %155 = arith.addf %146, %154 : vector<32x128xf32>
    %156 = tpu.concatenate %123, %139, %155 in 1 : vector<32x128xf32>, vector<32x128xf32>, vector<32x128xf32> -> vector<32x384xf32>
    %157 = arith.truncf %156 : vector<32x384xf32> to vector<32x384xbf16>
    %c64 = arith.constant 64 : index
    %c0_49 = arith.constant 0 : index
    %158 = vector.load %arg12[%c64, %c0_49] : memref<256x512xf32, #tpu.memory_space<vmem>>, vector<32x512xf32>
    %159 = vector.extract_strided_slice %158 {offsets = [0, 0], sizes = [32, 128], strides = [1, 1]} : vector<32x512xf32> to vector<32x128xf32>
    %160 = vector.extract_strided_slice %158 {offsets = [0, 128], sizes = [32, 384], strides = [1, 1]} : vector<32x512xf32> to vector<32x384xf32>
    %cst_50 = arith.constant dense<0.000000e+00> : vector<32x128xf32>
    %161 = tpu.matmul %157, %2, %cst_50 {dimension_numbers = #tpu.dot_dimension_numbers<[1], [0], [0], [1], [0, 0, 1, 1], [], []>} : vector<32x384xbf16>, vector<384x128xbf16>, vector<32x128xf32> -> vector<32x128xf32>
    %162 = arith.addf %159, %161 : vector<32x128xf32>
    %163 = math.tanh %162 : vector<32x128xf32>
    %164 = vector.extract_strided_slice %163 {offsets = [0, 0], sizes = [32, 32], strides = [1, 1]} : vector<32x128xf32> to vector<32x32xf32>
    %165 = vector.extract_strided_slice %163 {offsets = [0, 32], sizes = [32, 96], strides = [1, 1]} : vector<32x128xf32> to vector<32x96xf32>
    %cst_51 = arith.constant 5.000000e-01 : f32
    %166 = vector.broadcast %cst_51 : f32 to vector<32x96xf32>
    %167 = arith.mulf %166, %165 : vector<32x96xf32>
    %cst_52 = arith.constant 5.000000e-01 : f32
    %168 = vector.broadcast %cst_52 : f32 to vector<32x96xf32>
    %169 = arith.addf %168, %167 : vector<32x96xf32>
    %170 = vector.extract_strided_slice %169 {offsets = [0, 0], sizes = [32, 32], strides = [1, 1]} : vector<32x96xf32> to vector<32x32xf32>
    %171 = vector.extract_strided_slice %169 {offsets = [0, 32], sizes = [32, 32], strides = [1, 1]} : vector<32x96xf32> to vector<32x32xf32>
    %172 = vector.extract_strided_slice %169 {offsets = [0, 64], sizes = [32, 32], strides = [1, 1]} : vector<32x96xf32> to vector<32x32xf32>
    %173 = arith.mulf %106, %171 : vector<32x32xf32>
    %174 = arith.mulf %164, %170 : vector<32x32xf32>
    %175 = arith.addf %173, %174 : vector<32x32xf32>
    %176 = math.tanh %175 : vector<32x32xf32>
    %177 = arith.mulf %176, %172 : vector<32x32xf32>
    %178 = arith.truncf %177 : vector<32x32xf32> to vector<32x32xbf16>
    %cst_53 = arith.constant dense<0.000000e+00> : vector<32x1152xf32>
    %179 = tpu.matmul %178, %3, %cst_53 {dimension_numbers = #tpu.dot_dimension_numbers<[1], [0], [0], [1], [0, 0, 1, 1], [], []>} : vector<32x32xbf16>, vector<32x1152xbf16>, vector<32x1152xf32> -> vector<32x1152xf32>
    %180 = vector.extract_strided_slice %179 {offsets = [0, 0], sizes = [32, 384], strides = [1, 1]} : vector<32x1152xf32> to vector<32x384xf32>
    %181 = arith.addf %180, %160 : vector<32x384xf32>
    %182 = math.tanh %181 : vector<32x384xf32>
    %183 = vector.extract_strided_slice %182 {offsets = [0, 0], sizes = [32, 128], strides = [1, 1]} : vector<32x384xf32> to vector<32x128xf32>
    %184 = vector.extract_strided_slice %182 {offsets = [0, 128], sizes = [32, 128], strides = [1, 1]} : vector<32x384xf32> to vector<32x128xf32>
    %185 = vector.extract_strided_slice %182 {offsets = [0, 256], sizes = [32, 128], strides = [1, 1]} : vector<32x384xf32> to vector<32x128xf32>
    %cst_54 = arith.constant 5.000000e-01 : f32
    %186 = vector.broadcast %cst_54 : f32 to vector<32x128xf32>
    %187 = arith.mulf %186, %185 : vector<32x128xf32>
    %cst_55 = arith.constant 5.000000e-01 : f32
    %188 = vector.broadcast %cst_55 : f32 to vector<32x128xf32>
    %189 = arith.addf %188, %187 : vector<32x128xf32>
    %190 = arith.subf %184, %183 : vector<32x128xf32>
    %191 = arith.mulf %189, %190 : vector<32x128xf32>
    %192 = arith.addf %183, %191 : vector<32x128xf32>
    %193 = vector.extract_strided_slice %179 {offsets = [0, 384], sizes = [32, 384], strides = [1, 1]} : vector<32x1152xf32> to vector<32x384xf32>
    %194 = arith.addf %193, %8 : vector<32x384xf32>
    %195 = arith.truncf %192 : vector<32x128xf32> to vector<32x128xbf16>
    %cst_56 = arith.constant dense<0.000000e+00> : vector<32x384xf32>
    %196 = tpu.matmul %195, %4, %cst_56 {dimension_numbers = #tpu.dot_dimension_numbers<[1], [0], [0], [1], [0, 0, 1, 1], [], []>} : vector<32x128xbf16>, vector<128x384xbf16>, vector<32x384xf32> -> vector<32x384xf32>
    %197 = arith.addf %194, %196 : vector<32x384xf32>
    %198 = math.tanh %197 : vector<32x384xf32>
    %199 = vector.extract_strided_slice %198 {offsets = [0, 0], sizes = [32, 128], strides = [1, 1]} : vector<32x384xf32> to vector<32x128xf32>
    %200 = vector.extract_strided_slice %198 {offsets = [0, 128], sizes = [32, 128], strides = [1, 1]} : vector<32x384xf32> to vector<32x128xf32>
    %201 = vector.extract_strided_slice %198 {offsets = [0, 256], sizes = [32, 128], strides = [1, 1]} : vector<32x384xf32> to vector<32x128xf32>
    %cst_57 = arith.constant 5.000000e-01 : f32
    %202 = vector.broadcast %cst_57 : f32 to vector<32x128xf32>
    %203 = arith.mulf %202, %201 : vector<32x128xf32>
    %cst_58 = arith.constant 5.000000e-01 : f32
    %204 = vector.broadcast %cst_58 : f32 to vector<32x128xf32>
    %205 = arith.addf %204, %203 : vector<32x128xf32>
    %206 = arith.subf %200, %199 : vector<32x128xf32>
    %207 = arith.mulf %205, %206 : vector<32x128xf32>
    %208 = arith.addf %199, %207 : vector<32x128xf32>
    %209 = vector.extract_strided_slice %179 {offsets = [0, 768], sizes = [32, 384], strides = [1, 1]} : vector<32x1152xf32> to vector<32x384xf32>
    %210 = arith.addf %209, %11 : vector<32x384xf32>
    %211 = arith.truncf %208 : vector<32x128xf32> to vector<32x128xbf16>
    %cst_59 = arith.constant dense<0.000000e+00> : vector<32x384xf32>
    %212 = tpu.matmul %211, %5, %cst_59 {dimension_numbers = #tpu.dot_dimension_numbers<[1], [0], [0], [1], [0, 0, 1, 1], [], []>} : vector<32x128xbf16>, vector<128x384xbf16>, vector<32x384xf32> -> vector<32x384xf32>
    %213 = arith.addf %210, %212 : vector<32x384xf32>
    %214 = math.tanh %213 : vector<32x384xf32>
    %215 = vector.extract_strided_slice %214 {offsets = [0, 0], sizes = [32, 128], strides = [1, 1]} : vector<32x384xf32> to vector<32x128xf32>
    %216 = vector.extract_strided_slice %214 {offsets = [0, 128], sizes = [32, 128], strides = [1, 1]} : vector<32x384xf32> to vector<32x128xf32>
    %217 = vector.extract_strided_slice %214 {offsets = [0, 256], sizes = [32, 128], strides = [1, 1]} : vector<32x384xf32> to vector<32x128xf32>
    %cst_60 = arith.constant 5.000000e-01 : f32
    %218 = vector.broadcast %cst_60 : f32 to vector<32x128xf32>
    %219 = arith.mulf %218, %217 : vector<32x128xf32>
    %cst_61 = arith.constant 5.000000e-01 : f32
    %220 = vector.broadcast %cst_61 : f32 to vector<32x128xf32>
    %221 = arith.addf %220, %219 : vector<32x128xf32>
    %222 = arith.subf %216, %215 : vector<32x128xf32>
    %223 = arith.mulf %221, %222 : vector<32x128xf32>
    %224 = arith.addf %215, %223 : vector<32x128xf32>
    %225 = tpu.concatenate %192, %208, %224 in 1 : vector<32x128xf32>, vector<32x128xf32>, vector<32x128xf32> -> vector<32x384xf32>
    %226 = arith.truncf %225 : vector<32x384xf32> to vector<32x384xbf16>
    %c96 = arith.constant 96 : index
    %c0_62 = arith.constant 0 : index
    %227 = vector.load %arg12[%c96, %c0_62] : memref<256x512xf32, #tpu.memory_space<vmem>>, vector<32x512xf32>
    %228 = vector.extract_strided_slice %227 {offsets = [0, 0], sizes = [32, 128], strides = [1, 1]} : vector<32x512xf32> to vector<32x128xf32>
    %229 = vector.extract_strided_slice %227 {offsets = [0, 128], sizes = [32, 384], strides = [1, 1]} : vector<32x512xf32> to vector<32x384xf32>
    %cst_63 = arith.constant dense<0.000000e+00> : vector<32x128xf32>
    %230 = tpu.matmul %226, %2, %cst_63 {dimension_numbers = #tpu.dot_dimension_numbers<[1], [0], [0], [1], [0, 0, 1, 1], [], []>} : vector<32x384xbf16>, vector<384x128xbf16>, vector<32x128xf32> -> vector<32x128xf32>
    %231 = arith.addf %228, %230 : vector<32x128xf32>
    %232 = math.tanh %231 : vector<32x128xf32>
    %233 = vector.extract_strided_slice %232 {offsets = [0, 0], sizes = [32, 32], strides = [1, 1]} : vector<32x128xf32> to vector<32x32xf32>
    %234 = vector.extract_strided_slice %232 {offsets = [0, 32], sizes = [32, 96], strides = [1, 1]} : vector<32x128xf32> to vector<32x96xf32>
    %cst_64 = arith.constant 5.000000e-01 : f32
    %235 = vector.broadcast %cst_64 : f32 to vector<32x96xf32>
    %236 = arith.mulf %235, %234 : vector<32x96xf32>
    %cst_65 = arith.constant 5.000000e-01 : f32
    %237 = vector.broadcast %cst_65 : f32 to vector<32x96xf32>
    %238 = arith.addf %237, %236 : vector<32x96xf32>
    %239 = vector.extract_strided_slice %238 {offsets = [0, 0], sizes = [32, 32], strides = [1, 1]} : vector<32x96xf32> to vector<32x32xf32>
    %240 = vector.extract_strided_slice %238 {offsets = [0, 32], sizes = [32, 32], strides = [1, 1]} : vector<32x96xf32> to vector<32x32xf32>
    %241 = vector.extract_strided_slice %238 {offsets = [0, 64], sizes = [32, 32], strides = [1, 1]} : vector<32x96xf32> to vector<32x32xf32>
    %242 = arith.mulf %175, %240 : vector<32x32xf32>
    %243 = arith.mulf %233, %239 : vector<32x32xf32>
    %244 = arith.addf %242, %243 : vector<32x32xf32>
    %245 = math.tanh %244 : vector<32x32xf32>
    %246 = arith.mulf %245, %241 : vector<32x32xf32>
    %247 = arith.truncf %246 : vector<32x32xf32> to vector<32x32xbf16>
    %cst_66 = arith.constant dense<0.000000e+00> : vector<32x1152xf32>
    %248 = tpu.matmul %247, %3, %cst_66 {dimension_numbers = #tpu.dot_dimension_numbers<[1], [0], [0], [1], [0, 0, 1, 1], [], []>} : vector<32x32xbf16>, vector<32x1152xbf16>, vector<32x1152xf32> -> vector<32x1152xf32>
    %249 = vector.extract_strided_slice %248 {offsets = [0, 0], sizes = [32, 384], strides = [1, 1]} : vector<32x1152xf32> to vector<32x384xf32>
    %250 = arith.addf %249, %229 : vector<32x384xf32>
    %251 = math.tanh %250 : vector<32x384xf32>
    %252 = vector.extract_strided_slice %251 {offsets = [0, 0], sizes = [32, 128], strides = [1, 1]} : vector<32x384xf32> to vector<32x128xf32>
    %253 = vector.extract_strided_slice %251 {offsets = [0, 128], sizes = [32, 128], strides = [1, 1]} : vector<32x384xf32> to vector<32x128xf32>
    %254 = vector.extract_strided_slice %251 {offsets = [0, 256], sizes = [32, 128], strides = [1, 1]} : vector<32x384xf32> to vector<32x128xf32>
    %cst_67 = arith.constant 5.000000e-01 : f32
    %255 = vector.broadcast %cst_67 : f32 to vector<32x128xf32>
    %256 = arith.mulf %255, %254 : vector<32x128xf32>
    %cst_68 = arith.constant 5.000000e-01 : f32
    %257 = vector.broadcast %cst_68 : f32 to vector<32x128xf32>
    %258 = arith.addf %257, %256 : vector<32x128xf32>
    %259 = arith.subf %253, %252 : vector<32x128xf32>
    %260 = arith.mulf %258, %259 : vector<32x128xf32>
    %261 = arith.addf %252, %260 : vector<32x128xf32>
    %262 = vector.extract_strided_slice %248 {offsets = [0, 384], sizes = [32, 384], strides = [1, 1]} : vector<32x1152xf32> to vector<32x384xf32>
    %263 = arith.addf %262, %8 : vector<32x384xf32>
    %264 = arith.truncf %261 : vector<32x128xf32> to vector<32x128xbf16>
    %cst_69 = arith.constant dense<0.000000e+00> : vector<32x384xf32>
    %265 = tpu.matmul %264, %4, %cst_69 {dimension_numbers = #tpu.dot_dimension_numbers<[1], [0], [0], [1], [0, 0, 1, 1], [], []>} : vector<32x128xbf16>, vector<128x384xbf16>, vector<32x384xf32> -> vector<32x384xf32>
    %266 = arith.addf %263, %265 : vector<32x384xf32>
    %267 = math.tanh %266 : vector<32x384xf32>
    %268 = vector.extract_strided_slice %267 {offsets = [0, 0], sizes = [32, 128], strides = [1, 1]} : vector<32x384xf32> to vector<32x128xf32>
    %269 = vector.extract_strided_slice %267 {offsets = [0, 128], sizes = [32, 128], strides = [1, 1]} : vector<32x384xf32> to vector<32x128xf32>
    %270 = vector.extract_strided_slice %267 {offsets = [0, 256], sizes = [32, 128], strides = [1, 1]} : vector<32x384xf32> to vector<32x128xf32>
    %cst_70 = arith.constant 5.000000e-01 : f32
    %271 = vector.broadcast %cst_70 : f32 to vector<32x128xf32>
    %272 = arith.mulf %271, %270 : vector<32x128xf32>
    %cst_71 = arith.constant 5.000000e-01 : f32
    %273 = vector.broadcast %cst_71 : f32 to vector<32x128xf32>
    %274 = arith.addf %273, %272 : vector<32x128xf32>
    %275 = arith.subf %269, %268 : vector<32x128xf32>
    %276 = arith.mulf %274, %275 : vector<32x128xf32>
    %277 = arith.addf %268, %276 : vector<32x128xf32>
    %278 = vector.extract_strided_slice %248 {offsets = [0, 768], sizes = [32, 384], strides = [1, 1]} : vector<32x1152xf32> to vector<32x384xf32>
    %279 = arith.addf %278, %11 : vector<32x384xf32>
    %280 = arith.truncf %277 : vector<32x128xf32> to vector<32x128xbf16>
    %cst_72 = arith.constant dense<0.000000e+00> : vector<32x384xf32>
    %281 = tpu.matmul %280, %5, %cst_72 {dimension_numbers = #tpu.dot_dimension_numbers<[1], [0], [0], [1], [0, 0, 1, 1], [], []>} : vector<32x128xbf16>, vector<128x384xbf16>, vector<32x384xf32> -> vector<32x384xf32>
    %282 = arith.addf %279, %281 : vector<32x384xf32>
    %283 = math.tanh %282 : vector<32x384xf32>
    %284 = vector.extract_strided_slice %283 {offsets = [0, 0], sizes = [32, 128], strides = [1, 1]} : vector<32x384xf32> to vector<32x128xf32>
    %285 = vector.extract_strided_slice %283 {offsets = [0, 128], sizes = [32, 128], strides = [1, 1]} : vector<32x384xf32> to vector<32x128xf32>
    %286 = vector.extract_strided_slice %283 {offsets = [0, 256], sizes = [32, 128], strides = [1, 1]} : vector<32x384xf32> to vector<32x128xf32>
    %cst_73 = arith.constant 5.000000e-01 : f32
    %287 = vector.broadcast %cst_73 : f32 to vector<32x128xf32>
    %288 = arith.mulf %287, %286 : vector<32x128xf32>
    %cst_74 = arith.constant 5.000000e-01 : f32
    %289 = vector.broadcast %cst_74 : f32 to vector<32x128xf32>
    %290 = arith.addf %289, %288 : vector<32x128xf32>
    %291 = arith.subf %285, %284 : vector<32x128xf32>
    %292 = arith.mulf %290, %291 : vector<32x128xf32>
    %293 = arith.addf %284, %292 : vector<32x128xf32>
    %294 = tpu.concatenate %261, %277, %293 in 1 : vector<32x128xf32>, vector<32x128xf32>, vector<32x128xf32> -> vector<32x384xf32>
    %295 = arith.truncf %294 : vector<32x384xf32> to vector<32x384xbf16>
    %c128 = arith.constant 128 : index
    %c0_75 = arith.constant 0 : index
    %296 = vector.load %arg12[%c128, %c0_75] : memref<256x512xf32, #tpu.memory_space<vmem>>, vector<32x512xf32>
    %297 = vector.extract_strided_slice %296 {offsets = [0, 0], sizes = [32, 128], strides = [1, 1]} : vector<32x512xf32> to vector<32x128xf32>
    %298 = vector.extract_strided_slice %296 {offsets = [0, 128], sizes = [32, 384], strides = [1, 1]} : vector<32x512xf32> to vector<32x384xf32>
    %cst_76 = arith.constant dense<0.000000e+00> : vector<32x128xf32>
    %299 = tpu.matmul %295, %2, %cst_76 {dimension_numbers = #tpu.dot_dimension_numbers<[1], [0], [0], [1], [0, 0, 1, 1], [], []>} : vector<32x384xbf16>, vector<384x128xbf16>, vector<32x128xf32> -> vector<32x128xf32>
    %300 = arith.addf %297, %299 : vector<32x128xf32>
    %301 = math.tanh %300 : vector<32x128xf32>
    %302 = vector.extract_strided_slice %301 {offsets = [0, 0], sizes = [32, 32], strides = [1, 1]} : vector<32x128xf32> to vector<32x32xf32>
    %303 = vector.extract_strided_slice %301 {offsets = [0, 32], sizes = [32, 96], strides = [1, 1]} : vector<32x128xf32> to vector<32x96xf32>
    %cst_77 = arith.constant 5.000000e-01 : f32
    %304 = vector.broadcast %cst_77 : f32 to vector<32x96xf32>
    %305 = arith.mulf %304, %303 : vector<32x96xf32>
    %cst_78 = arith.constant 5.000000e-01 : f32
    %306 = vector.broadcast %cst_78 : f32 to vector<32x96xf32>
    %307 = arith.addf %306, %305 : vector<32x96xf32>
    %308 = vector.extract_strided_slice %307 {offsets = [0, 0], sizes = [32, 32], strides = [1, 1]} : vector<32x96xf32> to vector<32x32xf32>
    %309 = vector.extract_strided_slice %307 {offsets = [0, 32], sizes = [32, 32], strides = [1, 1]} : vector<32x96xf32> to vector<32x32xf32>
    %310 = vector.extract_strided_slice %307 {offsets = [0, 64], sizes = [32, 32], strides = [1, 1]} : vector<32x96xf32> to vector<32x32xf32>
    %311 = arith.mulf %244, %309 : vector<32x32xf32>
    %312 = arith.mulf %302, %308 : vector<32x32xf32>
    %313 = arith.addf %311, %312 : vector<32x32xf32>
    %314 = math.tanh %313 : vector<32x32xf32>
    %315 = arith.mulf %314, %310 : vector<32x32xf32>
    %316 = arith.truncf %315 : vector<32x32xf32> to vector<32x32xbf16>
    %cst_79 = arith.constant dense<0.000000e+00> : vector<32x1152xf32>
    %317 = tpu.matmul %316, %3, %cst_79 {dimension_numbers = #tpu.dot_dimension_numbers<[1], [0], [0], [1], [0, 0, 1, 1], [], []>} : vector<32x32xbf16>, vector<32x1152xbf16>, vector<32x1152xf32> -> vector<32x1152xf32>
    %318 = vector.extract_strided_slice %317 {offsets = [0, 0], sizes = [32, 384], strides = [1, 1]} : vector<32x1152xf32> to vector<32x384xf32>
    %319 = arith.addf %318, %298 : vector<32x384xf32>
    %320 = math.tanh %319 : vector<32x384xf32>
    %321 = vector.extract_strided_slice %320 {offsets = [0, 0], sizes = [32, 128], strides = [1, 1]} : vector<32x384xf32> to vector<32x128xf32>
    %322 = vector.extract_strided_slice %320 {offsets = [0, 128], sizes = [32, 128], strides = [1, 1]} : vector<32x384xf32> to vector<32x128xf32>
    %323 = vector.extract_strided_slice %320 {offsets = [0, 256], sizes = [32, 128], strides = [1, 1]} : vector<32x384xf32> to vector<32x128xf32>
    %cst_80 = arith.constant 5.000000e-01 : f32
    %324 = vector.broadcast %cst_80 : f32 to vector<32x128xf32>
    %325 = arith.mulf %324, %323 : vector<32x128xf32>
    %cst_81 = arith.constant 5.000000e-01 : f32
    %326 = vector.broadcast %cst_81 : f32 to vector<32x128xf32>
    %327 = arith.addf %326, %325 : vector<32x128xf32>
    %328 = arith.subf %322, %321 : vector<32x128xf32>
    %329 = arith.mulf %327, %328 : vector<32x128xf32>
    %330 = arith.addf %321, %329 : vector<32x128xf32>
    %331 = vector.extract_strided_slice %317 {offsets = [0, 384], sizes = [32, 384], strides = [1, 1]} : vector<32x1152xf32> to vector<32x384xf32>
    %332 = arith.addf %331, %8 : vector<32x384xf32>
    %333 = arith.truncf %330 : vector<32x128xf32> to vector<32x128xbf16>
    %cst_82 = arith.constant dense<0.000000e+00> : vector<32x384xf32>
    %334 = tpu.matmul %333, %4, %cst_82 {dimension_numbers = #tpu.dot_dimension_numbers<[1], [0], [0], [1], [0, 0, 1, 1], [], []>} : vector<32x128xbf16>, vector<128x384xbf16>, vector<32x384xf32> -> vector<32x384xf32>
    %335 = arith.addf %332, %334 : vector<32x384xf32>
    %336 = math.tanh %335 : vector<32x384xf32>
    %337 = vector.extract_strided_slice %336 {offsets = [0, 0], sizes = [32, 128], strides = [1, 1]} : vector<32x384xf32> to vector<32x128xf32>
    %338 = vector.extract_strided_slice %336 {offsets = [0, 128], sizes = [32, 128], strides = [1, 1]} : vector<32x384xf32> to vector<32x128xf32>
    %339 = vector.extract_strided_slice %336 {offsets = [0, 256], sizes = [32, 128], strides = [1, 1]} : vector<32x384xf32> to vector<32x128xf32>
    %cst_83 = arith.constant 5.000000e-01 : f32
    %340 = vector.broadcast %cst_83 : f32 to vector<32x128xf32>
    %341 = arith.mulf %340, %339 : vector<32x128xf32>
    %cst_84 = arith.constant 5.000000e-01 : f32
    %342 = vector.broadcast %cst_84 : f32 to vector<32x128xf32>
    %343 = arith.addf %342, %341 : vector<32x128xf32>
    %344 = arith.subf %338, %337 : vector<32x128xf32>
    %345 = arith.mulf %343, %344 : vector<32x128xf32>
    %346 = arith.addf %337, %345 : vector<32x128xf32>
    %347 = vector.extract_strided_slice %317 {offsets = [0, 768], sizes = [32, 384], strides = [1, 1]} : vector<32x1152xf32> to vector<32x384xf32>
    %348 = arith.addf %347, %11 : vector<32x384xf32>
    %349 = arith.truncf %346 : vector<32x128xf32> to vector<32x128xbf16>
    %cst_85 = arith.constant dense<0.000000e+00> : vector<32x384xf32>
    %350 = tpu.matmul %349, %5, %cst_85 {dimension_numbers = #tpu.dot_dimension_numbers<[1], [0], [0], [1], [0, 0, 1, 1], [], []>} : vector<32x128xbf16>, vector<128x384xbf16>, vector<32x384xf32> -> vector<32x384xf32>
    %351 = arith.addf %348, %350 : vector<32x384xf32>
    %352 = math.tanh %351 : vector<32x384xf32>
    %353 = vector.extract_strided_slice %352 {offsets = [0, 0], sizes = [32, 128], strides = [1, 1]} : vector<32x384xf32> to vector<32x128xf32>
    %354 = vector.extract_strided_slice %352 {offsets = [0, 128], sizes = [32, 128], strides = [1, 1]} : vector<32x384xf32> to vector<32x128xf32>
    %355 = vector.extract_strided_slice %352 {offsets = [0, 256], sizes = [32, 128], strides = [1, 1]} : vector<32x384xf32> to vector<32x128xf32>
    %cst_86 = arith.constant 5.000000e-01 : f32
    %356 = vector.broadcast %cst_86 : f32 to vector<32x128xf32>
    %357 = arith.mulf %356, %355 : vector<32x128xf32>
    %cst_87 = arith.constant 5.000000e-01 : f32
    %358 = vector.broadcast %cst_87 : f32 to vector<32x128xf32>
    %359 = arith.addf %358, %357 : vector<32x128xf32>
    %360 = arith.subf %354, %353 : vector<32x128xf32>
    %361 = arith.mulf %359, %360 : vector<32x128xf32>
    %362 = arith.addf %353, %361 : vector<32x128xf32>
    %363 = tpu.concatenate %330, %346, %362 in 1 : vector<32x128xf32>, vector<32x128xf32>, vector<32x128xf32> -> vector<32x384xf32>
    %364 = arith.truncf %363 : vector<32x384xf32> to vector<32x384xbf16>
    %c160 = arith.constant 160 : index
    %c0_88 = arith.constant 0 : index
    %365 = vector.load %arg12[%c160, %c0_88] : memref<256x512xf32, #tpu.memory_space<vmem>>, vector<32x512xf32>
    %366 = vector.extract_strided_slice %365 {offsets = [0, 0], sizes = [32, 128], strides = [1, 1]} : vector<32x512xf32> to vector<32x128xf32>
    %367 = vector.extract_strided_slice %365 {offsets = [0, 128], sizes = [32, 384], strides = [1, 1]} : vector<32x512xf32> to vector<32x384xf32>
    %cst_89 = arith.constant dense<0.000000e+00> : vector<32x128xf32>
    %368 = tpu.matmul %364, %2, %cst_89 {dimension_numbers = #tpu.dot_dimension_numbers<[1], [0], [0], [1], [0, 0, 1, 1], [], []>} : vector<32x384xbf16>, vector<384x128xbf16>, vector<32x128xf32> -> vector<32x128xf32>
    %369 = arith.addf %366, %368 : vector<32x128xf32>
    %370 = math.tanh %369 : vector<32x128xf32>
    %371 = vector.extract_strided_slice %370 {offsets = [0, 0], sizes = [32, 32], strides = [1, 1]} : vector<32x128xf32> to vector<32x32xf32>
    %372 = vector.extract_strided_slice %370 {offsets = [0, 32], sizes = [32, 96], strides = [1, 1]} : vector<32x128xf32> to vector<32x96xf32>
    %cst_90 = arith.constant 5.000000e-01 : f32
    %373 = vector.broadcast %cst_90 : f32 to vector<32x96xf32>
    %374 = arith.mulf %373, %372 : vector<32x96xf32>
    %cst_91 = arith.constant 5.000000e-01 : f32
    %375 = vector.broadcast %cst_91 : f32 to vector<32x96xf32>
    %376 = arith.addf %375, %374 : vector<32x96xf32>
    %377 = vector.extract_strided_slice %376 {offsets = [0, 0], sizes = [32, 32], strides = [1, 1]} : vector<32x96xf32> to vector<32x32xf32>
    %378 = vector.extract_strided_slice %376 {offsets = [0, 32], sizes = [32, 32], strides = [1, 1]} : vector<32x96xf32> to vector<32x32xf32>
    %379 = vector.extract_strided_slice %376 {offsets = [0, 64], sizes = [32, 32], strides = [1, 1]} : vector<32x96xf32> to vector<32x32xf32>
    %380 = arith.mulf %313, %378 : vector<32x32xf32>
    %381 = arith.mulf %371, %377 : vector<32x32xf32>
    %382 = arith.addf %380, %381 : vector<32x32xf32>
    %383 = math.tanh %382 : vector<32x32xf32>
    %384 = arith.mulf %383, %379 : vector<32x32xf32>
    %385 = arith.truncf %384 : vector<32x32xf32> to vector<32x32xbf16>
    %cst_92 = arith.constant dense<0.000000e+00> : vector<32x1152xf32>
    %386 = tpu.matmul %385, %3, %cst_92 {dimension_numbers = #tpu.dot_dimension_numbers<[1], [0], [0], [1], [0, 0, 1, 1], [], []>} : vector<32x32xbf16>, vector<32x1152xbf16>, vector<32x1152xf32> -> vector<32x1152xf32>
    %387 = vector.extract_strided_slice %386 {offsets = [0, 0], sizes = [32, 384], strides = [1, 1]} : vector<32x1152xf32> to vector<32x384xf32>
    %388 = arith.addf %387, %367 : vector<32x384xf32>
    %389 = math.tanh %388 : vector<32x384xf32>
    %390 = vector.extract_strided_slice %389 {offsets = [0, 0], sizes = [32, 128], strides = [1, 1]} : vector<32x384xf32> to vector<32x128xf32>
    %391 = vector.extract_strided_slice %389 {offsets = [0, 128], sizes = [32, 128], strides = [1, 1]} : vector<32x384xf32> to vector<32x128xf32>
    %392 = vector.extract_strided_slice %389 {offsets = [0, 256], sizes = [32, 128], strides = [1, 1]} : vector<32x384xf32> to vector<32x128xf32>
    %cst_93 = arith.constant 5.000000e-01 : f32
    %393 = vector.broadcast %cst_93 : f32 to vector<32x128xf32>
    %394 = arith.mulf %393, %392 : vector<32x128xf32>
    %cst_94 = arith.constant 5.000000e-01 : f32
    %395 = vector.broadcast %cst_94 : f32 to vector<32x128xf32>
    %396 = arith.addf %395, %394 : vector<32x128xf32>
    %397 = arith.subf %391, %390 : vector<32x128xf32>
    %398 = arith.mulf %396, %397 : vector<32x128xf32>
    %399 = arith.addf %390, %398 : vector<32x128xf32>
    %400 = vector.extract_strided_slice %386 {offsets = [0, 384], sizes = [32, 384], strides = [1, 1]} : vector<32x1152xf32> to vector<32x384xf32>
    %401 = arith.addf %400, %8 : vector<32x384xf32>
    %402 = arith.truncf %399 : vector<32x128xf32> to vector<32x128xbf16>
    %cst_95 = arith.constant dense<0.000000e+00> : vector<32x384xf32>
    %403 = tpu.matmul %402, %4, %cst_95 {dimension_numbers = #tpu.dot_dimension_numbers<[1], [0], [0], [1], [0, 0, 1, 1], [], []>} : vector<32x128xbf16>, vector<128x384xbf16>, vector<32x384xf32> -> vector<32x384xf32>
    %404 = arith.addf %401, %403 : vector<32x384xf32>
    %405 = math.tanh %404 : vector<32x384xf32>
    %406 = vector.extract_strided_slice %405 {offsets = [0, 0], sizes = [32, 128], strides = [1, 1]} : vector<32x384xf32> to vector<32x128xf32>
    %407 = vector.extract_strided_slice %405 {offsets = [0, 128], sizes = [32, 128], strides = [1, 1]} : vector<32x384xf32> to vector<32x128xf32>
    %408 = vector.extract_strided_slice %405 {offsets = [0, 256], sizes = [32, 128], strides = [1, 1]} : vector<32x384xf32> to vector<32x128xf32>
    %cst_96 = arith.constant 5.000000e-01 : f32
    %409 = vector.broadcast %cst_96 : f32 to vector<32x128xf32>
    %410 = arith.mulf %409, %408 : vector<32x128xf32>
    %cst_97 = arith.constant 5.000000e-01 : f32
    %411 = vector.broadcast %cst_97 : f32 to vector<32x128xf32>
    %412 = arith.addf %411, %410 : vector<32x128xf32>
    %413 = arith.subf %407, %406 : vector<32x128xf32>
    %414 = arith.mulf %412, %413 : vector<32x128xf32>
    %415 = arith.addf %406, %414 : vector<32x128xf32>
    %416 = vector.extract_strided_slice %386 {offsets = [0, 768], sizes = [32, 384], strides = [1, 1]} : vector<32x1152xf32> to vector<32x384xf32>
    %417 = arith.addf %416, %11 : vector<32x384xf32>
    %418 = arith.truncf %415 : vector<32x128xf32> to vector<32x128xbf16>
    %cst_98 = arith.constant dense<0.000000e+00> : vector<32x384xf32>
    %419 = tpu.matmul %418, %5, %cst_98 {dimension_numbers = #tpu.dot_dimension_numbers<[1], [0], [0], [1], [0, 0, 1, 1], [], []>} : vector<32x128xbf16>, vector<128x384xbf16>, vector<32x384xf32> -> vector<32x384xf32>
    %420 = arith.addf %417, %419 : vector<32x384xf32>
    %421 = math.tanh %420 : vector<32x384xf32>
    %422 = vector.extract_strided_slice %421 {offsets = [0, 0], sizes = [32, 128], strides = [1, 1]} : vector<32x384xf32> to vector<32x128xf32>
    %423 = vector.extract_strided_slice %421 {offsets = [0, 128], sizes = [32, 128], strides = [1, 1]} : vector<32x384xf32> to vector<32x128xf32>
    %424 = vector.extract_strided_slice %421 {offsets = [0, 256], sizes = [32, 128], strides = [1, 1]} : vector<32x384xf32> to vector<32x128xf32>
    %cst_99 = arith.constant 5.000000e-01 : f32
    %425 = vector.broadcast %cst_99 : f32 to vector<32x128xf32>
    %426 = arith.mulf %425, %424 : vector<32x128xf32>
    %cst_100 = arith.constant 5.000000e-01 : f32
    %427 = vector.broadcast %cst_100 : f32 to vector<32x128xf32>
    %428 = arith.addf %427, %426 : vector<32x128xf32>
    %429 = arith.subf %423, %422 : vector<32x128xf32>
    %430 = arith.mulf %428, %429 : vector<32x128xf32>
    %431 = arith.addf %422, %430 : vector<32x128xf32>
    %432 = tpu.concatenate %399, %415, %431 in 1 : vector<32x128xf32>, vector<32x128xf32>, vector<32x128xf32> -> vector<32x384xf32>
    %433 = arith.truncf %432 : vector<32x384xf32> to vector<32x384xbf16>
    %c192 = arith.constant 192 : index
    %c0_101 = arith.constant 0 : index
    %434 = vector.load %arg12[%c192, %c0_101] : memref<256x512xf32, #tpu.memory_space<vmem>>, vector<32x512xf32>
    %435 = vector.extract_strided_slice %434 {offsets = [0, 0], sizes = [32, 128], strides = [1, 1]} : vector<32x512xf32> to vector<32x128xf32>
    %436 = vector.extract_strided_slice %434 {offsets = [0, 128], sizes = [32, 384], strides = [1, 1]} : vector<32x512xf32> to vector<32x384xf32>
    %cst_102 = arith.constant dense<0.000000e+00> : vector<32x128xf32>
    %437 = tpu.matmul %433, %2, %cst_102 {dimension_numbers = #tpu.dot_dimension_numbers<[1], [0], [0], [1], [0, 0, 1, 1], [], []>} : vector<32x384xbf16>, vector<384x128xbf16>, vector<32x128xf32> -> vector<32x128xf32>
    %438 = arith.addf %435, %437 : vector<32x128xf32>
    %439 = math.tanh %438 : vector<32x128xf32>
    %440 = vector.extract_strided_slice %439 {offsets = [0, 0], sizes = [32, 32], strides = [1, 1]} : vector<32x128xf32> to vector<32x32xf32>
    %441 = vector.extract_strided_slice %439 {offsets = [0, 32], sizes = [32, 96], strides = [1, 1]} : vector<32x128xf32> to vector<32x96xf32>
    %cst_103 = arith.constant 5.000000e-01 : f32
    %442 = vector.broadcast %cst_103 : f32 to vector<32x96xf32>
    %443 = arith.mulf %442, %441 : vector<32x96xf32>
    %cst_104 = arith.constant 5.000000e-01 : f32
    %444 = vector.broadcast %cst_104 : f32 to vector<32x96xf32>
    %445 = arith.addf %444, %443 : vector<32x96xf32>
    %446 = vector.extract_strided_slice %445 {offsets = [0, 0], sizes = [32, 32], strides = [1, 1]} : vector<32x96xf32> to vector<32x32xf32>
    %447 = vector.extract_strided_slice %445 {offsets = [0, 32], sizes = [32, 32], strides = [1, 1]} : vector<32x96xf32> to vector<32x32xf32>
    %448 = vector.extract_strided_slice %445 {offsets = [0, 64], sizes = [32, 32], strides = [1, 1]} : vector<32x96xf32> to vector<32x32xf32>
    %449 = arith.mulf %382, %447 : vector<32x32xf32>
    %450 = arith.mulf %440, %446 : vector<32x32xf32>
    %451 = arith.addf %449, %450 : vector<32x32xf32>
    %452 = math.tanh %451 : vector<32x32xf32>
    %453 = arith.mulf %452, %448 : vector<32x32xf32>
    %454 = arith.truncf %453 : vector<32x32xf32> to vector<32x32xbf16>
    %cst_105 = arith.constant dense<0.000000e+00> : vector<32x1152xf32>
    %455 = tpu.matmul %454, %3, %cst_105 {dimension_numbers = #tpu.dot_dimension_numbers<[1], [0], [0], [1], [0, 0, 1, 1], [], []>} : vector<32x32xbf16>, vector<32x1152xbf16>, vector<32x1152xf32> -> vector<32x1152xf32>
    %456 = vector.extract_strided_slice %455 {offsets = [0, 0], sizes = [32, 384], strides = [1, 1]} : vector<32x1152xf32> to vector<32x384xf32>
    %457 = arith.addf %456, %436 : vector<32x384xf32>
    %458 = math.tanh %457 : vector<32x384xf32>
    %459 = vector.extract_strided_slice %458 {offsets = [0, 0], sizes = [32, 128], strides = [1, 1]} : vector<32x384xf32> to vector<32x128xf32>
    %460 = vector.extract_strided_slice %458 {offsets = [0, 128], sizes = [32, 128], strides = [1, 1]} : vector<32x384xf32> to vector<32x128xf32>
    %461 = vector.extract_strided_slice %458 {offsets = [0, 256], sizes = [32, 128], strides = [1, 1]} : vector<32x384xf32> to vector<32x128xf32>
    %cst_106 = arith.constant 5.000000e-01 : f32
    %462 = vector.broadcast %cst_106 : f32 to vector<32x128xf32>
    %463 = arith.mulf %462, %461 : vector<32x128xf32>
    %cst_107 = arith.constant 5.000000e-01 : f32
    %464 = vector.broadcast %cst_107 : f32 to vector<32x128xf32>
    %465 = arith.addf %464, %463 : vector<32x128xf32>
    %466 = arith.subf %460, %459 : vector<32x128xf32>
    %467 = arith.mulf %465, %466 : vector<32x128xf32>
    %468 = arith.addf %459, %467 : vector<32x128xf32>
    %469 = vector.extract_strided_slice %455 {offsets = [0, 384], sizes = [32, 384], strides = [1, 1]} : vector<32x1152xf32> to vector<32x384xf32>
    %470 = arith.addf %469, %8 : vector<32x384xf32>
    %471 = arith.truncf %468 : vector<32x128xf32> to vector<32x128xbf16>
    %cst_108 = arith.constant dense<0.000000e+00> : vector<32x384xf32>
    %472 = tpu.matmul %471, %4, %cst_108 {dimension_numbers = #tpu.dot_dimension_numbers<[1], [0], [0], [1], [0, 0, 1, 1], [], []>} : vector<32x128xbf16>, vector<128x384xbf16>, vector<32x384xf32> -> vector<32x384xf32>
    %473 = arith.addf %470, %472 : vector<32x384xf32>
    %474 = math.tanh %473 : vector<32x384xf32>
    %475 = vector.extract_strided_slice %474 {offsets = [0, 0], sizes = [32, 128], strides = [1, 1]} : vector<32x384xf32> to vector<32x128xf32>
    %476 = vector.extract_strided_slice %474 {offsets = [0, 128], sizes = [32, 128], strides = [1, 1]} : vector<32x384xf32> to vector<32x128xf32>
    %477 = vector.extract_strided_slice %474 {offsets = [0, 256], sizes = [32, 128], strides = [1, 1]} : vector<32x384xf32> to vector<32x128xf32>
    %cst_109 = arith.constant 5.000000e-01 : f32
    %478 = vector.broadcast %cst_109 : f32 to vector<32x128xf32>
    %479 = arith.mulf %478, %477 : vector<32x128xf32>
    %cst_110 = arith.constant 5.000000e-01 : f32
    %480 = vector.broadcast %cst_110 : f32 to vector<32x128xf32>
    %481 = arith.addf %480, %479 : vector<32x128xf32>
    %482 = arith.subf %476, %475 : vector<32x128xf32>
    %483 = arith.mulf %481, %482 : vector<32x128xf32>
    %484 = arith.addf %475, %483 : vector<32x128xf32>
    %485 = vector.extract_strided_slice %455 {offsets = [0, 768], sizes = [32, 384], strides = [1, 1]} : vector<32x1152xf32> to vector<32x384xf32>
    %486 = arith.addf %485, %11 : vector<32x384xf32>
    %487 = arith.truncf %484 : vector<32x128xf32> to vector<32x128xbf16>
    %cst_111 = arith.constant dense<0.000000e+00> : vector<32x384xf32>
    %488 = tpu.matmul %487, %5, %cst_111 {dimension_numbers = #tpu.dot_dimension_numbers<[1], [0], [0], [1], [0, 0, 1, 1], [], []>} : vector<32x128xbf16>, vector<128x384xbf16>, vector<32x384xf32> -> vector<32x384xf32>
    %489 = arith.addf %486, %488 : vector<32x384xf32>
    %490 = math.tanh %489 : vector<32x384xf32>
    %491 = vector.extract_strided_slice %490 {offsets = [0, 0], sizes = [32, 128], strides = [1, 1]} : vector<32x384xf32> to vector<32x128xf32>
    %492 = vector.extract_strided_slice %490 {offsets = [0, 128], sizes = [32, 128], strides = [1, 1]} : vector<32x384xf32> to vector<32x128xf32>
    %493 = vector.extract_strided_slice %490 {offsets = [0, 256], sizes = [32, 128], strides = [1, 1]} : vector<32x384xf32> to vector<32x128xf32>
    %cst_112 = arith.constant 5.000000e-01 : f32
    %494 = vector.broadcast %cst_112 : f32 to vector<32x128xf32>
    %495 = arith.mulf %494, %493 : vector<32x128xf32>
    %cst_113 = arith.constant 5.000000e-01 : f32
    %496 = vector.broadcast %cst_113 : f32 to vector<32x128xf32>
    %497 = arith.addf %496, %495 : vector<32x128xf32>
    %498 = arith.subf %492, %491 : vector<32x128xf32>
    %499 = arith.mulf %497, %498 : vector<32x128xf32>
    %500 = arith.addf %491, %499 : vector<32x128xf32>
    %501 = tpu.concatenate %468, %484, %500 in 1 : vector<32x128xf32>, vector<32x128xf32>, vector<32x128xf32> -> vector<32x384xf32>
    %502 = arith.truncf %501 : vector<32x384xf32> to vector<32x384xbf16>
    %c224 = arith.constant 224 : index
    %c0_114 = arith.constant 0 : index
    %503 = vector.load %arg12[%c224, %c0_114] : memref<256x512xf32, #tpu.memory_space<vmem>>, vector<32x512xf32>
    %504 = vector.extract_strided_slice %503 {offsets = [0, 0], sizes = [32, 128], strides = [1, 1]} : vector<32x512xf32> to vector<32x128xf32>
    %505 = vector.extract_strided_slice %503 {offsets = [0, 128], sizes = [32, 384], strides = [1, 1]} : vector<32x512xf32> to vector<32x384xf32>
    %cst_115 = arith.constant dense<0.000000e+00> : vector<32x128xf32>
    %506 = tpu.matmul %502, %2, %cst_115 {dimension_numbers = #tpu.dot_dimension_numbers<[1], [0], [0], [1], [0, 0, 1, 1], [], []>} : vector<32x384xbf16>, vector<384x128xbf16>, vector<32x128xf32> -> vector<32x128xf32>
    %507 = arith.addf %504, %506 : vector<32x128xf32>
    %508 = math.tanh %507 : vector<32x128xf32>
    %509 = vector.extract_strided_slice %508 {offsets = [0, 0], sizes = [32, 32], strides = [1, 1]} : vector<32x128xf32> to vector<32x32xf32>
    %510 = vector.extract_strided_slice %508 {offsets = [0, 32], sizes = [32, 96], strides = [1, 1]} : vector<32x128xf32> to vector<32x96xf32>
    %cst_116 = arith.constant 5.000000e-01 : f32
    %511 = vector.broadcast %cst_116 : f32 to vector<32x96xf32>
    %512 = arith.mulf %511, %510 : vector<32x96xf32>
    %cst_117 = arith.constant 5.000000e-01 : f32
    %513 = vector.broadcast %cst_117 : f32 to vector<32x96xf32>
    %514 = arith.addf %513, %512 : vector<32x96xf32>
    %515 = vector.extract_strided_slice %514 {offsets = [0, 0], sizes = [32, 32], strides = [1, 1]} : vector<32x96xf32> to vector<32x32xf32>
    %516 = vector.extract_strided_slice %514 {offsets = [0, 32], sizes = [32, 32], strides = [1, 1]} : vector<32x96xf32> to vector<32x32xf32>
    %517 = vector.extract_strided_slice %514 {offsets = [0, 64], sizes = [32, 32], strides = [1, 1]} : vector<32x96xf32> to vector<32x32xf32>
    %518 = arith.mulf %451, %516 : vector<32x32xf32>
    %519 = arith.mulf %509, %515 : vector<32x32xf32>
    %520 = arith.addf %518, %519 : vector<32x32xf32>
    %521 = math.tanh %520 : vector<32x32xf32>
    %522 = arith.mulf %521, %517 : vector<32x32xf32>
    %523 = arith.truncf %522 : vector<32x32xf32> to vector<32x32xbf16>
    %cst_118 = arith.constant dense<0.000000e+00> : vector<32x1152xf32>
    %524 = tpu.matmul %523, %3, %cst_118 {dimension_numbers = #tpu.dot_dimension_numbers<[1], [0], [0], [1], [0, 0, 1, 1], [], []>} : vector<32x32xbf16>, vector<32x1152xbf16>, vector<32x1152xf32> -> vector<32x1152xf32>
    %525 = vector.extract_strided_slice %524 {offsets = [0, 0], sizes = [32, 384], strides = [1, 1]} : vector<32x1152xf32> to vector<32x384xf32>
    %526 = arith.addf %525, %505 : vector<32x384xf32>
    %527 = math.tanh %526 : vector<32x384xf32>
    %528 = vector.extract_strided_slice %527 {offsets = [0, 0], sizes = [32, 128], strides = [1, 1]} : vector<32x384xf32> to vector<32x128xf32>
    %529 = vector.extract_strided_slice %527 {offsets = [0, 128], sizes = [32, 128], strides = [1, 1]} : vector<32x384xf32> to vector<32x128xf32>
    %530 = vector.extract_strided_slice %527 {offsets = [0, 256], sizes = [32, 128], strides = [1, 1]} : vector<32x384xf32> to vector<32x128xf32>
    %cst_119 = arith.constant 5.000000e-01 : f32
    %531 = vector.broadcast %cst_119 : f32 to vector<32x128xf32>
    %532 = arith.mulf %531, %530 : vector<32x128xf32>
    %cst_120 = arith.constant 5.000000e-01 : f32
    %533 = vector.broadcast %cst_120 : f32 to vector<32x128xf32>
    %534 = arith.addf %533, %532 : vector<32x128xf32>
    %535 = arith.subf %529, %528 : vector<32x128xf32>
    %536 = arith.mulf %534, %535 : vector<32x128xf32>
    %537 = arith.addf %528, %536 : vector<32x128xf32>
    %538 = vector.extract_strided_slice %524 {offsets = [0, 384], sizes = [32, 384], strides = [1, 1]} : vector<32x1152xf32> to vector<32x384xf32>
    %539 = arith.addf %538, %8 : vector<32x384xf32>
    %540 = arith.truncf %537 : vector<32x128xf32> to vector<32x128xbf16>
    %cst_121 = arith.constant dense<0.000000e+00> : vector<32x384xf32>
    %541 = tpu.matmul %540, %4, %cst_121 {dimension_numbers = #tpu.dot_dimension_numbers<[1], [0], [0], [1], [0, 0, 1, 1], [], []>} : vector<32x128xbf16>, vector<128x384xbf16>, vector<32x384xf32> -> vector<32x384xf32>
    %542 = arith.addf %539, %541 : vector<32x384xf32>
    %543 = math.tanh %542 : vector<32x384xf32>
    %544 = vector.extract_strided_slice %543 {offsets = [0, 0], sizes = [32, 128], strides = [1, 1]} : vector<32x384xf32> to vector<32x128xf32>
    %545 = vector.extract_strided_slice %543 {offsets = [0, 128], sizes = [32, 128], strides = [1, 1]} : vector<32x384xf32> to vector<32x128xf32>
    %546 = vector.extract_strided_slice %543 {offsets = [0, 256], sizes = [32, 128], strides = [1, 1]} : vector<32x384xf32> to vector<32x128xf32>
    %cst_122 = arith.constant 5.000000e-01 : f32
    %547 = vector.broadcast %cst_122 : f32 to vector<32x128xf32>
    %548 = arith.mulf %547, %546 : vector<32x128xf32>
    %cst_123 = arith.constant 5.000000e-01 : f32
    %549 = vector.broadcast %cst_123 : f32 to vector<32x128xf32>
    %550 = arith.addf %549, %548 : vector<32x128xf32>
    %551 = arith.subf %545, %544 : vector<32x128xf32>
    %552 = arith.mulf %550, %551 : vector<32x128xf32>
    %553 = arith.addf %544, %552 : vector<32x128xf32>
    %554 = vector.extract_strided_slice %524 {offsets = [0, 768], sizes = [32, 384], strides = [1, 1]} : vector<32x1152xf32> to vector<32x384xf32>
    %555 = arith.addf %554, %11 : vector<32x384xf32>
    %556 = arith.truncf %553 : vector<32x128xf32> to vector<32x128xbf16>
    %cst_124 = arith.constant dense<0.000000e+00> : vector<32x384xf32>
    %557 = tpu.matmul %556, %5, %cst_124 {dimension_numbers = #tpu.dot_dimension_numbers<[1], [0], [0], [1], [0, 0, 1, 1], [], []>} : vector<32x128xbf16>, vector<128x384xbf16>, vector<32x384xf32> -> vector<32x384xf32>
    %558 = arith.addf %555, %557 : vector<32x384xf32>
    %559 = math.tanh %558 : vector<32x384xf32>
    %560 = vector.extract_strided_slice %559 {offsets = [0, 0], sizes = [32, 128], strides = [1, 1]} : vector<32x384xf32> to vector<32x128xf32>
    %561 = vector.extract_strided_slice %559 {offsets = [0, 128], sizes = [32, 128], strides = [1, 1]} : vector<32x384xf32> to vector<32x128xf32>
    %562 = vector.extract_strided_slice %559 {offsets = [0, 256], sizes = [32, 128], strides = [1, 1]} : vector<32x384xf32> to vector<32x128xf32>
    %cst_125 = arith.constant 5.000000e-01 : f32
    %563 = vector.broadcast %cst_125 : f32 to vector<32x128xf32>
    %564 = arith.mulf %563, %562 : vector<32x128xf32>
    %cst_126 = arith.constant 5.000000e-01 : f32
    %565 = vector.broadcast %cst_126 : f32 to vector<32x128xf32>
    %566 = arith.addf %565, %564 : vector<32x128xf32>
    %567 = arith.subf %561, %560 : vector<32x128xf32>
    %568 = arith.mulf %566, %567 : vector<32x128xf32>
    %569 = arith.addf %560, %568 : vector<32x128xf32>
    %570 = vector.extract_strided_slice %537 {offsets = [0, 0], sizes = [32, 14], strides = [1, 1]} : vector<32x128xf32> to vector<32x14xf32>
    %571 = vector.extract_strided_slice %553 {offsets = [0, 0], sizes = [32, 9], strides = [1, 1]} : vector<32x128xf32> to vector<32x9xf32>
    %572 = vector.extract_strided_slice %569 {offsets = [0, 0], sizes = [32, 9], strides = [1, 1]} : vector<32x128xf32> to vector<32x9xf32>
    %573 = tpu.concatenate %570, %571, %572 in 1 : vector<32x14xf32>, vector<32x9xf32>, vector<32x9xf32> -> vector<32x32xf32>
    %c0_127 = arith.constant 0 : index
    %c0_128 = arith.constant 0 : index
    %574 = vector.load %arg10[%c0_127, %c0_128] : memref<32x32xf32, #tpu.memory_space<vmem>>, vector<32x32xf32>
    tpu.vector_store %arg10[%c0_127, %c0_128], %573 {strides = array<i32>} : memref<32x32xf32, #tpu.memory_space<vmem>>, vector<32x32xf32>,
    %c0_129 = arith.constant 0 : index
    %c0_130 = arith.constant 0 : index
    %575 = vector.load %arg11[%c0_129, %c0_130] : memref<32x32xf32, #tpu.memory_space<vmem>>, vector<32x32xf32>
    tpu.vector_store %arg11[%c0_129, %c0_130], %520 {strides = array<i32>} : memref<32x32xf32, #tpu.memory_space<vmem>>, vector<32x32xf32>,
    return
  }
  func.func @transform_0(%arg0: i32) -> (i32, i32, i32) {
    %c0_i32 = arith.constant 0 : i32
    %c0_i32_0 = arith.constant 0 : i32
    %c0_i32_1 = arith.constant 0 : i32
    return %arg0, %c0_i32, %c0_i32_0 : i32, i32, i32
  }
  func.func @transform_1(%arg0: i32) -> (i32, i32) {
    %c0_i32 = arith.constant 0 : i32
    %c0_i32_0 = arith.constant 0 : i32
    %c0_i32_1 = arith.constant 0 : i32
    return %c0_i32, %c0_i32_0 : i32, i32
  }
  func.func @transform_2(%arg0: i32) -> (i32, i32) {
    %c0_i32 = arith.constant 0 : i32
    %c0_i32_0 = arith.constant 0 : i32
    %c0_i32_1 = arith.constant 0 : i32
    return %c0_i32, %c0_i32_0 : i32, i32
  }
  func.func @transform_3(%arg0: i32) -> (i32, i32) {
    %c0_i32 = arith.constant 0 : i32
    %c0_i32_0 = arith.constant 0 : i32
    %c0_i32_1 = arith.constant 0 : i32
    return %c0_i32, %c0_i32_0 : i32, i32
  }
  func.func @transform_4(%arg0: i32) -> (i32, i32) {
    %c0_i32 = arith.constant 0 : i32
    %c0_i32_0 = arith.constant 0 : i32
    %c0_i32_1 = arith.constant 0 : i32
    return %c0_i32, %c0_i32_0 : i32, i32
  }
  func.func @transform_5(%arg0: i32) -> (i32, i32) {
    %c0_i32 = arith.constant 0 : i32
    %c0_i32_0 = arith.constant 0 : i32
    %c0_i32_1 = arith.constant 0 : i32
    return %c0_i32, %c0_i32_0 : i32, i32
  }
  func.func @transform_6(%arg0: i32) -> (i32, i32) {
    %c0_i32 = arith.constant 0 : i32
    %c0_i32_0 = arith.constant 0 : i32
    %c0_i32_1 = arith.constant 0 : i32
    return %c0_i32, %c0_i32_0 : i32, i32
  }
  func.func @transform_7(%arg0: i32) -> (i32, i32) {
    %c0_i32 = arith.constant 0 : i32
    %c0_i32_0 = arith.constant 0 : i32
    %c0_i32_1 = arith.constant 0 : i32
    return %c0_i32, %c0_i32_0 : i32, i32
  }
  func.func @transform_8(%arg0: i32) -> (i32, i32) {
    %c0_i32 = arith.constant 0 : i32
    %c0_i32_0 = arith.constant 0 : i32
    %c0_i32_1 = arith.constant 0 : i32
    return %c0_i32, %c0_i32_0 : i32, i32
  }
  func.func @transform_9(%arg0: i32) -> (i32, i32) {
    %c0_i32 = arith.constant 0 : i32
    %c0_i32_0 = arith.constant 0 : i32
    return %arg0, %c0_i32 : i32, i32
  }
  func.func @transform_10(%arg0: i32) -> (i32, i32) {
    %c0_i32 = arith.constant 0 : i32
    %c0_i32_0 = arith.constant 0 : i32
    return %arg0, %c0_i32 : i32, i32
  }
}

</mosaic_0001>

<bundles_post_ra>
// kernel: _encoder_forward_impl.1
= control target key start
LH: loop header
LB: loop body
LE: loop exit
PB: predicated region body
PF: predicated region fallthrough
CT: control target
= control target key end

     0   :  { %16 = vsyncpa [#allocation4], 0  ;;  %s11397_s13 = smov 0   ;;  %s15584_s0 = inlined_call_operand.vmem [shape: f32[2,256,2], index: 0, kind: input, shape index: {}]   ;;  %s15585_s1 = inlined_call_operand.vmem [shape: f32[2,512], index: 1, kind: input, shape index: {}]   ;;  %s15586_s2 = inlined_call_operand.vmem [shape: f32[1,512], index: 2, kind: input, shape index: {}]   ;;  %s15587_s3 = inlined_call_operand.vmem [shape: bf16[384,128], index: 3, kind: input, shape index: {}]   ;;  %s15588_s4 = inlined_call_operand.hbm [shape: bf16[32,1152], index: 4, kind: input, shape index: {}]   ;;  %s15589_s5 = inlined_call_operand.vmem [shape: bf16[128,384], index: 5, kind: input, shape index: {}]   ;;  %s15590_s6 = inlined_call_operand.vmem [shape: f32[1,384], index: 6, kind: input, shape index: {}]   ;;  %s15591_s7 = inlined_call_operand.vmem [shape: bf16[128,384], index: 7, kind: input, shape index: {}]   ;;  %s15592_s8 = inlined_call_operand.vmem [shape: f32[1,384], index: 8, kind: input, shape index: {}]   ;;  %s15593_s9 = inlined_call_operand.vmem [shape: f32[64,32], index: 9, kind: output, shape index: {0}]   ;;  %s15594_s10 = inlined_call_operand.vmem [shape: f32[64,32], index: 10, kind: output, shape index: {1}]  }
   0x1 LB: > { %s11403_s14 = sadd.s32 4294967295, %s11330_s13   ;;  %p8623_p0 = scmp.ge.s32.totalorder %s11330_s13, 1  ;;  %s11330_s13 = sphi %s11397_s13, %s22_s13  }
   0x2   : > { %p273_p1 = scmp.lt.s32.totalorder %s11330_s13, 3  ;;  %s11332_s15 = smov [#allocation3]  }
   0x3   : > { %s294_s16 = sshll.u32 %s11332_s15, 4  ;;  %p15595_p3 = scmp.eq.s32.totalorder %s11403_s14, 0  ;;  %s295_s16 = int_to_ptr.vmem [resolvable:$true] %s294_s16 }
   0x4   : > { %p11407_p2 = pnand %p8623_p0, %p273_p1  ;;  %s11292_s21 = scalar_lea.hbm %s15588_s4, 2304 }
   0x5   : > { %p11293_p6 = scmp.ne.s32.totalorder %s15588_s4, %s11292_s21  ;;  %p11299_p10 = scmp.lt.u32.totalorder %s11292_s21, %s15588_s4 }
   0x6   : > { %s15846_s17 = scalar_select %p11407_p2, 1, 0 }
   0x7   : > { %p10113_p4 = pneg %p11407_p2 }
   0x9   : > { %p11416_p5 = pnand %p15595_p3, %p10113_p4 }
   0xb   : > { %p11294_p7 = pneg %p11416_p5 }
   0xd   : > { %p11295_p8 = pnand %p11294_p7, %p11293_p6 }
   0xf   : > { %p11296_p9 = pneg %p11295_p8 }
  0x11   : > { %p11301_p11 = pnand %p11299_p10, %p11296_p9 }
  0x13   : > { %11304 = shalt.err (!%p11301_p11)
}
  0x14   : > { %s11305_s26 = scalar_lea.vmem %s295_s16, 2304  ;;  %p11313_p1 = scmp.lt.s32.totalorder %s295_s16, %s295_s16 }
  0x15   : > { %p11306_p12 = scmp.ne.s32.totalorder %s295_s16, %s11305_s26  ;;  %p11314_p4 = scmp.lt.s32.totalorder %s11305_s26, %s11305_s26 }
  0x17   : > { %p11308_p13 = pnand %p11306_p12, %p11294_p7  ;;  %p11315_p3 = por %p11314_p4, %p11313_p1 }
  0x19   : > { %p11309_p0 = pneg %p11308_p13 }
  0x1b   : > { %p11316_p2 = pnand %p11315_p3, %p11309_p0 }
  0x1d   : > { %11319 = shalt.err (!%p11316_p2)
}
  0x1e   : > { %s11333_s27 = smov 576   ;;  %s11334_s28 = smov 36  }
  0x1f   : > { %10116 = dma.hbm_to_vmem [thread:$0]  (!%p11416_p5), %s15588_s4, 2304, %s295_s16, [#allocation4], %s11333_s27, %s11333_s27, %s11334_s28  }
  0x20   : > { %p15848_p6 = scmp.ne.s32.totalorder %s15846_s17, 0 }
  0x22   : > { %330 = sbr.rel (%p15848_p6) target bundleno = 10959 (0x2acf), region = 56 }
  0x29   : > { %p15849_p8 = scmp.eq.s32.totalorder %s11403_s14, 0 }
  0x2b   : > { %11325 = dma.done.wait (%p15849_p8), [#allocation4], 2304   ;;  %p15850_p7 = pmov %p15849_p8 }
  0x2c   : > { %v557_v0 = vlaneseq  ;;  %v11335_v1 = vmov 1983009808   ;;  %v11336_v3 = vmov 0.0   ;;  %p373_p2 = scmp.lt.s32.totalorder %s11403_s14, 1  ;;  %v589_v10 = vld [vmem:[%s15585_s1] sm:$0xff]  ;;  %vm727_vm0 = vcmask 1041408  }
  0x2d   : > { %11327 = vsyncadd (%p15850_p7), [#allocation4], 4294964992  ;;  %v615_v2 = vunpack.c.l.s4 %v11335_v1  ;;  %800 = vmatprep.mubr.f32.mxu0 %v11336_v3  ;;  %986 = vmatprep.mubr.f32.mxu1 %v11336_v3  ;;  %v11462_v11 = vld [vmem:[%s15586_s2] sm:$0xf]  ;;  %v613_v15 = vcombine.high %v589_v10, %v589_v10  ;;  %vm630_vm1 = vcmask 15360   ;;  %v10141_v26 = vld [vmem:[%s15587_s3 + $0x88] sm:$0xff]  }
  0x2e   : > { %v11445_v4 = vshrl.u32 %v557_v0, 7  ;;  %s374_s11 = scalar_select %p373_p2, %s11403_s14, 1  ;;  %v10138_v22 = vld [vmem:[%s15587_s3 + $0x80] sm:$0xff]   ;;  %v10142_v27 = vld [vmem:[%s15587_s3 + $0x48] sm:$0xff]   ;;  %v10144_v30 = vld [vmem:[%s15587_s3 + $0x90] sm:$0xff]   ;;  %vm1804_vm2 = vcmask 261120  }
  0x2f   : > { %v616_v5 = vunpack.c.0.s8 %v615_v2  ;;  %v10139_v23 = vld [vmem:[%s15587_s3 + $0x40] sm:$0xff]   ;;  %v10143_v29 = vld [vmem:[%s15587_s3 + $0x8] sm:$0xff]   ;;  %v10145_v31 = vld [vmem:[%s15587_s3 + $0x50] sm:$0xff]   ;;  %s11339_s18 = smov 64   ;;  %s11340_s15 = smov 14   ;;  %vm8485_vm3 = vcmask 113664  }
  0x30   : > { %v11449_v6 = vsub.s32 1, %v11445_v4  ;;  %v11452_v7 = vsub.s32 2, %v11445_v4  ;;  %v606_v8 = vsub.s32 3, %v11445_v4  ;;  %s8874_s16 = sshll.u32 %s374_s11, 8  ;;  %v10140_v25 = vld [vmem:[%s15587_s3] sm:$0xff]   ;;  %v10146_v33 = vld [vmem:[%s15587_s3 + $0x10] sm:$0xff]  }
  0x31   : > { %v619_v9 = vsub.s32 %v616_v5, %v11445_v4  ;;  %s11478_s21 = scalar_lea.vmem %s15584_s0, %s8874_s16  ;;  %v10147_v34 = vld [vmem:[%s15587_s3 + $0x98] sm:$0xff]   ;;  %v10150_v38 = vld [vmem:[%s15587_s3 + $0x60] sm:$0xff]   ;;  %v10153_v42 = vld [vmem:[%s15587_s3 + $0x68] sm:$0xff]   ;;  %s11341_s16 = smov 23   ;;  %vm8490_vm4 = vcmask 187392  }
  0x32   : > { %v11466_v12 = vrot.slane %v11462_v11, %v11449_v6  ;;  %v11470_v13 = vrot.slane %v11462_v11, %v11452_v7  ;;  %v11473_v14 = vrot.slane %v11462_v11, %v606_v8  ;;  %v391_v19 = vld [vmem:[%s11478_s21] sm:$0xff]  ;;  %v11482_v20 = vld [vmem:[%s11478_s21 + $0xf8] sm:$0xff]  ;;  %v392_v24 = vld [vmem:[%s11478_s21 + $0x8] sm:$0xff] }
  0x33   : > { %v620_v16 = vrot.slane %v589_v10, %v619_v9  ;;  %v627_v18 = vrot.slane %v613_v15, %v619_v9  ;;  %v393_v28 = vld [vmem:[%s11478_s21 + $0x10] sm:$0xff]  ;;  %v394_v32 = vld [vmem:[%s11478_s21 + $0x18] sm:$0xff]  ;;  %v395_v36 = vld [vmem:[%s11478_s21 + $0x20] sm:$0xff] }
  0x34   : > { %15851 = vst [vmem:[#allocation6_spill] sm:$0xff] %v11466_v12  ;;  %15852 = vst [vmem:[#allocation7_spill] sm:$0xff] %v11470_v13  ;;  %v10148_v35 = vld [vmem:[%s15587_s3 + $0x58] sm:$0xff]   ;;  %v10151_v39 = vld [vmem:[%s15587_s3 + $0xa0] sm:$0xff]  }
  0x35   : > { %15853 = vst [vmem:[#allocation8_spill] sm:$0xff] %v11473_v14  ;;  %v628_v17 = vcombine.high %v620_v16, %v620_v16  ;;  %v629_v21 = vcombine.high %v627_v18, %v627_v18  ;;  %v10149_v37 = vld [vmem:[%s15587_s3 + $0x18] sm:$0xff]   ;;  %v396_v40 = vld [vmem:[%s11478_s21 + $0x28] sm:$0xff]  ;;  %v10152_v41 = vld [vmem:[%s15587_s3 + $0x20] sm:$0xff]  }
  0x36   : > { %v10154_v43 = vld [vmem:[%s15587_s3 + $0xa8] sm:$0xff]   ;;  %v397_v44 = vld [vmem:[%s11478_s21 + $0x30] sm:$0xff]  ;;  %v398_v48 = vld [vmem:[%s11478_s21 + $0x38] sm:$0xff] }
  0x37   : > { %8634 = vmatprep.subr.msk.mxu0 %vm727_vm0, %v628_v17  ;;  %9915 = vmatprep.subr.msk.mxu1 %vm727_vm0, %v628_v17  ;;  %v10155_v45 = vld [vmem:[%s15587_s3 + $0x28] sm:$0xff]   ;;  %v10156_v46 = vld [vmem:[%s15587_s3 + $0x70] sm:$0xff]   ;;  %v10159_v50 = vld [vmem:[%s15587_s3 + $0x78] sm:$0xff]  }
  0x38   : > { %8635 = vmatpush1.msk.msra.mxu0 %vm727_vm0, %v620_v16  ;;  %9916 = vmatpush1.msk.msra.mxu1 %vm727_vm0, %v620_v16  ;;  %v10158_v47 = vld [vmem:[%s15587_s3 + $0xb0] sm:$0xff]   ;;  %v10161_v51 = vld [vmem:[%s15587_s3 + $0xb8] sm:$0xff]   ;;  %v399_v52 = vld [vmem:[%s11478_s21 + $0x40] sm:$0xff] }
  0x39   : > { %8636 = vmatmul.mubr.msk.f32.vlgmr.msra.gmra.mrb[0].mxu0 %vm630_vm1, %v391_v19  ;;  %8667 = vmatmul.mubr.msk.f32.vlgmr.msra.gmra.mrb[0].mxu1 %vm630_vm1, %v11482_v20  ;;  %v10157_v49 = vld [vmem:[%s15587_s3 + $0x30] sm:$0xff]   ;;  %v10160_v53 = vld [vmem:[%s15587_s3 + $0x38] sm:$0xff]   ;;  %v400_v54 = vld [vmem:[%s11478_s21 + $0x48] sm:$0xff] }
  0x3a   : > { %8668 = vmatprep.subr.msk.mxu1 %vm727_vm0, %v629_v21  ;;  %806 = vmatprep.mubr.f32.mxu0 %v11336_v3  ;;  %v401_v55 = vld [vmem:[%s11478_s21 + $0x50] sm:$0xff]  ;;  %v402_v56 = vld [vmem:[%s11478_s21 + $0x58] sm:$0xff]  ;;  %v403_v57 = vld [vmem:[%s11478_s21 + $0x60] sm:$0xff]  ;;  %v15597_v21 = vmov 0  }
  0x3b   : > { %8669 = vmatpush1.msk.msra.mxu1 %vm727_vm0, %v627_v18  ;;  %1057 = vmatprep.mubr.f32.mxu1 %v11336_v3  ;;  %v404_v58 = vld [vmem:[%s11478_s21 + $0x68] sm:$0xff]  ;;  %v405_v59 = vld [vmem:[%s11478_s21 + $0x70] sm:$0xff]  ;;  %v406_v60 = vld [vmem:[%s11478_s21 + $0x78] sm:$0xff] }
  0x3c   : > { %9371 = vmatprep.subr.bf16.mxu1 %v10138_v22  ;;  %8875 = vmatprep.subr.bf16.mxu0 %v10139_v23  ;;  %v407_v61 = vld [vmem:[%s11478_s21 + $0x80] sm:$0xff]  ;;  %v408_v62 = vld [vmem:[%s11478_s21 + $0x88] sm:$0xff]  ;;  %v409_v63 = vld [vmem:[%s11478_s21 + $0x90] sm:$0xff] }
  0x3d   : > { %8637 = vmatmul.mubr.msk.f32.gmra.mrb[2].mxu0 %vm630_vm1, %v392_v24  ;;  %8670 = vmatmul.mubr.msk.f32.vlgmr.msra.gmra.mrb[2].mxu1 %vm630_vm1, %v391_v19  ;;  %v410_v0 = vld [vmem:[%s11478_s21 + $0x98] sm:$0xff]  ;;  %v411_v1 = vld [vmem:[%s11478_s21 + $0xa0] sm:$0xff]  ;;  %v412_v2 = vld [vmem:[%s11478_s21 + $0xa8] sm:$0xff] }
  0x3e   : > { %9372 = vmatpush3.bf16.msra.mxu1 %v10138_v22  ;;  %812 = vmatprep.mubr.f32.mxu0 %v11336_v3  ;;  %v413_v5 = vld [vmem:[%s11478_s21 + $0xb0] sm:$0xff]  ;;  %v414_v8 = vld [vmem:[%s11478_s21 + $0xb8] sm:$0xff]  ;;  %v415_v9 = vld [vmem:[%s11478_s21 + $0xc0] sm:$0xff] }
  0x3f   : > { %1063 = vmatprep.mubr.f32.mxu1 %v11336_v3  ;;  %8876 = vmatpush3.bf16.msra.mxu0 %v10140_v25  ;;  %v416_v10 = vld [vmem:[%s11478_s21 + $0xc8] sm:$0xff]  ;;  %v417_v15 = vld [vmem:[%s11478_s21 + $0xd0] sm:$0xff]  ;;  %v418_v16 = vld [vmem:[%s11478_s21 + $0xd8] sm:$0xff] }
  0x40   : > { %9373 = vmatprep.subr.bf16.mxu1 %v10141_v26  ;;  %8877 = vmatprep.subr.bf16.mxu0 %v10142_v27  ;;  %v419_v17 = vld [vmem:[%s11478_s21 + $0xe0] sm:$0xff]  ;;  %v420_v18 = vld [vmem:[%s11478_s21 + $0xe8] sm:$0xff]  ;;  %v421_v19 = vld [vmem:[%s11478_s21 + $0xf0] sm:$0xff]  ;;  %s11338_s21 = smov 96  }
  0x41   : > { %8638 = vmatmul.mubr.msk.f32.gmra.mrb[4].mxu0 %vm630_vm1, %v393_v28  ;;  %8671 = vmatmul.mubr.msk.f32.gmra.mrb[4].mxu1 %vm630_vm1, %v392_v24 }
  0x42   : > { %818 = vmatprep.mubr.f32.mxu0 %v11336_v3  ;;  %1069 = vmatprep.mubr.f32.mxu1 %v11336_v3 }
  0x43   : > { %9374 = vmatpush3.bf16.msra.mxu1 %v10141_v26  ;;  %8878 = vmatpush3.bf16.msra.mxu0 %v10143_v29 }
  0x44   : > { %9375 = vmatprep.subr.bf16.mxu1 %v10144_v30  ;;  %8879 = vmatprep.subr.bf16.mxu0 %v10145_v31 }
  0x45   : > { %8639 = vmatmul.mubr.msk.f32.gmra.mrb[6].mxu0 %vm630_vm1, %v394_v32  ;;  %8672 = vmatmul.mubr.msk.f32.gmra.mrb[6].mxu1 %vm630_vm1, %v393_v28 }
  0x46   : > { %824 = vmatprep.mubr.f32.mxu0 %v11336_v3  ;;  %1075 = vmatprep.mubr.f32.mxu1 %v11336_v3 }
  0x47   : > { %9376 = vmatpush3.bf16.msra.mxu1 %v10144_v30  ;;  %8880 = vmatpush3.bf16.msra.mxu0 %v10146_v33 }
  0x48   : > { %9377 = vmatprep.subr.bf16.mxu1 %v10147_v34  ;;  %8881 = vmatprep.subr.bf16.mxu0 %v10148_v35 }
  0x49   : > { %8640 = vmatmul.mubr.msk.f32.gmra.mrb[8].mxu0 %vm630_vm1, %v395_v36  ;;  %8673 = vmatmul.mubr.msk.f32.gmra.mrb[8].mxu1 %vm630_vm1, %v394_v32 }
  0x4a   : > { %830 = vmatprep.mubr.f32.mxu0 %v11336_v3  ;;  %1081 = vmatprep.mubr.f32.mxu1 %v11336_v3 }
  0x4b   : > { %9378 = vmatpush3.bf16.msra.mxu1 %v10147_v34  ;;  %8882 = vmatpush3.bf16.msra.mxu0 %v10149_v37 }
  0x4c   : > { %8883 = vmatprep.subr.bf16.mxu0 %v10150_v38  ;;  %9379 = vmatprep.subr.bf16.mxu1 %v10151_v39 }
  0x4d   : > { %8641 = vmatmul.mubr.msk.f32.gmra.mrb[10].mxu0 %vm630_vm1, %v396_v40  ;;  %8674 = vmatmul.mubr.msk.f32.gmra.mrb[10].mxu1 %vm630_vm1, %v395_v36 }
  0x4e   : > { %836 = vmatprep.mubr.f32.mxu0 %v11336_v3  ;;  %1087 = vmatprep.mubr.f32.mxu1 %v11336_v3 }
  0x4f   : > { %8884 = vmatpush3.bf16.msra.mxu0 %v10152_v41  ;;  %9380 = vmatpush3.bf16.msra.mxu1 %v10151_v39 }
  0x50   : > { %8885 = vmatprep.subr.bf16.mxu0 %v10153_v42  ;;  %9381 = vmatprep.subr.bf16.mxu1 %v10154_v43 }
  0x51   : > { %8642 = vmatmul.mubr.msk.f32.gmra.mrb[12].mxu0 %vm630_vm1, %v397_v44  ;;  %8675 = vmatmul.mubr.msk.f32.gmra.mrb[12].mxu1 %vm630_vm1, %v396_v40 }
  0x52   : > { %842 = vmatprep.mubr.f32.mxu0 %v11336_v3  ;;  %1093 = vmatprep.mubr.f32.mxu1 %v11336_v3 }
  0x53   : > { %8886 = vmatpush3.bf16.msra.mxu0 %v10155_v45  ;;  %9382 = vmatpush3.bf16.msra.mxu1 %v10154_v43 }
  0x54   : > { %8887 = vmatprep.subr.bf16.mxu0 %v10156_v46  ;;  %9383 = vmatprep.subr.bf16.mxu1 %v10158_v47 }
  0x55   : > { %8643 = vmatmul.mubr.msk.f32.gmra.mrb[14].mxu0 %vm630_vm1, %v398_v48  ;;  %8676 = vmatmul.mubr.msk.f32.gmra.mrb[14].mxu1 %vm630_vm1, %v397_v44 }
  0x56   : > { %848 = vmatprep.mubr.f32.mxu0 %v11336_v3  ;;  %1099 = vmatprep.mubr.f32.mxu1 %v11336_v3 }
  0x57   : > { %8888 = vmatpush3.bf16.msra.mxu0 %v10157_v49  ;;  %9384 = vmatpush3.bf16.msra.mxu1 %v10158_v47 }
  0x58   : > { %8889 = vmatprep.subr.bf16.mxu0 %v10159_v50  ;;  %9385 = vmatprep.subr.bf16.mxu1 %v10161_v51 }
  0x59   : > { %8644 = vmatmul.mubr.msk.f32.gmra.mrb[16].mxu0 %vm630_vm1, %v399_v52  ;;  %8677 = vmatmul.mubr.msk.f32.gmra.mrb[16].mxu1 %vm630_vm1, %v398_v48 }
  0x5a   : > { %854 = vmatprep.mubr.f32.mxu0 %v11336_v3  ;;  %1105 = vmatprep.mubr.f32.mxu1 %v11336_v3 }
  0x5b   : > { %8890 = vmatpush3.bf16.msra.mxu0 %v10160_v53  ;;  %9386 = vmatpush3.bf16.msra.mxu1 %v10161_v51 }
  0x5d   : > { %8645 = vmatmul.mubr.msk.f32.gmra.mrb[18].mxu0 %vm630_vm1, %v400_v54  ;;  %8678 = vmatmul.mubr.msk.f32.gmra.mrb[18].mxu1 %vm630_vm1, %v399_v52 }
  0x5e   : > { %860 = vmatprep.mubr.f32.mxu0 %v11336_v3  ;;  %1111 = vmatprep.mubr.f32.mxu1 %v11336_v3 }
  0x61   : > { %8646 = vmatmul.mubr.msk.f32.gmra.mrb[20].mxu0 %vm630_vm1, %v401_v55  ;;  %8679 = vmatmul.mubr.msk.f32.gmra.mrb[20].mxu1 %vm630_vm1, %v400_v54 }
  0x62   : > { %866 = vmatprep.mubr.f32.mxu0 %v11336_v3  ;;  %1117 = vmatprep.mubr.f32.mxu1 %v11336_v3 }
  0x65   : > { %8647 = vmatmul.mubr.msk.f32.gmra.mrb[22].mxu0 %vm630_vm1, %v402_v56  ;;  %8680 = vmatmul.mubr.msk.f32.gmra.mrb[22].mxu1 %vm630_vm1, %v401_v55 }
  0x66   : > { %872 = vmatprep.mubr.f32.mxu0 %v11336_v3  ;;  %1123 = vmatprep.mubr.f32.mxu1 %v11336_v3 }
  0x69   : > { %8648 = vmatmul.mubr.msk.f32.gmra.mrb[24].mxu0 %vm630_vm1, %v403_v57  ;;  %8681 = vmatmul.mubr.msk.f32.gmra.mrb[24].mxu1 %vm630_vm1, %v402_v56 }
  0x6a   : > { %878 = vmatprep.mubr.f32.mxu0 %v11336_v3  ;;  %1129 = vmatprep.mubr.f32.mxu1 %v11336_v3 }
  0x6d   : > { %8649 = vmatmul.mubr.msk.f32.gmra.mrb[26].mxu0 %vm630_vm1, %v404_v58  ;;  %8682 = vmatmul.mubr.msk.f32.gmra.mrb[26].mxu1 %vm630_vm1, %v403_v57 }
  0x6e   : > { %884 = vmatprep.mubr.f32.mxu0 %v11336_v3  ;;  %1135 = vmatprep.mubr.f32.mxu1 %v11336_v3 }
  0x71   : > { %8650 = vmatmul.mubr.msk.f32.gmra.mrb[28].mxu0 %vm630_vm1, %v405_v59  ;;  %8683 = vmatmul.mubr.msk.f32.gmra.mrb[28].mxu1 %vm630_vm1, %v404_v58 }
  0x72   : > { %890 = vmatprep.mubr.f32.mxu0 %v11336_v3  ;;  %1141 = vmatprep.mubr.f32.mxu1 %v11336_v3 }
  0x75   : > { %8651 = vmatmul.mubr.msk.f32.gmra.mrb[30].mxu0 %vm630_vm1, %v406_v60  ;;  %8684 = vmatmul.mubr.msk.f32.gmra.mrb[30].mxu1 %vm630_vm1, %v405_v59 }
  0x76   : > { %896 = vmatprep.mubr.f32.mxu0 %v11336_v3  ;;  %1147 = vmatprep.mubr.f32.mxu1 %v11336_v3 }
  0x79   : > { %8652 = vmatmul.mubr.msk.f32.gmra.mrb[32].mxu0 %vm630_vm1, %v407_v61  ;;  %8685 = vmatmul.mubr.msk.f32.gmra.mrb[32].mxu1 %vm630_vm1, %v406_v60 }
  0x7a   : > { %902 = vmatprep.mubr.f32.mxu0 %v11336_v3  ;;  %1153 = vmatprep.mubr.f32.mxu1 %v11336_v3 }
  0x7d   : > { %8653 = vmatmul.mubr.msk.f32.gmra.mrb[34].mxu0 %vm630_vm1, %v408_v62  ;;  %8686 = vmatmul.mubr.msk.f32.gmra.mrb[34].mxu1 %vm630_vm1, %v407_v61 }
  0x7e   : > { %908 = vmatprep.mubr.f32.mxu0 %v11336_v3  ;;  %1159 = vmatprep.mubr.f32.mxu1 %v11336_v3 }
  0x81   : > { %8654 = vmatmul.mubr.msk.f32.gmra.mrb[36].mxu0 %vm630_vm1, %v409_v63  ;;  %8687 = vmatmul.mubr.msk.f32.gmra.mrb[36].mxu1 %vm630_vm1, %v408_v62 }
  0x82   : > { %914 = vmatprep.mubr.f32.mxu0 %v11336_v3  ;;  %1165 = vmatprep.mubr.f32.mxu1 %v11336_v3 }
  0x85   : > { %8655 = vmatmul.mubr.msk.f32.gmra.mrb[38].mxu0 %vm630_vm1, %v410_v0  ;;  %8688 = vmatmul.mubr.msk.f32.gmra.mrb[38].mxu1 %vm630_vm1, %v409_v63 }
  0x86   : > { %920 = vmatprep.mubr.f32.mxu0 %v11336_v3  ;;  %1171 = vmatprep.mubr.f32.mxu1 %v11336_v3 }
  0x89   : > { %8656 = vmatmul.mubr.msk.f32.gmra.mrb[40].mxu0 %vm630_vm1, %v411_v1  ;;  %8689 = vmatmul.mubr.msk.f32.gmra.mrb[40].mxu1 %vm630_vm1, %v410_v0 }
  0x8a   : > { %926 = vmatprep.mubr.f32.mxu0 %v11336_v3  ;;  %1177 = vmatprep.mubr.f32.mxu1 %v11336_v3 }
  0x8d   : > { %8657 = vmatmul.mubr.msk.f32.gmra.mrb[42].mxu0 %vm630_vm1, %v412_v2  ;;  %8690 = vmatmul.mubr.msk.f32.gmra.mrb[42].mxu1 %vm630_vm1, %v411_v1 }
  0x8e   : > { %932 = vmatprep.mubr.f32.mxu0 %v11336_v3  ;;  %1183 = vmatprep.mubr.f32.mxu1 %v11336_v3 }
  0x91   : > { %8658 = vmatmul.mubr.msk.f32.gmra.mrb[44].mxu0 %vm630_vm1, %v413_v5  ;;  %8691 = vmatmul.mubr.msk.f32.gmra.mrb[44].mxu1 %vm630_vm1, %v412_v2 }
  0x92   : > { %938 = vmatprep.mubr.f32.mxu0 %v11336_v3  ;;  %1189 = vmatprep.mubr.f32.mxu1 %v11336_v3 }
  0x95   : > { %8659 = vmatmul.mubr.msk.f32.gmra.mrb[46].mxu0 %vm630_vm1, %v414_v8  ;;  %8692 = vmatmul.mubr.msk.f32.gmra.mrb[46].mxu1 %vm630_vm1, %v413_v5 }
  0x96   : > { %944 = vmatprep.mubr.f32.mxu0 %v11336_v3  ;;  %1195 = vmatprep.mubr.f32.mxu1 %v11336_v3 }
  0x99   : > { %8660 = vmatmul.mubr.msk.f32.gmra.mrb[48].mxu0 %vm630_vm1, %v415_v9  ;;  %8693 = vmatmul.mubr.msk.f32.gmra.mrb[48].mxu1 %vm630_vm1, %v414_v8 }
  0x9a   : > { %950 = vmatprep.mubr.f32.mxu0 %v11336_v3  ;;  %1201 = vmatprep.mubr.f32.mxu1 %v11336_v3 }
  0x9d   : > { %8661 = vmatmul.mubr.msk.f32.gmra.mrb[50].mxu0 %vm630_vm1, %v416_v10  ;;  %8694 = vmatmul.mubr.msk.f32.gmra.mrb[50].mxu1 %vm630_vm1, %v415_v9 }
  0x9e   : > { %956 = vmatprep.mubr.f32.mxu0 %v11336_v3  ;;  %1207 = vmatprep.mubr.f32.mxu1 %v11336_v3 }
  0xa1   : > { %8662 = vmatmul.mubr.msk.f32.gmra.mrb[52].mxu0 %vm630_vm1, %v417_v15  ;;  %8695 = vmatmul.mubr.msk.f32.gmra.mrb[52].mxu1 %vm630_vm1, %v416_v10 }
  0xa2   : > { %962 = vmatprep.mubr.f32.mxu0 %v11336_v3  ;;  %1213 = vmatprep.mubr.f32.mxu1 %v11336_v3 }
  0xa5   : > { %8663 = vmatmul.mubr.msk.f32.gmra.mrb[54].mxu0 %vm630_vm1, %v418_v16  ;;  %8696 = vmatmul.mubr.msk.f32.gmra.mrb[54].mxu1 %vm630_vm1, %v417_v15 }
  0xa6   : > { %968 = vmatprep.mubr.f32.mxu0 %v11336_v3  ;;  %1219 = vmatprep.mubr.f32.mxu1 %v11336_v3 }
  0xa9   : > { %8664 = vmatmul.mubr.msk.f32.gmra.mrb[56].mxu0 %vm630_vm1, %v419_v17  ;;  %8697 = vmatmul.mubr.msk.f32.gmra.mrb[56].mxu1 %vm630_vm1, %v418_v16 }
  0xaa   : > { %974 = vmatprep.mubr.f32.mxu0 %v11336_v3  ;;  %1225 = vmatprep.mubr.f32.mxu1 %v11336_v3 }
  0xad   : > { %8665 = vmatmul.mubr.msk.f32.gmra.mrb[58].mxu0 %vm630_vm1, %v420_v18  ;;  %8698 = vmatmul.mubr.msk.f32.gmra.mrb[58].mxu1 %vm630_vm1, %v419_v17 }
  0xae   : > { %980 = vmatprep.mubr.f32.mxu0 %v11336_v3  ;;  %1231 = vmatprep.mubr.f32.mxu1 %v11336_v3 }
  0xb1   : > { %8666 = vmatmul.mubr.msk.f32.gmra.mrb[60].mxu0 %vm630_vm1, %v421_v19  ;;  %8699 = vmatmul.mubr.msk.f32.gmra.mrb[60].mxu1 %vm630_vm1, %v420_v18 }
  0xb2   : > { %1237 = vmatprep.mubr.f32.mxu1 %v11336_v3  ;;  %1570 = vmatprep.mubr.bf16.mxu0 %v15597_v21 }
  0xb5   : > { %8700 = vmatmul.mubr.msk.f32.gmra.mrb[62].mxu1 %vm630_vm1, %v421_v19  ;;  %1571 = vmatmul.mubr.bf16.vlgmr.msra.gmra.mrb[64].mxu0 %v15597_v21 }
  0xb6   : > { %1243 = vmatprep.mubr.f32.mxu1 %v11336_v3  ;;  %1578 = vmatprep.mubr.bf16.mxu0 %v15597_v21 }
  0xb9   : > { %8701 = vmatmul.mubr.msk.f32.gmra.mrb[64].mxu1 %vm630_vm1, %v11482_v20 }
  0xba   : > { %9387 = vmatprep.mubr.bf16.mxu1 %v15597_v21 }
  0xbd   : > { %1579 = vmatmul.mubr.bf16.gmra.mrb[68].mxu0 %v15597_v21  ;;  %9388 = vmatmul.mubr.bf16.vlgmr.msra.gmra.mrb[68].mxu1 %v15597_v21 }
  0xbe   : > { %1843 = vmatprep.mubr.bf16.mxu1 %v15597_v21  ;;  %1896 = vmatprep.mubr.bf16.mxu0 %v15597_v21 }
 0x10c   : > { %v11728_v22 = vpop.f32.mrb[0].mxu1  ;;  %v11730_v23 = vpop.f32.mrb[0].mxu0 }
 0x10d   : > { %15854 = vst [vmem:[#allocation9_spill] sm:$0xff] %v11728_v22  ;;  %v11732_v3 = vpop.f32.mrb[1].mxu1  ;;  %v11734_v24 = vpop.f32.mrb[1].mxu0 }
 0x10e   : > { %15855 = vst [vmem:[#allocation10_spill] sm:$0xff] %v11732_v3 }
 0x110   : > { %v11736_v25 = vpop.f32.mrb[2].mxu1  ;;  %v11738_v20 = vpop.f32.mrb[2].mxu0 }
 0x111   : > { %v11740_v26 = vpop.f32.mrb[3].mxu1  ;;  %v11742_v27 = vpop.f32.mrb[3].mxu0 }
 0x114   : > { %v11744_v28 = vpop.f32.mrb[4].mxu1  ;;  %v11746_v29 = vpop.f32.mrb[4].mxu0 }
 0x115   : > { %v11748_v30 = vpop.f32.mrb[5].mxu1  ;;  %v11750_v31 = vpop.f32.mrb[5].mxu0 }
 0x118   : > { %v11752_v32 = vpop.f32.mrb[6].mxu1  ;;  %v11754_v33 = vpop.f32.mrb[6].mxu0 }
 0x119   : > { %v11756_v34 = vpop.f32.mrb[7].mxu1  ;;  %v11758_v35 = vpop.f32.mrb[7].mxu0 }
 0x11c   : > { %v11760_v36 = vpop.f32.mrb[8].mxu1  ;;  %v11762_v37 = vpop.f32.mrb[8].mxu0 }
 0x11d   : > { %v11764_v38 = vpop.f32.mrb[9].mxu1  ;;  %v11766_v39 = vpop.f32.mrb[9].mxu0 }
 0x120   : > { %v11768_v40 = vpop.f32.mrb[10].mxu1  ;;  %v11770_v41 = vpop.f32.mrb[10].mxu0 }
 0x121   : > { %v11772_v42 = vpop.f32.mrb[11].mxu1  ;;  %v11774_v43 = vpop.f32.mrb[11].mxu0 }
 0x124   : > { %v11776_v44 = vpop.f32.mrb[12].mxu1  ;;  %v11778_v45 = vpop.f32.mrb[12].mxu0 }
 0x125   : > { %15856 = vst [vmem:[#allocation11_spill] sm:$0xff] %v11776_v44  ;;  %v11780_v46 = vpop.f32.mrb[13].mxu1  ;;  %v11782_v47 = vpop.f32.mrb[13].mxu0 }
 0x126   : > { %15857 = vst [vmem:[#allocation12_spill] sm:$0xff] %v11782_v47 }
 0x128   : > { %v11784_v48 = vpop.f32.mrb[14].mxu1  ;;  %v11786_v49 = vpop.f32.mrb[14].mxu0 }
 0x129   : > { %15858 = vst [vmem:[#allocation13_spill] sm:$0xff] %v11784_v48  ;;  %v11788_v50 = vpop.f32.mrb[15].mxu1  ;;  %v11790_v51 = vpop.f32.mrb[15].mxu0 }
 0x12a   : > { %15859 = vst [vmem:[#allocation14_spill] sm:$0xff] %v11788_v50  ;;  %15860 = vst [vmem:[#allocation15_spill] sm:$0xff] %v11790_v51 }
 0x12c   : > { %v11792_v52 = vpop.f32.mrb[16].mxu1  ;;  %v11794_v53 = vpop.f32.mrb[16].mxu0 }
 0x12d   : > { %15861 = vst [vmem:[#allocation16_spill] sm:$0xff] %v11792_v52  ;;  %15862 = vst [vmem:[#allocation17_spill] sm:$0xff] %v11794_v53  ;;  %v11796_v54 = vpop.f32.mrb[17].mxu1  ;;  %v11798_v55 = vpop.f32.mrb[17].mxu0  ;;  %v10178_v53 = vld [vmem:[#allocation3 + $0x10] ss:$36 sps:$4 sm:$0xff]  }
 0x12e   : > { %15863 = vst [vmem:[#allocation18_spill] sm:$0xff] %v11796_v54  ;;  %15864 = vst [vmem:[#allocation19_spill] sm:$0xff] %v11798_v55 }
 0x130   : > { %v11800_v56 = vpop.f32.mrb[18].mxu1  ;;  %v11802_v57 = vpop.f32.mrb[18].mxu0 }
 0x131   : > { %15865 = vst [vmem:[#allocation20_spill] sm:$0xff] %v11800_v56  ;;  %15866 = vst [vmem:[#allocation21_spill] sm:$0xff] %v11802_v57  ;;  %v11804_v58 = vpop.f32.mrb[19].mxu1  ;;  %v11806_v59 = vpop.f32.mrb[19].mxu0 }
 0x132   : > { %15867 = vst [vmem:[#allocation22_spill] sm:$0xff] %v11804_v58  ;;  %15868 = vst [vmem:[#allocation23_spill] sm:$0xff] %v11806_v59 }
 0x134   : > { %v11808_v60 = vpop.f32.mrb[20].mxu1  ;;  %v11810_v61 = vpop.f32.mrb[20].mxu0 }
 0x135   : > { %15869 = vst [vmem:[#allocation24_spill] sm:$0xff] %v11808_v60  ;;  %15870 = vst [vmem:[#allocation25_spill] sm:$0xff] %v11810_v61  ;;  %v11812_v62 = vpop.f32.mrb[21].mxu1  ;;  %v11814_v63 = vpop.f32.mrb[21].mxu0  ;;  %v10179_v61 = vld [vmem:[#allocation3 + $0x18] ss:$36 sps:$4 sm:$0xff]  }
 0x136   : > { %15871 = vst [vmem:[#allocation26_spill] sm:$0xff] %v11812_v62  ;;  %15872 = vst [vmem:[#allocation27_spill] sm:$0xff] %v11814_v63 }
 0x138   : > { %v11816_v0 = vpop.f32.mrb[22].mxu1  ;;  %v11818_v1 = vpop.f32.mrb[22].mxu0 }
 0x139   : > { %15873 = vst [vmem:[#allocation28_spill] sm:$0xff] %v11816_v0  ;;  %15874 = vst [vmem:[#allocation29_spill] sm:$0xff] %v11818_v1  ;;  %v11820_v2 = vpop.f32.mrb[23].mxu1  ;;  %v11822_v5 = vpop.f32.mrb[23].mxu0 }
 0x13a   : > { %15875 = vst [vmem:[#allocation30_spill] sm:$0xff] %v11820_v2  ;;  %15876 = vst [vmem:[#allocation31_spill] sm:$0xff] %v11822_v5 }
 0x13c   : > { %v11824_v8 = vpop.f32.mrb[24].mxu1  ;;  %v11826_v9 = vpop.f32.mrb[24].mxu0 }
 0x13d   : > { %15877 = vst [vmem:[#allocation32_spill] sm:$0xff] %v11824_v8  ;;  %15878 = vst [vmem:[#allocation33_spill] sm:$0xff] %v11826_v9  ;;  %v11828_v10 = vpop.f32.mrb[25].mxu1  ;;  %v11830_v15 = vpop.f32.mrb[25].mxu0 }
 0x13e   : > { %15879 = vst [vmem:[#allocation34_spill] sm:$0xff] %v11828_v10  ;;  %15880 = vst [vmem:[#allocation35_spill] sm:$0xff] %v11830_v15 }
 0x140   : > { %v11832_v16 = vpop.f32.mrb[26].mxu1  ;;  %v11834_v17 = vpop.f32.mrb[26].mxu0 }
 0x141   : > { %15881 = vst [vmem:[#allocation36_spill] sm:$0xff] %v11832_v16  ;;  %15882 = vst [vmem:[#allocation37_spill] sm:$0xff] %v11834_v17  ;;  %v11836_v18 = vpop.f32.mrb[27].mxu1  ;;  %v11838_v19 = vpop.f32.mrb[27].mxu0 }
 0x142   : > { %15883 = vst [vmem:[#allocation38_spill] sm:$0xff] %v11836_v18  ;;  %15884 = vst [vmem:[#allocation39_spill] sm:$0xff] %v11838_v19 }
 0x144   : > { %v11840_v21 = vpop.f32.mrb[28].mxu1  ;;  %v11842_v3 = vpop.f32.mrb[28].mxu0 }
 0x145   : > { %15885 = vst [vmem:[#allocation40_spill] sm:$0xff] %v11840_v21  ;;  %15886 = vst [vmem:[#allocation41_spill] sm:$0xff] %v11842_v3  ;;  %v11844_v22 = vpop.f32.mrb[29].mxu1  ;;  %v11846_v8 = vpop.f32.mrb[29].mxu0 }
 0x146   : > { %15887 = vst [vmem:[#allocation42_spill] sm:$0xff] %v11844_v22  ;;  %15888 = vst [vmem:[#allocation43_spill] sm:$0xff] %v11846_v8 }
 0x148   : > { %v11848_v9 = vpop.f32.mrb[30].mxu1  ;;  %v11850_v10 = vpop.f32.mrb[30].mxu0 }
 0x149   : > { %15889 = vst [vmem:[#allocation44_spill] sm:$0xff] %v11848_v9  ;;  %15890 = vst [vmem:[#allocation45_spill] sm:$0xff] %v11850_v10  ;;  %v11852_v15 = vpop.f32.mrb[31].mxu1  ;;  %v11854_v16 = vpop.f32.mrb[31].mxu0 }
 0x14a   : > { %15891 = vst [vmem:[#allocation46_spill] sm:$0xff] %v11852_v15  ;;  %15892 = vst [vmem:[#allocation47_spill] sm:$0xff] %v11854_v16 }
 0x14c   : > { %v11856_v17 = vpop.f32.mrb[32].mxu1  ;;  %v11858_v18 = vpop.f32.mrb[32].mxu0 }
 0x14d   : > { %15893 = vst [vmem:[#allocation48_spill] sm:$0xff] %v11856_v17  ;;  %15894 = vst [vmem:[#allocation49_spill] sm:$0xff] %v11858_v18  ;;  %v11860_v19 = vpop.f32.mrb[33].mxu1  ;;  %v11862_v21 = vpop.f32.mrb[33].mxu0 }
 0x14e   : > { %15895 = vst [vmem:[#allocation50_spill] sm:$0xff] %v11860_v19  ;;  %15896 = vst [vmem:[#allocation51_spill] sm:$0xff] %v11862_v21 }
 0x150   : > { %v11864_v3 = vpop.f32.mrb[34].mxu1  ;;  %v11866_v22 = vpop.f32.mrb[34].mxu0 }
 0x151   : > { %15897 = vst [vmem:[#allocation52_spill] sm:$0xff] %v11864_v3  ;;  %15898 = vst [vmem:[#allocation53_spill] sm:$0xff] %v11866_v22  ;;  %v11868_v8 = vpop.f32.mrb[35].mxu1  ;;  %v11870_v9 = vpop.f32.mrb[35].mxu0 }
 0x152   : > { %15899 = vst [vmem:[#allocation54_spill] sm:$0xff] %v11868_v8  ;;  %15900 = vst [vmem:[#allocation55_spill] sm:$0xff] %v11870_v9 }
 0x154   : > { %v11872_v10 = vpop.f32.mrb[36].mxu1  ;;  %v11874_v15 = vpop.f32.mrb[36].mxu0 }
 0x155   : > { %15901 = vst [vmem:[#allocation56_spill] sm:$0xff] %v11872_v10  ;;  %15902 = vst [vmem:[#allocation57_spill] sm:$0xff] %v11874_v15  ;;  %v11876_v16 = vpop.f32.mrb[37].mxu1  ;;  %v11878_v17 = vpop.f32.mrb[37].mxu0 }
 0x156   : > { %15903 = vst [vmem:[#allocation58_spill] sm:$0xff] %v11876_v16  ;;  %15904 = vst [vmem:[#allocation59_spill] sm:$0xff] %v11878_v17 }
 0x158   : > { %v11880_v18 = vpop.f32.mrb[38].mxu1  ;;  %v11882_v19 = vpop.f32.mrb[38].mxu0 }
 0x159   : > { %15905 = vst [vmem:[#allocation60_spill] sm:$0xff] %v11880_v18  ;;  %15906 = vst [vmem:[#allocation61_spill] sm:$0xff] %v11882_v19  ;;  %v11884_v21 = vpop.f32.mrb[39].mxu1  ;;  %v11886_v3 = vpop.f32.mrb[39].mxu0 }
 0x15a   : > { %15907 = vst [vmem:[#allocation62_spill] sm:$0xff] %v11884_v21  ;;  %15908 = vst [vmem:[#allocation63_spill] sm:$0xff] %v11886_v3 }
 0x15c   : > { %v11888_v22 = vpop.f32.mrb[40].mxu1  ;;  %v11890_v8 = vpop.f32.mrb[40].mxu0 }
 0x15d   : > { %15909 = vst [vmem:[#allocation64_spill] sm:$0xff] %v11888_v22  ;;  %15910 = vst [vmem:[#allocation65_spill] sm:$0xff] %v11890_v8  ;;  %v11892_v9 = vpop.f32.mrb[41].mxu1  ;;  %v11894_v10 = vpop.f32.mrb[41].mxu0 }
 0x15e   : > { %15911 = vst [vmem:[#allocation66_spill] sm:$0xff] %v11892_v9  ;;  %15912 = vst [vmem:[#allocation67_spill] sm:$0xff] %v11894_v10 }
 0x160   : > { %v11896_v15 = vpop.f32.mrb[42].mxu1  ;;  %v11898_v16 = vpop.f32.mrb[42].mxu0 }
 0x161   : > { %15913 = vst [vmem:[#allocation68_spill] sm:$0xff] %v11896_v15  ;;  %15914 = vst [vmem:[#allocation69_spill] sm:$0xff] %v11898_v16  ;;  %v11900_v17 = vpop.f32.mrb[43].mxu1  ;;  %v11902_v18 = vpop.f32.mrb[43].mxu0 }
 0x162   : > { %15915 = vst [vmem:[#allocation70_spill] sm:$0xff] %v11900_v17  ;;  %15916 = vst [vmem:[#allocation71_spill] sm:$0xff] %v11902_v18 }
 0x164   : > { %v11904_v19 = vpop.f32.mrb[44].mxu1  ;;  %v11906_v21 = vpop.f32.mrb[44].mxu0 }
 0x165   : > { %15917 = vst [vmem:[#allocation72_spill] sm:$0xff] %v11904_v19  ;;  %15918 = vst [vmem:[#allocation73_spill] sm:$0xff] %v11906_v21  ;;  %v11908_v3 = vpop.f32.mrb[45].mxu1  ;;  %v11910_v22 = vpop.f32.mrb[45].mxu0 }
 0x166   : > { %15919 = vst [vmem:[#allocation74_spill] sm:$0xff] %v11908_v3  ;;  %15920 = vst [vmem:[#allocation75_spill] sm:$0xff] %v11910_v22 }
 0x168   : > { %v11912_v8 = vpop.f32.mrb[46].mxu1  ;;  %v11914_v9 = vpop.f32.mrb[46].mxu0 }
 0x169   : > { %15921 = vst [vmem:[#allocation76_spill] sm:$0xff] %v11912_v8  ;;  %15922 = vst [vmem:[#allocation77_spill] sm:$0xff] %v11914_v9  ;;  %v11916_v10 = vpop.f32.mrb[47].mxu1  ;;  %v11918_v15 = vpop.f32.mrb[47].mxu0 }
 0x16a   : > { %15923 = vst [vmem:[#allocation78_spill] sm:$0xff] %v11916_v10  ;;  %15924 = vst [vmem:[#allocation79_spill] sm:$0xff] %v11918_v15 }
 0x16c   : > { %v11920_v16 = vpop.f32.mrb[48].mxu1  ;;  %v11922_v17 = vpop.f32.mrb[48].mxu0 }
 0x16d   : > { %15925 = vst [vmem:[#allocation80_spill] sm:$0xff] %v11920_v16  ;;  %15926 = vst [vmem:[#allocation81_spill] sm:$0xff] %v11922_v17  ;;  %v11924_v18 = vpop.f32.mrb[49].mxu1  ;;  %v11926_v19 = vpop.f32.mrb[49].mxu0 }
 0x16e   : > { %15927 = vst [vmem:[#allocation82_spill] sm:$0xff] %v11924_v18  ;;  %15928 = vst [vmem:[#allocation83_spill] sm:$0xff] %v11926_v19 }
 0x170   : > { %v11928_v21 = vpop.f32.mrb[50].mxu1  ;;  %v11930_v3 = vpop.f32.mrb[50].mxu0 }
 0x171   : > { %15929 = vst [vmem:[#allocation84_spill] sm:$0xff] %v11928_v21  ;;  %15930 = vst [vmem:[#allocation85_spill] sm:$0xff] %v11930_v3  ;;  %v11932_v22 = vpop.f32.mrb[51].mxu1  ;;  %v11934_v8 = vpop.f32.mrb[51].mxu0 }
 0x172   : > { %15931 = vst [vmem:[#allocation86_spill] sm:$0xff] %v11932_v22  ;;  %15932 = vst [vmem:[#allocation87_spill] sm:$0xff] %v11934_v8 }
 0x174   : > { %v11936_v9 = vpop.f32.mrb[52].mxu1  ;;  %v11938_v10 = vpop.f32.mrb[52].mxu0 }
 0x175   : > { %15933 = vst [vmem:[#allocation88_spill] sm:$0xff] %v11936_v9  ;;  %15934 = vst [vmem:[#allocation89_spill] sm:$0xff] %v11938_v10  ;;  %v11940_v15 = vpop.f32.mrb[53].mxu1  ;;  %v11942_v16 = vpop.f32.mrb[53].mxu0 }
 0x176   : > { %15935 = vst [vmem:[#allocation90_spill] sm:$0xff] %v11940_v15  ;;  %15936 = vst [vmem:[#allocation91_spill] sm:$0xff] %v11942_v16 }
 0x178   : > { %v11944_v17 = vpop.f32.mrb[54].mxu1  ;;  %v11946_v18 = vpop.f32.mrb[54].mxu0 }
 0x179   : > { %15937 = vst [vmem:[#allocation92_spill] sm:$0xff] %v11944_v17  ;;  %15938 = vst [vmem:[#allocation93_spill] sm:$0xff] %v11946_v18  ;;  %v11948_v19 = vpop.f32.mrb[55].mxu1  ;;  %v11950_v21 = vpop.f32.mrb[55].mxu0 }
 0x17a   : > { %15939 = vst [vmem:[#allocation94_spill] sm:$0xff] %v11948_v19  ;;  %15940 = vst [vmem:[#allocation95_spill] sm:$0xff] %v11950_v21 }
 0x17c   : > { %v11952_v3 = vpop.f32.mrb[56].mxu1  ;;  %v11954_v22 = vpop.f32.mrb[56].mxu0 }
 0x17d   : > { %15941 = vst [vmem:[#allocation96_spill] sm:$0xff] %v11952_v3  ;;  %15942 = vst [vmem:[#allocation97_spill] sm:$0xff] %v11954_v22  ;;  %v11956_v8 = vpop.f32.mrb[57].mxu1  ;;  %v11958_v9 = vpop.f32.mrb[57].mxu0 }
 0x17e   : > { %15943 = vst [vmem:[#allocation98_spill] sm:$0xff] %v11956_v8  ;;  %15944 = vst [vmem:[#allocation99_spill] sm:$0xff] %v11958_v9 }
 0x180   : > { %v11960_v10 = vpop.f32.mrb[58].mxu1  ;;  %v11962_v15 = vpop.f32.mrb[58].mxu0 }
 0x181   : > { %15945 = vst [vmem:[#allocation100_spill] sm:$0xff] %v11960_v10  ;;  %15946 = vst [vmem:[#allocation101_spill] sm:$0xff] %v11962_v15  ;;  %v11964_v16 = vpop.f32.mrb[59].mxu1  ;;  %v11966_v17 = vpop.f32.mrb[59].mxu0 }
 0x182   : > { %15947 = vst [vmem:[#allocation102_spill] sm:$0xff] %v11964_v16  ;;  %15948 = vst [vmem:[#allocation103_spill] sm:$0xff] %v11966_v17  ;;  %v11981_v16 = vsub.s32 0, %v11445_v4 }
 0x184   : > { %v11968_v18 = vpop.f32.mrb[60].mxu1  ;;  %v11970_v19 = vpop.f32.mrb[60].mxu0 }
 0x185   : > { %15949 = vst [vmem:[#allocation104_spill] sm:$0xff] %v11968_v18  ;;  %15950 = vst [vmem:[#allocation105_spill] sm:$0xff] %v11970_v19  ;;  %v11972_v21 = vpop.f32.mrb[61].mxu1  ;;  %v11974_v3 = vpop.f32.mrb[61].mxu0 }
 0x186   : > { %15951 = vst [vmem:[#allocation106_spill] sm:$0xff] %v11972_v21  ;;  %15952 = vst [vmem:[#allocation107_spill] sm:$0xff] %v11974_v3  ;;  %v11989_v3 = vrot.slane %v11462_v11, %v11981_v16 }
 0x188   : > { %v11976_v22 = vpop.f32.mrb[62].mxu1  ;;  %v8891_v8 = vpop.f32.mrb[64].mxu0  ;;  %v821_v58 = vadd.f32 %v11754_v33, %v11989_v3 }
 0x189   : > { %15953 = vst [vmem:[#allocation108_spill] sm:$0xff] %v11976_v22  ;;  %v11978_v9 = vpop.f32.mrb[63].mxu1  ;;  %v8892_v10 = vpop.f32.mrb[65].mxu0 }
 0x18a   : > { %15954 = vst [vmem:[#allocation109_spill] sm:$0xff] %v11978_v9  ;;  %v8893_v5 = vadd.f32 %v8892_v10, %v8891_v8  ;;  %v8894_v15 = vpop.f32.mrb[66].mxu0  ;;  %v803_v8 = vadd.f32 %v11730_v23, %v11989_v3 }
 0x18b   : > { %v8895_v0 = vpop.f32.mrb[67].mxu0 }
 0x18c   : > { %v11983_v17 = vpop.f32.mrb[64].mxu1  ;;  %v8896_v18 = vadd.f32 %v8895_v0, %v8894_v15  ;;  %v809_v0 = vadd.f32 %v11738_v20, %v11989_v3  ;;  %v815_v15 = vadd.f32 %v11746_v29, %v11989_v3 }
 0x18d   : > { %15955 = vst [vmem:[#allocation110_spill] sm:$0xff] %v11983_v17  ;;  %v11985_v19 = vpop.f32.mrb[65].mxu1 }
 0x18e   : > { %15956 = vst [vmem:[#allocation111_spill] sm:$0xff] %v11985_v19 }
 0x190   : > { %v8897_v22 = vpop.f32.mrb[68].mxu0  ;;  %v9389_v21 = vpop.f32.mrb[68].mxu1 }
 0x191   : > { %v8898_v2 = vpop.f32.mrb[69].mxu0  ;;  %v1621_v9 = vpop.f32.mrb[69].mxu1 }
 0x192   : > { %v8899_v10 = vadd.f32 %v8898_v2, %v8897_v22  ;;  %v1622_v63 = vadd.f32 %v8893_v5, %v1621_v9  ;;  %v8900_v4 = vpop.f32.mrb[70].mxu0  ;;  %v9390_v60 = vpop.f32.mrb[70].mxu1 }
 0x193   : > { %v8901_v17 = vpop.f32.mrb[71].mxu0  ;;  %v1624_v11 = vpop.f32.mrb[71].mxu1 }
 0x194   : > { %v1630_v19 = vadd.f32 %v9389_v21, %v8899_v10  ;;  %v1636_v62 = vadd.f32 %v1622_v63, %v803_v8  ;;  %v8902_v59 = vadd.f32 %v8901_v17, %v8900_v4  ;;  %v1625_v56 = vadd.f32 %v8896_v18, %v1624_v11  ;;  %v12009_v11 = vld [vmem:[#allocation3 + $0x8] ss:$36 sps:$4 sm:$0xff]  }
 0x196   : > { %v1638_v23 = vadd.f32 %v1630_v19, %v815_v15  ;;  %10252 = vtanh.f32 %v1636_v62  ;;  %v1633_v22 = vadd.f32 %v9390_v60, %v8902_v59  ;;  %v1637_v2 = vadd.f32 %v1625_v56, %v809_v0  ;;  %v12007_v15 = vld [vmem:[#allocation3 + $0xc] ss:$36 sps:$4 sm:$0xff]  }
 0x197   : > { %1864 = vmatprep.subr.bf16.mxu0 %v12007_v15 }
 0x198   : > { %10254 = vtanh.f32 %v1638_v23  ;;  %v1639_v5 = vadd.f32 %v1633_v22, %v821_v58  ;;  %v12011_v23 = vld [vmem:[#allocation3 + $0x4] ss:$36 sps:$4 sm:$0xff]   ;;  %v10167_v22 = vld [vmem:[#allocation3 + $0x54] ss:$36 sps:$4 sm:$0xff]   ;;  %1865 = vmatpush1.bf16.msra.mxu0 %v12009_v11 }
 0x199   : > { %10256 = vtanh.f32 %v1637_v2  ;;  %v12013_v2 = vld [vmem:[#allocation3] ss:$36 sps:$4 sm:$0xff]   ;;  %1811 = vmatprep.subr.bf16.mxu1 %v12011_v23  ;;  %1866 = vmatprep.subr.bf16.mxu0 %v10167_v22 }
 0x19a   : > { %10258 = vtanh.f32 %v1639_v5  ;;  %1812 = vmatpush1.bf16.msra.mxu1 %v12013_v2  ;;  %v12021_v5 = vld [vmem:[#allocation3 + $0x50] ss:$36 sps:$4 sm:$0xff]  }
 0x19c   : > { %1867 = vmatpush1.bf16.msra.mxu0 %v12021_v5 }
 0x1a0   : > { %v10253_v20 = vpop.eup %10252 }
 0x1a1   : > { %v1644_v9 = vmul.f32 0.5, %v10253_v20 }
 0x1a2   : > { %v10255_v29 = vpop.eup %10254 }
 0x1a3   : > { %v10257_v55 = vpop.eup %10256  ;;  %v1648_v57 = vadd.f32 0.5, %v1644_v9  ;;  %v1646_v21 = vmul.f32 0.5, %v10255_v29 }
 0x1a4   : > { %v10259_v63 = vpop.eup %10258  ;;  %v1645_v17 = vmul.f32 0.5, %v10257_v55 }
 0x1a5   : > { %1660 = vrot.lane.b32.xlu0 %v1648_v57, %s11338_s21  ;;  %v1650_v33 = vadd.f32 0.5, %v1646_v21  ;;  %v1647_v18 = vmul.f32 0.5, %v10259_v63  ;;  %v1652_v9 = vmul.f32 0.0, %v1648_v57 }
 0x1a6   : > { %v1649_v56 = vadd.f32 0.5, %v1645_v17 }
 0x1a7   : > { %1664 = vrot.lane.b32.xlu1 %v1650_v33, %s11338_s21  ;;  %v1651_v58 = vadd.f32 0.5, %v1647_v18  ;;  %v1654_v17 = vmul.f32 0.0, %v1650_v33  ;;  %v12040_v33 = vld [vmem:[#allocation3 + $0x14] ss:$36 sps:$4 sm:$0xff]  }
 0x1a9   : > { %1662 = vrot.lane.b32.xlu0 %v1649_v56, %s11338_s21 }
 0x1ab   : > { %1666 = vrot.lane.b32.xlu1 %v1651_v58, %s11338_s21 }
 0x217   : > { %v1661_v59 = vpop.permute.xlu0 %1660 }
 0x218   : > { %v1672_v60 = vmul.f32 %v10253_v20, %v1661_v59  ;;  %v12023_v20 = vld [vmem:[#allocation3 + $0x48] ss:$36 sps:$4 sm:$0xff]  }
 0x219   : > { %v1665_v62 = vpop.permute.xlu1 %1664 }
 0x21a   : > { %1680 = vrot.lane.b32.xlu0 %v1672_v60, %s11339_s18  ;;  %v1674_v8 = vmul.f32 %v10255_v29, %v1665_v62 }
 0x21b   : > { %v1663_v19 = vpop.permute.xlu0 %1662 }
 0x21c   : > { %v1673_v10 = vmul.f32 %v10257_v55, %v1663_v19  ;;  %v12017_v55 = vld [vmem:[#allocation3 + $0x4c] ss:$36 sps:$4 sm:$0xff]  }
 0x21d   : > { %v1667_v4 = vpop.permute.xlu1 %1666  ;;  %1813 = vmatprep.subr.bf16.mxu1 %v12017_v55 }
 0x21e   : > { %1684 = vrot.lane.b32.xlu0 %v1674_v8, %s11339_s18  ;;  %1682 = vrot.lane.b32.xlu1 %v1673_v10, %s11339_s18  ;;  %v1675_v0 = vmul.f32 %v10259_v63, %v1667_v4  ;;  %v1653_v63 = vmul.f32 0.0, %v1649_v56 }
 0x21f   : > { %1814 = vmatpush1.bf16.msra.mxu1 %v12023_v20 }
 0x220   : > { %1917 = vmatprep.subr.bf16.mxu1 %v12040_v33 }
 0x222   : > { %1686 = vrot.lane.b32.xlu1 %v1675_v0, %s11339_s18  ;;  %v1655_v0 = vmul.f32 0.0, %v1651_v58 }
 0x28c   : > { %v1681_v29 = vpop.permute.xlu0 %1680 }
 0x28d   : > { %v12028_v21 = vadd.f32 %v1681_v29, %v1652_v9  ;;  %v12042_v9 = vld [vmem:[#allocation3 + $0x1c] ss:$36 sps:$4 sm:$0xff]  }
 0x28e   : > { %1970 = vmatprep.subr.bf16.mxu0 %v12042_v9 }
 0x28f   : > { %10260 = vtanh.f32 %v12028_v21 }
 0x290   : > { %v1683_v18 = vpop.permute.xlu1 %1682  ;;  %v1685_v60 = vpop.permute.xlu0 %1684 }
 0x291   : > { %v12031_v8 = vadd.f32 %v1683_v18, %v1653_v63  ;;  %v12033_v10 = vadd.f32 %v1685_v60, %v1654_v17 }
 0x293   : > { %10262 = vtanh.f32 %v12031_v8 }
 0x294   : > { %v1687_v22 = vpop.permute.xlu1 %1686  ;;  %10264 = vtanh.f32 %v12033_v10 }
 0x295   : > { %v12037_v57 = vadd.f32 %v1687_v22, %v1655_v0 }
 0x297   : > { %10266 = vtanh.f32 %v12037_v57 }
 0x299   : > { %v10261_v56 = vpop.eup %10260 }
 0x29a   : > { %v1700_v63 = vmul.f32 %v10261_v56, %v1661_v59  ;;  %v10180_v59 = vld [vmem:[#allocation3 + $0x5c] ss:$36 sps:$4 sm:$0xff]   ;;  %v15957_v56 = vmov 0  }
 0x29d   : > { %v10263_v29 = vpop.eup %10262 }
 0x29e   : > { %v1701_v18 = vmul.f32 %v10263_v29, %v1663_v19  ;;  %v10265_v58 = vpop.eup %10264  ;;  %v10182_v19 = vld [vmem:[#allocation3 + $0x64] ss:$36 sps:$4 sm:$0xff]  }
 0x29f   : > { %v1702_v0 = vmul.f32 %v10265_v58, %v1665_v62  ;;  %v10184_v62 = vld [vmem:[#allocation3 + $0x58] ss:$36 sps:$4 sm:$0xff]   ;;  %v10188_v29 = vld [vmem:[%s15589_s5 + $0x4] ss:$12 sps:$4 sm:$0xff]  }
 0x2a0   : > { %v1704_v17 = vpack.c.bf16 %v1701_v18, %v1700_v63  ;;  %v10191_v18 = vld [vmem:[%s15589_s5 + $0x1c] ss:$12 sps:$4 sm:$0xff]   ;;  %v10193_v58 = vld [vmem:[%s15589_s5 + $0x18] ss:$12 sps:$4 sm:$0xff]  }
 0x2a1   : > { %v10267_v60 = vpop.eup %10266 }
 0x2a2   : > { %1708 = vrot.lane.b32.xlu0 %v1704_v17, %s11339_s18  ;;  %v1703_v22 = vmul.f32 %v10267_v60, %v1667_v4  ;;  %v10185_v4 = vld [vmem:[#allocation3 + $0x60] ss:$36 sps:$4 sm:$0xff]   ;;  %v10196_v60 = vld [vmem:[%s15589_s5 + $0x8] ss:$12 sps:$4 sm:$0xff]  }
 0x2a3   : > { %v10194_v17 = vld [vmem:[%s15589_s5 + $0x34] ss:$12 sps:$4 sm:$0xff]  }
 0x2a4   : > { %v1705_v1 = vpack.c.bf16 %v1703_v22, %v1702_v0  ;;  %v10197_v0 = vld [vmem:[%s15589_s5 + $0x30] ss:$12 sps:$4 sm:$0xff]   ;;  %v10200_v22 = vld [vmem:[%s15589_s5 + $0x20] ss:$12 sps:$4 sm:$0xff]  }
 0x2a6   : > { %1710 = vrot.lane.b32.xlu1 %v1705_v1, %s11339_s18  ;;  %v10186_v1 = vld [vmem:[#allocation3 + $0x20] ss:$36 sps:$4 sm:$0xff]  }
 0x314   : > { %v1709_v52 = vpop.permute.xlu0 %1708 }
 0x315   : > { %8744 = vmatmul.mubr.msk.bf16.vlgmr.msra.gmra.mrb[72].mxu1 %vm1804_vm2, %v1709_v52  ;;  %8746 = vmatmul.mubr.msk.bf16.vlgmr.msra.gmra.mrb[72].mxu0 %vm1804_vm2, %v1709_v52 }
 0x316   : > { %1853 = vmatprep.mubr.bf16.mxu1 %v15957_v56  ;;  %1906 = vmatprep.mubr.bf16.mxu0 %v15957_v56 }
 0x317   : > { %1918 = vmatpush1.bf16.msra.mxu1 %v10178_v53  ;;  %1971 = vmatpush1.bf16.msra.mxu0 %v10179_v61  ;;  %v10190_v53 = vld [vmem:[%s15589_s5] ss:$12 sps:$4 sm:$0xff]  }
 0x318   : > { %1919 = vmatprep.subr.bf16.mxu1 %v10180_v59  ;;  %1972 = vmatprep.subr.bf16.mxu0 %v10182_v19  ;;  %v1711_v63 = vpop.permute.xlu1 %1710  ;;  %v10187_v61 = vld [vmem:[#allocation3 + $0x68] ss:$36 sps:$4 sm:$0xff]   ;;  %v10202_v19 = vld [vmem:[%s15589_s5 + $0x64] ss:$12 sps:$4 sm:$0xff]  }
 0x319   : > { %v10201_v59 = vld [vmem:[%s15589_s5 + $0x48] ss:$12 sps:$4 sm:$0xff]  }
 0x31b   : > { %1920 = vmatpush1.bf16.msra.mxu1 %v10184_v62  ;;  %1973 = vmatpush1.bf16.msra.mxu0 %v10185_v4  ;;  %v10204_v62 = vld [vmem:[%s15589_s5 + $0x38] ss:$12 sps:$4 sm:$0xff]   ;;  %v10205_v4 = vld [vmem:[%s15589_s5 + $0x60] ss:$12 sps:$4 sm:$0xff]  }
 0x31c   : > { %9391 = vmatprep.subr.bf16.mxu1 %v10186_v1  ;;  %2258 = vmatprep.subr.bf16.mxu0 %v10188_v29  ;;  %v10208_v29 = vld [vmem:[%s15589_s5 + $0x50] ss:$12 sps:$4 sm:$0xff]  }
 0x31d   : > { %8745 = vmatmul.mubr.msk.bf16.gmra.mrb[76].mxu1 %vm1804_vm2, %v1711_v63  ;;  %8747 = vmatmul.mubr.msk.bf16.gmra.mrb[76].mxu0 %vm1804_vm2, %v1711_v63 }
 0x31e   : > { %1949 = vmatprep.mubr.bf16.mxu1 %v15957_v56  ;;  %2002 = vmatprep.mubr.bf16.mxu0 %v15957_v56 }
 0x325   : > { %8748 = vmatmul.mubr.msk.bf16.vlgmr.msra.gmra.mrb[80].mxu1 %vm1804_vm2, %v1709_v52  ;;  %8750 = vmatmul.mubr.msk.bf16.vlgmr.msra.gmra.mrb[80].mxu0 %vm1804_vm2, %v1709_v52 }
 0x326   : > { %1959 = vmatprep.mubr.bf16.mxu1 %v15957_v56  ;;  %2012 = vmatprep.mubr.bf16.mxu0 %v15957_v56 }
 0x327   : > { %9392 = vmatpush3.bf16.msra.mxu1 %v10186_v1  ;;  %2259 = vmatpush1.bf16.msra.mxu0 %v10190_v53  ;;  %v10206_v1 = vld [vmem:[%s15589_s5 + $0x7c] ss:$12 sps:$4 sm:$0xff]   ;;  %v10210_v53 = vld [vmem:[%s15589_s5 + $0x94] ss:$12 sps:$4 sm:$0xff]  }
 0x328   : > { %9393 = vmatprep.subr.bf16.mxu1 %v10187_v61  ;;  %2260 = vmatprep.subr.bf16.mxu0 %v10191_v18  ;;  %v10213_v18 = vld [vmem:[%s15589_s5 + $0x90] ss:$12 sps:$4 sm:$0xff]  }
 0x32b   : > { %9394 = vmatpush3.bf16.msra.mxu1 %v10187_v61  ;;  %2261 = vmatpush1.bf16.msra.mxu0 %v10193_v58  ;;  %v10212_v61 = vld [vmem:[%s15589_s5 + $0x68] ss:$12 sps:$4 sm:$0xff]   ;;  %v10214_v58 = vld [vmem:[%s15589_s5 + $0xac] ss:$12 sps:$4 sm:$0xff]  }
 0x32c   : > { %2262 = vmatprep.subr.bf16.mxu0 %v10194_v17  ;;  %9399 = vmatprep.subr.bf16.mxu1 %v10196_v60  ;;  %v10216_v17 = vld [vmem:[%s15589_s5 + $0x80] ss:$12 sps:$4 sm:$0xff]  }
 0x32d   : > { %8749 = vmatmul.mubr.msk.bf16.gmra.mrb[84].mxu1 %vm1804_vm2, %v1711_v63  ;;  %8751 = vmatmul.mubr.msk.bf16.gmra.mrb[84].mxu0 %vm1804_vm2, %v1711_v63 }
 0x32e   : > { %9395 = vmatprep.mubr.msk.bf16.mxu1 %vm1804_vm2, %v1709_v52  ;;  %2290 = vmatprep.mubr.bf16.mxu0 %v15957_v56  ;;  %v10198_v52 = vld [vmem:[%s15589_s5 + $0x4c] ss:$12 sps:$4 sm:$0xff]  }
 0x32f   : > { %2263 = vmatpush1.bf16.msra.mxu0 %v10197_v0  ;;  %v10218_v0 = vld [vmem:[%s15589_s5 + $0x98] ss:$12 sps:$4 sm:$0xff]  }
 0x330   : > { %2264 = vmatprep.subr.bf16.mxu0 %v10198_v52  ;;  %v10219_v52 = vld [vmem:[%s15589_s5 + $0xb0] ss:$12 sps:$4 sm:$0xff]  }
 0x333   : > { %2265 = vmatpush1.bf16.msra.mxu0 %v10201_v59  ;;  %v1062_v59 = vadd.f32 %v11740_v26, %v11473_v14  ;;  %v1066_v26 = vadd.f32 %v11744_v28, %v11470_v13 }
 0x334   : > { %2266 = vmatprep.subr.bf16.mxu0 %v10202_v19 }
 0x335   : > { %9396 = vmatmul.mubr.msk.bf16.vlgmr.msra.gmra.mrb[88].mxu1 %vm1804_vm2, %v1711_v63  ;;  %v10209_v63 = vld [vmem:[%s15589_s5 + $0x78] ss:$12 sps:$4 sm:$0xff]  }
 0x336   : > { %9400 = vmatpush3.bf16.msra.mxu1 %v10196_v60  ;;  %v10217_v60 = vld [vmem:[%s15589_s5 + $0xa8] ss:$12 sps:$4 sm:$0xff]  }
 0x337   : > { %9401 = vmatprep.subr.bf16.mxu1 %v10200_v22  ;;  %2267 = vmatpush1.bf16.msra.mxu0 %v10205_v4  ;;  %v1060_v4 = vadd.f32 %v11736_v25, %v11470_v13 }
 0x338   : > { %2268 = vmatprep.subr.bf16.mxu0 %v10206_v1 }
 0x33a   : > { %9402 = vmatpush3.bf16.msra.mxu1 %v10200_v22  ;;  %v805_v22 = vadd.f32 %v11734_v24, %v11466_v12 }
 0x33b   : > { %9403 = vmatprep.subr.bf16.mxu1 %v10204_v62  ;;  %2269 = vmatpush1.bf16.msra.mxu0 %v10209_v63 }
 0x33c   : > { %2270 = vmatprep.subr.bf16.mxu0 %v10210_v53 }
 0x33e   : > { %9404 = vmatpush3.bf16.msra.mxu1 %v10204_v62 }
 0x33f   : > { %9405 = vmatprep.subr.bf16.mxu1 %v10208_v29  ;;  %2271 = vmatpush1.bf16.msra.mxu0 %v10213_v18  ;;  %v1068_v18 = vadd.f32 %v11748_v30, %v11473_v14  ;;  %v1074_v30 = vadd.f32 %v11756_v34, %v11473_v14 }
 0x340   : > { %2272 = vmatprep.subr.bf16.mxu0 %v10214_v58 }
 0x342   : > { %9406 = vmatpush3.bf16.msra.mxu1 %v10208_v29 }
 0x343   : > { %9407 = vmatprep.subr.bf16.mxu1 %v10212_v61  ;;  %2273 = vmatpush1.bf16.msra.mxu0 %v10217_v60 }
 0x346   : > { %9408 = vmatpush3.bf16.msra.mxu1 %v10212_v61  ;;  %v811_v61 = vadd.f32 %v11742_v27, %v11466_v12  ;;  %v817_v27 = vadd.f32 %v11750_v31, %v11466_v12  ;;  %v1080_v31 = vadd.f32 %v11764_v38, %v11473_v14 }
 0x347   : > { %9409 = vmatprep.subr.bf16.mxu1 %v10216_v17 }
 0x34a   : > { %9410 = vmatpush3.bf16.msra.mxu1 %v10216_v17 }
 0x34b   : > { %9411 = vmatprep.subr.bf16.mxu1 %v10218_v0 }
 0x34e   : > { %9412 = vmatpush3.bf16.msra.mxu1 %v10218_v0 }
 0x34f   : > { %9413 = vmatprep.subr.bf16.mxu1 %v10219_v52 }
 0x352   : > { %9414 = vmatpush3.bf16.msra.mxu1 %v10219_v52 }
 0x3e8   : > { %v1845_v19 = vpop.f32.mrb[72].mxu1  ;;  %v1898_v62 = vpop.f32.mrb[72].mxu0 }
 0x3e9   : > { %v2072_v1 = vadd.f32 %v1845_v19, %v805_v22  ;;  %v2074_v29 = vadd.f32 %v1898_v62, %v1062_v59  ;;  %v1847_v63 = vpop.f32.mrb[73].mxu1  ;;  %v12143_v53 = vpop.f32.mrb[73].mxu0  ;;  %v1072_v19 = vadd.f32 %v11752_v32, %v11470_v13 }
 0x3ea   : > { %v2073_v24 = vadd.f32 %v1847_v63, %v1060_v4  ;;  %v1849_v58 = vpop.f32.mrb[74].mxu1  ;;  %v1902_v17 = vpop.f32.mrb[74].mxu0  ;;  %v823_v63 = vadd.f32 %v11758_v35, %v11466_v12 }
 0x3eb   : > { %10268 = vtanh.f32 %v2072_v1  ;;  %v2075_v60 = vadd.f32 %v1849_v58, %v811_v61  ;;  %v2077_v25 = vadd.f32 %v1902_v17, %v1068_v18  ;;  %v1851_v0 = vpop.f32.mrb[75].mxu1  ;;  %v12151_v52 = vpop.f32.mrb[75].mxu0 }
 0x3ec   : > { %10270 = vtanh.f32 %v2074_v29  ;;  %v2076_v22 = vadd.f32 %v1851_v0, %v1066_v26 }
 0x3ed   : > { %10272 = vtanh.f32 %v2073_v24  ;;  %v1078_v24 = vadd.f32 %v11760_v36, %v11470_v13 }
 0x3ee   : > { %10274 = vtanh.f32 %v2075_v60 }
 0x3ef   : > { %10276 = vtanh.f32 %v2077_v25 }
 0x3f0   : > { %10278 = vtanh.f32 %v2076_v22  ;;  %v1855_v59 = vpop.f32.mrb[76].mxu1  ;;  %v1908_v28 = vpop.f32.mrb[76].mxu0 }
 0x3f1   : > { %v2078_v62 = vadd.f32 %v1855_v59, %v817_v27  ;;  %v2080_v4 = vadd.f32 %v1908_v28, %v1074_v30  ;;  %v1857_v1 = vpop.f32.mrb[77].mxu1  ;;  %v12159_v29 = vpop.f32.mrb[77].mxu0 }
 0x3f2   : > { %v2079_v61 = vadd.f32 %v1857_v1, %v1072_v19  ;;  %v1859_v18 = vpop.f32.mrb[78].mxu1  ;;  %v1912_v34 = vpop.f32.mrb[78].mxu0 }
 0x3f3   : > { %10280 = vtanh.f32 %v2078_v62  ;;  %v2081_v58 = vadd.f32 %v1859_v18, %v823_v63  ;;  %v2083_v32 = vadd.f32 %v1912_v34, %v1080_v31  ;;  %v1861_v17 = vpop.f32.mrb[79].mxu1  ;;  %v12167_v26 = vpop.f32.mrb[79].mxu0 }
 0x3f4   : > { %10282 = vtanh.f32 %v2080_v4  ;;  %v2082_v60 = vadd.f32 %v1861_v17, %v1078_v24 }
 0x3f5   : > { %v10269_v25 = vpop.eup %10268  ;;  %10284 = vtanh.f32 %v2079_v61 }
 0x3f6   : > { %v10271_v35 = vpop.eup %10270  ;;  %10286 = vtanh.f32 %v2081_v58 }
 0x3f7   : > { %v10273_v0 = vpop.eup %10272  ;;  %v2096_v38 = vmul.f32 0.5, %v10271_v35  ;;  %10288 = vtanh.f32 %v2083_v32 }
 0x3f8   : > { %v10275_v22 = vpop.eup %10274  ;;  %v2104_v27 = vsub.f32 %v10273_v0, %v10269_v25  ;;  %10290 = vtanh.f32 %v2082_v60  ;;  %v12169_v30 = vpop.f32.mrb[80].mxu1 }
 0x3f9   : > { %v10277_v36 = vpop.eup %10276  ;;  %v2100_v59 = vadd.f32 0.5, %v2096_v38  ;;  %v12171_v28 = vpop.f32.mrb[81].mxu1 }
 0x3fa   : > { %v10279_v19 = vpop.eup %10278  ;;  %v2097_v62 = vmul.f32 0.5, %v10277_v36  ;;  %v12173_v4 = vpop.f32.mrb[82].mxu1 }
 0x3fb   : > { %v2108_v1 = vmul.f32 %v2104_v27, %v2100_v59  ;;  %v2105_v63 = vsub.f32 %v10279_v19, %v10275_v22  ;;  %v12175_v31 = vpop.f32.mrb[83].mxu1 }
 0x3fc   : > { %v2101_v61 = vadd.f32 0.5, %v2097_v62 }
 0x3fd   : > { %v10281_v18 = vpop.eup %10280  ;;  %v2112_v34 = vadd.f32 %v10269_v25, %v2108_v1 }
 0x3fe   : > { %v10283_v24 = vpop.eup %10282  ;;  %v2109_v58 = vmul.f32 %v2105_v63, %v2101_v61 }
 0x3ff   : > { %v10285_v32 = vpop.eup %10284  ;;  %v2098_v17 = vmul.f32 0.5, %v10283_v24 }
 0x400   : > { %v10287_v60 = vpop.eup %10286  ;;  %v12177_v35 = vpop.f32.mrb[84].mxu1  ;;  %v2113_v0 = vadd.f32 %v10275_v22, %v2109_v58  ;;  %v2106_v38 = vsub.f32 %v10285_v32, %v10281_v18 }
 0x401   : > { %v10289_v54 = vpop.eup %10288  ;;  %v2102_v36 = vadd.f32 0.5, %v2098_v17  ;;  %v12179_v51 = vpop.f32.mrb[85].mxu1  ;;  %v10224_v17 = vld [vmem:[%s15591_s7 + $0x1c] ss:$12 sps:$4 sm:$0xff]  }
 0x402   : > { %v10291_v27 = vpop.eup %10290  ;;  %v2099_v59 = vmul.f32 0.5, %v10289_v54  ;;  %v12181_v19 = vpop.f32.mrb[86].mxu1  ;;  %v12183_v62 = vpack.c.bf16 %v2113_v0, %v2112_v34  ;;  %v12198_v54 = vld [vmem:[%s15591_s7 + $0x4] ss:$12 sps:$4 sm:$0xff]   ;;  %v10222_v34 = vld [vmem:[%s15591_s7] ss:$12 sps:$4 sm:$0xff]  }
 0x403   : > { %v12185_v25 = vpop.f32.mrb[87].mxu1  ;;  %v2107_v1 = vsub.f32 %v10291_v27, %v10287_v60  ;;  %v2110_v63 = vmul.f32 %v2106_v38, %v2102_v36  ;;  %2546 = vmatprep.subr.bf16.mxu0 %v12198_v54  ;;  %v10227_v0 = vld [vmem:[%s15591_s7 + $0x20] ss:$12 sps:$4 sm:$0xff]   ;;  %v12229_v36 = vld [vmem:[%s15591_s7 + $0x30] ss:$12 sps:$4 sm:$0xff]  }
 0x404   : > { %v2103_v61 = vadd.f32 0.5, %v2099_v59  ;;  %2291 = vmatmul.mubr.bf16.vlgmr.msra.gmra.mrb[88].mxu0 %v12183_v62  ;;  %9415 = vmatprep.mubr.bf16.mxu1 %v12183_v62  ;;  %v12223_v38 = vld [vmem:[%s15591_s7 + $0x34] ss:$12 sps:$4 sm:$0xff]   ;;  %15959 = vst [vmem:[#allocation113_spill] sm:$0xff] %v12229_v36  ;;  %v10231_v27 = vld [vmem:[%s15591_s7 + $0x38] ss:$12 sps:$4 sm:$0xff]  }
 0x405   : > { %2300 = vmatprep.mubr.bf16.mxu0 %v15957_v56  ;;  %v2114_v22 = vadd.f32 %v10281_v18, %v2110_v63  ;;  %v12207_v18 = vld [vmem:[%s15591_s7 + $0x8] ss:$12 sps:$4 sm:$0xff]   ;;  %2547 = vmatpush1.bf16.msra.mxu0 %v10222_v34  ;;  %15958 = vst [vmem:[#allocation112_spill] sm:$0xff] %v12223_v38  ;;  %v12238_v59 = vld [vmem:[%s15591_s7 + $0x4c] ss:$12 sps:$4 sm:$0xff]  }
 0x406   : > { %v2111_v24 = vmul.f32 %v2107_v1, %v2103_v61  ;;  %9419 = vmatprep.subr.bf16.mxu1 %v12207_v18  ;;  %2548 = vmatprep.subr.bf16.mxu0 %v10224_v17  ;;  %15960 = vst [vmem:[#allocation114_spill] sm:$0xff] %v12238_v59  ;;  %v12243_v1 = vld [vmem:[%s15591_s7 + $0x48] ss:$12 sps:$4 sm:$0xff]   ;;  %v10235_v63 = vld [vmem:[%s15591_s7 + $0x50] ss:$12 sps:$4 sm:$0xff]  }
 0x407   : > { %15961 = vst [vmem:[#allocation115_spill] sm:$0xff] %v12243_v1  ;;  %v12253_v61 = vld [vmem:[%s15591_s7 + $0x64] ss:$12 sps:$4 sm:$0xff]   ;;  %v12283_v17 = vld [vmem:[%s15591_s7 + $0x80] ss:$12 sps:$4 sm:$0xff]  }
 0x408   : > { %v2115_v58 = vadd.f32 %v10287_v60, %v2111_v24  ;;  %v10226_v60 = vld [vmem:[%s15591_s7 + $0x18] ss:$12 sps:$4 sm:$0xff]   ;;  %15962 = vst [vmem:[#allocation116_spill] sm:$0xff] %v12253_v61  ;;  %v12264_v24 = vld [vmem:[%s15591_s7 + $0x68] ss:$12 sps:$4 sm:$0xff]   ;;  %15967 = vst [vmem:[#allocation121_spill] sm:$0xff] %v12283_v17 }
 0x409   : > { %2549 = vmatpush1.bf16.msra.mxu0 %v10226_v60  ;;  %15964 = vst [vmem:[#allocation118_spill] sm:$0xff] %v12264_v24  ;;  %v12277_v34 = vld [vmem:[%s15591_s7 + $0x78] ss:$12 sps:$4 sm:$0xff]   ;;  %v12290_v60 = vld [vmem:[%s15591_s7 + $0x94] ss:$12 sps:$4 sm:$0xff]  }
 0x40a   : > { %v12190_v32 = vpack.c.bf16 %v2115_v58, %v2114_v22  ;;  %2550 = vmatprep.subr.bf16.mxu0 %v12223_v38  ;;  %v12258_v22 = vld [vmem:[%s15591_s7 + $0x60] ss:$12 sps:$4 sm:$0xff]   ;;  %v12271_v58 = vld [vmem:[%s15591_s7 + $0x7c] ss:$12 sps:$4 sm:$0xff]   ;;  %15966 = vst [vmem:[#allocation120_spill] sm:$0xff] %v12277_v34  ;;  %15968 = vst [vmem:[#allocation122_spill] sm:$0xff] %v12290_v60 }
 0x40b   : > { %15963 = vst [vmem:[#allocation117_spill] sm:$0xff] %v12258_v22  ;;  %15965 = vst [vmem:[#allocation119_spill] sm:$0xff] %v12271_v58 }
 0x40c   : > { %2301 = vmatmul.mubr.bf16.gmra.mrb[92].mxu0 %v12190_v32  ;;  %9416 = vmatmul.mubr.bf16.vlgmr.msra.gmra.mrb[92].mxu1 %v12190_v32 }
 0x40d   : > { %2578 = vmatprep.mubr.bf16.mxu0 %v15957_v56  ;;  %9420 = vmatpush3.bf16.msra.mxu1 %v12207_v18 }
 0x40e   : > { %9421 = vmatprep.subr.bf16.mxu1 %v10227_v0  ;;  %2551 = vmatpush1.bf16.msra.mxu0 %v12229_v36 }
 0x40f   : > { %2552 = vmatprep.subr.bf16.mxu0 %v12238_v59 }
 0x411   : > { %9422 = vmatpush3.bf16.msra.mxu1 %v10227_v0  ;;  %v12296_v0 = vld [vmem:[%s15591_s7 + $0x90] ss:$12 sps:$4 sm:$0xff]  }
 0x412   : > { %9423 = vmatprep.subr.bf16.mxu1 %v10231_v27  ;;  %2553 = vmatpush1.bf16.msra.mxu0 %v12243_v1  ;;  %15969 = vst [vmem:[#allocation123_spill] sm:$0xff] %v12296_v0 }
 0x413   : > { %2554 = vmatprep.subr.bf16.mxu0 %v12253_v61 }
 0x415   : > { %9424 = vmatpush3.bf16.msra.mxu1 %v10231_v27  ;;  %v12302_v27 = vld [vmem:[%s15591_s7 + $0x98] ss:$12 sps:$4 sm:$0xff]  }
 0x416   : > { %9425 = vmatprep.subr.bf16.mxu1 %v10235_v63  ;;  %2555 = vmatpush1.bf16.msra.mxu0 %v12258_v22  ;;  %15970 = vst [vmem:[#allocation124_spill] sm:$0xff] %v12302_v27 }
 0x417   : > { %2556 = vmatprep.subr.bf16.mxu0 %v12271_v58 }
 0x419   : > { %9426 = vmatpush3.bf16.msra.mxu1 %v10235_v63  ;;  %v12309_v63 = vld [vmem:[%s15591_s7 + $0xac] ss:$12 sps:$4 sm:$0xff]  }
 0x41a   : > { %9427 = vmatprep.subr.bf16.mxu1 %v12264_v24  ;;  %2557 = vmatpush1.bf16.msra.mxu0 %v12277_v34  ;;  %15971 = vst [vmem:[#allocation125_spill] sm:$0xff] %v12309_v63 }
 0x41b   : > { %2558 = vmatprep.subr.bf16.mxu0 %v12290_v60 }
 0x41d   : > { %9428 = vmatpush3.bf16.msra.mxu1 %v12264_v24 }
 0x41e   : > { %9429 = vmatprep.subr.bf16.mxu1 %v12283_v17  ;;  %2559 = vmatpush1.bf16.msra.mxu0 %v12296_v0  ;;  %v12321_v0 = vld [vmem:[%s15591_s7 + $0xb0] ss:$12 sps:$4 sm:$0xff]  }
 0x41f   : > { %2560 = vmatprep.subr.bf16.mxu0 %v12309_v63  ;;  %15973 = vst [vmem:[#allocation127_spill] sm:$0xff] %v12321_v0  ;;  %v12335_v63 = vld [vmem:[%s15587_s3 + $0x80] sm:$0xff]  }
 0x421   : > { %9430 = vmatpush3.bf16.msra.mxu1 %v12283_v17  ;;  %v12315_v17 = vld [vmem:[%s15591_s7 + $0xa8] ss:$12 sps:$4 sm:$0xff]  }
 0x422   : > { %9431 = vmatprep.subr.bf16.mxu1 %v12302_v27  ;;  %15972 = vst [vmem:[#allocation126_spill] sm:$0xff] %v12315_v17  ;;  %2561 = vmatpush1.bf16.msra.mxu0 %v12315_v17  ;;  %v555_v17 = vld [vmem:[%s15590_s6] sm:$0x7] }
 0x423   : > { %v12342_v60 = vrot.slane %v555_v17, %v11981_v16  ;;  %v12345_v24 = vrot.slane %v555_v17, %v11449_v6  ;;  %v12356_v50 = vrot.slane %v555_v17, %v11452_v7 }
 0x425   : > { %9432 = vmatpush3.bf16.msra.mxu1 %v12302_v27  ;;  %v12328_v27 = vld [vmem:[%s15587_s3 + $0x40] sm:$0xff]   ;;  %15975 = vst [vmem:[#allocation129_spill] sm:$0xff] %v12342_v60  ;;  %15976 = vst [vmem:[#allocation130_spill] sm:$0xff] %v12345_v24  ;;  %v2119_v58 = vadd.f32 %v12151_v52, %v12342_v60  ;;  %v2120_v1 = vadd.f32 %v12173_v4, %v12345_v24  ;;  %v2122_v52 = vadd.f32 %v12159_v29, %v12342_v60 }
 0x426   : > { %9433 = vmatprep.subr.bf16.mxu1 %v12321_v0  ;;  %15974 = vst [vmem:[#allocation128_spill] sm:$0xff] %v12328_v27  ;;  %8937 = vmatprep.subr.bf16.mxu0 %v12328_v27  ;;  %v2117_v27 = vadd.f32 %v12169_v30, %v12345_v24  ;;  %15977 = vst [vmem:[#allocation131_spill] sm:$0xff] %v12356_v50  ;;  %v2124_v30 = vadd.f32 %v12179_v51, %v12356_v50 }
 0x427   : > { %v2118_v4 = vadd.f32 %v12171_v28, %v12356_v50  ;;  %v2121_v51 = vadd.f32 %v12175_v31, %v12356_v50  ;;  %v2126_v28 = vadd.f32 %v12181_v19, %v12345_v24 }
 0x429   : > { %9434 = vmatpush3.bf16.msra.mxu1 %v12321_v0  ;;  %v2116_v0 = vadd.f32 %v12143_v53, %v12342_v60 }
 0x42a   : > { %9439 = vmatprep.subr.bf16.mxu1 %v12335_v63 }
 0x4d7   : > { %v2292_v34 = vpop.f32.mrb[88].mxu0 }
 0x4d8   : > { %v2360_v22 = vadd.f32 %v2292_v34, %v2116_v0  ;;  %v2294_v61 = vpop.f32.mrb[89].mxu0 }
 0x4d9   : > { %v2361_v59 = vadd.f32 %v2294_v61, %v2117_v27  ;;  %v2296_v36 = vpop.f32.mrb[90].mxu0 }
 0x4da   : > { %10292 = vtanh.f32 %v2360_v22  ;;  %v2363_v38 = vadd.f32 %v2296_v36, %v2119_v58  ;;  %v2298_v48 = vpop.f32.mrb[91].mxu0  ;;  %v2123_v36 = vadd.f32 %v12177_v35, %v12345_v24 }
 0x4db   : > { %10294 = vtanh.f32 %v2361_v59  ;;  %v2364_v53 = vadd.f32 %v2298_v48, %v2120_v1  ;;  %v2125_v59 = vadd.f32 %v12167_v26, %v12342_v60  ;;  %v2127_v48 = vadd.f32 %v12185_v25, %v12356_v50 }
 0x4dc   : > { %10296 = vtanh.f32 %v2363_v38 }
 0x4dd   : > { %10298 = vtanh.f32 %v2364_v53 }
 0x4df   : > { %v2302_v61 = vpop.f32.mrb[92].mxu0  ;;  %v9417_v22 = vpop.f32.mrb[92].mxu1 }
 0x4e0   : > { %v2366_v38 = vadd.f32 %v2302_v61, %v2122_v52  ;;  %v2368_v1 = vadd.f32 %v9417_v22, %v2124_v30  ;;  %v2304_v29 = vpop.f32.mrb[93].mxu0  ;;  %v2345_v58 = vpop.f32.mrb[93].mxu1 }
 0x4e1   : > { %v2367_v34 = vadd.f32 %v2304_v29, %v2123_v36  ;;  %v2362_v35 = vadd.f32 %v2345_v58, %v2118_v4  ;;  %v2306_v17 = vpop.f32.mrb[94].mxu0  ;;  %v9418_v0 = vpop.f32.mrb[94].mxu1 }
 0x4e2   : > { %10300 = vtanh.f32 %v2366_v38  ;;  %v2369_v27 = vadd.f32 %v2306_v17, %v2125_v59  ;;  %v2371_v26 = vadd.f32 %v9418_v0, %v2127_v48  ;;  %v2308_v53 = vpop.f32.mrb[95].mxu0  ;;  %v2348_v60 = vpop.f32.mrb[95].mxu1 }
 0x4e3   : > { %10302 = vtanh.f32 %v2368_v1  ;;  %v2370_v25 = vadd.f32 %v2308_v53, %v2126_v28  ;;  %v2365_v52 = vadd.f32 %v2348_v60, %v2121_v51 }
 0x4e4   : > { %v10293_v30 = vpop.eup %10292  ;;  %10304 = vtanh.f32 %v2367_v34 }
 0x4e5   : > { %v10295_v61 = vpop.eup %10294  ;;  %10306 = vtanh.f32 %v2362_v35 }
 0x4e6   : > { %v10297_v31 = vpop.eup %10296  ;;  %v2392_v22 = vsub.f32 %v10295_v61, %v10293_v30  ;;  %10308 = vtanh.f32 %v2369_v27 }
 0x4e7   : > { %v10299_v19 = vpop.eup %10298  ;;  %10310 = vtanh.f32 %v2371_v26 }
 0x4e8   : > { %10312 = vtanh.f32 %v2370_v25  ;;  %v2393_v4 = vsub.f32 %v10299_v19, %v10297_v31 }
 0x4e9   : > { %10314 = vtanh.f32 %v2365_v52 }
 0x4ec   : > { %v10301_v36 = vpop.eup %10300 }
 0x4ed   : > { %v10303_v59 = vpop.eup %10302 }
 0x4ee   : > { %v10305_v48 = vpop.eup %10304  ;;  %v2386_v38 = vmul.f32 0.5, %v10303_v59 }
 0x4ef   : > { %v10307_v29 = vpop.eup %10306  ;;  %v2394_v1 = vsub.f32 %v10305_v48, %v10301_v36 }
 0x4f0   : > { %v10309_v58 = vpop.eup %10308  ;;  %v2390_v60 = vadd.f32 0.5, %v2386_v38  ;;  %v2384_v51 = vmul.f32 0.5, %v10307_v29  ;;  %v12377_v29 = vld [vmem:[%s15587_s3] sm:$0xff]  }
 0x4f1   : > { %v10311_v28 = vpop.eup %10310 }
 0x4f2   : > { %v10313_v34 = vpop.eup %10312  ;;  %v2388_v35 = vadd.f32 0.5, %v2384_v51  ;;  %v2387_v17 = vmul.f32 0.5, %v10311_v28  ;;  %v2398_v0 = vmul.f32 %v2394_v1, %v2390_v60  ;;  %v12435_v1 = vld [vmem:[%s15587_s3 + $0x18] sm:$0xff]   ;;  %v12448_v60 = vld [vmem:[%s15587_s3 + $0xa0] sm:$0xff]   ;;  %v12460_v28 = vld [vmem:[%s15587_s3 + $0x68] sm:$0xff]  }
 0x4f3   : > { %v10315_v27 = vpop.eup %10314  ;;  %v2395_v53 = vsub.f32 %v10313_v34, %v10309_v58  ;;  %15978 = vst [vmem:[#allocation132_spill] sm:$0xff] %v12448_v60  ;;  %v12454_v51 = vld [vmem:[%s15587_s3 + $0x20] sm:$0xff]   ;;  %15980 = vst [vmem:[#allocation134_spill] sm:$0xff] %v12460_v28  ;;  %v12467_v34 = vld [vmem:[%s15587_s3 + $0xa8] sm:$0xff]  }
 0x4f4   : > { %v2396_v26 = vmul.f32 %v2392_v22, %v2388_v35  ;;  %v2391_v25 = vadd.f32 0.5, %v2387_v17  ;;  %v2385_v61 = vmul.f32 0.5, %v10315_v27  ;;  %v2402_v52 = vadd.f32 %v10301_v36, %v2398_v0  ;;  %v12416_v22 = vld [vmem:[%s15587_s3 + $0x10] sm:$0xff]   ;;  %v12429_v36 = vld [vmem:[%s15587_s3 + $0x98] sm:$0xff]   ;;  %15979 = vst [vmem:[#allocation133_spill] sm:$0xff] %v12454_v51  ;;  %15981 = vst [vmem:[#allocation135_spill] sm:$0xff] %v12467_v34 }
 0x4f5   : > { %v12473_v35 = vld [vmem:[%s15587_s3 + $0x28] sm:$0xff]   ;;  %v12479_v17 = vld [vmem:[%s15587_s3 + $0x70] sm:$0xff]  }
 0x4f6   : > { %v2400_v19 = vadd.f32 %v10293_v30, %v2396_v26  ;;  %v2389_v50 = vadd.f32 0.5, %v2385_v61  ;;  %v2399_v24 = vmul.f32 %v2395_v53, %v2391_v25  ;;  %v12383_v30 = vld [vmem:[%s15587_s3 + $0x48] sm:$0xff]   ;;  %15982 = vst [vmem:[#allocation136_spill] sm:$0xff] %v12473_v35  ;;  %15983 = vst [vmem:[#allocation137_spill] sm:$0xff] %v12479_v17  ;;  %v12486_v0 = vld [vmem:[%s15587_s3 + $0xb0] sm:$0xff]  }
 0x4f7   : > { %15984 = vst [vmem:[#allocation138_spill] sm:$0xff] %v12486_v0  ;;  %v12492_v27 = vld [vmem:[%s15587_s3 + $0x30] sm:$0xff]   ;;  %v12498_v53 = vld [vmem:[%s15587_s3 + $0x78] sm:$0xff]  }
 0x4f8   : > { %v2397_v59 = vmul.f32 %v2393_v4, %v2389_v50  ;;  %v2403_v47 = vadd.f32 %v10309_v58, %v2399_v24  ;;  %v12397_v50 = vld [vmem:[%s15587_s3 + $0x8] sm:$0xff]   ;;  %v12403_v24 = vld [vmem:[%s15587_s3 + $0x50] sm:$0xff]   ;;  %v12422_v4 = vld [vmem:[%s15587_s3 + $0x58] sm:$0xff]   ;;  %15985 = vst [vmem:[#allocation139_spill] sm:$0xff] %v12492_v27 }
 0x4f9   : > { %v12441_v58 = vld [vmem:[%s15587_s3 + $0x60] sm:$0xff]   ;;  %15986 = vst [vmem:[#allocation140_spill] sm:$0xff] %v12498_v53  ;;  %v12505_v26 = vld [vmem:[%s15587_s3 + $0xb8] sm:$0xff]  }
 0x4fa   : > { %v2401_v48 = vadd.f32 %v10297_v31, %v2397_v59  ;;  %v2417_v44 = vpack.c.bf16 %v2403_v47, %v2402_v52  ;;  %v12391_v47 = vld [vmem:[%s15587_s3 + $0x88] sm:$0xff]   ;;  %v12410_v31 = vld [vmem:[%s15587_s3 + $0x90] sm:$0xff]   ;;  %15987 = vst [vmem:[#allocation141_spill] sm:$0xff] %v12505_v26  ;;  %v12511_v25 = vld [vmem:[%s15587_s3 + $0x38] sm:$0xff]  }
 0x4fb   : > { %15988 = vst [vmem:[#allocation142_spill] sm:$0xff] %v12511_v25 }
 0x4fc   : > { %v2416_v38 = vpack.c.bf16 %v2401_v48, %v2400_v19 }
 0x4fe   : > { %2579 = vmatmul.mubr.bf16.vlgmr.msra.gmra.mrb[80].mxu0 %v2416_v38  ;;  %9435 = vmatprep.mubr.bf16.mxu1 %v2416_v38 }
 0x4ff   : > { %8938 = vmatpush3.bf16.msra.mxu0 %v12377_v29  ;;  %9436 = vmatmul.mubr.bf16.vlgmr.msra.gmra.mrb[88].mxu1 %v2417_v44 }
 0x500   : > { %8939 = vmatprep.subr.bf16.mxu0 %v12383_v30  ;;  %2588 = vmatprep.mubr.bf16.mxu0 %v15957_v56 }
 0x501   : > { %9440 = vmatpush3.bf16.msra.mxu1 %v12335_v63 }
 0x502   : > { %9441 = vmatprep.subr.bf16.mxu1 %v12391_v47 }
 0x503   : > { %8940 = vmatpush3.bf16.msra.mxu0 %v12397_v50 }
 0x504   : > { %8941 = vmatprep.subr.bf16.mxu0 %v12403_v24 }
 0x505   : > { %9442 = vmatpush3.bf16.msra.mxu1 %v12391_v47 }
 0x506   : > { %2589 = vmatmul.mubr.bf16.gmra.mrb[84].mxu0 %v2417_v44  ;;  %9443 = vmatprep.subr.bf16.mxu1 %v12410_v31 }
 0x507   : > { %8942 = vmatpush3.bf16.msra.mxu0 %v12416_v22  ;;  %2742 = vmatprep.mubr.bf16.mxu0 %v2416_v38 }
 0x508   : > { %8943 = vmatprep.subr.bf16.mxu0 %v12422_v4 }
 0x509   : > { %9444 = vmatpush3.bf16.msra.mxu1 %v12410_v31 }
 0x50a   : > { %9445 = vmatprep.subr.bf16.mxu1 %v12429_v36 }
 0x50b   : > { %8944 = vmatpush3.bf16.msra.mxu0 %v12435_v1 }
 0x50c   : > { %8945 = vmatprep.subr.bf16.mxu0 %v12441_v58 }
 0x50d   : > { %9446 = vmatpush3.bf16.msra.mxu1 %v12429_v36 }
 0x50e   : > { %9447 = vmatprep.subr.bf16.mxu1 %v12448_v60 }
 0x50f   : > { %8946 = vmatpush3.bf16.msra.mxu0 %v12454_v51 }
 0x510   : > { %8947 = vmatprep.subr.bf16.mxu0 %v12460_v28 }
 0x511   : > { %9448 = vmatpush3.bf16.msra.mxu1 %v12448_v60 }
 0x512   : > { %9449 = vmatprep.subr.bf16.mxu1 %v12467_v34 }
 0x513   : > { %8948 = vmatpush3.bf16.msra.mxu0 %v12473_v35 }
 0x514   : > { %8949 = vmatprep.subr.bf16.mxu0 %v12479_v17 }
 0x515   : > { %9450 = vmatpush3.bf16.msra.mxu1 %v12467_v34 }
 0x516   : > { %9451 = vmatprep.subr.bf16.mxu1 %v12486_v0 }
 0x517   : > { %8950 = vmatpush3.bf16.msra.mxu0 %v12492_v27 }
 0x518   : > { %8951 = vmatprep.subr.bf16.mxu0 %v12498_v53 }
 0x519   : > { %9452 = vmatpush3.bf16.msra.mxu1 %v12486_v0 }
 0x51a   : > { %9453 = vmatprep.subr.bf16.mxu1 %v12505_v26 }
 0x51b   : > { %8952 = vmatpush3.bf16.msra.mxu0 %v12511_v25 }
 0x51c   : > { %2890 = vmatprep.subr.bf16.mxu0 %v12011_v23  ;;  %v572_v23 = vld [vmem:[%s15592_s8] sm:$0x7] }
 0x51d   : > { %9454 = vmatpush3.bf16.msra.mxu1 %v12505_v26 }
 0x51e   : > { %2743 = vmatmul.mubr.bf16.vlgmr.msra.gmra.mrb[96].mxu0 %v12183_v62  ;;  %2943 = vmatprep.subr.bf16.mxu1 %v12007_v15  ;;  %v12528_v62 = vrot.slane %v572_v23, %v11981_v16  ;;  %v12534_v15 = vrot.slane %v572_v23, %v11452_v7 }
 0x51f   : > { %2750 = vmatprep.mubr.bf16.mxu0 %v2417_v44  ;;  %2891 = vmatpush1.bf16.msra.mxu0 %v12013_v2  ;;  %v12531_v44 = vrot.slane %v572_v23, %v11449_v6 }
 0x520   : > { %2892 = vmatprep.subr.bf16.mxu0 %v12017_v55  ;;  %15989 = vst [vmem:[#allocation143_spill] sm:$0xff] %v12528_v62  ;;  %15991 = vst [vmem:[#allocation145_spill] sm:$0xff] %v12534_v15 }
 0x521   : > { %15990 = vst [vmem:[#allocation144_spill] sm:$0xff] %v12531_v44 }
 0x523   : > { %2893 = vmatpush1.bf16.msra.mxu0 %v12023_v20 }
 0x524   : > { %2996 = vmatprep.subr.bf16.mxu0 %v12040_v33 }
 0x526   : > { %2751 = vmatmul.mubr.bf16.gmra.mrb[100].mxu0 %v12190_v32 }
 0x527   : > { %2922 = vmatprep.mubr.bf16.mxu0 %v15957_v56 }
 0x5d1   : > { %v2580_v2 = vpop.f32.mrb[80].mxu0 }
 0x5d2   : > { %v9917_v55 = vadd.f32 %v2580_v2, %v12528_v62  ;;  %v2582_v20 = vpop.f32.mrb[81].mxu0  ;;  %v9437_v33 = vpop.f32.mrb[88].mxu1 }
 0x5d3   : > { %v9918_v32 = vadd.f32 %v2582_v20, %v12531_v44  ;;  %v9925_v61 = vadd.f32 %v9437_v33, %v12534_v15  ;;  %v2584_v52 = vpop.f32.mrb[82].mxu0  ;;  %v2633_v19 = vpop.f32.mrb[89].mxu1 }
 0x5d4   : > { %10316 = vtanh.f32 %v9917_v55  ;;  %v9919_v16 = vadd.f32 %v2584_v52, %v12528_v62  ;;  %v9926_v6 = vadd.f32 %v2633_v19, %v12534_v15  ;;  %v2586_v59 = vpop.f32.mrb[83].mxu0  ;;  %v9438_v48 = vpop.f32.mrb[90].mxu1 }
 0x5d5   : > { %10318 = vtanh.f32 %v9918_v32  ;;  %v9920_v7 = vadd.f32 %v2586_v59, %v12531_v44  ;;  %v2636_v38 = vpop.f32.mrb[91].mxu1  ;;  %v9927_v23 = vadd.f32 %v9438_v48, %v12534_v15 }
 0x5d6   : > { %10320 = vtanh.f32 %v9925_v61  ;;  %v9928_v2 = vadd.f32 %v2636_v38, %v12534_v15 }
 0x5d7   : > { %10322 = vtanh.f32 %v9919_v16 }
 0x5d8   : > { %10324 = vtanh.f32 %v9926_v6 }
 0x5d9   : > { %10326 = vtanh.f32 %v9920_v7  ;;  %v2590_v20 = vpop.f32.mrb[84].mxu0 }
 0x5da   : > { %10328 = vtanh.f32 %v9927_v23  ;;  %v9921_v55 = vadd.f32 %v2590_v20, %v12528_v62  ;;  %v2592_v33 = vpop.f32.mrb[85].mxu0 }
 0x5db   : > { %10330 = vtanh.f32 %v9928_v2  ;;  %v9922_v52 = vadd.f32 %v2592_v33, %v12531_v44  ;;  %v2594_v32 = vpop.f32.mrb[86].mxu0 }
 0x5dc   : > { %10332 = vtanh.f32 %v9921_v55  ;;  %v9923_v19 = vadd.f32 %v2594_v32, %v12528_v62  ;;  %v2596_v61 = vpop.f32.mrb[87].mxu0 }
 0x5dd   : > { %10334 = vtanh.f32 %v9922_v52  ;;  %v9924_v16 = vadd.f32 %v2596_v61, %v12531_v44 }
 0x5de   : > { %v10317_v59 = vpop.eup %10316  ;;  %10336 = vtanh.f32 %v9923_v19 }
 0x5df   : > { %v10319_v6 = vpop.eup %10318  ;;  %10338 = vtanh.f32 %v9924_v16 }
 0x5e0   : > { %v10321_v48 = vpop.eup %10320  ;;  %v2680_v7 = vsub.f32 %v10319_v6, %v10317_v59 }
 0x5e1   : > { %v10323_v38 = vpop.eup %10322  ;;  %v2674_v33 = vmul.f32 0.5, %v10321_v48 }
 0x5e2   : > { %v10325_v23 = vpop.eup %10324 }
 0x5e3   : > { %v10327_v20 = vpop.eup %10326  ;;  %v2672_v2 = vmul.f32 0.5, %v10325_v23  ;;  %v2678_v19 = vadd.f32 0.5, %v2674_v33 }
 0x5e4   : > { %v10329_v15 = vpop.eup %10328  ;;  %v2681_v25 = vsub.f32 %v10327_v20, %v10323_v38 }
 0x5e5   : > { %v10331_v55 = vpop.eup %10330  ;;  %v2676_v26 = vadd.f32 0.5, %v2672_v2  ;;  %v2675_v62 = vmul.f32 0.5, %v10329_v15 }
 0x5e6   : > { %v10333_v32 = vpop.eup %10332  ;;  %v2673_v52 = vmul.f32 0.5, %v10331_v55 }
 0x5e7   : > { %v10335_v53 = vpop.eup %10334  ;;  %v2684_v61 = vmul.f32 %v2680_v7, %v2676_v26  ;;  %v2679_v17 = vadd.f32 0.5, %v2675_v62 }
 0x5e8   : > { %v10337_v44 = vpop.eup %10336  ;;  %v2677_v27 = vadd.f32 0.5, %v2673_v52  ;;  %v2682_v16 = vsub.f32 %v10335_v53, %v10333_v32 }
 0x5e9   : > { %v10339_v0 = vpop.eup %10338  ;;  %v2688_v6 = vadd.f32 %v10317_v59, %v2684_v61  ;;  %v827_v59 = vadd.f32 %v11762_v37, %v11989_v3 }
 0x5ea   : > { %v2685_v35 = vmul.f32 %v2681_v25, %v2677_v27  ;;  %v2683_v34 = vsub.f32 %v10339_v0, %v10337_v44  ;;  %v2686_v23 = vmul.f32 %v2682_v16, %v2678_v19  ;;  %v12550_v27 = vld [vmem:[#allocation3 + $0x54] ss:$36 sps:$4 sm:$0xff]   ;;  %v833_v19 = vadd.f32 %v11770_v41, %v11989_v3 }
 0x5ec   : > { %v2689_v28 = vadd.f32 %v10323_v38, %v2685_v35  ;;  %v2687_v48 = vmul.f32 %v2683_v34, %v2679_v17  ;;  %v2690_v20 = vadd.f32 %v10333_v32, %v2686_v23 }
 0x5ee   : > { %v2692_v51 = vpack.c.bf16 %v2689_v28, %v2688_v6  ;;  %v2691_v2 = vadd.f32 %v10337_v44, %v2687_v48 }
 0x5f0   : > { %9455 = vmatprep.mubr.bf16.mxu1 %v2692_v51  ;;  %v2693_v15 = vpack.c.bf16 %v2691_v2, %v2690_v20 }
 0x5f1   : > { %v8953_v55 = vpop.f32.mrb[96].mxu0 }
 0x5f2   : > { %v8954_v60 = vpop.f32.mrb[97].mxu0  ;;  %9456 = vmatmul.mubr.bf16.vlgmr.msra.gmra.mrb[96].mxu1 %v2693_v15 }
 0x5f3   : > { %v8955_v26 = vadd.f32 %v8954_v60, %v8953_v55  ;;  %v8956_v7 = vpop.f32.mrb[98].mxu0  ;;  %2944 = vmatpush1.bf16.msra.mxu1 %v12009_v11  ;;  %2975 = vmatprep.mubr.bf16.mxu1 %v15957_v56  ;;  %v839_v11 = vadd.f32 %v11778_v45, %v11989_v3 }
 0x5f4   : > { %v8957_v53 = vpop.f32.mrb[99].mxu0  ;;  %2945 = vmatprep.subr.bf16.mxu1 %v12550_v27 }
 0x5f5   : > { %v8958_v34 = vadd.f32 %v8957_v53, %v8956_v7 }
 0x5f7   : > { %2946 = vmatpush1.bf16.msra.mxu1 %v12021_v5  ;;  %v845_v5 = vadd.f32 %v11786_v49, %v11989_v3 }
 0x5f8   : > { %3049 = vmatprep.subr.bf16.mxu1 %v12042_v9 }
 0x5f9   : > { %v8959_v51 = vpop.f32.mrb[100].mxu0 }
 0x5fa   : > { %v8960_v28 = vpop.f32.mrb[101].mxu0 }
 0x5fb   : > { %v8961_v35 = vadd.f32 %v8960_v28, %v8959_v51  ;;  %v8962_v17 = vpop.f32.mrb[102].mxu0 }
 0x5fc   : > { %v8963_v60 = vpop.f32.mrb[103].mxu0 }
 0x5fd   : > { %v8964_v0 = vadd.f32 %v8963_v60, %v8962_v17 }
 0x6c5   : > { %v9457_v25 = vpop.f32.mrb[96].mxu1 }
 0x6c6   : > { %v2802_v62 = vadd.f32 %v9457_v25, %v8961_v35  ;;  %v2793_v44 = vpop.f32.mrb[97].mxu1 }
 0x6c7   : > { %v2794_v38 = vadd.f32 %v8955_v26, %v2793_v44  ;;  %v9458_v33 = vpop.f32.mrb[98].mxu1 }
 0x6c8   : > { %v2810_v9 = vadd.f32 %v2802_v62, %v839_v11  ;;  %v2805_v32 = vadd.f32 %v9458_v33, %v8964_v0  ;;  %v2796_v52 = vpop.f32.mrb[99].mxu1 }
 0x6c9   : > { %v2808_v61 = vadd.f32 %v2794_v38, %v827_v59  ;;  %v2797_v16 = vadd.f32 %v8958_v34, %v2796_v52 }
 0x6ca   : > { %10340 = vtanh.f32 %v2810_v9  ;;  %v2811_v45 = vadd.f32 %v2805_v32, %v845_v5 }
 0x6cb   : > { %10342 = vtanh.f32 %v2808_v61  ;;  %v2809_v6 = vadd.f32 %v2797_v16, %v833_v19 }
 0x6cc   : > { %10344 = vtanh.f32 %v2811_v45 }
 0x6cd   : > { %10346 = vtanh.f32 %v2809_v6 }
 0x6d4   : > { %v10341_v37 = vpop.eup %10340 }
 0x6d5   : > { %v10343_v23 = vpop.eup %10342  ;;  %v2818_v55 = vmul.f32 0.5, %v10341_v37 }
 0x6d6   : > { %v10345_v48 = vpop.eup %10344  ;;  %v2816_v20 = vmul.f32 0.5, %v10343_v23 }
 0x6d7   : > { %v10347_v2 = vpop.eup %10346  ;;  %v2819_v7 = vmul.f32 0.5, %v10345_v48  ;;  %v2822_v41 = vadd.f32 0.5, %v2818_v55  ;;  %v12602_v55 = vld [vmem:[#allocation3 + $0x64] ss:$36 sps:$4 sm:$0xff]  }
 0x6d8   : > { %v2820_v49 = vadd.f32 0.5, %v2816_v20  ;;  %v2817_v15 = vmul.f32 0.5, %v10347_v2 }
 0x6d9   : > { %v2823_v53 = vadd.f32 0.5, %v2819_v7  ;;  %v2826_v5 = vmul.f32 %v2822_v41, %v12033_v10  ;;  %v12608_v7 = vld [vmem:[#allocation3 + $0x60] ss:$36 sps:$4 sm:$0xff]  }
 0x6da   : > { %2832 = vrot.lane.b32.xlu0 %v2820_v49, %s11338_s21  ;;  %v2821_v26 = vadd.f32 0.5, %v2817_v15  ;;  %v2824_v11 = vmul.f32 %v2820_v49, %v12028_v21  ;;  %v12596_v49 = vld [vmem:[#allocation3 + $0x18] ss:$36 sps:$4 sm:$0xff]  }
 0x6db   : > { %v2827_v52 = vmul.f32 %v2823_v53, %v12037_v57  ;;  %v12599_v15 = vld [vmem:[#allocation3 + $0x5c] ss:$36 sps:$4 sm:$0xff]  }
 0x6dc   : > { %2834 = vrot.lane.b32.xlu1 %v2821_v26, %s11338_s21  ;;  %v2825_v59 = vmul.f32 %v2821_v26, %v12031_v8  ;;  %v12605_v26 = vld [vmem:[#allocation3 + $0x58] ss:$36 sps:$4 sm:$0xff]  }
 0x6de   : > { %2836 = vrot.lane.b32.xlu0 %v2822_v41, %s11338_s21 }
 0x6e0   : > { %2838 = vrot.lane.b32.xlu1 %v2823_v53, %s11338_s21  ;;  %v12611_v53 = vld [vmem:[#allocation3 + $0x20] ss:$36 sps:$4 sm:$0xff]  }
 0x74c   : > { %v2833_v34 = vpop.permute.xlu0 %2832 }
 0x74d   : > { %v2844_v51 = vmul.f32 %v10343_v23, %v2833_v34 }
 0x74e   : > { %v2835_v28 = vpop.permute.xlu1 %2834 }
 0x74f   : > { %v2845_v35 = vmul.f32 %v10347_v2, %v2835_v28  ;;  %2852 = vrot.lane.b32.xlu0 %v2844_v51, %s11339_s18  ;;  %v12593_v2 = vld [vmem:[#allocation3 + $0x10] ss:$36 sps:$4 sm:$0xff]   ;;  %v12632_v51 = vld [vmem:[%s15589_s5] ss:$12 sps:$4 sm:$0xff]  }
 0x750   : > { %v2837_v17 = vpop.permute.xlu0 %2836 }
 0x751   : > { %v2846_v60 = vmul.f32 %v10341_v37, %v2837_v17  ;;  %2854 = vrot.lane.b32.xlu1 %v2845_v35, %s11339_s18  ;;  %v12641_v35 = vld [vmem:[%s15589_s5 + $0x1c] ss:$12 sps:$4 sm:$0xff]  }
 0x752   : > { %v2839_v0 = vpop.permute.xlu1 %2838 }
 0x753   : > { %v2847_v25 = vmul.f32 %v10345_v48, %v2839_v0  ;;  %2856 = vrot.lane.b32.xlu0 %v2846_v60, %s11339_s18  ;;  %v12654_v60 = vld [vmem:[%s15589_s5 + $0x34] ss:$12 sps:$4 sm:$0xff]  }
 0x755   : > { %2858 = vrot.lane.b32.xlu1 %v2847_v25, %s11339_s18  ;;  %v12670_v25 = vld [vmem:[%s15589_s5 + $0x30] ss:$12 sps:$4 sm:$0xff]  }
 0x7c1   : > { %v2853_v62 = vpop.permute.xlu0 %2852 }
 0x7c2   : > { %v12572_v44 = vadd.f32 %v2853_v62, %v2824_v11  ;;  %v12676_v11 = vld [vmem:[%s15589_s5 + $0x4c] ss:$12 sps:$4 sm:$0xff]   ;;  %v12682_v62 = vld [vmem:[%s15589_s5 + $0x48] ss:$12 sps:$4 sm:$0xff]  }
 0x7c3   : > { %v2855_v38 = vpop.permute.xlu1 %2854  ;;  %15992 = vst [vmem:[#allocation146_spill] sm:$0xff] %v12676_v11  ;;  %15993 = vst [vmem:[#allocation147_spill] sm:$0xff] %v12682_v62 }
 0x7c4   : > { %10348 = vtanh.f32 %v12572_v44  ;;  %v12576_v33 = vadd.f32 %v2855_v38, %v2825_v59  ;;  %v12688_v59 = vld [vmem:[%s15589_s5 + $0x64] ss:$12 sps:$4 sm:$0xff]   ;;  %v12696_v38 = vld [vmem:[%s15589_s5 + $0x20] ss:$12 sps:$4 sm:$0xff]  }
 0x7c5   : > { %v2857_v9 = vpop.permute.xlu0 %2856  ;;  %15994 = vst [vmem:[#allocation148_spill] sm:$0xff] %v12688_v59  ;;  %15995 = vst [vmem:[#allocation149_spill] sm:$0xff] %v12696_v38 }
 0x7c6   : > { %10350 = vtanh.f32 %v12576_v33  ;;  %v12580_v32 = vadd.f32 %v2857_v9, %v2826_v5  ;;  %v12702_v5 = vld [vmem:[%s15589_s5 + $0x60] ss:$12 sps:$4 sm:$0xff]   ;;  %v12708_v9 = vld [vmem:[%s15589_s5 + $0x7c] ss:$12 sps:$4 sm:$0xff]  }
 0x7c7   : > { %v2859_v21 = vpop.permute.xlu1 %2858  ;;  %15996 = vst [vmem:[#allocation150_spill] sm:$0xff] %v12702_v5  ;;  %15997 = vst [vmem:[#allocation151_spill] sm:$0xff] %v12708_v9 }
 0x7c8   : > { %10352 = vtanh.f32 %v12580_v32  ;;  %v12584_v61 = vadd.f32 %v2859_v21, %v2827_v52  ;;  %v12715_v52 = vld [vmem:[%s15589_s5 + $0x38] ss:$12 sps:$4 sm:$0xff]  }
 0x7c9   : > { %15998 = vst [vmem:[#allocation152_spill] sm:$0xff] %v12715_v52  ;;  %v12721_v21 = vld [vmem:[%s15589_s5 + $0x78] ss:$12 sps:$4 sm:$0xff]  }
 0x7ca   : > { %10354 = vtanh.f32 %v12584_v61  ;;  %15999 = vst [vmem:[#allocation153_spill] sm:$0xff] %v12721_v21 }
 0x7ce   : > { %v10349_v8 = vpop.eup %10348 }
 0x7cf   : > { %v2872_v16 = vmul.f32 %v10349_v8, %v2833_v34  ;;  %v12617_v34 = vld [vmem:[%s15589_s5 + $0x4] ss:$12 sps:$4 sm:$0xff]   ;;  %v12727_v8 = vld [vmem:[%s15589_s5 + $0x94] ss:$12 sps:$4 sm:$0xff]  }
 0x7d0   : > { %v10351_v19 = vpop.eup %10350  ;;  %16000 = vst [vmem:[#allocation154_spill] sm:$0xff] %v12727_v8 }
 0x7d1   : > { %v2873_v45 = vmul.f32 %v10351_v19, %v2835_v28  ;;  %v12635_v28 = vld [vmem:[#allocation3 + $0x68] ss:$36 sps:$4 sm:$0xff]   ;;  %v12734_v19 = vld [vmem:[%s15589_s5 + $0x50] ss:$12 sps:$4 sm:$0xff]  }
 0x7d2   : > { %v10353_v6 = vpop.eup %10352  ;;  %16001 = vst [vmem:[#allocation155_spill] sm:$0xff] %v12734_v19 }
 0x7d3   : > { %v2876_v10 = vpack.c.bf16 %v2873_v45, %v2872_v16  ;;  %v2874_v23 = vmul.f32 %v10353_v6, %v2837_v17  ;;  %v12648_v17 = vld [vmem:[%s15589_s5 + $0x18] ss:$12 sps:$4 sm:$0xff]   ;;  %v12740_v16 = vld [vmem:[%s15589_s5 + $0x90] ss:$12 sps:$4 sm:$0xff]   ;;  %v12753_v6 = vld [vmem:[%s15589_s5 + $0x68] ss:$12 sps:$4 sm:$0xff]  }
 0x7d4   : > { %v10355_v37 = vpop.eup %10354  ;;  %16002 = vst [vmem:[#allocation156_spill] sm:$0xff] %v12740_v16  ;;  %v12746_v45 = vld [vmem:[%s15589_s5 + $0xac] ss:$12 sps:$4 sm:$0xff]   ;;  %16004 = vst [vmem:[#allocation158_spill] sm:$0xff] %v12753_v6 }
 0x7d5   : > { %2880 = vrot.lane.b32.xlu0 %v2876_v10, %s11339_s18  ;;  %v2875_v48 = vmul.f32 %v10355_v37, %v2839_v0  ;;  %v12660_v0 = vld [vmem:[%s15589_s5 + $0x8] ss:$12 sps:$4 sm:$0xff]   ;;  %16003 = vst [vmem:[#allocation157_spill] sm:$0xff] %v12746_v45  ;;  %v12767_v37 = vld [vmem:[%s15589_s5 + $0x80] ss:$12 sps:$4 sm:$0xff]  }
 0x7d6   : > { %v12759_v10 = vld [vmem:[%s15589_s5 + $0xa8] ss:$12 sps:$4 sm:$0xff]   ;;  %16006 = vst [vmem:[#allocation160_spill] sm:$0xff] %v12767_v37 }
 0x7d7   : > { %v2877_v20 = vpack.c.bf16 %v2875_v48, %v2874_v23  ;;  %16005 = vst [vmem:[#allocation159_spill] sm:$0xff] %v12759_v10  ;;  %v12774_v23 = vld [vmem:[%s15589_s5 + $0x98] ss:$12 sps:$4 sm:$0xff]   ;;  %v829_v48 = vadd.f32 %v11766_v39, %v11466_v12 }
 0x7d8   : > { %16007 = vst [vmem:[#allocation161_spill] sm:$0xff] %v12774_v23 }
 0x7d9   : > { %2882 = vrot.lane.b32.xlu1 %v2877_v20, %s11339_s18  ;;  %v1086_v20 = vadd.f32 %v11772_v42, %v11473_v14  ;;  %v16009_v42 = vld [vmem:[#allocation11_spill] sm:$0xff] }
 0x847   : > { %v2881_v57 = vpop.permute.xlu0 %2880 }
 0x848   : > { %8802 = vmatmul.mubr.msk.bf16.vlgmr.msra.gmra.mrb[104].mxu0 %vm1804_vm2, %v2881_v57  ;;  %8804 = vmatmul.mubr.msk.bf16.vlgmr.msra.gmra.mrb[100].mxu1 %vm1804_vm2, %v2881_v57 }
 0x849   : > { %2932 = vmatprep.mubr.bf16.mxu0 %v15957_v56  ;;  %2985 = vmatprep.mubr.bf16.mxu1 %v15957_v56 }
 0x84a   : > { %2997 = vmatpush1.bf16.msra.mxu0 %v12593_v2  ;;  %3050 = vmatpush1.bf16.msra.mxu1 %v12596_v49 }
 0x84b   : > { %2998 = vmatprep.subr.bf16.mxu0 %v12599_v15  ;;  %3051 = vmatprep.subr.bf16.mxu1 %v12602_v55  ;;  %v2883_v41 = vpop.permute.xlu1 %2882 }
 0x84e   : > { %2999 = vmatpush1.bf16.msra.mxu0 %v12605_v26  ;;  %3052 = vmatpush1.bf16.msra.mxu1 %v12608_v7 }
 0x84f   : > { %9459 = vmatprep.subr.bf16.mxu0 %v12611_v53  ;;  %3209 = vmatprep.subr.bf16.mxu1 %v12617_v34 }
 0x850   : > { %8803 = vmatmul.mubr.msk.bf16.gmra.mrb[108].mxu0 %vm1804_vm2, %v2883_v41  ;;  %8805 = vmatmul.mubr.msk.bf16.gmra.mrb[104].mxu1 %vm1804_vm2, %v2883_v41 }
 0x851   : > { %3028 = vmatprep.mubr.bf16.mxu0 %v15957_v56  ;;  %3081 = vmatprep.mubr.bf16.mxu1 %v15957_v56 }
 0x858   : > { %8806 = vmatmul.mubr.msk.bf16.vlgmr.msra.gmra.mrb[112].mxu0 %vm1804_vm2, %v2881_v57  ;;  %8808 = vmatmul.mubr.msk.bf16.vlgmr.msra.gmra.mrb[108].mxu1 %vm1804_vm2, %v2881_v57 }
 0x859   : > { %3038 = vmatprep.mubr.bf16.mxu0 %v15957_v56  ;;  %3091 = vmatprep.mubr.bf16.mxu1 %v15957_v56 }
 0x85a   : > { %9460 = vmatpush3.bf16.msra.mxu0 %v12611_v53  ;;  %3210 = vmatpush1.bf16.msra.mxu1 %v12632_v51 }
 0x85b   : > { %9461 = vmatprep.subr.bf16.mxu0 %v12635_v28  ;;  %3211 = vmatprep.subr.bf16.mxu1 %v12641_v35 }
 0x85e   : > { %9462 = vmatpush3.bf16.msra.mxu0 %v12635_v28  ;;  %3212 = vmatpush1.bf16.msra.mxu1 %v12648_v17 }
 0x85f   : > { %3213 = vmatprep.subr.bf16.mxu1 %v12654_v60  ;;  %9467 = vmatprep.subr.bf16.mxu0 %v12660_v0 }
 0x860   : > { %8807 = vmatmul.mubr.msk.bf16.gmra.mrb[116].mxu0 %vm1804_vm2, %v2883_v41  ;;  %8809 = vmatmul.mubr.msk.bf16.gmra.mrb[112].mxu1 %vm1804_vm2, %v2883_v41 }
 0x861   : > { %9463 = vmatprep.mubr.msk.bf16.mxu0 %vm1804_vm2, %v2881_v57  ;;  %3241 = vmatprep.mubr.bf16.mxu1 %v15957_v56 }
 0x862   : > { %3214 = vmatpush1.bf16.msra.mxu1 %v12670_v25 }
 0x863   : > { %3215 = vmatprep.subr.bf16.mxu1 %v12676_v11 }
 0x866   : > { %3216 = vmatpush1.bf16.msra.mxu1 %v12682_v62 }
 0x867   : > { %3217 = vmatprep.subr.bf16.mxu1 %v12688_v59 }
 0x868   : > { %9464 = vmatmul.mubr.msk.bf16.vlgmr.msra.gmra.mrb[120].mxu0 %vm1804_vm2, %v2883_v41 }
 0x869   : > { %9468 = vmatpush3.bf16.msra.mxu0 %v12660_v0 }
 0x86a   : > { %9469 = vmatprep.subr.bf16.mxu0 %v12696_v38  ;;  %3218 = vmatpush1.bf16.msra.mxu1 %v12702_v5 }
 0x86b   : > { %3219 = vmatprep.subr.bf16.mxu1 %v12708_v9 }
 0x86d   : > { %9470 = vmatpush3.bf16.msra.mxu0 %v12696_v38 }
 0x86e   : > { %9471 = vmatprep.subr.bf16.mxu0 %v12715_v52  ;;  %3220 = vmatpush1.bf16.msra.mxu1 %v12721_v21 }
 0x86f   : > { %3221 = vmatprep.subr.bf16.mxu1 %v12727_v8  ;;  %v1090_v8 = vadd.f32 %v16009_v42, %v11470_v13 }
 0x871   : > { %9472 = vmatpush3.bf16.msra.mxu0 %v12715_v52 }
 0x872   : > { %9473 = vmatprep.subr.bf16.mxu0 %v12734_v19  ;;  %3222 = vmatpush1.bf16.msra.mxu1 %v12740_v16 }
 0x873   : > { %3223 = vmatprep.subr.bf16.mxu1 %v12746_v45 }
 0x875   : > { %9474 = vmatpush3.bf16.msra.mxu0 %v12734_v19 }
 0x876   : > { %9475 = vmatprep.subr.bf16.mxu0 %v12753_v6  ;;  %3224 = vmatpush1.bf16.msra.mxu1 %v12759_v10 }
 0x877   : > { %3369 = vmatprep.subr.bf16.mxu1 %v12198_v54  ;;  %v12781_v54 = vld [vmem:[%s15589_s5 + $0xb0] ss:$12 sps:$4 sm:$0xff]  }
 0x878   : > { %16008 = vst [vmem:[#allocation162_spill] sm:$0xff] %v12781_v54 }
 0x879   : > { %9476 = vmatpush3.bf16.msra.mxu0 %v12753_v6 }
 0x87a   : > { %9477 = vmatprep.subr.bf16.mxu0 %v12767_v37 }
 0x87d   : > { %9478 = vmatpush3.bf16.msra.mxu0 %v12767_v37 }
 0x87e   : > { %9479 = vmatprep.subr.bf16.mxu0 %v12774_v23 }
 0x881   : > { %9480 = vmatpush3.bf16.msra.mxu0 %v12774_v23  ;;  %v1084_v23 = vadd.f32 %v11768_v40, %v11470_v13 }
 0x882   : > { %9481 = vmatprep.subr.bf16.mxu0 %v12781_v54 }
 0x885   : > { %9482 = vmatpush3.bf16.msra.mxu0 %v12781_v54  ;;  %v835_v54 = vadd.f32 %v11774_v43, %v11466_v12  ;;  %v16010_v43 = vld [vmem:[#allocation12_spill] sm:$0xff] }
 0x886   : > { %9487 = vmatprep.subr.bf16.mxu0 %v12207_v18  ;;  %v1092_v18 = vadd.f32 %v11780_v46, %v11473_v14  ;;  %v841_v46 = vadd.f32 %v16010_v43, %v11466_v12 }
 0x91b   : > { %v2924_v57 = vpop.f32.mrb[104].mxu0  ;;  %v2977_v41 = vpop.f32.mrb[100].mxu1 }
 0x91c   : > { %v3151_v37 = vadd.f32 %v2924_v57, %v829_v48  ;;  %v3153_v10 = vadd.f32 %v2977_v41, %v1086_v20  ;;  %v2926_v6 = vpop.f32.mrb[105].mxu0  ;;  %v12792_v45 = vpop.f32.mrb[101].mxu1 }
 0x91d   : > { %v3152_v39 = vadd.f32 %v2926_v6, %v1084_v23  ;;  %v2928_v16 = vpop.f32.mrb[106].mxu0  ;;  %v2981_v19 = vpop.f32.mrb[102].mxu1  ;;  %v16011_v6 = vld [vmem:[#allocation14_spill] sm:$0xff] }
 0x91e   : > { %10356 = vtanh.f32 %v3151_v37  ;;  %v3154_v21 = vadd.f32 %v2928_v16, %v835_v54  ;;  %v3156_v40 = vadd.f32 %v2981_v19, %v1092_v18  ;;  %v2930_v48 = vpop.f32.mrb[107].mxu0  ;;  %v12800_v20 = vpop.f32.mrb[103].mxu1  ;;  %v1098_v23 = vadd.f32 %v16011_v6, %v11473_v14  ;;  %v16012_v16 = vld [vmem:[#allocation13_spill] sm:$0xff] }
 0x91f   : > { %10358 = vtanh.f32 %v3153_v10  ;;  %v3155_v57 = vadd.f32 %v2930_v48, %v1090_v8  ;;  %v1096_v19 = vadd.f32 %v16012_v16, %v11470_v13 }
 0x920   : > { %10360 = vtanh.f32 %v3152_v39  ;;  %v16014_v39 = vld [vmem:[#allocation18_spill] sm:$0xff] }
 0x921   : > { %10362 = vtanh.f32 %v3154_v21  ;;  %v16013_v21 = vld [vmem:[#allocation15_spill] sm:$0xff] }
 0x922   : > { %10364 = vtanh.f32 %v3156_v40  ;;  %v847_v8 = vadd.f32 %v16013_v21, %v11466_v12  ;;  %v1104_v40 = vadd.f32 %v16014_v39, %v11473_v14 }
 0x923   : > { %10366 = vtanh.f32 %v3155_v57  ;;  %v2934_v41 = vpop.f32.mrb[108].mxu0  ;;  %v2987_v42 = vpop.f32.mrb[104].mxu1  ;;  %v16015_v57 = vld [vmem:[#allocation16_spill] sm:$0xff] }
 0x924   : > { %v3157_v37 = vadd.f32 %v2934_v41, %v841_v46  ;;  %v3159_v54 = vadd.f32 %v2987_v42, %v1098_v23  ;;  %v2936_v18 = vpop.f32.mrb[109].mxu0  ;;  %v12808_v10 = vpop.f32.mrb[105].mxu1  ;;  %v1102_v52 = vadd.f32 %v16015_v57, %v11470_v13 }
 0x925   : > { %v3158_v48 = vadd.f32 %v2936_v18, %v1096_v19  ;;  %v2938_v43 = vpop.f32.mrb[110].mxu0  ;;  %v2991_v6 = vpop.f32.mrb[106].mxu1 }
 0x926   : > { %10368 = vtanh.f32 %v3157_v37  ;;  %v3160_v9 = vadd.f32 %v2938_v43, %v847_v8  ;;  %v3162_v16 = vadd.f32 %v2991_v6, %v1104_v40  ;;  %v2940_v46 = vpop.f32.mrb[111].mxu0  ;;  %v12816_v23 = vpop.f32.mrb[107].mxu1 }
 0x927   : > { %10370 = vtanh.f32 %v3159_v54  ;;  %v3161_v41 = vadd.f32 %v2940_v46, %v1102_v52 }
 0x928   : > { %v10357_v42 = vpop.eup %10356  ;;  %10372 = vtanh.f32 %v3158_v48 }
 0x929   : > { %v10359_v21 = vpop.eup %10358  ;;  %10374 = vtanh.f32 %v3160_v9 }
 0x92a   : > { %v10361_v12 = vpop.eup %10360  ;;  %v3175_v39 = vmul.f32 0.5, %v10359_v21  ;;  %10376 = vtanh.f32 %v3162_v16 }
 0x92b   : > { %v10363_v19 = vpop.eup %10362  ;;  %v3183_v18 = vsub.f32 %v10361_v12, %v10357_v42  ;;  %10378 = vtanh.f32 %v3161_v41  ;;  %v12818_v14 = vpop.f32.mrb[112].mxu0 }
 0x92c   : > { %v10365_v37 = vpop.eup %10364  ;;  %v3179_v8 = vadd.f32 0.5, %v3175_v39  ;;  %v12820_v40 = vpop.f32.mrb[113].mxu0 }
 0x92d   : > { %v10367_v43 = vpop.eup %10366  ;;  %v3176_v6 = vmul.f32 0.5, %v10365_v37  ;;  %v12822_v54 = vpop.f32.mrb[114].mxu0 }
 0x92e   : > { %v3187_v52 = vmul.f32 %v3183_v18, %v3179_v8  ;;  %v3184_v48 = vsub.f32 %v10367_v43, %v10363_v19  ;;  %v12824_v57 = vpop.f32.mrb[115].mxu0 }
 0x92f   : > { %v3180_v9 = vadd.f32 0.5, %v3176_v6 }
 0x930   : > { %v10369_v46 = vpop.eup %10368  ;;  %v3191_v16 = vadd.f32 %v10357_v42, %v3187_v52 }
 0x931   : > { %v10371_v21 = vpop.eup %10370  ;;  %v3188_v12 = vmul.f32 %v3184_v48, %v3180_v9 }
 0x932   : > { %v10373_v41 = vpop.eup %10372  ;;  %v3177_v13 = vmul.f32 0.5, %v10371_v21 }
 0x933   : > { %v10375_v5 = vpop.eup %10374  ;;  %v12826_v38 = vpop.f32.mrb[116].mxu0  ;;  %v3192_v39 = vadd.f32 %v10363_v19, %v3188_v12  ;;  %v3185_v59 = vsub.f32 %v10373_v41, %v10369_v46  ;;  %v16019_v12 = vld [vmem:[#allocation112_spill] sm:$0xff]  ;;  %v12865_v41 = vld [vmem:[%s15591_s7 + $0x8] ss:$12 sps:$4 sm:$0xff]  }
 0x934   : > { %v10377_v62 = vpop.eup %10376  ;;  %v3181_v37 = vadd.f32 0.5, %v3177_v13  ;;  %v12828_v11 = vpop.f32.mrb[117].mxu0  ;;  %16020 = vst [vmem:[#allocation13_spill] sm:$0xff] %v12865_v41 }
 0x935   : > { %v10379_v18 = vpop.eup %10378  ;;  %v3178_v8 = vmul.f32 0.5, %v10377_v62  ;;  %v12830_v43 = vpop.f32.mrb[118].mxu0  ;;  %v12832_v6 = vpack.c.bf16 %v3192_v39, %v3191_v16  ;;  %v12842_v62 = vld [vmem:[%s15591_s7] ss:$12 sps:$4 sm:$0xff]  }
 0x936   : > { %v12834_v42 = vpop.f32.mrb[119].mxu0  ;;  %v3186_v52 = vsub.f32 %v10379_v18, %v10375_v5  ;;  %v3189_v48 = vmul.f32 %v3185_v59, %v3181_v37  ;;  %16016 = vst [vmem:[#allocation11_spill] sm:$0xff] %v12842_v62  ;;  %v12848_v59 = vld [vmem:[%s15591_s7 + $0x1c] ss:$12 sps:$4 sm:$0xff]   ;;  %v12872_v39 = vld [vmem:[%s15591_s7 + $0x20] ss:$12 sps:$4 sm:$0xff]  }
 0x937   : > { %v3182_v9 = vadd.f32 0.5, %v3178_v8  ;;  %3242 = vmatmul.mubr.bf16.vlgmr.msra.gmra.mrb[116].mxu1 %v12832_v6  ;;  %9483 = vmatprep.mubr.bf16.mxu0 %v12832_v6  ;;  %16017 = vst [vmem:[#allocation12_spill] sm:$0xff] %v12848_v59  ;;  %16022 = vst [vmem:[#allocation15_spill] sm:$0xff] %v12872_v39  ;;  %v16023_v37 = vld [vmem:[#allocation114_spill] sm:$0xff]  ;;  %v16024_v18 = vld [vmem:[#allocation115_spill] sm:$0xff] }
 0x938   : > { %3251 = vmatprep.mubr.bf16.mxu1 %v15957_v56  ;;  %v3193_v13 = vadd.f32 %v10369_v46, %v3189_v48  ;;  %3370 = vmatpush1.bf16.msra.mxu1 %v12842_v62  ;;  %v12854_v46 = vld [vmem:[%s15591_s7 + $0x18] ss:$12 sps:$4 sm:$0xff]   ;;  %v16027_v48 = vld [vmem:[#allocation117_spill] sm:$0xff] }
 0x939   : > { %v3190_v19 = vmul.f32 %v3186_v52, %v3182_v9  ;;  %3371 = vmatprep.subr.bf16.mxu1 %v12848_v59  ;;  %16018 = vst [vmem:[#allocation14_spill] sm:$0xff] %v12854_v46  ;;  %v12882_v8 = vld [vmem:[%s15591_s7 + $0x38] ss:$12 sps:$4 sm:$0xff]   ;;  %v12891_v9 = vld [vmem:[%s15591_s7 + $0x50] ss:$12 sps:$4 sm:$0xff]  }
 0x93a   : > { %16025 = vst [vmem:[#allocation18_spill] sm:$0xff] %v12882_v8  ;;  %v16026_v52 = vld [vmem:[#allocation116_spill] sm:$0xff]  ;;  %16028 = vst [vmem:[#allocation16_spill] sm:$0xff] %v12891_v9 }
 0x93b   : > { %v3194_v16 = vadd.f32 %v10375_v5, %v3190_v19  ;;  %v16021_v5 = vld [vmem:[#allocation113_spill] sm:$0xff]  ;;  %v16030_v19 = vld [vmem:[#allocation120_spill] sm:$0xff] }
 0x93c   : > { %3372 = vmatpush1.bf16.msra.mxu1 %v12854_v46 }
 0x93d   : > { %v12857_v21 = vpack.c.bf16 %v3194_v16, %v3193_v13  ;;  %3373 = vmatprep.subr.bf16.mxu1 %v16019_v12  ;;  %v16029_v13 = vld [vmem:[#allocation119_spill] sm:$0xff]  ;;  %v16031_v16 = vld [vmem:[#allocation118_spill] sm:$0xff] }
 0x93e   : > { %v16032_v12 = vld [vmem:[#allocation122_spill] sm:$0xff] }
 0x93f   : > { %3252 = vmatmul.mubr.bf16.gmra.mrb[120].mxu1 %v12857_v21  ;;  %9484 = vmatmul.mubr.bf16.vlgmr.msra.gmra.mrb[124].mxu0 %v12857_v21 }
 0x940   : > { %9488 = vmatpush3.bf16.msra.mxu0 %v12865_v41  ;;  %3374 = vmatpush1.bf16.msra.mxu1 %v16021_v5  ;;  %v16033_v5 = vld [vmem:[#allocation123_spill] sm:$0xff] }
 0x941   : > { %9489 = vmatprep.subr.bf16.mxu0 %v12872_v39  ;;  %3375 = vmatprep.subr.bf16.mxu1 %v16023_v37  ;;  %v16034_v37 = vld [vmem:[#allocation121_spill] sm:$0xff] }
 0x942   : > { %3401 = vmatprep.mubr.bf16.mxu1 %v15957_v56 }
 0x944   : > { %9490 = vmatpush3.bf16.msra.mxu0 %v12872_v39  ;;  %3376 = vmatpush1.bf16.msra.mxu1 %v16024_v18  ;;  %v16035_v18 = vld [vmem:[#allocation125_spill] sm:$0xff] }
 0x945   : > { %9491 = vmatprep.subr.bf16.mxu0 %v12882_v8  ;;  %3377 = vmatprep.subr.bf16.mxu1 %v16026_v52  ;;  %v16036_v52 = vld [vmem:[#allocation126_spill] sm:$0xff] }
 0x948   : > { %9492 = vmatpush3.bf16.msra.mxu0 %v12882_v8  ;;  %3378 = vmatpush1.bf16.msra.mxu1 %v16027_v48  ;;  %v16037_v48 = vld [vmem:[#allocation124_spill] sm:$0xff] }
 0x949   : > { %9493 = vmatprep.subr.bf16.mxu0 %v12891_v9  ;;  %3379 = vmatprep.subr.bf16.mxu1 %v16029_v13  ;;  %v16038_v13 = vld [vmem:[#allocation128_spill] sm:$0xff] }
 0x94c   : > { %9494 = vmatpush3.bf16.msra.mxu0 %v12891_v9  ;;  %3380 = vmatpush1.bf16.msra.mxu1 %v16030_v19  ;;  %v16039_v19 = vld [vmem:[#allocation127_spill] sm:$0xff] }
 0x94d   : > { %9495 = vmatprep.subr.bf16.mxu0 %v16031_v16  ;;  %3381 = vmatprep.subr.bf16.mxu1 %v16032_v12 }
 0x950   : > { %9496 = vmatpush3.bf16.msra.mxu0 %v16031_v16  ;;  %3382 = vmatpush1.bf16.msra.mxu1 %v16033_v5  ;;  %v16040_v16 = vld [vmem:[#allocation129_spill] sm:$0xff]  ;;  %v16041_v5 = vld [vmem:[#allocation130_spill] sm:$0xff] }
 0x951   : > { %9497 = vmatprep.subr.bf16.mxu0 %v16034_v37  ;;  %3383 = vmatprep.subr.bf16.mxu1 %v16035_v18  ;;  %v3195_v12 = vadd.f32 %v12792_v45, %v16040_v16  ;;  %v16042_v45 = vld [vmem:[#allocation131_spill] sm:$0xff] }
 0x954   : > { %9498 = vmatpush3.bf16.msra.mxu0 %v16034_v37  ;;  %3384 = vmatpush1.bf16.msra.mxu1 %v16036_v52  ;;  %v3196_v37 = vadd.f32 %v12818_v14, %v16041_v5  ;;  %v3198_v52 = vadd.f32 %v12800_v20, %v16040_v16  ;;  %v3201_v14 = vadd.f32 %v12808_v10, %v16040_v16 }
 0x955   : > { %9499 = vmatprep.subr.bf16.mxu0 %v16037_v48  ;;  %8999 = vmatprep.subr.bf16.mxu1 %v16038_v13  ;;  %v3203_v20 = vadd.f32 %v12828_v11, %v16042_v45  ;;  %v3200_v11 = vadd.f32 %v12824_v57, %v16042_v45 }
 0x958   : > { %9500 = vmatpush3.bf16.msra.mxu0 %v16037_v48  ;;  %v3199_v48 = vadd.f32 %v12822_v54, %v16041_v5  ;;  %v3202_v54 = vadd.f32 %v12826_v38, %v16041_v5 }
 0x959   : > { %9501 = vmatprep.subr.bf16.mxu0 %v16039_v19 }
 0x95c   : > { %9502 = vmatpush3.bf16.msra.mxu0 %v16039_v19 }
 0x95d   : > { %9507 = vmatprep.subr.bf16.mxu0 %v12335_v63 }
 0xa0a   : > { %v3243_v18 = vpop.f32.mrb[116].mxu1 }
 0xa0b   : > { %v3311_v9 = vadd.f32 %v3243_v18, %v3195_v12  ;;  %v3245_v13 = vpop.f32.mrb[117].mxu1  ;;  %v3197_v12 = vadd.f32 %v12820_v40, %v16042_v45  ;;  %v3205_v40 = vadd.f32 %v12830_v43, %v16041_v5 }
 0xa0c   : > { %v3312_v8 = vadd.f32 %v3245_v13, %v3196_v37  ;;  %v3247_v39 = vpop.f32.mrb[118].mxu1 }
 0xa0d   : > { %10380 = vtanh.f32 %v3311_v9  ;;  %v3314_v19 = vadd.f32 %v3247_v39, %v3198_v52  ;;  %v3249_v63 = vpop.f32.mrb[119].mxu1  ;;  %v3204_v39 = vadd.f32 %v12816_v23, %v16040_v16 }
 0xa0e   : > { %10382 = vtanh.f32 %v3312_v8  ;;  %v3315_v46 = vadd.f32 %v3249_v63, %v3199_v48 }
 0xa0f   : > { %10384 = vtanh.f32 %v3314_v19 }
 0xa10   : > { %10386 = vtanh.f32 %v3315_v46  ;;  %v3206_v46 = vadd.f32 %v12834_v42, %v16042_v45 }
 0xa12   : > { %v3253_v37 = vpop.f32.mrb[120].mxu1  ;;  %v9485_v9 = vpop.f32.mrb[124].mxu0 }
 0xa13   : > { %v3317_v8 = vadd.f32 %v3253_v37, %v3201_v14  ;;  %v3319_v18 = vadd.f32 %v9485_v9, %v3203_v20  ;;  %v3255_v10 = vpop.f32.mrb[121].mxu1  ;;  %v3296_v52 = vpop.f32.mrb[125].mxu0 }
 0xa14   : > { %v3318_v13 = vadd.f32 %v3255_v10, %v3202_v54  ;;  %v3313_v38 = vadd.f32 %v3296_v52, %v3197_v12  ;;  %v3257_v48 = vpop.f32.mrb[122].mxu1  ;;  %v9486_v19 = vpop.f32.mrb[126].mxu0 }
 0xa15   : > { %10388 = vtanh.f32 %v3317_v8  ;;  %v3320_v63 = vadd.f32 %v3257_v48, %v3204_v39  ;;  %v3322_v23 = vadd.f32 %v9486_v19, %v3206_v46  ;;  %v3259_v16 = vpop.f32.mrb[123].mxu1  ;;  %v3299_v59 = vpop.f32.mrb[127].mxu0 }
 0xa16   : > { %10390 = vtanh.f32 %v3319_v18  ;;  %v3321_v42 = vadd.f32 %v3259_v16, %v3205_v40  ;;  %v3316_v14 = vadd.f32 %v3299_v59, %v3200_v11 }
 0xa17   : > { %v10381_v20 = vpop.eup %10380  ;;  %10392 = vtanh.f32 %v3318_v13 }
 0xa18   : > { %v10383_v37 = vpop.eup %10382  ;;  %10394 = vtanh.f32 %v3313_v38 }
 0xa19   : > { %v10385_v57 = vpop.eup %10384  ;;  %v3343_v9 = vsub.f32 %v10383_v37, %v10381_v20  ;;  %10396 = vtanh.f32 %v3320_v63 }
 0xa1a   : > { %v10387_v43 = vpop.eup %10386  ;;  %10398 = vtanh.f32 %v3322_v23 }
 0xa1b   : > { %10400 = vtanh.f32 %v3321_v42  ;;  %v3344_v12 = vsub.f32 %v10387_v43, %v10385_v57 }
 0xa1c   : > { %10402 = vtanh.f32 %v3316_v14 }
 0xa1f   : > { %v10389_v54 = vpop.eup %10388 }
 0xa20   : > { %v10391_v39 = vpop.eup %10390 }
 0xa21   : > { %v10393_v46 = vpop.eup %10392  ;;  %v3337_v8 = vmul.f32 0.5, %v10391_v39 }
 0xa22   : > { %v10395_v10 = vpop.eup %10394  ;;  %v3345_v18 = vsub.f32 %v10393_v46, %v10389_v54 }
 0xa23   : > { %v10397_v16 = vpop.eup %10396  ;;  %v3341_v59 = vadd.f32 0.5, %v3337_v8  ;;  %v3335_v52 = vmul.f32 0.5, %v10395_v10 }
 0xa24   : > { %v10399_v11 = vpop.eup %10398 }
 0xa25   : > { %v10401_v40 = vpop.eup %10400  ;;  %v3339_v13 = vadd.f32 0.5, %v3335_v52  ;;  %v3338_v38 = vmul.f32 0.5, %v10399_v11  ;;  %v3349_v48 = vmul.f32 %v3345_v18, %v3341_v59  ;;  %v16056_v52 = vld [vmem:[#allocation145_spill] sm:$0xff] }
 0xa26   : > { %v10403_v19 = vpop.eup %10402  ;;  %v3346_v63 = vsub.f32 %v10401_v40, %v10397_v16 }
 0xa27   : > { %v3347_v23 = vmul.f32 %v3343_v9, %v3339_v13  ;;  %v3342_v42 = vadd.f32 0.5, %v3338_v38  ;;  %v3336_v37 = vmul.f32 0.5, %v10403_v19  ;;  %v3353_v14 = vadd.f32 %v10389_v54, %v3349_v48  ;;  %v12984_v9 = vld [vmem:[#allocation3 + $0x48] ss:$36 sps:$4 sm:$0xff]  }
 0xa29   : > { %v3351_v43 = vadd.f32 %v10381_v20, %v3347_v23  ;;  %v3340_v45 = vadd.f32 0.5, %v3336_v37  ;;  %v3350_v5 = vmul.f32 %v3346_v63, %v3342_v42  ;;  %v12941_v20 = vld [vmem:[%s15587_s3 + $0x80] sm:$0xff]  }
 0xa2b   : > { %v3348_v39 = vmul.f32 %v3344_v12, %v3340_v45  ;;  %v3354_v62 = vadd.f32 %v10397_v16, %v3350_v5  ;;  %v12975_v5 = vld [vmem:[#allocation3 + $0xc] ss:$36 sps:$4 sm:$0xff]   ;;  %v12978_v45 = vld [vmem:[#allocation3] ss:$36 sps:$4 sm:$0xff]   ;;  %v12987_v12 = vld [vmem:[#allocation3 + $0x14] ss:$36 sps:$4 sm:$0xff]  }
 0xa2c   : > { %v16055_v16 = vld [vmem:[#allocation144_spill] sm:$0xff] }
 0xa2d   : > { %v3352_v46 = vadd.f32 %v10385_v57, %v3348_v39  ;;  %v3368_v41 = vpack.c.bf16 %v3354_v62, %v3353_v14  ;;  %v12970_v62 = vld [vmem:[#allocation3 + $0x4] ss:$36 sps:$4 sm:$0xff]   ;;  %v12981_v57 = vld [vmem:[#allocation3 + $0x4c] ss:$36 sps:$4 sm:$0xff]  }
 0xa2f   : > { %v3367_v8 = vpack.c.bf16 %v3352_v46, %v3351_v43 }
 0xa31   : > { %3402 = vmatmul.mubr.bf16.vlgmr.msra.gmra.mrb[108].mxu1 %v3367_v8  ;;  %9503 = vmatprep.mubr.bf16.mxu0 %v3367_v8 }
 0xa32   : > { %9000 = vmatpush3.bf16.msra.mxu1 %v12377_v29  ;;  %9504 = vmatmul.mubr.bf16.vlgmr.msra.gmra.mrb[120].mxu0 %v3368_v41  ;;  %v16043_v29 = vld [vmem:[#allocation132_spill] sm:$0xff] }
 0xa33   : > { %9001 = vmatprep.subr.bf16.mxu1 %v12383_v30  ;;  %3411 = vmatprep.mubr.bf16.mxu1 %v15957_v56  ;;  %v16044_v30 = vld [vmem:[#allocation133_spill] sm:$0xff] }
 0xa34   : > { %9508 = vmatpush3.bf16.msra.mxu0 %v12941_v20 }
 0xa35   : > { %9509 = vmatprep.subr.bf16.mxu0 %v12391_v47 }
 0xa36   : > { %9002 = vmatpush3.bf16.msra.mxu1 %v12397_v50  ;;  %v16046_v50 = vld [vmem:[#allocation135_spill] sm:$0xff] }
 0xa37   : > { %9003 = vmatprep.subr.bf16.mxu1 %v12403_v24  ;;  %v16047_v24 = vld [vmem:[#allocation136_spill] sm:$0xff] }
 0xa38   : > { %9510 = vmatpush3.bf16.msra.mxu0 %v12391_v47  ;;  %v16045_v47 = vld [vmem:[#allocation134_spill] sm:$0xff] }
 0xa39   : > { %3412 = vmatmul.mubr.bf16.gmra.mrb[112].mxu1 %v3368_v41  ;;  %9511 = vmatprep.subr.bf16.mxu0 %v12410_v31 }
 0xa3a   : > { %9004 = vmatpush3.bf16.msra.mxu1 %v12416_v22  ;;  %3565 = vmatprep.mubr.bf16.mxu1 %v3367_v8  ;;  %v16049_v22 = vld [vmem:[#allocation138_spill] sm:$0xff] }
 0xa3b   : > { %9005 = vmatprep.subr.bf16.mxu1 %v12422_v4  ;;  %v16050_v4 = vld [vmem:[#allocation139_spill] sm:$0xff] }
 0xa3c   : > { %9512 = vmatpush3.bf16.msra.mxu0 %v12410_v31  ;;  %v16048_v31 = vld [vmem:[#allocation137_spill] sm:$0xff] }
 0xa3d   : > { %9513 = vmatprep.subr.bf16.mxu0 %v12429_v36 }
 0xa3e   : > { %9006 = vmatpush3.bf16.msra.mxu1 %v12435_v1  ;;  %v16052_v1 = vld [vmem:[#allocation141_spill] sm:$0xff] }
 0xa3f   : > { %9007 = vmatprep.subr.bf16.mxu1 %v12441_v58  ;;  %v16053_v58 = vld [vmem:[#allocation142_spill] sm:$0xff] }
 0xa40   : > { %9514 = vmatpush3.bf16.msra.mxu0 %v12429_v36  ;;  %v16051_v36 = vld [vmem:[#allocation140_spill] sm:$0xff] }
 0xa41   : > { %9515 = vmatprep.subr.bf16.mxu0 %v16043_v29 }
 0xa42   : > { %9008 = vmatpush3.bf16.msra.mxu1 %v16044_v30 }
 0xa43   : > { %9009 = vmatprep.subr.bf16.mxu1 %v16045_v47 }
 0xa44   : > { %9516 = vmatpush3.bf16.msra.mxu0 %v16043_v29 }
 0xa45   : > { %9517 = vmatprep.subr.bf16.mxu0 %v16046_v50 }
 0xa46   : > { %9010 = vmatpush3.bf16.msra.mxu1 %v16047_v24 }
 0xa47   : > { %9011 = vmatprep.subr.bf16.mxu1 %v16048_v31 }
 0xa48   : > { %9518 = vmatpush3.bf16.msra.mxu0 %v16046_v50 }
 0xa49   : > { %9519 = vmatprep.subr.bf16.mxu0 %v16049_v22 }
 0xa4a   : > { %9012 = vmatpush3.bf16.msra.mxu1 %v16050_v4 }
 0xa4b   : > { %9013 = vmatprep.subr.bf16.mxu1 %v16051_v36 }
 0xa4c   : > { %9520 = vmatpush3.bf16.msra.mxu0 %v16049_v22 }
 0xa4d   : > { %9521 = vmatprep.subr.bf16.mxu0 %v16052_v1 }
 0xa4e   : > { %9014 = vmatpush3.bf16.msra.mxu1 %v16053_v58 }
 0xa4f   : > { %3713 = vmatprep.subr.bf16.mxu1 %v12970_v62 }
 0xa50   : > { %9522 = vmatpush3.bf16.msra.mxu0 %v16052_v1 }
 0xa51   : > { %3566 = vmatmul.mubr.bf16.vlgmr.msra.gmra.mrb[124].mxu1 %v12832_v6  ;;  %3766 = vmatprep.subr.bf16.mxu0 %v12975_v5 }
 0xa52   : > { %3573 = vmatprep.mubr.bf16.mxu1 %v3368_v41  ;;  %3714 = vmatpush1.bf16.msra.mxu1 %v12978_v45  ;;  %v16054_v41 = vld [vmem:[#allocation143_spill] sm:$0xff] }
 0xa53   : > { %3715 = vmatprep.subr.bf16.mxu1 %v12981_v57 }
 0xa56   : > { %3716 = vmatpush1.bf16.msra.mxu1 %v12984_v9 }
 0xa57   : > { %3819 = vmatprep.subr.bf16.mxu1 %v12987_v12 }
 0xa59   : > { %3574 = vmatmul.mubr.bf16.gmra.mrb[128].mxu1 %v12857_v21 }
 0xa5a   : > { %3745 = vmatprep.mubr.bf16.mxu1 %v15957_v56 }
 0xb04   : > { %v3403_v6 = vpop.f32.mrb[108].mxu1 }
 0xb05   : > { %v9929_v54 = vadd.f32 %v3403_v6, %v16054_v41  ;;  %v3405_v10 = vpop.f32.mrb[109].mxu1  ;;  %v9505_v18 = vpop.f32.mrb[120].mxu0 }
 0xb06   : > { %v9930_v59 = vadd.f32 %v3405_v10, %v16055_v16  ;;  %v9937_v11 = vadd.f32 %v9505_v18, %v16056_v52  ;;  %v3407_v40 = vpop.f32.mrb[110].mxu1  ;;  %v3456_v13 = vpop.f32.mrb[121].mxu0 }
 0xb07   : > { %10404 = vtanh.f32 %v9929_v54  ;;  %v9931_v38 = vadd.f32 %v3407_v40, %v16054_v41  ;;  %v9938_v48 = vadd.f32 %v3456_v13, %v16056_v52  ;;  %v3409_v19 = vpop.f32.mrb[111].mxu1  ;;  %v9506_v21 = vpop.f32.mrb[122].mxu0 }
 0xb08   : > { %10406 = vtanh.f32 %v9930_v59  ;;  %v9932_v63 = vadd.f32 %v3409_v19, %v16055_v16  ;;  %v3459_v23 = vpop.f32.mrb[123].mxu0  ;;  %v9939_v42 = vadd.f32 %v9506_v21, %v16056_v52 }
 0xb09   : > { %10408 = vtanh.f32 %v9937_v11  ;;  %v9940_v37 = vadd.f32 %v3459_v23, %v16056_v52 }
 0xb0a   : > { %10410 = vtanh.f32 %v9931_v38 }
 0xb0b   : > { %10412 = vtanh.f32 %v9938_v48 }
 0xb0c   : > { %10414 = vtanh.f32 %v9932_v63  ;;  %v3413_v14 = vpop.f32.mrb[112].mxu1 }
 0xb0d   : > { %10416 = vtanh.f32 %v9939_v42  ;;  %v9933_v43 = vadd.f32 %v3413_v14, %v16054_v41  ;;  %v3415_v39 = vpop.f32.mrb[113].mxu1 }
 0xb0e   : > { %10418 = vtanh.f32 %v9940_v37  ;;  %v9934_v46 = vadd.f32 %v3415_v39, %v16055_v16  ;;  %v3417_v8 = vpop.f32.mrb[114].mxu1 }
 0xb0f   : > { %10420 = vtanh.f32 %v9933_v43  ;;  %v9935_v29 = vadd.f32 %v3417_v8, %v16054_v41  ;;  %v3419_v30 = vpop.f32.mrb[115].mxu1 }
 0xb10   : > { %10422 = vtanh.f32 %v9934_v46  ;;  %v9936_v47 = vadd.f32 %v3419_v30, %v16055_v16 }
 0xb11   : > { %v10405_v50 = vpop.eup %10404  ;;  %10424 = vtanh.f32 %v9935_v29 }
 0xb12   : > { %v10407_v24 = vpop.eup %10406  ;;  %10426 = vtanh.f32 %v9936_v47 }
 0xb13   : > { %v10409_v31 = vpop.eup %10408  ;;  %v3503_v22 = vsub.f32 %v10407_v24, %v10405_v50 }
 0xb14   : > { %v10411_v4 = vpop.eup %10410  ;;  %v3497_v54 = vmul.f32 0.5, %v10409_v31 }
 0xb15   : > { %v10413_v36 = vpop.eup %10412 }
 0xb16   : > { %v10415_v1 = vpop.eup %10414  ;;  %v3495_v58 = vmul.f32 0.5, %v10413_v36  ;;  %v3501_v21 = vadd.f32 0.5, %v3497_v54  ;;  %v13009_v54 = vld [vmem:[#allocation3 + $0x50] ss:$36 sps:$4 sm:$0xff]  }
 0xb17   : > { %v10417_v6 = vpop.eup %10416  ;;  %v3504_v10 = vsub.f32 %v10415_v1, %v10411_v4 }
 0xb18   : > { %v10419_v18 = vpop.eup %10418  ;;  %v3499_v59 = vadd.f32 0.5, %v3495_v58  ;;  %v3498_v40 = vmul.f32 0.5, %v10417_v6  ;;  %v13004_v6 = vld [vmem:[#allocation3 + $0x8] ss:$36 sps:$4 sm:$0xff]  }
 0xb19   : > { %v10421_v11 = vpop.eup %10420  ;;  %v3496_v13 = vmul.f32 0.5, %v10419_v18 }
 0xb1a   : > { %v10423_v38 = vpop.eup %10422  ;;  %v3507_v48 = vmul.f32 %v3503_v22, %v3499_v59  ;;  %v3502_v14 = vadd.f32 0.5, %v3498_v40 }
 0xb1b   : > { %v10425_v19 = vpop.eup %10424  ;;  %v3500_v63 = vadd.f32 0.5, %v3496_v13  ;;  %v3505_v23 = vsub.f32 %v10423_v38, %v10421_v11 }
 0xb1c   : > { %v10427_v42 = vpop.eup %10426  ;;  %v3511_v37 = vadd.f32 %v10405_v50, %v3507_v48 }
 0xb1d   : > { %v3508_v43 = vmul.f32 %v3504_v10, %v3500_v63  ;;  %v3506_v39 = vsub.f32 %v10427_v42, %v10425_v19  ;;  %v3509_v46 = vmul.f32 %v3505_v23, %v3501_v21  ;;  %v13012_v10 = vld [vmem:[#allocation3 + $0x1c] ss:$36 sps:$4 sm:$0xff]   ;;  %v16058_v23 = vld [vmem:[#allocation17_spill] sm:$0xff] }
 0xb1e   : > { %v851_v42 = vadd.f32 %v16058_v23, %v11989_v3 }
 0xb1f   : > { %v3512_v8 = vadd.f32 %v10411_v4, %v3508_v43  ;;  %v3510_v29 = vmul.f32 %v3506_v39, %v3502_v14  ;;  %v3513_v30 = vadd.f32 %v10421_v11, %v3509_v46  ;;  %v16059_v43 = vld [vmem:[#allocation29_spill] sm:$0xff] }
 0xb20   : > { %v869_v39 = vadd.f32 %v16059_v43, %v11989_v3 }
 0xb21   : > { %v3515_v47 = vpack.c.bf16 %v3512_v8, %v3511_v37  ;;  %v3514_v24 = vadd.f32 %v10425_v19, %v3510_v29  ;;  %v16057_v19 = vld [vmem:[#allocation25_spill] sm:$0xff] }
 0xb22   : > { %v863_v21 = vadd.f32 %v16057_v19, %v11989_v3 }
 0xb23   : > { %9523 = vmatprep.mubr.bf16.mxu0 %v3515_v47  ;;  %v3516_v31 = vpack.c.bf16 %v3514_v24, %v3513_v30  ;;  %v16060_v30 = vld [vmem:[#allocation21_spill] sm:$0xff] }
 0xb24   : > { %v9015_v36 = vpop.f32.mrb[124].mxu1  ;;  %v857_v47 = vadd.f32 %v16060_v30, %v11989_v3 }
 0xb25   : > { %v9016_v1 = vpop.f32.mrb[125].mxu1  ;;  %9524 = vmatmul.mubr.bf16.vlgmr.msra.gmra.mrb[128].mxu0 %v3516_v31 }
 0xb26   : > { %v9017_v22 = vadd.f32 %v9016_v1, %v9015_v36  ;;  %v9018_v58 = vpop.f32.mrb[126].mxu1  ;;  %3767 = vmatpush1.bf16.msra.mxu0 %v13004_v6  ;;  %3798 = vmatprep.mubr.bf16.mxu0 %v15957_v56 }
 0xb27   : > { %v9019_v50 = vpop.f32.mrb[127].mxu1  ;;  %3768 = vmatprep.subr.bf16.mxu0 %v12550_v27 }
 0xb28   : > { %v9020_v4 = vadd.f32 %v9019_v50, %v9018_v58 }
 0xb2a   : > { %3769 = vmatpush1.bf16.msra.mxu0 %v13009_v54 }
 0xb2b   : > { %3872 = vmatprep.subr.bf16.mxu0 %v13012_v10 }
 0xb2c   : > { %v9021_v18 = vpop.f32.mrb[128].mxu1 }
 0xb2d   : > { %v9022_v59 = vpop.f32.mrb[129].mxu1 }
 0xb2e   : > { %v9023_v11 = vadd.f32 %v9022_v59, %v9021_v18  ;;  %v9024_v40 = vpop.f32.mrb[130].mxu1 }
 0xb2f   : > { %v9025_v13 = vpop.f32.mrb[131].mxu1 }
 0xb30   : > { %v9026_v38 = vadd.f32 %v9025_v13, %v9024_v40 }
 0xbf8   : > { %v9525_v48 = vpop.f32.mrb[128].mxu0 }
 0xbf9   : > { %v3625_v27 = vadd.f32 %v9525_v48, %v9023_v11  ;;  %v3616_v63 = vpop.f32.mrb[129].mxu0 }
 0xbfa   : > { %v3617_v37 = vadd.f32 %v9017_v22, %v3616_v63  ;;  %v9526_v14 = vpop.f32.mrb[130].mxu0 }
 0xbfb   : > { %v3633_v46 = vadd.f32 %v3625_v27, %v863_v21  ;;  %v3628_v8 = vadd.f32 %v9526_v14, %v9026_v38  ;;  %v3619_v29 = vpop.f32.mrb[131].mxu0 }
 0xbfc   : > { %v3631_v24 = vadd.f32 %v3617_v37, %v851_v42  ;;  %v3620_v31 = vadd.f32 %v9020_v4, %v3619_v29 }
 0xbfd   : > { %10428 = vtanh.f32 %v3633_v46  ;;  %v3634_v36 = vadd.f32 %v3628_v8, %v869_v39 }
 0xbfe   : > { %10430 = vtanh.f32 %v3631_v24  ;;  %v3632_v1 = vadd.f32 %v3620_v31, %v857_v47 }
 0xbff   : > { %10432 = vtanh.f32 %v3634_v36 }
 0xc00   : > { %10434 = vtanh.f32 %v3632_v1 }
 0xc07   : > { %v10429_v58 = vpop.eup %10428 }
 0xc08   : > { %v10431_v22 = vpop.eup %10430  ;;  %v3641_v13 = vmul.f32 0.5, %v10429_v58 }
 0xc09   : > { %v10433_v50 = vpop.eup %10432  ;;  %v3639_v18 = vmul.f32 0.5, %v10431_v22 }
 0xc0a   : > { %v10435_v59 = vpop.eup %10434  ;;  %v3642_v48 = vmul.f32 0.5, %v10433_v50  ;;  %v3645_v4 = vadd.f32 0.5, %v3641_v13 }
 0xc0b   : > { %v3643_v11 = vadd.f32 0.5, %v3639_v18  ;;  %v3640_v40 = vmul.f32 0.5, %v10435_v59 }
 0xc0c   : > { %v3646_v19 = vadd.f32 0.5, %v3642_v48  ;;  %v3649_v24 = vmul.f32 %v3645_v4, %v12580_v32 }
 0xc0d   : > { %3655 = vrot.lane.b32.xlu0 %v3643_v11, %s11338_s21  ;;  %v3644_v38 = vadd.f32 0.5, %v3640_v40  ;;  %v3647_v39 = vmul.f32 %v3643_v11, %v12572_v44 }
 0xc0e   : > { %v3650_v1 = vmul.f32 %v3646_v19, %v12584_v61 }
 0xc0f   : > { %3657 = vrot.lane.b32.xlu1 %v3644_v38, %s11338_s21  ;;  %v3648_v29 = vmul.f32 %v3644_v38, %v12576_v33 }
 0xc11   : > { %3659 = vrot.lane.b32.xlu0 %v3645_v4, %s11338_s21  ;;  %v16075_v4 = vld [vmem:[#allocation160_spill] sm:$0xff] }
 0xc13   : > { %3661 = vrot.lane.b32.xlu1 %v3646_v19, %s11338_s21  ;;  %v16076_v19 = vld [vmem:[#allocation161_spill] sm:$0xff] }
 0xc7f   : > { %v3656_v21 = vpop.permute.xlu0 %3655 }
 0xc80   : > { %v3667_v27 = vmul.f32 %v10431_v22, %v3656_v21 }
 0xc81   : > { %v3658_v63 = vpop.permute.xlu1 %3657 }
 0xc82   : > { %v3668_v23 = vmul.f32 %v10435_v59, %v3658_v63  ;;  %3675 = vrot.lane.b32.xlu0 %v3667_v27, %s11339_s18  ;;  %v16078_v27 = vld [vmem:[#allocation13_spill] sm:$0xff] }
 0xc83   : > { %v3660_v42 = vpop.permute.xlu0 %3659 }
 0xc84   : > { %v3669_v37 = vmul.f32 %v10429_v58, %v3660_v42  ;;  %3677 = vrot.lane.b32.xlu1 %v3668_v23, %s11339_s18  ;;  %v16080_v23 = vld [vmem:[#allocation19_spill] sm:$0xff] }
 0xc85   : > { %v3662_v14 = vpop.permute.xlu1 %3661 }
 0xc86   : > { %v3670_v43 = vmul.f32 %v10433_v50, %v3662_v14  ;;  %3679 = vrot.lane.b32.xlu0 %v3669_v37, %s11339_s18  ;;  %v16081_v37 = vld [vmem:[#allocation8_spill] sm:$0xff] }
 0xc88   : > { %3681 = vrot.lane.b32.xlu1 %v3670_v43, %s11339_s18 }
 0xcf4   : > { %v3676_v46 = vpop.permute.xlu0 %3675 }
 0xcf5   : > { %v13032_v8 = vadd.f32 %v3676_v46, %v3647_v39 }
 0xcf6   : > { %v3678_v30 = vpop.permute.xlu1 %3677 }
 0xcf7   : > { %10436 = vtanh.f32 %v13032_v8  ;;  %v13036_v47 = vadd.f32 %v3678_v30, %v3648_v29  ;;  %v16083_v29 = vld [vmem:[#allocation7_spill] sm:$0xff]  ;;  %v16084_v30 = vld [vmem:[#allocation20_spill] sm:$0xff] }
 0xcf8   : > { %v3680_v31 = vpop.permute.xlu0 %3679 }
 0xcf9   : > { %10438 = vtanh.f32 %v13036_v47  ;;  %v13040_v36 = vadd.f32 %v3680_v31, %v3649_v24  ;;  %v1108_v24 = vadd.f32 %v16084_v30, %v16083_v29 }
 0xcfa   : > { %v3682_v44 = vpop.permute.xlu1 %3681 }
 0xcfb   : > { %10440 = vtanh.f32 %v13040_v36  ;;  %v13044_v58 = vadd.f32 %v3682_v44, %v3650_v1 }
 0xcfd   : > { %10442 = vtanh.f32 %v13044_v58 }
 0xd01   : > { %v10437_v33 = vpop.eup %10436 }
 0xd02   : > { %v3695_v50 = vmul.f32 %v10437_v33, %v3656_v21  ;;  %v16077_v21 = vld [vmem:[#allocation162_spill] sm:$0xff] }
 0xd03   : > { %v10439_v22 = vpop.eup %10438 }
 0xd04   : > { %v3696_v18 = vmul.f32 %v10439_v22, %v3658_v63  ;;  %v16079_v63 = vld [vmem:[#allocation6_spill] sm:$0xff]  ;;  %v16085_v22 = vld [vmem:[#allocation23_spill] sm:$0xff] }
 0xd05   : > { %v10441_v59 = vpop.eup %10440 }
 0xd06   : > { %v3699_v32 = vpack.c.bf16 %v3696_v18, %v3695_v50  ;;  %v3697_v40 = vmul.f32 %v10441_v59, %v3660_v42  ;;  %v853_v42 = vadd.f32 %v16080_v23, %v16079_v63  ;;  %v859_v50 = vadd.f32 %v16085_v22, %v16079_v63  ;;  %v16086_v18 = vld [vmem:[#allocation26_spill] sm:$0xff] }
 0xd07   : > { %v10443_v11 = vpop.eup %10442  ;;  %v1116_v59 = vadd.f32 %v16086_v18, %v16081_v37  ;;  %v16092_v23 = vld [vmem:[#allocation34_spill] sm:$0xff] }
 0xd08   : > { %3703 = vrot.lane.b32.xlu0 %v3699_v32, %s11339_s18  ;;  %v3698_v13 = vmul.f32 %v10443_v11, %v3662_v14  ;;  %v16082_v14 = vld [vmem:[#allocation22_spill] sm:$0xff] }
 0xd09   : > { %v1110_v43 = vadd.f32 %v16082_v14, %v16081_v37 }
 0xd0a   : > { %v3700_v38 = vpack.c.bf16 %v3698_v13, %v3697_v40  ;;  %v16087_v13 = vld [vmem:[#allocation24_spill] sm:$0xff] }
 0xd0c   : > { %3705 = vrot.lane.b32.xlu1 %v3700_v38, %s11339_s18  ;;  %v1114_v38 = vadd.f32 %v16087_v13, %v16083_v29 }
 0xd7a   : > { %v3704_v61 = vpop.permute.xlu0 %3703 }
 0xd7b   : > { %8812 = vmatmul.mubr.msk.bf16.vlgmr.msra.gmra.mrb[132].mxu1 %vm1804_vm2, %v3704_v61  ;;  %8814 = vmatmul.mubr.msk.bf16.vlgmr.msra.gmra.mrb[132].mxu0 %vm1804_vm2, %v3704_v61 }
 0xd7c   : > { %3755 = vmatprep.mubr.bf16.mxu1 %v15957_v56  ;;  %3808 = vmatprep.mubr.bf16.mxu0 %v15957_v56 }
 0xd7d   : > { %3820 = vmatpush1.bf16.msra.mxu1 %v12593_v2  ;;  %3873 = vmatpush1.bf16.msra.mxu0 %v12596_v49  ;;  %v16061_v2 = vld [vmem:[#allocation146_spill] sm:$0xff]  ;;  %v16062_v49 = vld [vmem:[#allocation147_spill] sm:$0xff] }
 0xd7e   : > { %3821 = vmatprep.subr.bf16.mxu1 %v12599_v15  ;;  %3874 = vmatprep.subr.bf16.mxu0 %v12602_v55  ;;  %v3706_v48 = vpop.permute.xlu1 %3705  ;;  %v16063_v15 = vld [vmem:[#allocation148_spill] sm:$0xff]  ;;  %v16064_v55 = vld [vmem:[#allocation149_spill] sm:$0xff] }
 0xd81   : > { %3822 = vmatpush1.bf16.msra.mxu1 %v12605_v26  ;;  %3875 = vmatpush1.bf16.msra.mxu0 %v12608_v7  ;;  %v16065_v26 = vld [vmem:[#allocation150_spill] sm:$0xff]  ;;  %v16066_v7 = vld [vmem:[#allocation151_spill] sm:$0xff] }
 0xd82   : > { %9527 = vmatprep.subr.bf16.mxu1 %v12611_v53  ;;  %4032 = vmatprep.subr.bf16.mxu0 %v12617_v34  ;;  %v16068_v34 = vld [vmem:[#allocation153_spill] sm:$0xff] }
 0xd83   : > { %8813 = vmatmul.mubr.msk.bf16.gmra.mrb[136].mxu1 %vm1804_vm2, %v3706_v48  ;;  %8815 = vmatmul.mubr.msk.bf16.gmra.mrb[136].mxu0 %vm1804_vm2, %v3706_v48 }
 0xd84   : > { %3851 = vmatprep.mubr.bf16.mxu1 %v15957_v56  ;;  %3904 = vmatprep.mubr.bf16.mxu0 %v15957_v56 }
 0xd8b   : > { %8816 = vmatmul.mubr.msk.bf16.vlgmr.msra.gmra.mrb[140].mxu1 %vm1804_vm2, %v3704_v61  ;;  %8818 = vmatmul.mubr.msk.bf16.vlgmr.msra.gmra.mrb[140].mxu0 %vm1804_vm2, %v3704_v61 }
 0xd8c   : > { %3861 = vmatprep.mubr.bf16.mxu1 %v15957_v56  ;;  %3914 = vmatprep.mubr.bf16.mxu0 %v15957_v56 }
 0xd8d   : > { %9528 = vmatpush3.bf16.msra.mxu1 %v12611_v53  ;;  %4033 = vmatpush1.bf16.msra.mxu0 %v12632_v51  ;;  %v16067_v53 = vld [vmem:[#allocation152_spill] sm:$0xff]  ;;  %v16069_v51 = vld [vmem:[#allocation154_spill] sm:$0xff] }
 0xd8e   : > { %9529 = vmatprep.subr.bf16.mxu1 %v12635_v28  ;;  %4034 = vmatprep.subr.bf16.mxu0 %v12641_v35  ;;  %v16071_v35 = vld [vmem:[#allocation156_spill] sm:$0xff] }
 0xd91   : > { %9530 = vmatpush3.bf16.msra.mxu1 %v12635_v28  ;;  %4035 = vmatpush1.bf16.msra.mxu0 %v12648_v17  ;;  %v16070_v28 = vld [vmem:[#allocation155_spill] sm:$0xff]  ;;  %v16072_v17 = vld [vmem:[#allocation157_spill] sm:$0xff] }
 0xd92   : > { %4036 = vmatprep.subr.bf16.mxu0 %v12654_v60  ;;  %9535 = vmatprep.subr.bf16.mxu1 %v12660_v0  ;;  %v16073_v60 = vld [vmem:[#allocation158_spill] sm:$0xff] }
 0xd93   : > { %8817 = vmatmul.mubr.msk.bf16.gmra.mrb[144].mxu1 %vm1804_vm2, %v3706_v48  ;;  %8819 = vmatmul.mubr.msk.bf16.gmra.mrb[144].mxu0 %vm1804_vm2, %v3706_v48 }
 0xd94   : > { %9531 = vmatprep.mubr.msk.bf16.mxu1 %vm1804_vm2, %v3704_v61  ;;  %4064 = vmatprep.mubr.bf16.mxu0 %v15957_v56 }
 0xd95   : > { %4037 = vmatpush1.bf16.msra.mxu0 %v12670_v25  ;;  %v13104_v25 = vld [vmem:[%s15591_s7 + $0x4] ss:$12 sps:$4 sm:$0xff]  }
 0xd96   : > { %4038 = vmatprep.subr.bf16.mxu0 %v16061_v2 }
 0xd99   : > { %4039 = vmatpush1.bf16.msra.mxu0 %v16062_v49 }
 0xd9a   : > { %4040 = vmatprep.subr.bf16.mxu0 %v16063_v15 }
 0xd9b   : > { %9532 = vmatmul.mubr.msk.bf16.vlgmr.msra.gmra.mrb[148].mxu1 %vm1804_vm2, %v3706_v48 }
 0xd9c   : > { %9536 = vmatpush3.bf16.msra.mxu1 %v12660_v0  ;;  %v16074_v0 = vld [vmem:[#allocation159_spill] sm:$0xff] }
 0xd9d   : > { %9537 = vmatprep.subr.bf16.mxu1 %v16064_v55  ;;  %4041 = vmatpush1.bf16.msra.mxu0 %v16065_v26 }
 0xd9e   : > { %4042 = vmatprep.subr.bf16.mxu0 %v16066_v7  ;;  %v16089_v7 = vld [vmem:[#allocation30_spill] sm:$0xff] }
 0xda0   : > { %9538 = vmatpush3.bf16.msra.mxu1 %v16064_v55  ;;  %v16088_v55 = vld [vmem:[#allocation27_spill] sm:$0xff] }
 0xda1   : > { %9539 = vmatprep.subr.bf16.mxu1 %v16067_v53  ;;  %4043 = vmatpush1.bf16.msra.mxu0 %v16068_v34  ;;  %v865_v26 = vadd.f32 %v16088_v55, %v16079_v63 }
 0xda2   : > { %4044 = vmatprep.subr.bf16.mxu0 %v16069_v51 }
 0xda4   : > { %9540 = vmatpush3.bf16.msra.mxu1 %v16067_v53  ;;  %v1122_v53 = vadd.f32 %v16089_v7, %v16081_v37 }
 0xda5   : > { %9541 = vmatprep.subr.bf16.mxu1 %v16070_v28  ;;  %4045 = vmatpush1.bf16.msra.mxu0 %v16071_v35 }
 0xda6   : > { %4046 = vmatprep.subr.bf16.mxu0 %v16072_v17 }
 0xda8   : > { %9542 = vmatpush3.bf16.msra.mxu1 %v16070_v28  ;;  %v16090_v28 = vld [vmem:[#allocation28_spill] sm:$0xff] }
 0xda9   : > { %9543 = vmatprep.subr.bf16.mxu1 %v16073_v60  ;;  %4047 = vmatpush1.bf16.msra.mxu0 %v16074_v0  ;;  %v1120_v35 = vadd.f32 %v16090_v28, %v16083_v29 }
 0xdaa   : > { %4192 = vmatprep.subr.bf16.mxu0 %v13104_v25 }
 0xdac   : > { %9544 = vmatpush3.bf16.msra.mxu1 %v16073_v60 }
 0xdad   : > { %9545 = vmatprep.subr.bf16.mxu1 %v16075_v4 }
 0xdb0   : > { %9546 = vmatpush3.bf16.msra.mxu1 %v16075_v4 }
 0xdb1   : > { %9547 = vmatprep.subr.bf16.mxu1 %v16076_v19 }
 0xdb4   : > { %9548 = vmatpush3.bf16.msra.mxu1 %v16076_v19  ;;  %v16091_v19 = vld [vmem:[#allocation31_spill] sm:$0xff] }
 0xdb5   : > { %9549 = vmatprep.subr.bf16.mxu1 %v16077_v21 }
 0xdb8   : > { %9550 = vmatpush3.bf16.msra.mxu1 %v16077_v21  ;;  %v871_v21 = vadd.f32 %v16091_v19, %v16079_v63 }
 0xdb9   : > { %9555 = vmatprep.subr.bf16.mxu1 %v16078_v27 }
 0xe4e   : > { %v3747_v39 = vpop.f32.mrb[132].mxu1  ;;  %v3800_v46 = vpop.f32.mrb[132].mxu0 }
 0xe4f   : > { %v3974_v31 = vadd.f32 %v3747_v39, %v853_v42  ;;  %v3976_v1 = vadd.f32 %v3800_v46, %v1110_v43  ;;  %v3749_v44 = vpop.f32.mrb[133].mxu1  ;;  %v13121_v33 = vpop.f32.mrb[133].mxu0  ;;  %v1128_v42 = vadd.f32 %v16092_v23, %v16081_v37  ;;  %v16093_v46 = vld [vmem:[#allocation32_spill] sm:$0xff] }
 0xe50   : > { %v3975_v32 = vadd.f32 %v3749_v44, %v1108_v24  ;;  %v3751_v11 = vpop.f32.mrb[134].mxu1  ;;  %v3804_v40 = vpop.f32.mrb[134].mxu0  ;;  %v1126_v30 = vadd.f32 %v16093_v46, %v16083_v29 }
 0xe51   : > { %10444 = vtanh.f32 %v3974_v31  ;;  %v3977_v61 = vadd.f32 %v3751_v11, %v859_v50  ;;  %v3979_v48 = vadd.f32 %v3804_v40, %v1116_v59  ;;  %v3753_v2 = vpop.f32.mrb[135].mxu1  ;;  %v13129_v49 = vpop.f32.mrb[135].mxu0 }
 0xe52   : > { %10446 = vtanh.f32 %v3976_v1  ;;  %v3978_v15 = vadd.f32 %v3753_v2, %v1114_v38 }
 0xe53   : > { %10448 = vtanh.f32 %v3975_v32 }
 0xe54   : > { %10450 = vtanh.f32 %v3977_v61 }
 0xe55   : > { %10452 = vtanh.f32 %v3979_v48 }
 0xe56   : > { %10454 = vtanh.f32 %v3978_v15  ;;  %v3757_v34 = vpop.f32.mrb[136].mxu1  ;;  %v3810_v51 = vpop.f32.mrb[136].mxu0 }
 0xe57   : > { %v3980_v17 = vadd.f32 %v3757_v34, %v865_v26  ;;  %v3982_v60 = vadd.f32 %v3810_v51, %v1122_v53  ;;  %v3759_v0 = vpop.f32.mrb[137].mxu1  ;;  %v13137_v4 = vpop.f32.mrb[137].mxu0 }
 0xe58   : > { %v3981_v14 = vadd.f32 %v3759_v0, %v1120_v35  ;;  %v3761_v43 = vpop.f32.mrb[138].mxu1  ;;  %v3814_v39 = vpop.f32.mrb[138].mxu0 }
 0xe59   : > { %10456 = vtanh.f32 %v3980_v17  ;;  %v3983_v24 = vadd.f32 %v3761_v43, %v871_v21  ;;  %v3985_v31 = vadd.f32 %v3814_v39, %v1128_v42  ;;  %v3763_v1 = vpop.f32.mrb[139].mxu1  ;;  %v13145_v44 = vpop.f32.mrb[139].mxu0 }
 0xe5a   : > { %10458 = vtanh.f32 %v3982_v60  ;;  %v3984_v22 = vadd.f32 %v3763_v1, %v1126_v30 }
 0xe5b   : > { %v10445_v50 = vpop.eup %10444  ;;  %10460 = vtanh.f32 %v3981_v14 }
 0xe5c   : > { %v10447_v18 = vpop.eup %10446  ;;  %10462 = vtanh.f32 %v3983_v24 }
 0xe5d   : > { %v10449_v59 = vpop.eup %10448  ;;  %v3998_v32 = vmul.f32 0.5, %v10447_v18  ;;  %10464 = vtanh.f32 %v3985_v31 }
 0xe5e   : > { %v10451_v11 = vpop.eup %10450  ;;  %v4006_v40 = vsub.f32 %v10449_v59, %v10445_v50  ;;  %10466 = vtanh.f32 %v3984_v22  ;;  %v13147_v13 = vpop.f32.mrb[140].mxu1 }
 0xe5f   : > { %v10453_v38 = vpop.eup %10452  ;;  %v4002_v61 = vadd.f32 0.5, %v3998_v32  ;;  %v13149_v48 = vpop.f32.mrb[141].mxu1  ;;  %v16094_v32 = vld [vmem:[#allocation11_spill] sm:$0xff] }
 0xe60   : > { %v10455_v2 = vpop.eup %10454  ;;  %v3999_v15 = vmul.f32 0.5, %v10453_v38  ;;  %v13151_v55 = vpop.f32.mrb[142].mxu1 }
 0xe61   : > { %v4010_v26 = vmul.f32 %v4006_v40, %v4002_v61  ;;  %v4007_v7 = vsub.f32 %v10455_v2, %v10451_v11  ;;  %v13153_v53 = vpop.f32.mrb[143].mxu1  ;;  %v16095_v40 = vld [vmem:[#allocation12_spill] sm:$0xff]  ;;  %v16096_v61 = vld [vmem:[#allocation14_spill] sm:$0xff] }
 0xe62   : > { %v4003_v34 = vadd.f32 0.5, %v3999_v15  ;;  %v13176_v15 = vld [vmem:[%s15591_s7 + $0x34] ss:$12 sps:$4 sm:$0xff]  }
 0xe63   : > { %v10457_v51 = vpop.eup %10456  ;;  %v4014_v28 = vadd.f32 %v10445_v50, %v4010_v26  ;;  %v13185_v26 = vld [vmem:[%s15591_s7 + $0x30] ss:$12 sps:$4 sm:$0xff]  }
 0xe64   : > { %v10459_v35 = vpop.eup %10458  ;;  %v4011_v17 = vmul.f32 %v4007_v7, %v4003_v34  ;;  %v16097_v7 = vld [vmem:[#allocation15_spill] sm:$0xff] }
 0xe65   : > { %v10461_v60 = vpop.eup %10460  ;;  %v4000_v0 = vmul.f32 0.5, %v10459_v35  ;;  %v13192_v34 = vld [vmem:[%s15591_s7 + $0x4c] ss:$12 sps:$4 sm:$0xff]  }
 0xe66   : > { %v10463_v19 = vpop.eup %10462  ;;  %v13155_v21 = vpop.f32.mrb[144].mxu1  ;;  %v4015_v23 = vadd.f32 %v10451_v11, %v4011_v17  ;;  %v4008_v42 = vsub.f32 %v10461_v60, %v10457_v51  ;;  %v13214_v35 = vld [vmem:[%s15591_s7 + $0x60] ss:$12 sps:$4 sm:$0xff]   ;;  %v13221_v60 = vld [vmem:[%s15591_s7 + $0x7c] ss:$12 sps:$4 sm:$0xff]  }
 0xe67   : > { %v10465_v14 = vpop.eup %10464  ;;  %v4004_v43 = vadd.f32 0.5, %v4000_v0  ;;  %v13157_v39 = vpop.f32.mrb[145].mxu1  ;;  %v16099_v17 = vld [vmem:[#allocation16_spill] sm:$0xff] }
 0xe68   : > { %v10467_v46 = vpop.eup %10466  ;;  %v4001_v30 = vmul.f32 0.5, %v10465_v14  ;;  %v13159_v24 = vpop.f32.mrb[146].mxu1  ;;  %v13161_v31 = vpack.c.bf16 %v4015_v23, %v4014_v28  ;;  %v13207_v28 = vld [vmem:[%s15591_s7 + $0x64] ss:$12 sps:$4 sm:$0xff]   ;;  %v13240_v23 = vld [vmem:[%s15591_s7 + $0x94] ss:$12 sps:$4 sm:$0xff]  }
 0xe69   : > { %v13163_v1 = vpop.f32.mrb[147].mxu1  ;;  %v4009_v22 = vsub.f32 %v10467_v46, %v10463_v19  ;;  %v4012_v50 = vmul.f32 %v4008_v42, %v4004_v43  ;;  %v13228_v0 = vld [vmem:[%s15591_s7 + $0x78] ss:$12 sps:$4 sm:$0xff]   ;;  %v13247_v42 = vld [vmem:[%s15591_s7 + $0x90] ss:$12 sps:$4 sm:$0xff]  }
 0xe6a   : > { %v4005_v18 = vadd.f32 0.5, %v4001_v30  ;;  %4065 = vmatmul.mubr.bf16.vlgmr.msra.gmra.mrb[148].mxu0 %v13161_v31  ;;  %9551 = vmatprep.mubr.bf16.mxu1 %v13161_v31  ;;  %16100 = vst [vmem:[#allocation112_spill] sm:$0xff] %v13247_v42  ;;  %v13253_v14 = vld [vmem:[%s15591_s7 + $0x80] ss:$12 sps:$4 sm:$0xff]   ;;  %v13266_v46 = vld [vmem:[%s15591_s7 + $0xa8] ss:$12 sps:$4 sm:$0xff]  }
 0xe6b   : > { %4074 = vmatprep.mubr.bf16.mxu0 %v15957_v56  ;;  %v4016_v59 = vadd.f32 %v10457_v51, %v4012_v50  ;;  %4193 = vmatpush1.bf16.msra.mxu0 %v16094_v32  ;;  %v16098_v51 = vld [vmem:[#allocation18_spill] sm:$0xff]  ;;  %16101 = vst [vmem:[#allocation113_spill] sm:$0xff] %v13253_v14  ;;  %v13259_v43 = vld [vmem:[%s15591_s7 + $0xac] ss:$12 sps:$4 sm:$0xff]   ;;  %16103 = vst [vmem:[#allocation115_spill] sm:$0xff] %v13266_v46 }
 0xe6c   : > { %v4013_v11 = vmul.f32 %v4009_v22, %v4005_v18  ;;  %4194 = vmatprep.subr.bf16.mxu0 %v16095_v40  ;;  %16102 = vst [vmem:[#allocation114_spill] sm:$0xff] %v13259_v43  ;;  %v13272_v30 = vld [vmem:[%s15591_s7 + $0x98] ss:$12 sps:$4 sm:$0xff]   ;;  %v13285_v50 = vld [vmem:[%s15591_s7 + $0xb0] ss:$12 sps:$4 sm:$0xff]   ;;  %v16107_v18 = vld [vmem:[#allocation129_spill] sm:$0xff] }
 0xe6d   : > { %16104 = vst [vmem:[#allocation116_spill] sm:$0xff] %v13272_v30  ;;  %v13278_v22 = vld [vmem:[%s15587_s3 + $0x40] sm:$0xff]   ;;  %16106 = vst [vmem:[#allocation119_spill] sm:$0xff] %v13285_v50  ;;  %v16108_v32 = vld [vmem:[#allocation130_spill] sm:$0xff] }
 0xe6e   : > { %v4017_v38 = vadd.f32 %v10463_v19, %v4013_v11  ;;  %v13234_v19 = vld [vmem:[%s15591_s7 + $0x68] ss:$12 sps:$4 sm:$0xff]   ;;  %16105 = vst [vmem:[#allocation117_spill] sm:$0xff] %v13278_v22  ;;  %v4019_v11 = vadd.f32 %v13147_v13, %v16108_v32  ;;  %v16109_v13 = vld [vmem:[#allocation131_spill] sm:$0xff] }
 0xe6f   : > { %4195 = vmatpush1.bf16.msra.mxu0 %v16096_v61 }
 0xe70   : > { %v13171_v2 = vpack.c.bf16 %v4017_v38, %v4016_v59  ;;  %4196 = vmatprep.subr.bf16.mxu0 %v13176_v15  ;;  %v4018_v59 = vadd.f32 %v13121_v33, %v16107_v18  ;;  %v4021_v38 = vadd.f32 %v13129_v49, %v16107_v18  ;;  %v4024_v33 = vadd.f32 %v13137_v4, %v16107_v18 }
 0xe71   : > { %v4026_v49 = vadd.f32 %v13157_v39, %v16109_v13  ;;  %v4023_v39 = vadd.f32 %v13153_v53, %v16109_v13 }
 0xe72   : > { %4075 = vmatmul.mubr.bf16.gmra.mrb[152].mxu0 %v13171_v2  ;;  %9552 = vmatmul.mubr.bf16.vlgmr.msra.gmra.mrb[152].mxu1 %v13171_v2 }
 0xe73   : > { %9556 = vmatpush3.bf16.msra.mxu1 %v16078_v27  ;;  %4197 = vmatpush1.bf16.msra.mxu0 %v13185_v26  ;;  %v13200_v27 = vld [vmem:[%s15591_s7 + $0x48] ss:$12 sps:$4 sm:$0xff]  }
 0xe74   : > { %9557 = vmatprep.subr.bf16.mxu1 %v16097_v7  ;;  %4198 = vmatprep.subr.bf16.mxu0 %v13192_v34 }
 0xe75   : > { %4224 = vmatprep.mubr.bf16.mxu0 %v15957_v56 }
 0xe77   : > { %9558 = vmatpush3.bf16.msra.mxu1 %v16097_v7  ;;  %4199 = vmatpush1.bf16.msra.mxu0 %v13200_v27 }
 0xe78   : > { %9559 = vmatprep.subr.bf16.mxu1 %v16098_v51  ;;  %4200 = vmatprep.subr.bf16.mxu0 %v13207_v28 }
 0xe7b   : > { %9560 = vmatpush3.bf16.msra.mxu1 %v16098_v51  ;;  %4201 = vmatpush1.bf16.msra.mxu0 %v13214_v35  ;;  %v4022_v51 = vadd.f32 %v13151_v55, %v16108_v32  ;;  %v4025_v55 = vadd.f32 %v13155_v21, %v16108_v32 }
 0xe7c   : > { %9561 = vmatprep.subr.bf16.mxu1 %v16099_v17  ;;  %4202 = vmatprep.subr.bf16.mxu0 %v13221_v60 }
 0xe7f   : > { %9562 = vmatpush3.bf16.msra.mxu1 %v16099_v17  ;;  %4203 = vmatpush1.bf16.msra.mxu0 %v13228_v0 }
 0xe80   : > { %9563 = vmatprep.subr.bf16.mxu1 %v13234_v19  ;;  %4204 = vmatprep.subr.bf16.mxu0 %v13240_v23 }
 0xe83   : > { %9564 = vmatpush3.bf16.msra.mxu1 %v13234_v19  ;;  %4205 = vmatpush1.bf16.msra.mxu0 %v13247_v42 }
 0xe84   : > { %9565 = vmatprep.subr.bf16.mxu1 %v13253_v14  ;;  %4206 = vmatprep.subr.bf16.mxu0 %v13259_v43 }
 0xe87   : > { %9566 = vmatpush3.bf16.msra.mxu1 %v13253_v14  ;;  %4207 = vmatpush1.bf16.msra.mxu0 %v13266_v46 }
 0xe88   : > { %9567 = vmatprep.subr.bf16.mxu1 %v13272_v30  ;;  %9061 = vmatprep.subr.bf16.mxu0 %v13278_v22 }
 0xe8b   : > { %9568 = vmatpush3.bf16.msra.mxu1 %v13272_v30 }
 0xe8c   : > { %9569 = vmatprep.subr.bf16.mxu1 %v13285_v50 }
 0xe8f   : > { %9570 = vmatpush3.bf16.msra.mxu1 %v13285_v50 }
 0xe90   : > { %9575 = vmatprep.subr.bf16.mxu1 %v12941_v20 }
 0xf3d   : > { %v4066_v40 = vpop.f32.mrb[148].mxu0 }
 0xf3e   : > { %v4134_v61 = vadd.f32 %v4066_v40, %v4018_v59  ;;  %v4068_v7 = vpop.f32.mrb[149].mxu0  ;;  %v4020_v59 = vadd.f32 %v13149_v48, %v16109_v13  ;;  %v4028_v48 = vadd.f32 %v13159_v24, %v16108_v32 }
 0xf3f   : > { %v4135_v17 = vadd.f32 %v4068_v7, %v4019_v11  ;;  %v4070_v22 = vpop.f32.mrb[150].mxu0 }
 0xf40   : > { %10468 = vtanh.f32 %v4134_v61  ;;  %v4137_v50 = vadd.f32 %v4070_v22, %v4021_v38  ;;  %v4072_v30 = vpop.f32.mrb[151].mxu0  ;;  %v4027_v22 = vadd.f32 %v13145_v44, %v16107_v18 }
 0xf41   : > { %10470 = vtanh.f32 %v4135_v17  ;;  %v4138_v46 = vadd.f32 %v4072_v30, %v4022_v51 }
 0xf42   : > { %10472 = vtanh.f32 %v4137_v50 }
 0xf43   : > { %10474 = vtanh.f32 %v4138_v46  ;;  %v4029_v46 = vadd.f32 %v13163_v1, %v16109_v13 }
 0xf45   : > { %v4076_v11 = vpop.f32.mrb[152].mxu0  ;;  %v9553_v40 = vpop.f32.mrb[152].mxu1 }
 0xf46   : > { %v4140_v30 = vadd.f32 %v4076_v11, %v4024_v33  ;;  %v4142_v50 = vadd.f32 %v9553_v40, %v4026_v49  ;;  %v4078_v4 = vpop.f32.mrb[153].mxu0  ;;  %v4119_v38 = vpop.f32.mrb[153].mxu1 }
 0xf47   : > { %v4141_v61 = vadd.f32 %v4078_v4, %v4025_v55  ;;  %v4136_v21 = vadd.f32 %v4119_v38, %v4020_v59  ;;  %v4080_v7 = vpop.f32.mrb[154].mxu0  ;;  %v9554_v51 = vpop.f32.mrb[154].mxu1 }
 0xf48   : > { %10476 = vtanh.f32 %v4140_v30  ;;  %v4143_v17 = vadd.f32 %v4080_v7, %v4027_v22  ;;  %v4145_v44 = vadd.f32 %v9554_v51, %v4029_v46  ;;  %v4082_v18 = vpop.f32.mrb[155].mxu0  ;;  %v4122_v43 = vpop.f32.mrb[155].mxu1 }
 0xf49   : > { %10478 = vtanh.f32 %v4142_v50  ;;  %v4144_v1 = vadd.f32 %v4082_v18, %v4028_v48  ;;  %v4139_v33 = vadd.f32 %v4122_v43, %v4023_v39 }
 0xf4a   : > { %v10469_v49 = vpop.eup %10468  ;;  %10480 = vtanh.f32 %v4141_v61 }
 0xf4b   : > { %v10471_v11 = vpop.eup %10470  ;;  %10482 = vtanh.f32 %v4136_v21 }
 0xf4c   : > { %v10473_v53 = vpop.eup %10472  ;;  %v4166_v40 = vsub.f32 %v10471_v11, %v10469_v49  ;;  %10484 = vtanh.f32 %v4143_v17 }
 0xf4d   : > { %v10475_v24 = vpop.eup %10474  ;;  %10486 = vtanh.f32 %v4145_v44 }
 0xf4e   : > { %10488 = vtanh.f32 %v4144_v1  ;;  %v4167_v59 = vsub.f32 %v10475_v24, %v10473_v53 }
 0xf4f   : > { %10490 = vtanh.f32 %v4139_v33 }
 0xf52   : > { %v10477_v55 = vpop.eup %10476 }
 0xf53   : > { %v10479_v22 = vpop.eup %10478 }
 0xf54   : > { %v10481_v46 = vpop.eup %10480  ;;  %v4160_v30 = vmul.f32 0.5, %v10479_v22 }
 0xf55   : > { %v10483_v4 = vpop.eup %10482  ;;  %v4168_v50 = vsub.f32 %v10481_v46, %v10477_v55 }
 0xf56   : > { %v10485_v18 = vpop.eup %10484  ;;  %v4164_v43 = vadd.f32 0.5, %v4160_v30  ;;  %v4158_v38 = vmul.f32 0.5, %v10483_v4  ;;  %v13317_v4 = vld [vmem:[%s15587_s3] sm:$0xff]  }
 0xf57   : > { %v10487_v39 = vpop.eup %10486 }
 0xf58   : > { %v10489_v48 = vpop.eup %10488  ;;  %v4162_v61 = vadd.f32 0.5, %v4158_v38  ;;  %v4161_v21 = vmul.f32 0.5, %v10487_v39  ;;  %v4172_v7 = vmul.f32 %v4168_v50, %v4164_v43  ;;  %v13381_v50 = vld [vmem:[%s15587_s3 + $0x60] sm:$0xff]   ;;  %v13400_v38 = vld [vmem:[%s15587_s3 + $0x68] sm:$0xff]  }
 0xf59   : > { %v10491_v51 = vpop.eup %10490  ;;  %v4169_v17 = vsub.f32 %v10489_v48, %v10485_v18  ;;  %v13394_v43 = vld [vmem:[%s15587_s3 + $0x20] sm:$0xff]   ;;  %16111 = vst [vmem:[#allocation118_spill] sm:$0xff] %v13400_v38  ;;  %v13407_v39 = vld [vmem:[%s15587_s3 + $0xa8] sm:$0xff]  }
 0xf5a   : > { %v4170_v44 = vmul.f32 %v4166_v40, %v4162_v61  ;;  %v4165_v1 = vadd.f32 0.5, %v4161_v21  ;;  %v4159_v11 = vmul.f32 0.5, %v10491_v51  ;;  %v4176_v33 = vadd.f32 %v10477_v55, %v4172_v7  ;;  %v13362_v40 = vld [vmem:[%s15587_s3 + $0x58] sm:$0xff]   ;;  %16110 = vst [vmem:[#allocation120_spill] sm:$0xff] %v13394_v43  ;;  %16112 = vst [vmem:[#allocation122_spill] sm:$0xff] %v13407_v39  ;;  %v13413_v48 = vld [vmem:[%s15587_s3 + $0x28] sm:$0xff]  }
 0xf5b   : > { %v13375_v55 = vld [vmem:[%s15587_s3 + $0x18] sm:$0xff]   ;;  %16113 = vst [vmem:[#allocation123_spill] sm:$0xff] %v13413_v48  ;;  %v13419_v61 = vld [vmem:[%s15587_s3 + $0x70] sm:$0xff]  }
 0xf5c   : > { %v4174_v24 = vadd.f32 %v10469_v49, %v4170_v44  ;;  %v4163_v13 = vadd.f32 0.5, %v4159_v11  ;;  %v4173_v32 = vmul.f32 %v4169_v17, %v4165_v1  ;;  %v13323_v49 = vld [vmem:[%s15587_s3 + $0x48] sm:$0xff]   ;;  %16114 = vst [vmem:[#allocation121_spill] sm:$0xff] %v13419_v61  ;;  %v13426_v21 = vld [vmem:[%s15587_s3 + $0xb0] sm:$0xff]   ;;  %v13438_v51 = vld [vmem:[%s15587_s3 + $0x78] sm:$0xff]  }
 0xf5d   : > { %16115 = vst [vmem:[#allocation125_spill] sm:$0xff] %v13426_v21  ;;  %v13432_v7 = vld [vmem:[%s15587_s3 + $0x30] sm:$0xff]   ;;  %16117 = vst [vmem:[#allocation124_spill] sm:$0xff] %v13438_v51  ;;  %v13445_v17 = vld [vmem:[%s15587_s3 + $0xb8] sm:$0xff]  }
 0xf5e   : > { %v4171_v22 = vmul.f32 %v4167_v59, %v4163_v13  ;;  %v4177_v14 = vadd.f32 %v10485_v18, %v4173_v32  ;;  %v13337_v32 = vld [vmem:[%s15587_s3 + $0x8] sm:$0xff]   ;;  %v13343_v13 = vld [vmem:[%s15587_s3 + $0x50] sm:$0xff]   ;;  %v13369_v59 = vld [vmem:[%s15587_s3 + $0x98] sm:$0xff]   ;;  %16116 = vst [vmem:[#allocation126_spill] sm:$0xff] %v13432_v7 }
 0xf5f   : > { %v13388_v18 = vld [vmem:[%s15587_s3 + $0xa0] sm:$0xff]   ;;  %16118 = vst [vmem:[#allocation128_spill] sm:$0xff] %v13445_v17  ;;  %v13451_v44 = vld [vmem:[%s15587_s3 + $0x38] sm:$0xff]  }
 0xf60   : > { %v4175_v46 = vadd.f32 %v10473_v53, %v4171_v22  ;;  %v4191_v42 = vpack.c.bf16 %v4177_v14, %v4176_v33  ;;  %v13331_v14 = vld [vmem:[%s15587_s3 + $0x88] sm:$0xff]   ;;  %v13356_v53 = vld [vmem:[%s15587_s3 + $0x10] sm:$0xff]   ;;  %16119 = vst [vmem:[#allocation127_spill] sm:$0xff] %v13451_v44 }
 0xf62   : > { %v4190_v30 = vpack.c.bf16 %v4175_v46, %v4174_v24 }
 0xf64   : > { %4225 = vmatmul.mubr.bf16.vlgmr.msra.gmra.mrb[140].mxu0 %v4190_v30  ;;  %9571 = vmatprep.mubr.bf16.mxu1 %v4190_v30 }
 0xf65   : > { %9062 = vmatpush3.bf16.msra.mxu0 %v13317_v4  ;;  %9572 = vmatmul.mubr.bf16.vlgmr.msra.gmra.mrb[148].mxu1 %v4191_v42 }
 0xf66   : > { %9063 = vmatprep.subr.bf16.mxu0 %v13323_v49  ;;  %4234 = vmatprep.mubr.bf16.mxu0 %v15957_v56 }
 0xf67   : > { %9576 = vmatpush3.bf16.msra.mxu1 %v12941_v20  ;;  %v13350_v20 = vld [vmem:[%s15587_s3 + $0x90] sm:$0xff]  }
 0xf68   : > { %9577 = vmatprep.subr.bf16.mxu1 %v13331_v14 }
 0xf69   : > { %9064 = vmatpush3.bf16.msra.mxu0 %v13337_v32 }
 0xf6a   : > { %9065 = vmatprep.subr.bf16.mxu0 %v13343_v13 }
 0xf6b   : > { %9578 = vmatpush3.bf16.msra.mxu1 %v13331_v14 }
 0xf6c   : > { %4235 = vmatmul.mubr.bf16.gmra.mrb[144].mxu0 %v4191_v42  ;;  %9579 = vmatprep.subr.bf16.mxu1 %v13350_v20 }
 0xf6d   : > { %9066 = vmatpush3.bf16.msra.mxu0 %v13356_v53  ;;  %4388 = vmatprep.mubr.bf16.mxu0 %v4190_v30 }
 0xf6e   : > { %9067 = vmatprep.subr.bf16.mxu0 %v13362_v40 }
 0xf6f   : > { %9580 = vmatpush3.bf16.msra.mxu1 %v13350_v20 }
 0xf70   : > { %9581 = vmatprep.subr.bf16.mxu1 %v13369_v59 }
 0xf71   : > { %9068 = vmatpush3.bf16.msra.mxu0 %v13375_v55 }
 0xf72   : > { %9069 = vmatprep.subr.bf16.mxu0 %v13381_v50 }
 0xf73   : > { %9582 = vmatpush3.bf16.msra.mxu1 %v13369_v59 }
 0xf74   : > { %9583 = vmatprep.subr.bf16.mxu1 %v13388_v18 }
 0xf75   : > { %9070 = vmatpush3.bf16.msra.mxu0 %v13394_v43 }
 0xf76   : > { %9071 = vmatprep.subr.bf16.mxu0 %v13400_v38 }
 0xf77   : > { %9584 = vmatpush3.bf16.msra.mxu1 %v13388_v18 }
 0xf78   : > { %9585 = vmatprep.subr.bf16.mxu1 %v13407_v39 }
 0xf79   : > { %9072 = vmatpush3.bf16.msra.mxu0 %v13413_v48 }
 0xf7a   : > { %9073 = vmatprep.subr.bf16.mxu0 %v13419_v61 }
 0xf7b   : > { %9586 = vmatpush3.bf16.msra.mxu1 %v13407_v39 }
 0xf7c   : > { %9587 = vmatprep.subr.bf16.mxu1 %v13426_v21 }
 0xf7d   : > { %9074 = vmatpush3.bf16.msra.mxu0 %v13432_v7 }
 0xf7e   : > { %9075 = vmatprep.subr.bf16.mxu0 %v13438_v51 }
 0xf7f   : > { %9588 = vmatpush3.bf16.msra.mxu1 %v13426_v21 }
 0xf80   : > { %9589 = vmatprep.subr.bf16.mxu1 %v13445_v17 }
 0xf81   : > { %9076 = vmatpush3.bf16.msra.mxu0 %v13451_v44 }
 0xf82   : > { %4536 = vmatprep.subr.bf16.mxu0 %v12970_v62 }
 0xf83   : > { %9590 = vmatpush3.bf16.msra.mxu1 %v13445_v17 }
 0xf84   : > { %4389 = vmatmul.mubr.bf16.vlgmr.msra.gmra.mrb[156].mxu0 %v13161_v31  ;;  %4589 = vmatprep.subr.bf16.mxu1 %v12975_v5 }
 0xf85   : > { %4396 = vmatprep.mubr.bf16.mxu0 %v4191_v42  ;;  %4537 = vmatpush1.bf16.msra.mxu0 %v12978_v45 }
 0xf86   : > { %4538 = vmatprep.subr.bf16.mxu0 %v12981_v57 }
 0xf89   : > { %4539 = vmatpush1.bf16.msra.mxu0 %v12984_v9 }
 0xf8a   : > { %4642 = vmatprep.subr.bf16.mxu0 %v12987_v12 }
 0xf8c   : > { %4397 = vmatmul.mubr.bf16.gmra.mrb[160].mxu0 %v13171_v2 }
 0xf8d   : > { %4568 = vmatprep.mubr.bf16.mxu0 %v15957_v56 }
0x1037   : > { %v4226_v62 = vpop.f32.mrb[140].mxu0 }
0x1038   : > { %v9941_v1 = vadd.f32 %v4226_v62, %v16054_v41  ;;  %v4228_v11 = vpop.f32.mrb[141].mxu0  ;;  %v9573_v31 = vpop.f32.mrb[148].mxu1 }
0x1039   : > { %v9942_v5 = vadd.f32 %v4228_v11, %v16055_v16  ;;  %v9949_v42 = vadd.f32 %v9573_v31, %v16056_v52  ;;  %v4230_v45 = vpop.f32.mrb[142].mxu0  ;;  %v4279_v33 = vpop.f32.mrb[149].mxu1 }
0x103a   : > { %10492 = vtanh.f32 %v9941_v1  ;;  %v9943_v57 = vadd.f32 %v4230_v45, %v16054_v41  ;;  %v9950_v9 = vadd.f32 %v4279_v33, %v16056_v52  ;;  %v4232_v12 = vpop.f32.mrb[143].mxu0  ;;  %v9574_v2 = vpop.f32.mrb[150].mxu1 }
0x103b   : > { %10494 = vtanh.f32 %v9942_v5  ;;  %v9944_v24 = vadd.f32 %v4232_v12, %v16055_v16  ;;  %v4282_v22 = vpop.f32.mrb[151].mxu1  ;;  %v9951_v46 = vadd.f32 %v9574_v2, %v16056_v52 }
0x103c   : > { %10496 = vtanh.f32 %v9949_v42  ;;  %v9952_v30 = vadd.f32 %v4282_v22, %v16056_v52 }
0x103d   : > { %10498 = vtanh.f32 %v9943_v57 }
0x103e   : > { %10500 = vtanh.f32 %v9950_v9 }
0x103f   : > { %10502 = vtanh.f32 %v9944_v24  ;;  %v4236_v62 = vpop.f32.mrb[144].mxu0 }
0x1040   : > { %10504 = vtanh.f32 %v9951_v46  ;;  %v9945_v1 = vadd.f32 %v4236_v62, %v16054_v41  ;;  %v4238_v11 = vpop.f32.mrb[145].mxu0 }
0x1041   : > { %10506 = vtanh.f32 %v9952_v30  ;;  %v9946_v31 = vadd.f32 %v4238_v11, %v16055_v16  ;;  %v4240_v5 = vpop.f32.mrb[146].mxu0 }
0x1042   : > { %10508 = vtanh.f32 %v9945_v1  ;;  %v9947_v45 = vadd.f32 %v4240_v5, %v16054_v41  ;;  %v4242_v42 = vpop.f32.mrb[147].mxu0 }
0x1043   : > { %10510 = vtanh.f32 %v9946_v31  ;;  %v9948_v33 = vadd.f32 %v4242_v42, %v16055_v16 }
0x1044   : > { %v10493_v57 = vpop.eup %10492  ;;  %10512 = vtanh.f32 %v9947_v45 }
0x1045   : > { %v10495_v9 = vpop.eup %10494  ;;  %10514 = vtanh.f32 %v9948_v33 }
0x1046   : > { %v10497_v12 = vpop.eup %10496  ;;  %v4326_v2 = vsub.f32 %v10495_v9, %v10493_v57 }
0x1047   : > { %v10499_v24 = vpop.eup %10498  ;;  %v4320_v11 = vmul.f32 0.5, %v10497_v12 }
0x1048   : > { %v10501_v22 = vpop.eup %10500 }
0x1049   : > { %v10503_v46 = vpop.eup %10502  ;;  %v4318_v30 = vmul.f32 0.5, %v10501_v22  ;;  %v4324_v45 = vadd.f32 0.5, %v4320_v11 }
0x104a   : > { %v10505_v62 = vpop.eup %10504  ;;  %v4327_v52 = vsub.f32 %v10503_v46, %v10499_v24 }
0x104b   : > { %v10507_v1 = vpop.eup %10506  ;;  %v4322_v44 = vadd.f32 0.5, %v4318_v30  ;;  %v4321_v41 = vmul.f32 0.5, %v10505_v62 }
0x104c   : > { %v10509_v5 = vpop.eup %10508  ;;  %v4319_v31 = vmul.f32 0.5, %v10507_v1 }
0x104d   : > { %v10511_v17 = vpop.eup %10510  ;;  %v4330_v42 = vmul.f32 %v4326_v2, %v4322_v44  ;;  %v4325_v21 = vadd.f32 0.5, %v4321_v41 }
0x104e   : > { %v10513_v16 = vpop.eup %10512  ;;  %v4323_v51 = vadd.f32 0.5, %v4319_v31  ;;  %v4328_v33 = vsub.f32 %v10511_v17, %v10509_v5 }
0x104f   : > { %v10515_v7 = vpop.eup %10514  ;;  %v4334_v9 = vadd.f32 %v10493_v57, %v4330_v42 }
0x1050   : > { %v4331_v61 = vmul.f32 %v4327_v52, %v4323_v51  ;;  %v4329_v48 = vsub.f32 %v10515_v7, %v10513_v16  ;;  %v4332_v22 = vmul.f32 %v4328_v33, %v4324_v45  ;;  %v13478_v52 = vld [vmem:[#allocation3 + $0x54] ss:$36 sps:$4 sm:$0xff]  }
0x1052   : > { %v4335_v39 = vadd.f32 %v10499_v24, %v4331_v61  ;;  %v4333_v12 = vmul.f32 %v4329_v48, %v4325_v21  ;;  %v4336_v46 = vadd.f32 %v10509_v5, %v4332_v22  ;;  %v16121_v24 = vld [vmem:[#allocation33_spill] sm:$0xff] }
0x1053   : > { %v875_v11 = vadd.f32 %v16121_v24, %v11989_v3 }
0x1054   : > { %v4338_v38 = vpack.c.bf16 %v4335_v39, %v4334_v9  ;;  %v4337_v30 = vadd.f32 %v10513_v16, %v4333_v12  ;;  %v16123_v9 = vld [vmem:[#allocation37_spill] sm:$0xff] }
0x1055   : > { %v881_v22 = vadd.f32 %v16123_v9, %v11989_v3 }
0x1056   : > { %9591 = vmatprep.mubr.bf16.mxu1 %v4338_v38  ;;  %v4339_v62 = vpack.c.bf16 %v4337_v30, %v4336_v46 }
0x1057   : > { %v9077_v1 = vpop.f32.mrb[156].mxu0 }
0x1058   : > { %v9078_v43 = vpop.f32.mrb[157].mxu0  ;;  %9592 = vmatmul.mubr.bf16.vlgmr.msra.gmra.mrb[156].mxu1 %v4339_v62 }
0x1059   : > { %v9079_v44 = vadd.f32 %v9078_v43, %v9077_v1  ;;  %v9080_v2 = vpop.f32.mrb[158].mxu0  ;;  %4590 = vmatpush1.bf16.msra.mxu1 %v13004_v6  ;;  %4621 = vmatprep.mubr.bf16.mxu1 %v15957_v56  ;;  %v16120_v6 = vld [vmem:[#allocation41_spill] sm:$0xff] }
0x105a   : > { %v9081_v41 = vpop.f32.mrb[159].mxu0  ;;  %4591 = vmatprep.subr.bf16.mxu1 %v13478_v52  ;;  %v887_v51 = vadd.f32 %v16120_v6, %v11989_v3 }
0x105b   : > { %v9082_v48 = vadd.f32 %v9081_v41, %v9080_v2 }
0x105d   : > { %4592 = vmatpush1.bf16.msra.mxu1 %v13009_v54  ;;  %v16122_v54 = vld [vmem:[#allocation45_spill] sm:$0xff] }
0x105e   : > { %4695 = vmatprep.subr.bf16.mxu1 %v13012_v10  ;;  %v893_v10 = vadd.f32 %v16122_v54, %v11989_v3 }
0x105f   : > { %v9083_v16 = vpop.f32.mrb[160].mxu0 }
0x1060   : > { %v9084_v38 = vpop.f32.mrb[161].mxu0 }
0x1061   : > { %v9085_v39 = vadd.f32 %v9084_v38, %v9083_v16  ;;  %v9086_v61 = vpop.f32.mrb[162].mxu0 }
0x1062   : > { %v9087_v43 = vpop.f32.mrb[163].mxu0 }
0x1063   : > { %v9088_v21 = vadd.f32 %v9087_v43, %v9086_v61 }
0x112b   : > { %v9593_v7 = vpop.f32.mrb[156].mxu1 }
0x112c   : > { %v4448_v17 = vadd.f32 %v9593_v7, %v9085_v39  ;;  %v4439_v57 = vpop.f32.mrb[157].mxu1 }
0x112d   : > { %v4440_v5 = vadd.f32 %v9079_v44, %v4439_v57  ;;  %v9594_v31 = vpop.f32.mrb[158].mxu1 }
0x112e   : > { %v4456_v42 = vadd.f32 %v4448_v17, %v887_v51  ;;  %v4451_v45 = vadd.f32 %v9594_v31, %v9088_v21  ;;  %v4442_v33 = vpop.f32.mrb[159].mxu1 }
0x112f   : > { %v4454_v12 = vadd.f32 %v4440_v5, %v875_v11  ;;  %v4443_v46 = vadd.f32 %v9082_v48, %v4442_v33 }
0x1130   : > { %10516 = vtanh.f32 %v4456_v42  ;;  %v4457_v30 = vadd.f32 %v4451_v45, %v893_v10 }
0x1131   : > { %10518 = vtanh.f32 %v4454_v12  ;;  %v4455_v62 = vadd.f32 %v4443_v46, %v881_v22 }
0x1132   : > { %10520 = vtanh.f32 %v4457_v30 }
0x1133   : > { %10522 = vtanh.f32 %v4455_v62 }
0x113a   : > { %v10517_v1 = vpop.eup %10516 }
0x113b   : > { %v10519_v44 = vpop.eup %10518  ;;  %v4464_v61 = vmul.f32 0.5, %v10517_v1 }
0x113c   : > { %v10521_v2 = vpop.eup %10520  ;;  %v4462_v41 = vmul.f32 0.5, %v10519_v44 }
0x113d   : > { %v10523_v16 = vpop.eup %10522  ;;  %v4465_v21 = vmul.f32 0.5, %v10521_v2  ;;  %v4468_v48 = vadd.f32 0.5, %v4464_v61 }
0x113e   : > { %v4466_v38 = vadd.f32 0.5, %v4462_v41  ;;  %v4463_v39 = vmul.f32 0.5, %v10523_v16 }
0x113f   : > { %v4469_v7 = vadd.f32 0.5, %v4465_v21  ;;  %v4472_v22 = vmul.f32 %v4468_v48, %v13040_v36  ;;  %v13524_v21 = vld [vmem:[#allocation3 + $0x18] ss:$36 sps:$4 sm:$0xff]  }
0x1140   : > { %4478 = vrot.lane.b32.xlu0 %v4466_v38, %s11338_s21  ;;  %v4467_v43 = vadd.f32 0.5, %v4463_v39  ;;  %v4470_v54 = vmul.f32 %v4466_v38, %v13032_v8 }
0x1141   : > { %v4473_v30 = vmul.f32 %v4469_v7, %v13044_v58 }
0x1142   : > { %4480 = vrot.lane.b32.xlu1 %v4467_v43, %s11338_s21  ;;  %v4471_v45 = vmul.f32 %v4467_v43, %v13036_v47  ;;  %v13521_v43 = vld [vmem:[#allocation3 + $0x10] ss:$36 sps:$4 sm:$0xff]  }
0x1144   : > { %4482 = vrot.lane.b32.xlu0 %v4468_v48, %s11338_s21  ;;  %v13527_v48 = vld [vmem:[#allocation3 + $0x5c] ss:$36 sps:$4 sm:$0xff]  }
0x1146   : > { %4484 = vrot.lane.b32.xlu1 %v4469_v7, %s11338_s21  ;;  %v13530_v7 = vld [vmem:[#allocation3 + $0x64] ss:$36 sps:$4 sm:$0xff]  }
0x11b2   : > { %v4479_v6 = vpop.permute.xlu0 %4478 }
0x11b3   : > { %v4490_v51 = vmul.f32 %v10519_v44, %v4479_v6 }
0x11b4   : > { %v4481_v17 = vpop.permute.xlu1 %4480 }
0x11b5   : > { %v4491_v57 = vmul.f32 %v10523_v16, %v4481_v17  ;;  %4498 = vrot.lane.b32.xlu0 %v4490_v51, %s11339_s18  ;;  %v13536_v51 = vld [vmem:[#allocation3 + $0x60] ss:$36 sps:$4 sm:$0xff]  }
0x11b6   : > { %v4483_v24 = vpop.permute.xlu0 %4482  ;;  %16125 = vst [vmem:[#allocation133_spill] sm:$0xff] %v13536_v51 }
0x11b7   : > { %v4492_v11 = vmul.f32 %v10517_v1, %v4483_v24  ;;  %4500 = vrot.lane.b32.xlu1 %v4491_v57, %s11339_s18  ;;  %v13539_v57 = vld [vmem:[#allocation3 + $0x20] ss:$36 sps:$4 sm:$0xff]  }
0x11b8   : > { %v4485_v5 = vpop.permute.xlu1 %4484  ;;  %16126 = vst [vmem:[#allocation134_spill] sm:$0xff] %v13539_v57 }
0x11b9   : > { %v4493_v31 = vmul.f32 %v10521_v2, %v4485_v5  ;;  %4502 = vrot.lane.b32.xlu0 %v4492_v11, %s11339_s18  ;;  %v13560_v11 = vld [vmem:[%s15589_s5] ss:$12 sps:$4 sm:$0xff]  }
0x11ba   : > { %16128 = vst [vmem:[#allocation136_spill] sm:$0xff] %v13560_v11 }
0x11bb   : > { %4504 = vrot.lane.b32.xlu1 %v4493_v31, %s11339_s18  ;;  %v13569_v31 = vld [vmem:[%s15589_s5 + $0x1c] ss:$12 sps:$4 sm:$0xff]  }
0x11bc   : > { %16130 = vst [vmem:[#allocation138_spill] sm:$0xff] %v13569_v31 }
0x1227   : > { %v4499_v10 = vpop.permute.xlu0 %4498 }
0x1228   : > { %v13500_v42 = vadd.f32 %v4499_v10, %v4470_v54  ;;  %v13576_v54 = vld [vmem:[%s15589_s5 + $0x18] ss:$12 sps:$4 sm:$0xff]   ;;  %v13582_v10 = vld [vmem:[%s15589_s5 + $0x34] ss:$12 sps:$4 sm:$0xff]  }
0x1229   : > { %v4501_v33 = vpop.permute.xlu1 %4500  ;;  %16131 = vst [vmem:[#allocation139_spill] sm:$0xff] %v13576_v54  ;;  %16132 = vst [vmem:[#allocation140_spill] sm:$0xff] %v13582_v10 }
0x122a   : > { %10524 = vtanh.f32 %v13500_v42  ;;  %v13504_v9 = vadd.f32 %v4501_v33, %v4471_v45  ;;  %v13588_v45 = vld [vmem:[%s15589_s5 + $0x8] ss:$12 sps:$4 sm:$0xff]   ;;  %v13598_v33 = vld [vmem:[%s15589_s5 + $0x30] ss:$12 sps:$4 sm:$0xff]  }
0x122b   : > { %v4503_v12 = vpop.permute.xlu0 %4502  ;;  %16133 = vst [vmem:[#allocation141_spill] sm:$0xff] %v13588_v45  ;;  %16134 = vst [vmem:[#allocation142_spill] sm:$0xff] %v13598_v33 }
0x122c   : > { %10526 = vtanh.f32 %v13504_v9  ;;  %v13508_v46 = vadd.f32 %v4503_v12, %v4472_v22  ;;  %v13604_v22 = vld [vmem:[%s15589_s5 + $0x4c] ss:$12 sps:$4 sm:$0xff]   ;;  %v13610_v12 = vld [vmem:[%s15589_s5 + $0x48] ss:$12 sps:$4 sm:$0xff]  }
0x122d   : > { %v4505_v8 = vpop.permute.xlu1 %4504  ;;  %16135 = vst [vmem:[#allocation25_spill] sm:$0xff] %v13604_v22  ;;  %16136 = vst [vmem:[#allocation17_spill] sm:$0xff] %v13610_v12 }
0x122e   : > { %10528 = vtanh.f32 %v13508_v46  ;;  %v13512_v62 = vadd.f32 %v4505_v8, %v4473_v30  ;;  %v13616_v30 = vld [vmem:[%s15589_s5 + $0x64] ss:$12 sps:$4 sm:$0xff]   ;;  %v13624_v8 = vld [vmem:[%s15589_s5 + $0x20] ss:$12 sps:$4 sm:$0xff]  }
0x122f   : > { %16137 = vst [vmem:[#allocation29_spill] sm:$0xff] %v13616_v30  ;;  %16138 = vst [vmem:[#allocation21_spill] sm:$0xff] %v13624_v8 }
0x1230   : > { %10530 = vtanh.f32 %v13512_v62 }
0x1234   : > { %v10525_v47 = vpop.eup %10524 }
0x1235   : > { %v4518_v44 = vmul.f32 %v10525_v47, %v4479_v6  ;;  %v13533_v6 = vld [vmem:[#allocation3 + $0x58] ss:$36 sps:$4 sm:$0xff]   ;;  %v13630_v47 = vld [vmem:[%s15589_s5 + $0x60] ss:$12 sps:$4 sm:$0xff]  }
0x1236   : > { %v10527_v1 = vpop.eup %10526  ;;  %16124 = vst [vmem:[#allocation132_spill] sm:$0xff] %v13533_v6  ;;  %16139 = vst [vmem:[#allocation146_spill] sm:$0xff] %v13630_v47 }
0x1237   : > { %v4519_v2 = vmul.f32 %v10527_v1, %v4481_v17  ;;  %v13636_v1 = vld [vmem:[%s15589_s5 + $0x7c] ss:$12 sps:$4 sm:$0xff]  }
0x1238   : > { %v10529_v41 = vpop.eup %10528  ;;  %16140 = vst [vmem:[#allocation147_spill] sm:$0xff] %v13636_v1 }
0x1239   : > { %v4522_v36 = vpack.c.bf16 %v4519_v2, %v4518_v44  ;;  %v4520_v38 = vmul.f32 %v10529_v41, %v4483_v24  ;;  %v13545_v24 = vld [vmem:[%s15589_s5 + $0x4] ss:$12 sps:$4 sm:$0xff]   ;;  %v13655_v41 = vld [vmem:[%s15589_s5 + $0x94] ss:$12 sps:$4 sm:$0xff]  }
0x123a   : > { %v10531_v16 = vpop.eup %10530  ;;  %16127 = vst [vmem:[#allocation135_spill] sm:$0xff] %v13545_v24  ;;  %v13643_v44 = vld [vmem:[%s15589_s5 + $0x38] ss:$12 sps:$4 sm:$0xff]   ;;  %16143 = vst [vmem:[#allocation150_spill] sm:$0xff] %v13655_v41 }
0x123b   : > { %4526 = vrot.lane.b32.xlu0 %v4522_v36, %s11339_s18  ;;  %v4521_v39 = vmul.f32 %v10531_v16, %v4485_v5  ;;  %v13563_v5 = vld [vmem:[#allocation3 + $0x68] ss:$36 sps:$4 sm:$0xff]   ;;  %16141 = vst [vmem:[#allocation148_spill] sm:$0xff] %v13643_v44  ;;  %v13649_v2 = vld [vmem:[%s15589_s5 + $0x78] ss:$12 sps:$4 sm:$0xff]  }
0x123c   : > { %16129 = vst [vmem:[#allocation137_spill] sm:$0xff] %v13563_v5  ;;  %16142 = vst [vmem:[#allocation149_spill] sm:$0xff] %v13649_v2  ;;  %v13662_v36 = vld [vmem:[%s15589_s5 + $0x50] ss:$12 sps:$4 sm:$0xff]  }
0x123d   : > { %v4523_v61 = vpack.c.bf16 %v4521_v39, %v4520_v38  ;;  %16144 = vst [vmem:[#allocation151_spill] sm:$0xff] %v13662_v36  ;;  %v13668_v16 = vld [vmem:[%s15589_s5 + $0x90] ss:$12 sps:$4 sm:$0xff]   ;;  %v13674_v38 = vld [vmem:[%s15589_s5 + $0xac] ss:$12 sps:$4 sm:$0xff]  }
0x123e   : > { %16145 = vst [vmem:[#allocation152_spill] sm:$0xff] %v13668_v16  ;;  %16146 = vst [vmem:[#allocation153_spill] sm:$0xff] %v13674_v38  ;;  %v13681_v39 = vld [vmem:[%s15589_s5 + $0x68] ss:$12 sps:$4 sm:$0xff]  }
0x123f   : > { %4528 = vrot.lane.b32.xlu1 %v4523_v61, %s11339_s18  ;;  %16147 = vst [vmem:[#allocation154_spill] sm:$0xff] %v13681_v39  ;;  %v13687_v61 = vld [vmem:[%s15589_s5 + $0xa8] ss:$12 sps:$4 sm:$0xff]  }
0x1240   : > { %16148 = vst [vmem:[#allocation155_spill] sm:$0xff] %v13687_v61 }
0x12ad   : > { %v4527_v58 = vpop.permute.xlu0 %4526 }
0x12ae   : > { %8822 = vmatmul.mubr.msk.bf16.vlgmr.msra.gmra.mrb[164].mxu0 %vm1804_vm2, %v4527_v58  ;;  %8824 = vmatmul.mubr.msk.bf16.vlgmr.msra.gmra.mrb[160].mxu1 %vm1804_vm2, %v4527_v58 }
0x12af   : > { %4578 = vmatprep.mubr.bf16.mxu0 %v15957_v56  ;;  %4631 = vmatprep.mubr.bf16.mxu1 %v15957_v56 }
0x12b0   : > { %4643 = vmatpush1.bf16.msra.mxu0 %v13521_v43  ;;  %4696 = vmatpush1.bf16.msra.mxu1 %v13524_v21 }
0x12b1   : > { %4644 = vmatprep.subr.bf16.mxu0 %v13527_v48  ;;  %4697 = vmatprep.subr.bf16.mxu1 %v13530_v7  ;;  %v4529_v17 = vpop.permute.xlu1 %4528 }
0x12b4   : > { %4645 = vmatpush1.bf16.msra.mxu0 %v13533_v6  ;;  %4698 = vmatpush1.bf16.msra.mxu1 %v13536_v51 }
0x12b5   : > { %9595 = vmatprep.subr.bf16.mxu0 %v13539_v57  ;;  %4855 = vmatprep.subr.bf16.mxu1 %v13545_v24 }
0x12b6   : > { %8823 = vmatmul.mubr.msk.bf16.gmra.mrb[168].mxu0 %vm1804_vm2, %v4529_v17  ;;  %8825 = vmatmul.mubr.msk.bf16.gmra.mrb[164].mxu1 %vm1804_vm2, %v4529_v17 }
0x12b7   : > { %4674 = vmatprep.mubr.bf16.mxu0 %v15957_v56  ;;  %4727 = vmatprep.mubr.bf16.mxu1 %v15957_v56 }
0x12be   : > { %8826 = vmatmul.mubr.msk.bf16.vlgmr.msra.gmra.mrb[172].mxu0 %vm1804_vm2, %v4527_v58  ;;  %8828 = vmatmul.mubr.msk.bf16.vlgmr.msra.gmra.mrb[168].mxu1 %vm1804_vm2, %v4527_v58 }
0x12bf   : > { %4684 = vmatprep.mubr.bf16.mxu0 %v15957_v56  ;;  %4737 = vmatprep.mubr.bf16.mxu1 %v15957_v56 }
0x12c0   : > { %9596 = vmatpush3.bf16.msra.mxu0 %v13539_v57  ;;  %4856 = vmatpush1.bf16.msra.mxu1 %v13560_v11 }
0x12c1   : > { %9597 = vmatprep.subr.bf16.mxu0 %v13563_v5  ;;  %4857 = vmatprep.subr.bf16.mxu1 %v13569_v31 }
0x12c4   : > { %9598 = vmatpush3.bf16.msra.mxu0 %v13563_v5  ;;  %4858 = vmatpush1.bf16.msra.mxu1 %v13576_v54 }
0x12c5   : > { %4859 = vmatprep.subr.bf16.mxu1 %v13582_v10  ;;  %9603 = vmatprep.subr.bf16.mxu0 %v13588_v45 }
0x12c6   : > { %8827 = vmatmul.mubr.msk.bf16.gmra.mrb[176].mxu0 %vm1804_vm2, %v4529_v17  ;;  %8829 = vmatmul.mubr.msk.bf16.gmra.mrb[172].mxu1 %vm1804_vm2, %v4529_v17 }
0x12c7   : > { %9599 = vmatprep.mubr.msk.bf16.mxu0 %vm1804_vm2, %v4527_v58  ;;  %4887 = vmatprep.mubr.bf16.mxu1 %v15957_v56  ;;  %v13695_v58 = vld [vmem:[%s15589_s5 + $0x80] ss:$12 sps:$4 sm:$0xff]  }
0x12c8   : > { %4860 = vmatpush1.bf16.msra.mxu1 %v13598_v33  ;;  %16149 = vst [vmem:[#allocation156_spill] sm:$0xff] %v13695_v58 }
0x12c9   : > { %4861 = vmatprep.subr.bf16.mxu1 %v13604_v22 }
0x12cc   : > { %4862 = vmatpush1.bf16.msra.mxu1 %v13610_v12  ;;  %v16156_v12 = vld [vmem:[#allocation42_spill] sm:$0xff] }
0x12cd   : > { %4863 = vmatprep.subr.bf16.mxu1 %v13616_v30  ;;  %v1140_v22 = vadd.f32 %v16156_v12, %v16081_v37 }
0x12ce   : > { %9600 = vmatmul.mubr.msk.bf16.vlgmr.msra.gmra.mrb[180].mxu0 %vm1804_vm2, %v4529_v17  ;;  %v13702_v17 = vld [vmem:[%s15589_s5 + $0x98] ss:$12 sps:$4 sm:$0xff]  }
0x12cf   : > { %9604 = vmatpush3.bf16.msra.mxu0 %v13588_v45  ;;  %16150 = vst [vmem:[#allocation157_spill] sm:$0xff] %v13702_v17 }
0x12d0   : > { %9605 = vmatprep.subr.bf16.mxu0 %v13624_v8  ;;  %4864 = vmatpush1.bf16.msra.mxu1 %v13630_v47 }
0x12d1   : > { %4865 = vmatprep.subr.bf16.mxu1 %v13636_v1 }
0x12d3   : > { %9606 = vmatpush3.bf16.msra.mxu0 %v13624_v8  ;;  %v16155_v8 = vld [vmem:[#allocation39_spill] sm:$0xff] }
0x12d4   : > { %9607 = vmatprep.subr.bf16.mxu0 %v13643_v44  ;;  %4866 = vmatpush1.bf16.msra.mxu1 %v13649_v2  ;;  %v883_v30 = vadd.f32 %v16155_v8, %v16079_v63  ;;  %v16158_v8 = vld [vmem:[#allocation43_spill] sm:$0xff] }
0x12d5   : > { %4867 = vmatprep.subr.bf16.mxu1 %v13655_v41  ;;  %v16154_v41 = vld [vmem:[#allocation36_spill] sm:$0xff]  ;;  %v889_v12 = vadd.f32 %v16158_v8, %v16079_v63 }
0x12d6   : > { %v1132_v2 = vadd.f32 %v16154_v41, %v16083_v29 }
0x12d7   : > { %9608 = vmatpush3.bf16.msra.mxu0 %v13643_v44 }
0x12d8   : > { %9609 = vmatprep.subr.bf16.mxu0 %v13662_v36  ;;  %4868 = vmatpush1.bf16.msra.mxu1 %v13668_v16 }
0x12d9   : > { %4869 = vmatprep.subr.bf16.mxu1 %v13674_v38 }
0x12db   : > { %9610 = vmatpush3.bf16.msra.mxu0 %v13662_v36 }
0x12dc   : > { %9611 = vmatprep.subr.bf16.mxu0 %v13681_v39  ;;  %4870 = vmatpush1.bf16.msra.mxu1 %v13687_v61  ;;  %v16152_v61 = vld [vmem:[#allocation35_spill] sm:$0xff] }
0x12dd   : > { %5015 = vmatprep.subr.bf16.mxu1 %v13104_v25  ;;  %v13709_v25 = vld [vmem:[%s15589_s5 + $0xb0] ss:$12 sps:$4 sm:$0xff]  }
0x12de   : > { %16151 = vst [vmem:[#allocation158_spill] sm:$0xff] %v13709_v25 }
0x12df   : > { %9612 = vmatpush3.bf16.msra.mxu0 %v13681_v39  ;;  %v877_v39 = vadd.f32 %v16152_v61, %v16079_v63 }
0x12e0   : > { %9613 = vmatprep.subr.bf16.mxu0 %v13695_v58 }
0x12e3   : > { %9614 = vmatpush3.bf16.msra.mxu0 %v13695_v58  ;;  %v13716_v58 = vld [vmem:[%s15591_s7 + $0x8] ss:$12 sps:$4 sm:$0xff]  }
0x12e4   : > { %9615 = vmatprep.subr.bf16.mxu0 %v13702_v17 }
0x12e7   : > { %9616 = vmatpush3.bf16.msra.mxu0 %v13702_v17  ;;  %v16153_v17 = vld [vmem:[#allocation38_spill] sm:$0xff] }
0x12e8   : > { %9617 = vmatprep.subr.bf16.mxu0 %v13709_v25  ;;  %v1134_v38 = vadd.f32 %v16153_v17, %v16081_v37  ;;  %v16157_v17 = vld [vmem:[#allocation40_spill] sm:$0xff] }
0x12e9   : > { %v1138_v10 = vadd.f32 %v16157_v17, %v16083_v29 }
0x12eb   : > { %9618 = vmatpush3.bf16.msra.mxu0 %v13709_v25 }
0x12ec   : > { %9623 = vmatprep.subr.bf16.mxu0 %v13716_v58 }
0x1381   : > { %v4570_v16 = vpop.f32.mrb[164].mxu0  ;;  %v4623_v36 = vpop.f32.mrb[160].mxu1 }
0x1382   : > { %v4797_v44 = vadd.f32 %v4570_v16, %v877_v39  ;;  %v4799_v25 = vadd.f32 %v4623_v36, %v1134_v38  ;;  %v4572_v1 = vpop.f32.mrb[165].mxu0  ;;  %v13725_v47 = vpop.f32.mrb[161].mxu1 }
0x1383   : > { %v4798_v61 = vadd.f32 %v4572_v1, %v1132_v2  ;;  %v4574_v33 = vpop.f32.mrb[166].mxu0  ;;  %v4627_v45 = vpop.f32.mrb[162].mxu1  ;;  %v16159_v1 = vld [vmem:[#allocation46_spill] sm:$0xff] }
0x1384   : > { %10532 = vtanh.f32 %v4797_v44  ;;  %v4800_v54 = vadd.f32 %v4574_v33, %v883_v30  ;;  %v4802_v41 = vadd.f32 %v4627_v45, %v1140_v22  ;;  %v4576_v16 = vpop.f32.mrb[167].mxu0  ;;  %v13733_v36 = vpop.f32.mrb[163].mxu1  ;;  %v1146_v2 = vadd.f32 %v16159_v1, %v16081_v37  ;;  %v16160_v33 = vld [vmem:[#allocation44_spill] sm:$0xff] }
0x1385   : > { %10534 = vtanh.f32 %v4799_v25  ;;  %v4801_v38 = vadd.f32 %v4576_v16, %v1138_v10  ;;  %v1144_v45 = vadd.f32 %v16160_v33, %v16083_v29 }
0x1386   : > { %10536 = vtanh.f32 %v4798_v61  ;;  %v16162_v61 = vld [vmem:[#allocation50_spill] sm:$0xff] }
0x1387   : > { %10538 = vtanh.f32 %v4800_v54  ;;  %v16161_v54 = vld [vmem:[#allocation47_spill] sm:$0xff] }
0x1388   : > { %10540 = vtanh.f32 %v4802_v41  ;;  %v895_v10 = vadd.f32 %v16161_v54, %v16079_v63  ;;  %v1152_v41 = vadd.f32 %v16162_v61, %v16081_v37 }
0x1389   : > { %10542 = vtanh.f32 %v4801_v38  ;;  %v4580_v39 = vpop.f32.mrb[168].mxu0  ;;  %v4633_v17 = vpop.f32.mrb[164].mxu1  ;;  %v16163_v38 = vld [vmem:[#allocation48_spill] sm:$0xff] }
0x138a   : > { %v4803_v22 = vadd.f32 %v4580_v39, %v889_v12  ;;  %v4805_v30 = vadd.f32 %v4633_v17, %v1146_v2  ;;  %v4582_v44 = vpop.f32.mrb[169].mxu0  ;;  %v13741_v25 = vpop.f32.mrb[165].mxu1  ;;  %v1150_v31 = vadd.f32 %v16163_v38, %v16083_v29 }
0x138b   : > { %v4804_v16 = vadd.f32 %v4582_v44, %v1144_v45  ;;  %v4584_v8 = vpop.f32.mrb[170].mxu0  ;;  %v4637_v1 = vpop.f32.mrb[166].mxu1 }
0x138c   : > { %10544 = vtanh.f32 %v4803_v22  ;;  %v4806_v5 = vadd.f32 %v4584_v8, %v895_v10  ;;  %v4808_v33 = vadd.f32 %v4637_v1, %v1152_v41  ;;  %v4586_v12 = vpop.f32.mrb[171].mxu0  ;;  %v13749_v2 = vpop.f32.mrb[167].mxu1 }
0x138d   : > { %10546 = vtanh.f32 %v4805_v30  ;;  %v4807_v39 = vadd.f32 %v4586_v12, %v1150_v31 }
0x138e   : > { %v10533_v17 = vpop.eup %10532  ;;  %10548 = vtanh.f32 %v4804_v16 }
0x138f   : > { %v10535_v54 = vpop.eup %10534  ;;  %10550 = vtanh.f32 %v4806_v5 }
0x1390   : > { %v10537_v63 = vpop.eup %10536  ;;  %v4821_v61 = vmul.f32 0.5, %v10535_v54  ;;  %10552 = vtanh.f32 %v4808_v33 }
0x1391   : > { %v10539_v45 = vpop.eup %10538  ;;  %v4829_v44 = vsub.f32 %v10537_v63, %v10533_v17  ;;  %10554 = vtanh.f32 %v4807_v39  ;;  %v13751_v37 = vpop.f32.mrb[172].mxu0 }
0x1392   : > { %v10541_v22 = vpop.eup %10540  ;;  %v4825_v10 = vadd.f32 0.5, %v4821_v61  ;;  %v13753_v41 = vpop.f32.mrb[173].mxu0 }
0x1393   : > { %v10543_v8 = vpop.eup %10542  ;;  %v4822_v1 = vmul.f32 0.5, %v10541_v22  ;;  %v13755_v30 = vpop.f32.mrb[174].mxu0 }
0x1394   : > { %v4833_v31 = vmul.f32 %v4829_v44, %v4825_v10  ;;  %v4830_v16 = vsub.f32 %v10543_v8, %v10539_v45  ;;  %v13757_v38 = vpop.f32.mrb[175].mxu0 }
0x1395   : > { %v4826_v5 = vadd.f32 0.5, %v4822_v1 }
0x1396   : > { %v10545_v12 = vpop.eup %10544  ;;  %v4837_v33 = vadd.f32 %v10533_v17, %v4833_v31 }
0x1397   : > { %v10547_v54 = vpop.eup %10546  ;;  %v4834_v63 = vmul.f32 %v4830_v16, %v4826_v5 }
0x1398   : > { %v10549_v39 = vpop.eup %10548  ;;  %v4823_v29 = vmul.f32 0.5, %v10547_v54 }
0x1399   : > { %v10551_v11 = vpop.eup %10550  ;;  %v13759_v24 = vpop.f32.mrb[176].mxu0  ;;  %v4838_v61 = vadd.f32 %v10539_v45, %v4834_v63  ;;  %v4831_v57 = vsub.f32 %v10549_v39, %v10545_v12  ;;  %v16169_v63 = vld [vmem:[#allocation117_spill] sm:$0xff] }
0x139a   : > { %v10553_v51 = vpop.eup %10552  ;;  %v4827_v22 = vadd.f32 0.5, %v4823_v29  ;;  %v13761_v6 = vpop.f32.mrb[177].mxu0 }
0x139b   : > { %v10555_v44 = vpop.eup %10554  ;;  %v4824_v10 = vmul.f32 0.5, %v10553_v51  ;;  %v13763_v8 = vpop.f32.mrb[178].mxu0  ;;  %v13765_v1 = vpack.c.bf16 %v4838_v61, %v4837_v33  ;;  %v13775_v51 = vld [vmem:[%s15591_s7] ss:$12 sps:$4 sm:$0xff]   ;;  %v16172_v61 = vld [vmem:[#allocation130_spill] sm:$0xff] }
0x139c   : > { %v13767_v17 = vpop.f32.mrb[179].mxu0  ;;  %v4832_v31 = vsub.f32 %v10555_v44, %v10551_v11  ;;  %v4835_v16 = vmul.f32 %v4831_v57, %v4827_v22  ;;  %v13781_v57 = vld [vmem:[%s15591_s7 + $0x1c] ss:$12 sps:$4 sm:$0xff]   ;;  %v4842_v22 = vadd.f32 %v13751_v37, %v16172_v61 }
0x139d   : > { %v4828_v5 = vadd.f32 0.5, %v4824_v10  ;;  %4888 = vmatmul.mubr.bf16.vlgmr.msra.gmra.mrb[176].mxu1 %v13765_v1  ;;  %9619 = vmatprep.mubr.bf16.mxu0 %v13765_v1 }
0x139e   : > { %4897 = vmatprep.mubr.bf16.mxu1 %v15957_v56  ;;  %v4839_v29 = vadd.f32 %v10545_v12, %v4835_v16  ;;  %5016 = vmatpush1.bf16.msra.mxu1 %v13775_v51  ;;  %v13787_v12 = vld [vmem:[%s15591_s7 + $0x18] ss:$12 sps:$4 sm:$0xff]  }
0x139f   : > { %v4836_v45 = vmul.f32 %v4832_v31, %v4828_v5  ;;  %5017 = vmatprep.subr.bf16.mxu1 %v13781_v57  ;;  %v4845_v5 = vadd.f32 %v13755_v30, %v16172_v61  ;;  %v4848_v30 = vadd.f32 %v13759_v24, %v16172_v61 }
0x13a1   : > { %v4840_v33 = vadd.f32 %v10551_v11, %v4836_v45  ;;  %v13800_v11 = vld [vmem:[%s15591_s7 + $0x20] ss:$12 sps:$4 sm:$0xff]  }
0x13a2   : > { %5018 = vmatpush1.bf16.msra.mxu1 %v13787_v12 }
0x13a3   : > { %v13790_v54 = vpack.c.bf16 %v4840_v33, %v4839_v29  ;;  %5019 = vmatprep.subr.bf16.mxu1 %v13176_v15  ;;  %v13810_v15 = vld [vmem:[%s15591_s7 + $0x38] ss:$12 sps:$4 sm:$0xff]  }
0x13a5   : > { %4898 = vmatmul.mubr.bf16.gmra.mrb[180].mxu1 %v13790_v54  ;;  %9620 = vmatmul.mubr.bf16.vlgmr.msra.gmra.mrb[184].mxu0 %v13790_v54 }
0x13a6   : > { %9624 = vmatpush3.bf16.msra.mxu0 %v13716_v58  ;;  %5020 = vmatpush1.bf16.msra.mxu1 %v13185_v26  ;;  %v13819_v26 = vld [vmem:[%s15591_s7 + $0x50] ss:$12 sps:$4 sm:$0xff]  }
0x13a7   : > { %9625 = vmatprep.subr.bf16.mxu0 %v13800_v11  ;;  %5021 = vmatprep.subr.bf16.mxu1 %v13192_v34  ;;  %v16164_v34 = vld [vmem:[#allocation112_spill] sm:$0xff] }
0x13a8   : > { %5047 = vmatprep.mubr.bf16.mxu1 %v15957_v56 }
0x13aa   : > { %9626 = vmatpush3.bf16.msra.mxu0 %v13800_v11  ;;  %5022 = vmatpush1.bf16.msra.mxu1 %v13200_v27  ;;  %v16165_v27 = vld [vmem:[#allocation113_spill] sm:$0xff] }
0x13ab   : > { %9627 = vmatprep.subr.bf16.mxu0 %v13810_v15  ;;  %5023 = vmatprep.subr.bf16.mxu1 %v13207_v28  ;;  %v16166_v28 = vld [vmem:[#allocation114_spill] sm:$0xff] }
0x13ae   : > { %9628 = vmatpush3.bf16.msra.mxu0 %v13810_v15  ;;  %5024 = vmatpush1.bf16.msra.mxu1 %v13214_v35  ;;  %v16167_v35 = vld [vmem:[#allocation115_spill] sm:$0xff] }
0x13af   : > { %9629 = vmatprep.subr.bf16.mxu0 %v13819_v26  ;;  %5025 = vmatprep.subr.bf16.mxu1 %v13221_v60  ;;  %v16168_v60 = vld [vmem:[#allocation116_spill] sm:$0xff] }
0x13b2   : > { %9630 = vmatpush3.bf16.msra.mxu0 %v13819_v26  ;;  %5026 = vmatpush1.bf16.msra.mxu1 %v13228_v0  ;;  %v16170_v0 = vld [vmem:[#allocation119_spill] sm:$0xff] }
0x13b3   : > { %9631 = vmatprep.subr.bf16.mxu0 %v13234_v19  ;;  %5027 = vmatprep.subr.bf16.mxu1 %v13240_v23  ;;  %v16171_v23 = vld [vmem:[#allocation129_spill] sm:$0xff] }
0x13b4   : > { %v4841_v39 = vadd.f32 %v13725_v47, %v16171_v23  ;;  %v4844_v10 = vadd.f32 %v13733_v36, %v16171_v23  ;;  %v4847_v37 = vadd.f32 %v13741_v25, %v16171_v23  ;;  %v16173_v47 = vld [vmem:[#allocation131_spill] sm:$0xff] }
0x13b5   : > { %v4849_v36 = vadd.f32 %v13761_v6, %v16173_v47  ;;  %v4846_v6 = vadd.f32 %v13757_v38, %v16173_v47 }
0x13b6   : > { %9632 = vmatpush3.bf16.msra.mxu0 %v13234_v19  ;;  %5028 = vmatpush1.bf16.msra.mxu1 %v16164_v34  ;;  %v13841_v19 = vld [vmem:[%s15587_s3 + $0x80] sm:$0xff]  }
0x13b7   : > { %9633 = vmatprep.subr.bf16.mxu0 %v16165_v27  ;;  %5029 = vmatprep.subr.bf16.mxu1 %v16166_v28  ;;  %v4843_v28 = vadd.f32 %v13753_v41, %v16173_v47  ;;  %v4851_v41 = vadd.f32 %v13763_v8, %v16172_v61 }
0x13ba   : > { %9634 = vmatpush3.bf16.msra.mxu0 %v16165_v27  ;;  %5030 = vmatpush1.bf16.msra.mxu1 %v16167_v35 }
0x13bb   : > { %9635 = vmatprep.subr.bf16.mxu0 %v16168_v60  ;;  %9123 = vmatprep.subr.bf16.mxu1 %v16169_v63  ;;  %v4850_v63 = vadd.f32 %v13749_v2, %v16171_v23 }
0x13be   : > { %9636 = vmatpush3.bf16.msra.mxu0 %v16168_v60 }
0x13bf   : > { %9637 = vmatprep.subr.bf16.mxu0 %v16170_v0 }
0x13c2   : > { %9638 = vmatpush3.bf16.msra.mxu0 %v16170_v0  ;;  %v4852_v0 = vadd.f32 %v13767_v17, %v16173_v47 }
0x13c3   : > { %9643 = vmatprep.subr.bf16.mxu0 %v13841_v19 }
0x1470   : > { %v4889_v44 = vpop.f32.mrb[176].mxu1 }
0x1471   : > { %v4957_v31 = vadd.f32 %v4889_v44, %v4841_v39  ;;  %v4891_v16 = vpop.f32.mrb[177].mxu1 }
0x1472   : > { %v4958_v29 = vadd.f32 %v4891_v16, %v4842_v22  ;;  %v4893_v45 = vpop.f32.mrb[178].mxu1 }
0x1473   : > { %10556 = vtanh.f32 %v4957_v31  ;;  %v4960_v33 = vadd.f32 %v4893_v45, %v4844_v10  ;;  %v4895_v34 = vpop.f32.mrb[179].mxu1 }
0x1474   : > { %10558 = vtanh.f32 %v4958_v29  ;;  %v4961_v27 = vadd.f32 %v4895_v34, %v4845_v5 }
0x1475   : > { %10560 = vtanh.f32 %v4960_v33 }
0x1476   : > { %10562 = vtanh.f32 %v4961_v27 }
0x1478   : > { %v4899_v35 = vpop.f32.mrb[180].mxu1  ;;  %v9621_v60 = vpop.f32.mrb[184].mxu0 }
0x1479   : > { %v4963_v39 = vadd.f32 %v4899_v35, %v4847_v37  ;;  %v4965_v22 = vadd.f32 %v9621_v60, %v4849_v36  ;;  %v4901_v25 = vpop.f32.mrb[181].mxu1  ;;  %v4942_v44 = vpop.f32.mrb[185].mxu0 }
0x147a   : > { %v4964_v10 = vadd.f32 %v4901_v25, %v4848_v30  ;;  %v4959_v24 = vadd.f32 %v4942_v44, %v4843_v28  ;;  %v4903_v31 = vpop.f32.mrb[182].mxu1  ;;  %v9622_v16 = vpop.f32.mrb[186].mxu0 }
0x147b   : > { %10564 = vtanh.f32 %v4963_v39  ;;  %v4966_v5 = vadd.f32 %v4903_v31, %v4850_v63  ;;  %v4968_v2 = vadd.f32 %v9622_v16, %v4852_v0  ;;  %v4905_v29 = vpop.f32.mrb[183].mxu1  ;;  %v4945_v45 = vpop.f32.mrb[187].mxu0 }
0x147c   : > { %10566 = vtanh.f32 %v4965_v22  ;;  %v4967_v17 = vadd.f32 %v4905_v29, %v4851_v41  ;;  %v4962_v33 = vadd.f32 %v4945_v45, %v4846_v6 }
0x147d   : > { %v10557_v34 = vpop.eup %10556  ;;  %10568 = vtanh.f32 %v4964_v10 }
0x147e   : > { %v10559_v27 = vpop.eup %10558  ;;  %10570 = vtanh.f32 %v4959_v24 }
0x147f   : > { %v10561_v38 = vpop.eup %10560  ;;  %v4989_v37 = vsub.f32 %v10559_v27, %v10557_v34  ;;  %10572 = vtanh.f32 %v4966_v5 }
0x1480   : > { %v10563_v8 = vpop.eup %10562  ;;  %10574 = vtanh.f32 %v4968_v2 }
0x1481   : > { %10576 = vtanh.f32 %v4967_v17  ;;  %v4990_v36 = vsub.f32 %v10563_v8, %v10561_v38 }
0x1482   : > { %10578 = vtanh.f32 %v4962_v33 }
0x1485   : > { %v10565_v28 = vpop.eup %10564 }
0x1486   : > { %v10567_v30 = vpop.eup %10566 }
0x1487   : > { %v10569_v35 = vpop.eup %10568  ;;  %v4983_v60 = vmul.f32 0.5, %v10567_v30 }
0x1488   : > { %v10571_v63 = vpop.eup %10570  ;;  %v4991_v0 = vsub.f32 %v10569_v35, %v10565_v28 }
0x1489   : > { %v10573_v39 = vpop.eup %10572  ;;  %v4987_v22 = vadd.f32 0.5, %v4983_v60  ;;  %v4981_v25 = vmul.f32 0.5, %v10571_v63 }
0x148a   : > { %v10575_v44 = vpop.eup %10574 }
0x148b   : > { %v10577_v6 = vpop.eup %10576  ;;  %v4985_v41 = vadd.f32 0.5, %v4981_v25  ;;  %v4984_v10 = vmul.f32 0.5, %v10575_v44  ;;  %v4995_v24 = vmul.f32 %v4991_v0, %v4987_v22  ;;  %v16186_v25 = vld [vmem:[#allocation145_spill] sm:$0xff] }
0x148c   : > { %v10579_v31 = vpop.eup %10578  ;;  %v4992_v16 = vsub.f32 %v10577_v6, %v10573_v39 }
0x148d   : > { %v4993_v5 = vmul.f32 %v4989_v37, %v4985_v41  ;;  %v4988_v2 = vadd.f32 0.5, %v4984_v10  ;;  %v4982_v29 = vmul.f32 0.5, %v10579_v31  ;;  %v4999_v45 = vadd.f32 %v10565_v28, %v4995_v24  ;;  %v13912_v37 = vld [vmem:[#allocation3 + $0x48] ss:$36 sps:$4 sm:$0xff]  }
0x148f   : > { %v4997_v17 = vadd.f32 %v10557_v34, %v4993_v5  ;;  %v4986_v33 = vadd.f32 0.5, %v4982_v29  ;;  %v4996_v27 = vmul.f32 %v4992_v16, %v4988_v2  ;;  %v13906_v34 = vld [vmem:[#allocation3] ss:$36 sps:$4 sm:$0xff]  }
0x1491   : > { %v4994_v8 = vmul.f32 %v4990_v36, %v4986_v33  ;;  %v5000_v30 = vadd.f32 %v10573_v39, %v4996_v27  ;;  %v13915_v36 = vld [vmem:[#allocation3 + $0x14] ss:$36 sps:$4 sm:$0xff]   ;;  %v16185_v39 = vld [vmem:[#allocation144_spill] sm:$0xff] }
0x1493   : > { %v4998_v35 = vadd.f32 %v10561_v38, %v4994_v8  ;;  %v5014_v47 = vpack.c.bf16 %v5000_v30, %v4999_v45  ;;  %v13909_v38 = vld [vmem:[#allocation3 + $0x4c] ss:$36 sps:$4 sm:$0xff]  }
0x1495   : > { %v5013_v60 = vpack.c.bf16 %v4998_v35, %v4997_v17 }
0x1497   : > { %5048 = vmatmul.mubr.bf16.vlgmr.msra.gmra.mrb[168].mxu1 %v5013_v60  ;;  %9639 = vmatprep.mubr.bf16.mxu0 %v5013_v60 }
0x1498   : > { %9124 = vmatpush3.bf16.msra.mxu1 %v13317_v4  ;;  %9640 = vmatmul.mubr.bf16.vlgmr.msra.gmra.mrb[180].mxu0 %v5014_v47  ;;  %v16174_v4 = vld [vmem:[#allocation120_spill] sm:$0xff] }
0x1499   : > { %9125 = vmatprep.subr.bf16.mxu1 %v13323_v49  ;;  %5057 = vmatprep.mubr.bf16.mxu1 %v15957_v56  ;;  %v16175_v49 = vld [vmem:[#allocation118_spill] sm:$0xff] }
0x149a   : > { %9644 = vmatpush3.bf16.msra.mxu0 %v13841_v19 }
0x149b   : > { %9645 = vmatprep.subr.bf16.mxu0 %v13331_v14 }
0x149c   : > { %9126 = vmatpush3.bf16.msra.mxu1 %v13337_v32  ;;  %v16177_v32 = vld [vmem:[#allocation123_spill] sm:$0xff] }
0x149d   : > { %9127 = vmatprep.subr.bf16.mxu1 %v13343_v13  ;;  %v16178_v13 = vld [vmem:[#allocation121_spill] sm:$0xff] }
0x149e   : > { %9646 = vmatpush3.bf16.msra.mxu0 %v13331_v14  ;;  %v16176_v14 = vld [vmem:[#allocation122_spill] sm:$0xff] }
0x149f   : > { %5058 = vmatmul.mubr.bf16.gmra.mrb[172].mxu1 %v5014_v47  ;;  %9647 = vmatprep.subr.bf16.mxu0 %v13350_v20 }
0x14a0   : > { %9128 = vmatpush3.bf16.msra.mxu1 %v13356_v53  ;;  %5211 = vmatprep.mubr.bf16.mxu1 %v5013_v60  ;;  %v16180_v53 = vld [vmem:[#allocation126_spill] sm:$0xff] }
0x14a1   : > { %9129 = vmatprep.subr.bf16.mxu1 %v13362_v40  ;;  %v16181_v40 = vld [vmem:[#allocation124_spill] sm:$0xff] }
0x14a2   : > { %9648 = vmatpush3.bf16.msra.mxu0 %v13350_v20  ;;  %v16179_v20 = vld [vmem:[#allocation125_spill] sm:$0xff] }
0x14a3   : > { %9649 = vmatprep.subr.bf16.mxu0 %v13369_v59 }
0x14a4   : > { %9130 = vmatpush3.bf16.msra.mxu1 %v13375_v55  ;;  %v16183_v55 = vld [vmem:[#allocation127_spill] sm:$0xff] }
0x14a5   : > { %9131 = vmatprep.subr.bf16.mxu1 %v13381_v50  ;;  %v13898_v50 = vld [vmem:[#allocation3 + $0x4] ss:$36 sps:$4 sm:$0xff]  }
0x14a6   : > { %9650 = vmatpush3.bf16.msra.mxu0 %v13369_v59  ;;  %v16182_v59 = vld [vmem:[#allocation128_spill] sm:$0xff] }
0x14a7   : > { %9651 = vmatprep.subr.bf16.mxu0 %v13388_v18 }
0x14a8   : > { %9132 = vmatpush3.bf16.msra.mxu1 %v16174_v4 }
0x14a9   : > { %9133 = vmatprep.subr.bf16.mxu1 %v16175_v49 }
0x14aa   : > { %9652 = vmatpush3.bf16.msra.mxu0 %v13388_v18  ;;  %v13903_v18 = vld [vmem:[#allocation3 + $0xc] ss:$36 sps:$4 sm:$0xff]  }
0x14ab   : > { %9653 = vmatprep.subr.bf16.mxu0 %v16176_v14 }
0x14ac   : > { %9134 = vmatpush3.bf16.msra.mxu1 %v16177_v32 }
0x14ad   : > { %9135 = vmatprep.subr.bf16.mxu1 %v16178_v13 }
0x14ae   : > { %9654 = vmatpush3.bf16.msra.mxu0 %v16176_v14 }
0x14af   : > { %9655 = vmatprep.subr.bf16.mxu0 %v16179_v20 }
0x14b0   : > { %9136 = vmatpush3.bf16.msra.mxu1 %v16180_v53 }
0x14b1   : > { %9137 = vmatprep.subr.bf16.mxu1 %v16181_v40 }
0x14b2   : > { %9656 = vmatpush3.bf16.msra.mxu0 %v16179_v20 }
0x14b3   : > { %9657 = vmatprep.subr.bf16.mxu0 %v16182_v59 }
0x14b4   : > { %9138 = vmatpush3.bf16.msra.mxu1 %v16183_v55 }
0x14b5   : > { %5359 = vmatprep.subr.bf16.mxu1 %v13898_v50 }
0x14b6   : > { %9658 = vmatpush3.bf16.msra.mxu0 %v16182_v59 }
0x14b7   : > { %5212 = vmatmul.mubr.bf16.vlgmr.msra.gmra.mrb[184].mxu1 %v13765_v1  ;;  %5412 = vmatprep.subr.bf16.mxu0 %v13903_v18 }
0x14b8   : > { %5219 = vmatprep.mubr.bf16.mxu1 %v5014_v47  ;;  %5360 = vmatpush1.bf16.msra.mxu1 %v13906_v34  ;;  %v16184_v47 = vld [vmem:[#allocation143_spill] sm:$0xff] }
0x14b9   : > { %5361 = vmatprep.subr.bf16.mxu1 %v13909_v38 }
0x14bc   : > { %5362 = vmatpush1.bf16.msra.mxu1 %v13912_v37 }
0x14bd   : > { %5465 = vmatprep.subr.bf16.mxu1 %v13915_v36 }
0x14bf   : > { %5220 = vmatmul.mubr.bf16.gmra.mrb[188].mxu1 %v13790_v54 }
0x14c0   : > { %5391 = vmatprep.mubr.bf16.mxu1 %v15957_v56 }
0x156a   : > { %v5049_v1 = vpop.f32.mrb[168].mxu1 }
0x156b   : > { %v9953_v28 = vadd.f32 %v5049_v1, %v16184_v47  ;;  %v5051_v63 = vpop.f32.mrb[169].mxu1  ;;  %v9641_v0 = vpop.f32.mrb[180].mxu0 }
0x156c   : > { %v9954_v22 = vadd.f32 %v5051_v63, %v16185_v39  ;;  %v9961_v44 = vadd.f32 %v9641_v0, %v16186_v25  ;;  %v5053_v6 = vpop.f32.mrb[170].mxu1  ;;  %v5102_v41 = vpop.f32.mrb[181].mxu0 }
0x156d   : > { %10580 = vtanh.f32 %v9953_v28  ;;  %v9955_v10 = vadd.f32 %v5053_v6, %v16184_v47  ;;  %v9962_v24 = vadd.f32 %v5102_v41, %v16186_v25  ;;  %v5055_v31 = vpop.f32.mrb[171].mxu1  ;;  %v9642_v54 = vpop.f32.mrb[182].mxu0 }
0x156e   : > { %10582 = vtanh.f32 %v9954_v22  ;;  %v9956_v16 = vadd.f32 %v5055_v31, %v16185_v39  ;;  %v5105_v5 = vpop.f32.mrb[183].mxu0  ;;  %v9963_v2 = vadd.f32 %v9642_v54, %v16186_v25 }
0x156f   : > { %10584 = vtanh.f32 %v9961_v44  ;;  %v9964_v29 = vadd.f32 %v5105_v5, %v16186_v25 }
0x1570   : > { %10586 = vtanh.f32 %v9955_v10 }
0x1571   : > { %10588 = vtanh.f32 %v9962_v24 }
0x1572   : > { %10590 = vtanh.f32 %v9956_v16  ;;  %v5059_v45 = vpop.f32.mrb[172].mxu1 }
0x1573   : > { %10592 = vtanh.f32 %v9963_v2  ;;  %v9957_v17 = vadd.f32 %v5059_v45, %v16184_v47  ;;  %v5061_v33 = vpop.f32.mrb[173].mxu1 }
0x1574   : > { %10594 = vtanh.f32 %v9964_v29  ;;  %v9958_v27 = vadd.f32 %v5061_v33, %v16185_v39  ;;  %v5063_v8 = vpop.f32.mrb[174].mxu1 }
0x1575   : > { %10596 = vtanh.f32 %v9957_v17  ;;  %v9959_v30 = vadd.f32 %v5063_v8, %v16184_v47  ;;  %v5065_v35 = vpop.f32.mrb[175].mxu1 }
0x1576   : > { %10598 = vtanh.f32 %v9958_v27  ;;  %v9960_v60 = vadd.f32 %v5065_v35, %v16185_v39 }
0x1577   : > { %v10581_v4 = vpop.eup %10580  ;;  %10600 = vtanh.f32 %v9959_v30 }
0x1578   : > { %v10583_v49 = vpop.eup %10582  ;;  %10602 = vtanh.f32 %v9960_v60 }
0x1579   : > { %v10585_v14 = vpop.eup %10584  ;;  %v5149_v32 = vsub.f32 %v10583_v49, %v10581_v4 }
0x157a   : > { %v10587_v13 = vpop.eup %10586  ;;  %v5143_v55 = vmul.f32 0.5, %v10585_v14 }
0x157b   : > { %v10589_v20 = vpop.eup %10588 }
0x157c   : > { %v10591_v53 = vpop.eup %10590  ;;  %v5141_v40 = vmul.f32 0.5, %v10589_v20  ;;  %v5147_v24 = vadd.f32 0.5, %v5143_v55 }
0x157d   : > { %v10593_v59 = vpop.eup %10592  ;;  %v5150_v1 = vsub.f32 %v10591_v53, %v10587_v13  ;;  %v13932_v53 = vld [vmem:[#allocation3 + $0x8] ss:$36 sps:$4 sm:$0xff]  }
0x157e   : > { %v10595_v28 = vpop.eup %10594  ;;  %v5145_v63 = vadd.f32 0.5, %v5141_v40  ;;  %v5144_v22 = vmul.f32 0.5, %v10593_v59  ;;  %v13937_v40 = vld [vmem:[#allocation3 + $0x50] ss:$36 sps:$4 sm:$0xff]   ;;  %v13940_v59 = vld [vmem:[#allocation3 + $0x1c] ss:$36 sps:$4 sm:$0xff]  }
0x157f   : > { %v10597_v0 = vpop.eup %10596  ;;  %v5142_v44 = vmul.f32 0.5, %v10595_v28 }
0x1580   : > { %v10599_v6 = vpop.eup %10598  ;;  %v5153_v41 = vmul.f32 %v5149_v32, %v5145_v63  ;;  %v5148_v2 = vadd.f32 0.5, %v5144_v22 }
0x1581   : > { %v10601_v10 = vpop.eup %10600  ;;  %v5146_v31 = vadd.f32 0.5, %v5142_v44  ;;  %v5151_v54 = vsub.f32 %v10599_v6, %v10597_v0  ;;  %v16187_v6 = vld [vmem:[#allocation57_spill] sm:$0xff] }
0x1582   : > { %v10603_v16 = vpop.eup %10602  ;;  %v5157_v5 = vadd.f32 %v10581_v4, %v5153_v41  ;;  %v911_v41 = vadd.f32 %v16187_v6, %v11989_v3 }
0x1583   : > { %v5154_v29 = vmul.f32 %v5150_v1, %v5146_v31  ;;  %v5152_v45 = vsub.f32 %v10603_v16, %v10601_v10  ;;  %v5155_v17 = vmul.f32 %v5151_v54, %v5147_v24  ;;  %v16188_v24 = vld [vmem:[#allocation49_spill] sm:$0xff] }
0x1584   : > { %v899_v31 = vadd.f32 %v16188_v24, %v11989_v3 }
0x1585   : > { %v5158_v33 = vadd.f32 %v10587_v13, %v5154_v29  ;;  %v5156_v27 = vmul.f32 %v5152_v45, %v5148_v2  ;;  %v5159_v8 = vadd.f32 %v10597_v0, %v5155_v17 }
0x1587   : > { %v5161_v30 = vpack.c.bf16 %v5158_v33, %v5157_v5  ;;  %v5160_v35 = vadd.f32 %v10601_v10, %v5156_v27  ;;  %v16189_v5 = vld [vmem:[#allocation61_spill] sm:$0xff] }
0x1588   : > { %v917_v2 = vadd.f32 %v16189_v5, %v11989_v3  ;;  %v16190_v33 = vld [vmem:[#allocation53_spill] sm:$0xff] }
0x1589   : > { %9659 = vmatprep.mubr.bf16.mxu0 %v5161_v30  ;;  %v5162_v60 = vpack.c.bf16 %v5160_v35, %v5159_v8  ;;  %v905_v27 = vadd.f32 %v16190_v33, %v11989_v3 }
0x158a   : > { %v9139_v49 = vpop.f32.mrb[184].mxu1 }
0x158b   : > { %v9140_v14 = vpop.f32.mrb[185].mxu1  ;;  %9660 = vmatmul.mubr.bf16.vlgmr.msra.gmra.mrb[188].mxu0 %v5162_v60 }
0x158c   : > { %v9141_v32 = vadd.f32 %v9140_v14, %v9139_v49  ;;  %v9142_v20 = vpop.f32.mrb[186].mxu1  ;;  %5413 = vmatpush1.bf16.msra.mxu0 %v13932_v53  ;;  %5444 = vmatprep.mubr.bf16.mxu0 %v15957_v56 }
0x158d   : > { %v9143_v4 = vpop.f32.mrb[187].mxu1  ;;  %5414 = vmatprep.subr.bf16.mxu0 %v13478_v52 }
0x158e   : > { %v9144_v13 = vadd.f32 %v9143_v4, %v9142_v20 }
0x1590   : > { %5415 = vmatpush1.bf16.msra.mxu0 %v13937_v40 }
0x1591   : > { %5518 = vmatprep.subr.bf16.mxu0 %v13940_v59 }
0x1592   : > { %v9145_v55 = vpop.f32.mrb[188].mxu1 }
0x1593   : > { %v9146_v1 = vpop.f32.mrb[189].mxu1 }
0x1594   : > { %v9147_v28 = vadd.f32 %v9146_v1, %v9145_v55  ;;  %v9148_v63 = vpop.f32.mrb[190].mxu1 }
0x1595   : > { %v9149_v0 = vpop.f32.mrb[191].mxu1 }
0x1596   : > { %v9150_v22 = vadd.f32 %v9149_v0, %v9148_v63 }
0x165e   : > { %v9661_v44 = vpop.f32.mrb[188].mxu0 }
0x165f   : > { %v5271_v52 = vadd.f32 %v9661_v44, %v9147_v28  ;;  %v5262_v10 = vpop.f32.mrb[189].mxu0 }
0x1660   : > { %v5263_v54 = vadd.f32 %v9141_v32, %v5262_v10  ;;  %v9662_v16 = vpop.f32.mrb[190].mxu0 }
0x1661   : > { %v5279_v29 = vadd.f32 %v5271_v52, %v911_v41  ;;  %v5274_v45 = vadd.f32 %v9662_v16, %v9150_v22  ;;  %v5265_v17 = vpop.f32.mrb[191].mxu0 }
0x1662   : > { %v5277_v8 = vadd.f32 %v5263_v54, %v899_v31  ;;  %v5266_v30 = vadd.f32 %v9144_v13, %v5265_v17 }
0x1663   : > { %10604 = vtanh.f32 %v5279_v29  ;;  %v5280_v35 = vadd.f32 %v5274_v45, %v917_v2 }
0x1664   : > { %10606 = vtanh.f32 %v5277_v8  ;;  %v5278_v60 = vadd.f32 %v5266_v30, %v905_v27 }
0x1665   : > { %10608 = vtanh.f32 %v5280_v35 }
0x1666   : > { %10610 = vtanh.f32 %v5278_v60 }
0x166d   : > { %v10605_v49 = vpop.eup %10604 }
0x166e   : > { %v10607_v14 = vpop.eup %10606  ;;  %v5287_v28 = vmul.f32 0.5, %v10605_v49 }
0x166f   : > { %v10609_v32 = vpop.eup %10608  ;;  %v5285_v20 = vmul.f32 0.5, %v10607_v14 }
0x1670   : > { %v10611_v4 = vpop.eup %10610  ;;  %v5288_v0 = vmul.f32 0.5, %v10609_v32  ;;  %v5291_v13 = vadd.f32 0.5, %v5287_v28  ;;  %v16191_v28 = vld [vmem:[#allocation132_spill] sm:$0xff] }
0x1671   : > { %v5289_v55 = vadd.f32 0.5, %v5285_v20  ;;  %v5286_v1 = vmul.f32 0.5, %v10611_v4 }
0x1672   : > { %v5292_v22 = vadd.f32 0.5, %v5288_v0  ;;  %v5295_v33 = vmul.f32 %v5291_v13, %v13508_v46 }
0x1673   : > { %5301 = vrot.lane.b32.xlu0 %v5289_v55, %s11338_s21  ;;  %v5290_v63 = vadd.f32 0.5, %v5286_v1  ;;  %v5293_v16 = vmul.f32 %v5289_v55, %v13500_v42 }
0x1674   : > { %v5296_v30 = vmul.f32 %v5292_v22, %v13512_v62 }
0x1675   : > { %5303 = vrot.lane.b32.xlu1 %v5290_v63, %s11338_s21  ;;  %v5294_v29 = vmul.f32 %v5290_v63, %v13504_v9  ;;  %v16192_v63 = vld [vmem:[#allocation133_spill] sm:$0xff] }
0x1677   : > { %5305 = vrot.lane.b32.xlu0 %v5291_v13, %s11338_s21  ;;  %v16193_v13 = vld [vmem:[#allocation134_spill] sm:$0xff] }
0x1679   : > { %5307 = vrot.lane.b32.xlu1 %v5292_v22, %s11338_s21  ;;  %v16194_v22 = vld [vmem:[#allocation135_spill] sm:$0xff] }
0x16e5   : > { %v5302_v44 = vpop.permute.xlu0 %5301 }
0x16e6   : > { %v5313_v6 = vmul.f32 %v10607_v14, %v5302_v44 }
0x16e7   : > { %v5304_v41 = vpop.permute.xlu1 %5303 }
0x16e8   : > { %v5314_v52 = vmul.f32 %v10611_v4, %v5304_v41  ;;  %5321 = vrot.lane.b32.xlu0 %v5313_v6, %s11339_s18  ;;  %v16200_v6 = vld [vmem:[#allocation141_spill] sm:$0xff] }
0x16e9   : > { %v5306_v10 = vpop.permute.xlu0 %5305 }
0x16ea   : > { %v5315_v24 = vmul.f32 %v10605_v49, %v5306_v10  ;;  %5323 = vrot.lane.b32.xlu1 %v5314_v52, %s11339_s18  ;;  %v16202_v52 = vld [vmem:[#allocation25_spill] sm:$0xff] }
0x16eb   : > { %v5308_v31 = vpop.permute.xlu1 %5307 }
0x16ec   : > { %v5316_v54 = vmul.f32 %v10609_v32, %v5308_v31  ;;  %5325 = vrot.lane.b32.xlu0 %v5315_v24, %s11339_s18  ;;  %v16204_v24 = vld [vmem:[#allocation29_spill] sm:$0xff] }
0x16ee   : > { %5327 = vrot.lane.b32.xlu1 %v5316_v54, %s11339_s18  ;;  %v16206_v54 = vld [vmem:[#allocation146_spill] sm:$0xff] }
0x175a   : > { %v5322_v5 = vpop.permute.xlu0 %5321 }
0x175b   : > { %v13960_v2 = vadd.f32 %v5322_v5, %v5293_v16  ;;  %v16207_v16 = vld [vmem:[#allocation147_spill] sm:$0xff]  ;;  %v16208_v5 = vld [vmem:[#allocation148_spill] sm:$0xff] }
0x175c   : > { %v5324_v45 = vpop.permute.xlu1 %5323 }
0x175d   : > { %10612 = vtanh.f32 %v13960_v2  ;;  %v13964_v17 = vadd.f32 %v5324_v45, %v5294_v29  ;;  %v16209_v29 = vld [vmem:[#allocation149_spill] sm:$0xff]  ;;  %v16210_v45 = vld [vmem:[#allocation150_spill] sm:$0xff] }
0x175e   : > { %v5326_v27 = vpop.permute.xlu0 %5325 }
0x175f   : > { %10614 = vtanh.f32 %v13964_v17  ;;  %v13968_v8 = vadd.f32 %v5326_v27, %v5295_v33  ;;  %v16211_v33 = vld [vmem:[#allocation151_spill] sm:$0xff]  ;;  %v16212_v27 = vld [vmem:[#allocation152_spill] sm:$0xff] }
0x1760   : > { %v5328_v42 = vpop.permute.xlu1 %5327 }
0x1761   : > { %10616 = vtanh.f32 %v13968_v8  ;;  %v13972_v35 = vadd.f32 %v5328_v42, %v5296_v30  ;;  %v16213_v30 = vld [vmem:[#allocation153_spill] sm:$0xff]  ;;  %v16214_v42 = vld [vmem:[#allocation154_spill] sm:$0xff] }
0x1763   : > { %10618 = vtanh.f32 %v13972_v35 }
0x1767   : > { %v10613_v9 = vpop.eup %10612 }
0x1768   : > { %v5341_v49 = vmul.f32 %v10613_v9, %v5302_v44  ;;  %v16199_v44 = vld [vmem:[#allocation140_spill] sm:$0xff]  ;;  %v16215_v9 = vld [vmem:[#allocation155_spill] sm:$0xff] }
0x1769   : > { %v10615_v60 = vpop.eup %10614 }
0x176a   : > { %v5342_v14 = vmul.f32 %v10615_v60, %v5304_v41  ;;  %v16201_v41 = vld [vmem:[#allocation142_spill] sm:$0xff] }
0x176b   : > { %v10617_v32 = vpop.eup %10616  ;;  %v14032_v60 = vld [vmem:[%s15591_s7 + $0x4] ss:$12 sps:$4 sm:$0xff]  }
0x176c   : > { %v5345_v46 = vpack.c.bf16 %v5342_v14, %v5341_v49  ;;  %v5343_v4 = vmul.f32 %v10617_v32, %v5306_v10  ;;  %v16203_v10 = vld [vmem:[#allocation17_spill] sm:$0xff]  ;;  %v16216_v49 = vld [vmem:[#allocation156_spill] sm:$0xff]  ;;  %v16218_v32 = vld [vmem:[#allocation158_spill] sm:$0xff] }
0x176d   : > { %v10619_v20 = vpop.eup %10618  ;;  %v16217_v14 = vld [vmem:[#allocation157_spill] sm:$0xff] }
0x176e   : > { %5349 = vrot.lane.b32.xlu0 %v5345_v46, %s11339_s18  ;;  %v5344_v55 = vmul.f32 %v10619_v20, %v5308_v31  ;;  %v16205_v31 = vld [vmem:[#allocation21_spill] sm:$0xff]  ;;  %v16219_v46 = vld [vmem:[#allocation6_spill] sm:$0xff]  ;;  %v16220_v20 = vld [vmem:[#allocation51_spill] sm:$0xff] }
0x1770   : > { %v5346_v1 = vpack.c.bf16 %v5344_v55, %v5343_v4  ;;  %v901_v4 = vadd.f32 %v16220_v20, %v16219_v46  ;;  %v16221_v55 = vld [vmem:[#allocation8_spill] sm:$0xff] }
0x1772   : > { %5351 = vrot.lane.b32.xlu1 %v5346_v1, %s11339_s18  ;;  %v16222_v1 = vld [vmem:[#allocation54_spill] sm:$0xff] }
0x17e0   : > { %v5350_v62 = vpop.permute.xlu0 %5349 }
0x17e1   : > { %8832 = vmatmul.mubr.msk.bf16.vlgmr.msra.gmra.mrb[192].mxu1 %vm1804_vm2, %v5350_v62  ;;  %8834 = vmatmul.mubr.msk.bf16.vlgmr.msra.gmra.mrb[192].mxu0 %vm1804_vm2, %v5350_v62 }
0x17e2   : > { %5401 = vmatprep.mubr.bf16.mxu1 %v15957_v56  ;;  %5454 = vmatprep.mubr.bf16.mxu0 %v15957_v56 }
0x17e3   : > { %5466 = vmatpush1.bf16.msra.mxu1 %v13521_v43  ;;  %5519 = vmatpush1.bf16.msra.mxu0 %v13524_v21  ;;  %v16195_v43 = vld [vmem:[#allocation136_spill] sm:$0xff]  ;;  %v16196_v21 = vld [vmem:[#allocation137_spill] sm:$0xff] }
0x17e4   : > { %5467 = vmatprep.subr.bf16.mxu1 %v13527_v48  ;;  %5520 = vmatprep.subr.bf16.mxu0 %v13530_v7  ;;  %v5352_v0 = vpop.permute.xlu1 %5351  ;;  %v16197_v48 = vld [vmem:[#allocation138_spill] sm:$0xff]  ;;  %v16198_v7 = vld [vmem:[#allocation139_spill] sm:$0xff] }
0x17e7   : > { %5468 = vmatpush1.bf16.msra.mxu1 %v16191_v28  ;;  %5521 = vmatpush1.bf16.msra.mxu0 %v16192_v63 }
0x17e8   : > { %9663 = vmatprep.subr.bf16.mxu1 %v16193_v13  ;;  %5678 = vmatprep.subr.bf16.mxu0 %v16194_v22 }
0x17e9   : > { %8833 = vmatmul.mubr.msk.bf16.gmra.mrb[196].mxu1 %vm1804_vm2, %v5352_v0  ;;  %8835 = vmatmul.mubr.msk.bf16.gmra.mrb[196].mxu0 %vm1804_vm2, %v5352_v0 }
0x17ea   : > { %5497 = vmatprep.mubr.bf16.mxu1 %v15957_v56  ;;  %5550 = vmatprep.mubr.bf16.mxu0 %v15957_v56 }
0x17f1   : > { %8836 = vmatmul.mubr.msk.bf16.vlgmr.msra.gmra.mrb[200].mxu1 %vm1804_vm2, %v5350_v62  ;;  %8838 = vmatmul.mubr.msk.bf16.vlgmr.msra.gmra.mrb[200].mxu0 %vm1804_vm2, %v5350_v62 }
0x17f2   : > { %5507 = vmatprep.mubr.bf16.mxu1 %v15957_v56  ;;  %5560 = vmatprep.mubr.bf16.mxu0 %v15957_v56 }
0x17f3   : > { %9664 = vmatpush3.bf16.msra.mxu1 %v16193_v13  ;;  %5679 = vmatpush1.bf16.msra.mxu0 %v16195_v43  ;;  %v16224_v13 = vld [vmem:[#allocation52_spill] sm:$0xff] }
0x17f4   : > { %9665 = vmatprep.subr.bf16.mxu1 %v16196_v21  ;;  %5680 = vmatprep.subr.bf16.mxu0 %v16197_v48 }
0x17f7   : > { %9666 = vmatpush3.bf16.msra.mxu1 %v16196_v21  ;;  %5681 = vmatpush1.bf16.msra.mxu0 %v16198_v7 }
0x17f8   : > { %5682 = vmatprep.subr.bf16.mxu0 %v16199_v44  ;;  %9671 = vmatprep.subr.bf16.mxu1 %v16200_v6  ;;  %v16225_v44 = vld [vmem:[#allocation55_spill] sm:$0xff] }
0x17f9   : > { %8837 = vmatmul.mubr.msk.bf16.gmra.mrb[204].mxu1 %vm1804_vm2, %v5352_v0  ;;  %8839 = vmatmul.mubr.msk.bf16.gmra.mrb[204].mxu0 %vm1804_vm2, %v5352_v0 }
0x17fa   : > { %9667 = vmatprep.mubr.msk.bf16.mxu1 %vm1804_vm2, %v5350_v62  ;;  %5710 = vmatprep.mubr.bf16.mxu0 %v15957_v56  ;;  %v1158_v62 = vadd.f32 %v16222_v1, %v16221_v55 }
0x17fb   : > { %5683 = vmatpush1.bf16.msra.mxu0 %v16201_v41 }
0x17fc   : > { %5684 = vmatprep.subr.bf16.mxu0 %v16202_v52 }
0x17ff   : > { %5685 = vmatpush1.bf16.msra.mxu0 %v16203_v10 }
0x1800   : > { %5686 = vmatprep.subr.bf16.mxu0 %v16204_v24 }
0x1801   : > { %9668 = vmatmul.mubr.msk.bf16.vlgmr.msra.gmra.mrb[208].mxu1 %vm1804_vm2, %v5352_v0  ;;  %v16223_v0 = vld [vmem:[#allocation7_spill] sm:$0xff] }
0x1802   : > { %9672 = vmatpush3.bf16.msra.mxu1 %v16200_v6  ;;  %v1156_v22 = vadd.f32 %v16224_v13, %v16223_v0  ;;  %v907_v6 = vadd.f32 %v16225_v44, %v16219_v46 }
0x1803   : > { %9673 = vmatprep.subr.bf16.mxu1 %v16205_v31  ;;  %5687 = vmatpush1.bf16.msra.mxu0 %v16206_v54 }
0x1804   : > { %5688 = vmatprep.subr.bf16.mxu0 %v16207_v16 }
0x1806   : > { %9674 = vmatpush3.bf16.msra.mxu1 %v16205_v31  ;;  %v16227_v31 = vld [vmem:[#allocation56_spill] sm:$0xff] }
0x1807   : > { %9675 = vmatprep.subr.bf16.mxu1 %v16208_v5  ;;  %5689 = vmatpush1.bf16.msra.mxu0 %v16209_v29  ;;  %v1162_v54 = vadd.f32 %v16227_v31, %v16223_v0 }
0x1808   : > { %5690 = vmatprep.subr.bf16.mxu0 %v16210_v45 }
0x180a   : > { %9676 = vmatpush3.bf16.msra.mxu1 %v16208_v5 }
0x180b   : > { %9677 = vmatprep.subr.bf16.mxu1 %v16211_v33  ;;  %5691 = vmatpush1.bf16.msra.mxu0 %v16212_v27  ;;  %v16228_v27 = vld [vmem:[#allocation59_spill] sm:$0xff] }
0x180c   : > { %5692 = vmatprep.subr.bf16.mxu0 %v16213_v30  ;;  %v913_v30 = vadd.f32 %v16228_v27, %v16219_v46 }
0x180e   : > { %9678 = vmatpush3.bf16.msra.mxu1 %v16211_v33 }
0x180f   : > { %9679 = vmatprep.subr.bf16.mxu1 %v16214_v42  ;;  %5693 = vmatpush1.bf16.msra.mxu0 %v16215_v9 }
0x1810   : > { %5838 = vmatprep.subr.bf16.mxu0 %v14032_v60 }
0x1812   : > { %9680 = vmatpush3.bf16.msra.mxu1 %v16214_v42  ;;  %v16229_v42 = vld [vmem:[#allocation62_spill] sm:$0xff] }
0x1813   : > { %9681 = vmatprep.subr.bf16.mxu1 %v16216_v49  ;;  %v1170_v9 = vadd.f32 %v16229_v42, %v16221_v55 }
0x1816   : > { %9682 = vmatpush3.bf16.msra.mxu1 %v16216_v49 }
0x1817   : > { %9683 = vmatprep.subr.bf16.mxu1 %v16217_v14 }
0x181a   : > { %9684 = vmatpush3.bf16.msra.mxu1 %v16217_v14 }
0x181b   : > { %9685 = vmatprep.subr.bf16.mxu1 %v16218_v32 }
0x181e   : > { %9686 = vmatpush3.bf16.msra.mxu1 %v16218_v32  ;;  %v16230_v32 = vld [vmem:[#allocation60_spill] sm:$0xff] }
0x181f   : > { %9691 = vmatprep.subr.bf16.mxu1 %v13716_v58  ;;  %v16226_v58 = vld [vmem:[#allocation58_spill] sm:$0xff]  ;;  %v1168_v20 = vadd.f32 %v16230_v32, %v16223_v0 }
0x1820   : > { %v1164_v41 = vadd.f32 %v16226_v58, %v16221_v55 }
0x18b4   : > { %v5393_v28 = vpop.f32.mrb[192].mxu1  ;;  %v5446_v63 = vpop.f32.mrb[192].mxu0 }
0x18b5   : > { %v5620_v43 = vadd.f32 %v5393_v28, %v901_v4  ;;  %v5622_v21 = vadd.f32 %v5446_v63, %v1158_v62  ;;  %v5395_v48 = vpop.f32.mrb[193].mxu1  ;;  %v14049_v7 = vpop.f32.mrb[193].mxu0  ;;  %v16231_v63 = vld [vmem:[#allocation63_spill] sm:$0xff] }
0x18b6   : > { %v5621_v52 = vadd.f32 %v5395_v48, %v1156_v22  ;;  %v5397_v10 = vpop.f32.mrb[194].mxu1  ;;  %v5450_v24 = vpop.f32.mrb[194].mxu0  ;;  %v919_v13 = vadd.f32 %v16231_v63, %v16219_v46  ;;  %v16232_v22 = vld [vmem:[#allocation66_spill] sm:$0xff] }
0x18b7   : > { %10620 = vtanh.f32 %v5620_v43  ;;  %v5623_v16 = vadd.f32 %v5397_v10, %v907_v6  ;;  %v5625_v5 = vadd.f32 %v5450_v24, %v1164_v41  ;;  %v5399_v29 = vpop.f32.mrb[195].mxu1  ;;  %v14057_v45 = vpop.f32.mrb[195].mxu0  ;;  %v1176_v43 = vadd.f32 %v16232_v22, %v16221_v55  ;;  %v16233_v6 = vld [vmem:[#allocation64_spill] sm:$0xff] }
0x18b8   : > { %10622 = vtanh.f32 %v5622_v21  ;;  %v5624_v33 = vadd.f32 %v5399_v29, %v1162_v54  ;;  %v1174_v58 = vadd.f32 %v16233_v6, %v16223_v0 }
0x18b9   : > { %10624 = vtanh.f32 %v5621_v52 }
0x18ba   : > { %10626 = vtanh.f32 %v5623_v16 }
0x18bb   : > { %10628 = vtanh.f32 %v5625_v5 }
0x18bc   : > { %10630 = vtanh.f32 %v5624_v33  ;;  %v5403_v49 = vpop.f32.mrb[196].mxu1  ;;  %v5456_v14 = vpop.f32.mrb[196].mxu0 }
0x18bd   : > { %v5626_v4 = vadd.f32 %v5403_v49, %v913_v30  ;;  %v5628_v1 = vadd.f32 %v5456_v14, %v1170_v9  ;;  %v5405_v62 = vpop.f32.mrb[197].mxu1  ;;  %v14065_v28 = vpop.f32.mrb[197].mxu0 }
0x18be   : > { %v5627_v21 = vadd.f32 %v5405_v62, %v1168_v20  ;;  %v5407_v48 = vpop.f32.mrb[198].mxu1  ;;  %v5460_v44 = vpop.f32.mrb[198].mxu0 }
0x18bf   : > { %10632 = vtanh.f32 %v5626_v4  ;;  %v5629_v41 = vadd.f32 %v5407_v48, %v919_v13  ;;  %v5631_v52 = vadd.f32 %v5460_v44, %v1176_v43  ;;  %v5409_v10 = vpop.f32.mrb[199].mxu1  ;;  %v14073_v24 = vpop.f32.mrb[199].mxu0 }
0x18c0   : > { %10634 = vtanh.f32 %v5628_v1  ;;  %v5630_v31 = vadd.f32 %v5409_v10, %v1174_v58 }
0x18c1   : > { %v10621_v54 = vpop.eup %10620  ;;  %10636 = vtanh.f32 %v5627_v21 }
0x18c2   : > { %v10623_v16 = vpop.eup %10622  ;;  %10638 = vtanh.f32 %v5629_v41 }
0x18c3   : > { %v10625_v5 = vpop.eup %10624  ;;  %v5644_v29 = vmul.f32 0.5, %v10623_v16  ;;  %10640 = vtanh.f32 %v5631_v52 }
0x18c4   : > { %v10627_v33 = vpop.eup %10626  ;;  %v5652_v27 = vsub.f32 %v10625_v5, %v10621_v54  ;;  %10642 = vtanh.f32 %v5630_v31  ;;  %v14075_v30 = vpop.f32.mrb[200].mxu1 }
0x18c5   : > { %v10629_v42 = vpop.eup %10628  ;;  %v5648_v9 = vadd.f32 0.5, %v5644_v29  ;;  %v14077_v49 = vpop.f32.mrb[201].mxu1 }
0x18c6   : > { %v10631_v14 = vpop.eup %10630  ;;  %v5645_v32 = vmul.f32 0.5, %v10629_v42  ;;  %v14079_v20 = vpop.f32.mrb[202].mxu1 }
0x18c7   : > { %v5656_v4 = vmul.f32 %v5652_v27, %v5648_v9  ;;  %v5653_v1 = vsub.f32 %v10631_v14, %v10627_v33  ;;  %v14081_v62 = vpop.f32.mrb[203].mxu1 }
0x18c8   : > { %v5649_v63 = vadd.f32 0.5, %v5645_v32 }
0x18c9   : > { %v10633_v13 = vpop.eup %10632  ;;  %v5660_v22 = vadd.f32 %v10621_v54, %v5656_v4 }
0x18ca   : > { %v10635_v43 = vpop.eup %10634  ;;  %v5657_v21 = vmul.f32 %v5653_v1, %v5649_v63 }
0x18cb   : > { %v10637_v48 = vpop.eup %10636  ;;  %v5646_v44 = vmul.f32 0.5, %v10635_v43  ;;  %v14140_v43 = vld [vmem:[%s15591_s7 + $0x64] ss:$12 sps:$4 sm:$0xff]  }
0x18cc   : > { %v10639_v6 = vpop.eup %10638  ;;  %v14083_v58 = vpop.f32.mrb[204].mxu1  ;;  %v5661_v41 = vadd.f32 %v10627_v33, %v5657_v21  ;;  %v5654_v52 = vsub.f32 %v10637_v48, %v10633_v13  ;;  %v14154_v21 = vld [vmem:[%s15591_s7 + $0x7c] ss:$12 sps:$4 sm:$0xff]  }
0x18cd   : > { %v10641_v10 = vpop.eup %10640  ;;  %v5650_v31 = vadd.f32 0.5, %v5646_v44  ;;  %v14085_v16 = vpop.f32.mrb[205].mxu1  ;;  %v14167_v48 = vld [vmem:[%s15591_s7 + $0x68] ss:$12 sps:$4 sm:$0xff]  }
0x18ce   : > { %v10643_v5 = vpop.eup %10642  ;;  %v5647_v29 = vmul.f32 0.5, %v10641_v10  ;;  %v14087_v27 = vpop.f32.mrb[206].mxu1  ;;  %v14089_v42 = vpack.c.bf16 %v5661_v41, %v5660_v22  ;;  %v14104_v22 = vld [vmem:[%s15591_s7 + $0x34] ss:$12 sps:$4 sm:$0xff]   ;;  %v14192_v41 = vld [vmem:[%s15591_s7 + $0xac] ss:$12 sps:$4 sm:$0xff]  }
0x18cf   : > { %v14091_v54 = vpop.f32.mrb[207].mxu1  ;;  %v5655_v9 = vsub.f32 %v10643_v5, %v10639_v6  ;;  %v5658_v14 = vmul.f32 %v5654_v52, %v5650_v31  ;;  %v14173_v44 = vld [vmem:[%s15591_s7 + $0x94] ss:$12 sps:$4 sm:$0xff]   ;;  %16236 = vst [vmem:[#allocation161_spill] sm:$0xff] %v14192_v41  ;;  %v14205_v10 = vld [vmem:[%s15591_s7 + $0x98] ss:$12 sps:$4 sm:$0xff]  }
0x18d0   : > { %v5651_v32 = vadd.f32 0.5, %v5647_v29  ;;  %5711 = vmatmul.mubr.bf16.vlgmr.msra.gmra.mrb[208].mxu0 %v14089_v42  ;;  %9687 = vmatprep.mubr.bf16.mxu1 %v14089_v42  ;;  %v14199_v52 = vld [vmem:[%s15591_s7 + $0xa8] ss:$12 sps:$4 sm:$0xff]   ;;  %16238 = vst [vmem:[#allocation13_spill] sm:$0xff] %v14205_v10  ;;  %v14211_v31 = vld [vmem:[%s15587_s3 + $0x40] sm:$0xff]   ;;  %v5664_v29 = vadd.f32 %v14049_v7, %v16171_v23  ;;  %v5670_v7 = vadd.f32 %v14065_v28, %v16171_v23 }
0x18d1   : > { %5720 = vmatprep.mubr.bf16.mxu0 %v15957_v56  ;;  %v5662_v33 = vadd.f32 %v10633_v13, %v5658_v14  ;;  %5839 = vmatpush1.bf16.msra.mxu0 %v13775_v51  ;;  %v14112_v51 = vld [vmem:[%s15591_s7 + $0x8] ss:$12 sps:$4 sm:$0xff]   ;;  %16237 = vst [vmem:[#allocation162_spill] sm:$0xff] %v14199_v52  ;;  %16239 = vst [vmem:[#allocation19_spill] sm:$0xff] %v14211_v31  ;;  %v14218_v5 = vld [vmem:[%s15591_s7 + $0xb0] ss:$12 sps:$4 sm:$0xff]  }
0x18d2   : > { %v5659_v4 = vmul.f32 %v5655_v9, %v5651_v32  ;;  %5840 = vmatprep.subr.bf16.mxu0 %v13781_v57  ;;  %v14118_v57 = vld [vmem:[%s15591_s7 + $0x30] ss:$12 sps:$4 sm:$0xff]   ;;  %v14133_v13 = vld [vmem:[%s15591_s7 + $0x48] ss:$12 sps:$4 sm:$0xff]   ;;  %16240 = vst [vmem:[#allocation22_spill] sm:$0xff] %v14218_v5  ;;  %v5665_v9 = vadd.f32 %v14075_v30, %v16172_v61  ;;  %v5667_v32 = vadd.f32 %v14057_v45, %v16171_v23 }
0x18d3   : > { %v16241_v30 = vld [vmem:[#allocation131_spill] sm:$0xff] }
0x18d4   : > { %v5663_v1 = vadd.f32 %v10639_v6, %v5659_v4  ;;  %v14186_v6 = vld [vmem:[%s15591_s7 + $0x80] ss:$12 sps:$4 sm:$0xff]   ;;  %v5672_v45 = vadd.f32 %v14085_v16, %v16241_v30  ;;  %v5669_v16 = vadd.f32 %v14081_v62, %v16241_v30 }
0x18d5   : > { %5841 = vmatpush1.bf16.msra.mxu0 %v13787_v12  ;;  %v14125_v12 = vld [vmem:[%s15591_s7 + $0x4c] ss:$12 sps:$4 sm:$0xff]   ;;  %16235 = vst [vmem:[#allocation160_spill] sm:$0xff] %v14186_v6 }
0x18d6   : > { %v14099_v63 = vpack.c.bf16 %v5663_v1, %v5662_v33  ;;  %5842 = vmatprep.subr.bf16.mxu0 %v14104_v22  ;;  %v5668_v1 = vadd.f32 %v14079_v20, %v16172_v61  ;;  %v5671_v20 = vadd.f32 %v14083_v58, %v16172_v61 }
0x18d8   : > { %5721 = vmatmul.mubr.bf16.gmra.mrb[212].mxu0 %v14099_v63  ;;  %9688 = vmatmul.mubr.bf16.vlgmr.msra.gmra.mrb[212].mxu1 %v14099_v63 }
0x18d9   : > { %9692 = vmatpush3.bf16.msra.mxu1 %v14112_v51  ;;  %5843 = vmatpush1.bf16.msra.mxu0 %v14118_v57 }
0x18da   : > { %9693 = vmatprep.subr.bf16.mxu1 %v13800_v11  ;;  %5844 = vmatprep.subr.bf16.mxu0 %v14125_v12 }
0x18db   : > { %5870 = vmatprep.mubr.bf16.mxu0 %v15957_v56 }
0x18dd   : > { %9694 = vmatpush3.bf16.msra.mxu1 %v13800_v11  ;;  %5845 = vmatpush1.bf16.msra.mxu0 %v14133_v13  ;;  %v14147_v11 = vld [vmem:[%s15591_s7 + $0x60] ss:$12 sps:$4 sm:$0xff]  }
0x18de   : > { %9695 = vmatprep.subr.bf16.mxu1 %v13810_v15  ;;  %5846 = vmatprep.subr.bf16.mxu0 %v14140_v43 }
0x18e1   : > { %9696 = vmatpush3.bf16.msra.mxu1 %v13810_v15  ;;  %5847 = vmatpush1.bf16.msra.mxu0 %v14147_v11  ;;  %v14161_v15 = vld [vmem:[%s15591_s7 + $0x78] ss:$12 sps:$4 sm:$0xff]  }
0x18e2   : > { %9697 = vmatprep.subr.bf16.mxu1 %v13819_v26  ;;  %5848 = vmatprep.subr.bf16.mxu0 %v14154_v21 }
0x18e5   : > { %9698 = vmatpush3.bf16.msra.mxu1 %v13819_v26  ;;  %5849 = vmatpush1.bf16.msra.mxu0 %v14161_v15  ;;  %v14180_v26 = vld [vmem:[%s15591_s7 + $0x90] ss:$12 sps:$4 sm:$0xff]  }
0x18e6   : > { %9699 = vmatprep.subr.bf16.mxu1 %v14167_v48  ;;  %5850 = vmatprep.subr.bf16.mxu0 %v14173_v44  ;;  %16234 = vst [vmem:[#allocation159_spill] sm:$0xff] %v14180_v26 }
0x18e9   : > { %9700 = vmatpush3.bf16.msra.mxu1 %v14167_v48  ;;  %5851 = vmatpush1.bf16.msra.mxu0 %v14180_v26 }
0x18ea   : > { %9701 = vmatprep.subr.bf16.mxu1 %v14186_v6  ;;  %5852 = vmatprep.subr.bf16.mxu0 %v14192_v41 }
0x18ed   : > { %9702 = vmatpush3.bf16.msra.mxu1 %v14186_v6  ;;  %5853 = vmatpush1.bf16.msra.mxu0 %v14199_v52 }
0x18ee   : > { %9703 = vmatprep.subr.bf16.mxu1 %v14205_v10  ;;  %9185 = vmatprep.subr.bf16.mxu0 %v14211_v31 }
0x18f1   : > { %9704 = vmatpush3.bf16.msra.mxu1 %v14205_v10 }
0x18f2   : > { %9705 = vmatprep.subr.bf16.mxu1 %v14218_v5 }
0x18f5   : > { %9706 = vmatpush3.bf16.msra.mxu1 %v14218_v5 }
0x18f6   : > { %9711 = vmatprep.subr.bf16.mxu1 %v13841_v19 }
0x19a3   : > { %v5712_v14 = vpop.f32.mrb[208].mxu0 }
0x19a4   : > { %v5780_v33 = vadd.f32 %v5712_v14, %v5664_v29  ;;  %v5714_v4 = vpop.f32.mrb[209].mxu0  ;;  %v5666_v29 = vadd.f32 %v14077_v49, %v16241_v30  ;;  %v5674_v49 = vadd.f32 %v14087_v27, %v16172_v61 }
0x19a5   : > { %v5781_v31 = vadd.f32 %v5714_v4, %v5665_v9  ;;  %v5716_v10 = vpop.f32.mrb[210].mxu0 }
0x19a6   : > { %10644 = vtanh.f32 %v5780_v33  ;;  %v5783_v5 = vadd.f32 %v5716_v10, %v5667_v32  ;;  %v5718_v19 = vpop.f32.mrb[211].mxu0  ;;  %v5673_v10 = vadd.f32 %v14073_v24, %v16171_v23 }
0x19a7   : > { %10646 = vtanh.f32 %v5781_v31  ;;  %v5784_v52 = vadd.f32 %v5718_v19, %v5668_v1 }
0x19a8   : > { %10648 = vtanh.f32 %v5783_v5 }
0x19a9   : > { %10650 = vtanh.f32 %v5784_v52  ;;  %v5675_v52 = vadd.f32 %v14091_v54, %v16241_v30 }
0x19ab   : > { %v5722_v9 = vpop.f32.mrb[212].mxu0  ;;  %v9689_v14 = vpop.f32.mrb[212].mxu1 }
0x19ac   : > { %v5786_v31 = vadd.f32 %v5722_v9, %v5670_v7  ;;  %v5788_v5 = vadd.f32 %v9689_v14, %v5672_v45  ;;  %v5724_v28 = vpop.f32.mrb[213].mxu0  ;;  %v5765_v32 = vpop.f32.mrb[213].mxu1 }
0x19ad   : > { %v5787_v33 = vadd.f32 %v5724_v28, %v5671_v20  ;;  %v5782_v58 = vadd.f32 %v5765_v32, %v5666_v29  ;;  %v5726_v4 = vpop.f32.mrb[214].mxu0  ;;  %v9690_v1 = vpop.f32.mrb[214].mxu1 }
0x19ae   : > { %10652 = vtanh.f32 %v5786_v31  ;;  %v5789_v19 = vadd.f32 %v5726_v4, %v5673_v10  ;;  %v5791_v24 = vadd.f32 %v9690_v1, %v5675_v52  ;;  %v5728_v23 = vpop.f32.mrb[215].mxu0  ;;  %v5768_v41 = vpop.f32.mrb[215].mxu1 }
0x19af   : > { %10654 = vtanh.f32 %v5788_v5  ;;  %v5790_v54 = vadd.f32 %v5728_v23, %v5674_v49  ;;  %v5785_v7 = vadd.f32 %v5768_v41, %v5669_v16 }
0x19b0   : > { %v10645_v45 = vpop.eup %10644  ;;  %10656 = vtanh.f32 %v5787_v33 }
0x19b1   : > { %v10647_v9 = vpop.eup %10646  ;;  %10658 = vtanh.f32 %v5782_v58 }
0x19b2   : > { %v10649_v62 = vpop.eup %10648  ;;  %v5812_v14 = vsub.f32 %v10647_v9, %v10645_v45  ;;  %10660 = vtanh.f32 %v5789_v19 }
0x19b3   : > { %v10651_v27 = vpop.eup %10650  ;;  %10662 = vtanh.f32 %v5791_v24 }
0x19b4   : > { %10664 = vtanh.f32 %v5790_v54  ;;  %v5813_v29 = vsub.f32 %v10651_v27, %v10649_v62 }
0x19b5   : > { %10666 = vtanh.f32 %v5785_v7 }
0x19b8   : > { %v10653_v20 = vpop.eup %10652 }
0x19b9   : > { %v10655_v10 = vpop.eup %10654 }
0x19ba   : > { %v10657_v52 = vpop.eup %10656  ;;  %v5806_v31 = vmul.f32 0.5, %v10655_v10 }
0x19bb   : > { %v10659_v28 = vpop.eup %10658  ;;  %v5814_v5 = vsub.f32 %v10657_v52, %v10653_v20 }
0x19bc   : > { %v10661_v23 = vpop.eup %10660  ;;  %v5810_v41 = vadd.f32 0.5, %v5806_v31  ;;  %v5804_v32 = vmul.f32 0.5, %v10659_v28  ;;  %v14252_v28 = vld [vmem:[%s15587_s3] sm:$0xff]  }
0x19bd   : > { %v10663_v16 = vpop.eup %10662 }
0x19be   : > { %v10665_v49 = vpop.eup %10664  ;;  %v5808_v33 = vadd.f32 0.5, %v5804_v32  ;;  %v5807_v58 = vmul.f32 0.5, %v10663_v16  ;;  %v5818_v4 = vmul.f32 %v5814_v5, %v5810_v41  ;;  %v14311_v5 = vld [vmem:[%s15587_s3 + $0x98] sm:$0xff]   ;;  %v14323_v41 = vld [vmem:[%s15587_s3 + $0x60] sm:$0xff]  }
0x19bf   : > { %v10667_v1 = vpop.eup %10666  ;;  %v5815_v19 = vsub.f32 %v10665_v49, %v10661_v23  ;;  %16242 = vst [vmem:[#allocation20_spill] sm:$0xff] %v14323_v41  ;;  %v14330_v32 = vld [vmem:[%s15587_s3 + $0xa0] sm:$0xff]   ;;  %v14342_v49 = vld [vmem:[%s15587_s3 + $0x68] sm:$0xff]  }
0x19c0   : > { %v5816_v24 = vmul.f32 %v5812_v14, %v5808_v33  ;;  %v5811_v54 = vadd.f32 0.5, %v5807_v58  ;;  %v5805_v9 = vmul.f32 0.5, %v10667_v1  ;;  %v5822_v7 = vadd.f32 %v10653_v20, %v5818_v4  ;;  %v14292_v14 = vld [vmem:[%s15587_s3 + $0x90] sm:$0xff]   ;;  %v14304_v20 = vld [vmem:[%s15587_s3 + $0x58] sm:$0xff]   ;;  %16243 = vst [vmem:[#allocation23_spill] sm:$0xff] %v14330_v32  ;;  %v14336_v16 = vld [vmem:[%s15587_s3 + $0x20] sm:$0xff]  }
0x19c1   : > { %16244 = vst [vmem:[#allocation26_spill] sm:$0xff] %v14336_v16  ;;  %16245 = vst [vmem:[#allocation24_spill] sm:$0xff] %v14342_v49  ;;  %v14349_v33 = vld [vmem:[%s15587_s3 + $0xa8] sm:$0xff]   ;;  %v14361_v4 = vld [vmem:[%s15587_s3 + $0x70] sm:$0xff]  }
0x19c2   : > { %v5820_v27 = vadd.f32 %v10645_v45, %v5816_v24  ;;  %v5809_v30 = vadd.f32 0.5, %v5805_v9  ;;  %v5819_v61 = vmul.f32 %v5815_v19, %v5811_v54  ;;  %v14278_v45 = vld [vmem:[%s15587_s3 + $0x8] sm:$0xff]   ;;  %16246 = vst [vmem:[#allocation27_spill] sm:$0xff] %v14349_v33  ;;  %16248 = vst [vmem:[#allocation28_spill] sm:$0xff] %v14361_v4  ;;  %v14368_v1 = vld [vmem:[%s15587_s3 + $0xb0] sm:$0xff]  }
0x19c3   : > { %v14355_v58 = vld [vmem:[%s15587_s3 + $0x28] sm:$0xff]   ;;  %16249 = vst [vmem:[#allocation31_spill] sm:$0xff] %v14368_v1  ;;  %v14374_v19 = vld [vmem:[%s15587_s3 + $0x30] sm:$0xff]   ;;  %v14380_v24 = vld [vmem:[%s15587_s3 + $0x78] sm:$0xff]  }
0x19c4   : > { %v5817_v10 = vmul.f32 %v5813_v29, %v5809_v30  ;;  %v5823_v6 = vadd.f32 %v10661_v23, %v5819_v61  ;;  %v14259_v30 = vld [vmem:[%s15587_s3 + $0x48] sm:$0xff]   ;;  %v14266_v61 = vld [vmem:[%s15587_s3 + $0x80] sm:$0xff]   ;;  %v14298_v29 = vld [vmem:[%s15587_s3 + $0x10] sm:$0xff]   ;;  %16247 = vst [vmem:[#allocation30_spill] sm:$0xff] %v14355_v58 }
0x19c5   : > { %v14317_v23 = vld [vmem:[%s15587_s3 + $0x18] sm:$0xff]   ;;  %16250 = vst [vmem:[#allocation34_spill] sm:$0xff] %v14374_v19  ;;  %16251 = vst [vmem:[#allocation32_spill] sm:$0xff] %v14380_v24 }
0x19c6   : > { %v5821_v52 = vadd.f32 %v10649_v62, %v5817_v10  ;;  %v14247_v26 = vpack.c.bf16 %v5823_v6, %v5822_v7  ;;  %v14272_v6 = vld [vmem:[%s15587_s3 + $0x88] sm:$0xff]   ;;  %v14284_v62 = vld [vmem:[%s15587_s3 + $0x50] sm:$0xff]   ;;  %v14387_v54 = vld [vmem:[%s15587_s3 + $0xb8] sm:$0xff]  }
0x19c7   : > { %16252 = vst [vmem:[#allocation11_spill] sm:$0xff] %v14387_v54  ;;  %v14393_v9 = vld [vmem:[%s15587_s3 + $0x38] sm:$0xff]  }
0x19c8   : > { %v5836_v31 = vpack.c.bf16 %v5821_v52, %v5820_v27  ;;  %16253 = vst [vmem:[#allocation12_spill] sm:$0xff] %v14393_v9 }
0x19ca   : > { %5871 = vmatmul.mubr.bf16.vlgmr.msra.gmra.mrb[200].mxu0 %v5836_v31  ;;  %9707 = vmatprep.mubr.bf16.mxu1 %v5836_v31 }
0x19cb   : > { %9186 = vmatpush3.bf16.msra.mxu0 %v14252_v28  ;;  %9708 = vmatmul.mubr.bf16.vlgmr.msra.gmra.mrb[208].mxu1 %v14247_v26 }
0x19cc   : > { %9187 = vmatprep.subr.bf16.mxu0 %v14259_v30  ;;  %5880 = vmatprep.mubr.bf16.mxu0 %v15957_v56 }
0x19cd   : > { %9712 = vmatpush3.bf16.msra.mxu1 %v14266_v61 }
0x19ce   : > { %9713 = vmatprep.subr.bf16.mxu1 %v14272_v6 }
0x19cf   : > { %9188 = vmatpush3.bf16.msra.mxu0 %v14278_v45 }
0x19d0   : > { %9189 = vmatprep.subr.bf16.mxu0 %v14284_v62 }
0x19d1   : > { %9714 = vmatpush3.bf16.msra.mxu1 %v14272_v6 }
0x19d2   : > { %5881 = vmatmul.mubr.bf16.gmra.mrb[204].mxu0 %v14247_v26  ;;  %9715 = vmatprep.subr.bf16.mxu1 %v14292_v14 }
0x19d3   : > { %9190 = vmatpush3.bf16.msra.mxu0 %v14298_v29  ;;  %6034 = vmatprep.mubr.bf16.mxu0 %v5836_v31 }
0x19d4   : > { %9191 = vmatprep.subr.bf16.mxu0 %v14304_v20 }
0x19d5   : > { %9716 = vmatpush3.bf16.msra.mxu1 %v14292_v14 }
0x19d6   : > { %9717 = vmatprep.subr.bf16.mxu1 %v14311_v5 }
0x19d7   : > { %9192 = vmatpush3.bf16.msra.mxu0 %v14317_v23 }
0x19d8   : > { %9193 = vmatprep.subr.bf16.mxu0 %v14323_v41 }
0x19d9   : > { %9718 = vmatpush3.bf16.msra.mxu1 %v14311_v5 }
0x19da   : > { %9719 = vmatprep.subr.bf16.mxu1 %v14330_v32 }
0x19db   : > { %9194 = vmatpush3.bf16.msra.mxu0 %v14336_v16 }
0x19dc   : > { %9195 = vmatprep.subr.bf16.mxu0 %v14342_v49 }
0x19dd   : > { %9720 = vmatpush3.bf16.msra.mxu1 %v14330_v32 }
0x19de   : > { %9721 = vmatprep.subr.bf16.mxu1 %v14349_v33 }
0x19df   : > { %9196 = vmatpush3.bf16.msra.mxu0 %v14355_v58 }
0x19e0   : > { %9197 = vmatprep.subr.bf16.mxu0 %v14361_v4 }
0x19e1   : > { %9722 = vmatpush3.bf16.msra.mxu1 %v14349_v33 }
0x19e2   : > { %9723 = vmatprep.subr.bf16.mxu1 %v14368_v1 }
0x19e3   : > { %9198 = vmatpush3.bf16.msra.mxu0 %v14374_v19 }
0x19e4   : > { %9199 = vmatprep.subr.bf16.mxu0 %v14380_v24 }
0x19e5   : > { %9724 = vmatpush3.bf16.msra.mxu1 %v14368_v1 }
0x19e6   : > { %9725 = vmatprep.subr.bf16.mxu1 %v14387_v54 }
0x19e7   : > { %9200 = vmatpush3.bf16.msra.mxu0 %v14393_v9 }
0x19e8   : > { %6182 = vmatprep.subr.bf16.mxu0 %v13898_v50 }
0x19e9   : > { %9726 = vmatpush3.bf16.msra.mxu1 %v14387_v54 }
0x19ea   : > { %6035 = vmatmul.mubr.bf16.vlgmr.msra.gmra.mrb[216].mxu0 %v14089_v42  ;;  %6235 = vmatprep.subr.bf16.mxu1 %v13903_v18 }
0x19eb   : > { %6042 = vmatprep.mubr.bf16.mxu0 %v14247_v26  ;;  %6183 = vmatpush1.bf16.msra.mxu0 %v13906_v34 }
0x19ec   : > { %6184 = vmatprep.subr.bf16.mxu0 %v13909_v38 }
0x19ef   : > { %6185 = vmatpush1.bf16.msra.mxu0 %v13912_v37 }
0x19f0   : > { %6288 = vmatprep.subr.bf16.mxu0 %v13915_v36 }
0x19f2   : > { %6043 = vmatmul.mubr.bf16.gmra.mrb[220].mxu0 %v14099_v63 }
0x19f3   : > { %6214 = vmatprep.mubr.bf16.mxu0 %v15957_v56 }
0x1a9d   : > { %v5872_v50 = vpop.f32.mrb[200].mxu0 }
0x1a9e   : > { %v9965_v7 = vadd.f32 %v5872_v50, %v16184_v47  ;;  %v5874_v42 = vpop.f32.mrb[201].mxu0  ;;  %v9709_v27 = vpop.f32.mrb[208].mxu1 }
0x1a9f   : > { %v9966_v18 = vadd.f32 %v5874_v42, %v16185_v39  ;;  %v9973_v26 = vadd.f32 %v9709_v27, %v16186_v25  ;;  %v5876_v34 = vpop.f32.mrb[202].mxu0  ;;  %v5925_v10 = vpop.f32.mrb[209].mxu1 }
0x1aa0   : > { %10668 = vtanh.f32 %v9965_v7  ;;  %v9967_v38 = vadd.f32 %v5876_v34, %v16184_v47  ;;  %v9974_v37 = vadd.f32 %v5925_v10, %v16186_v25  ;;  %v5878_v36 = vpop.f32.mrb[203].mxu0  ;;  %v9710_v63 = vpop.f32.mrb[210].mxu1 }
0x1aa1   : > { %10670 = vtanh.f32 %v9966_v18  ;;  %v9968_v52 = vadd.f32 %v5878_v36, %v16185_v39  ;;  %v5928_v31 = vpop.f32.mrb[211].mxu1  ;;  %v9975_v50 = vadd.f32 %v9710_v63, %v16186_v25 }
0x1aa2   : > { %10672 = vtanh.f32 %v9973_v26  ;;  %v9976_v42 = vadd.f32 %v5928_v31, %v16186_v25 }
0x1aa3   : > { %10674 = vtanh.f32 %v9967_v38 }
0x1aa4   : > { %10676 = vtanh.f32 %v9974_v37 }
0x1aa5   : > { %10678 = vtanh.f32 %v9968_v52  ;;  %v5882_v27 = vpop.f32.mrb[204].mxu0 }
0x1aa6   : > { %10680 = vtanh.f32 %v9975_v50  ;;  %v9969_v7 = vadd.f32 %v5882_v27, %v16184_v47  ;;  %v5884_v34 = vpop.f32.mrb[205].mxu0 }
0x1aa7   : > { %10682 = vtanh.f32 %v9976_v42  ;;  %v9970_v10 = vadd.f32 %v5884_v34, %v16185_v39  ;;  %v5886_v18 = vpop.f32.mrb[206].mxu0 }
0x1aa8   : > { %10684 = vtanh.f32 %v9969_v7  ;;  %v9971_v36 = vadd.f32 %v5886_v18, %v16184_v47  ;;  %v5888_v26 = vpop.f32.mrb[207].mxu0 }
0x1aa9   : > { %10686 = vtanh.f32 %v9970_v10  ;;  %v9972_v38 = vadd.f32 %v5888_v26, %v16185_v39 }
0x1aaa   : > { %v10669_v63 = vpop.eup %10668  ;;  %10688 = vtanh.f32 %v9971_v36 }
0x1aab   : > { %v10671_v37 = vpop.eup %10670  ;;  %10690 = vtanh.f32 %v9972_v38 }
0x1aac   : > { %v10673_v52 = vpop.eup %10672  ;;  %v5972_v31 = vsub.f32 %v10671_v37, %v10669_v63 }
0x1aad   : > { %v10675_v50 = vpop.eup %10674  ;;  %v5966_v34 = vmul.f32 0.5, %v10673_v52 }
0x1aae   : > { %v10677_v27 = vpop.eup %10676 }
0x1aaf   : > { %v10679_v25 = vpop.eup %10678  ;;  %v5964_v42 = vmul.f32 0.5, %v10677_v27  ;;  %v5970_v36 = vadd.f32 0.5, %v5966_v34 }
0x1ab0   : > { %v10681_v9 = vpop.eup %10680  ;;  %v5973_v54 = vsub.f32 %v10679_v25, %v10675_v50 }
0x1ab1   : > { %v10683_v7 = vpop.eup %10682  ;;  %v5968_v24 = vadd.f32 0.5, %v5964_v42  ;;  %v5967_v47 = vmul.f32 0.5, %v10681_v9 }
0x1ab2   : > { %v10685_v18 = vpop.eup %10684  ;;  %v5965_v10 = vmul.f32 0.5, %v10683_v7 }
0x1ab3   : > { %v10687_v19 = vpop.eup %10686  ;;  %v5976_v26 = vmul.f32 %v5972_v31, %v5968_v24  ;;  %v5971_v58 = vadd.f32 0.5, %v5967_v47 }
0x1ab4   : > { %v10689_v39 = vpop.eup %10688  ;;  %v5969_v1 = vadd.f32 0.5, %v5965_v10  ;;  %v5974_v38 = vsub.f32 %v10687_v19, %v10685_v18 }
0x1ab5   : > { %v10691_v4 = vpop.eup %10690  ;;  %v5980_v37 = vadd.f32 %v10669_v63, %v5976_v26 }
0x1ab6   : > { %v5977_v33 = vmul.f32 %v5973_v54, %v5969_v1  ;;  %v5975_v49 = vsub.f32 %v10691_v4, %v10689_v39  ;;  %v5978_v27 = vmul.f32 %v5974_v38, %v5970_v36  ;;  %v14421_v1 = vld [vmem:[#allocation3 + $0x54] ss:$36 sps:$4 sm:$0xff]  }
0x1ab8   : > { %v5981_v16 = vadd.f32 %v10675_v50, %v5977_v33  ;;  %v5979_v52 = vmul.f32 %v5975_v49, %v5971_v58  ;;  %v5982_v25 = vadd.f32 %v10685_v18, %v5978_v27  ;;  %v16255_v50 = vld [vmem:[#allocation65_spill] sm:$0xff] }
0x1ab9   : > { %v923_v34 = vadd.f32 %v16255_v50, %v11989_v3 }
0x1aba   : > { %v5984_v32 = vpack.c.bf16 %v5981_v16, %v5980_v37  ;;  %v5983_v42 = vadd.f32 %v10689_v39, %v5979_v52  ;;  %v16257_v37 = vld [vmem:[#allocation69_spill] sm:$0xff] }
0x1abb   : > { %v929_v27 = vadd.f32 %v16257_v37, %v11989_v3 }
0x1abc   : > { %9727 = vmatprep.mubr.bf16.mxu1 %v5984_v32  ;;  %v5985_v9 = vpack.c.bf16 %v5983_v42, %v5982_v25 }
0x1abd   : > { %v9201_v7 = vpop.f32.mrb[216].mxu0 }
0x1abe   : > { %v9202_v41 = vpop.f32.mrb[217].mxu0  ;;  %9728 = vmatmul.mubr.bf16.vlgmr.msra.gmra.mrb[216].mxu1 %v5985_v9 }
0x1abf   : > { %v9203_v24 = vadd.f32 %v9202_v41, %v9201_v7  ;;  %v9204_v31 = vpop.f32.mrb[218].mxu0  ;;  %6236 = vmatpush1.bf16.msra.mxu1 %v13932_v53  ;;  %6267 = vmatprep.mubr.bf16.mxu1 %v15957_v56  ;;  %v16254_v53 = vld [vmem:[#allocation73_spill] sm:$0xff] }
0x1ac0   : > { %v9205_v47 = vpop.f32.mrb[219].mxu0  ;;  %6237 = vmatprep.subr.bf16.mxu1 %v14421_v1  ;;  %v935_v19 = vadd.f32 %v16254_v53, %v11989_v3 }
0x1ac1   : > { %v9206_v49 = vadd.f32 %v9205_v47, %v9204_v31 }
0x1ac3   : > { %6238 = vmatpush1.bf16.msra.mxu1 %v13937_v40 }
0x1ac4   : > { %6341 = vmatprep.subr.bf16.mxu1 %v13940_v59  ;;  %v16256_v59 = vld [vmem:[#allocation77_spill] sm:$0xff] }
0x1ac5   : > { %v9207_v39 = vpop.f32.mrb[220].mxu0  ;;  %v941_v26 = vadd.f32 %v16256_v59, %v11989_v3 }
0x1ac6   : > { %v9208_v32 = vpop.f32.mrb[221].mxu0 }
0x1ac7   : > { %v9209_v16 = vadd.f32 %v9208_v32, %v9207_v39  ;;  %v9210_v33 = vpop.f32.mrb[222].mxu0 }
0x1ac8   : > { %v9211_v41 = vpop.f32.mrb[223].mxu0 }
0x1ac9   : > { %v9212_v58 = vadd.f32 %v9211_v41, %v9210_v33 }
0x1b91   : > { %v9729_v4 = vpop.f32.mrb[216].mxu1 }
0x1b92   : > { %v6094_v54 = vadd.f32 %v9729_v4, %v9209_v16  ;;  %v6085_v63 = vpop.f32.mrb[217].mxu1 }
0x1b93   : > { %v6086_v18 = vadd.f32 %v9203_v24, %v6085_v63  ;;  %v9730_v10 = vpop.f32.mrb[218].mxu1 }
0x1b94   : > { %v6102_v40 = vadd.f32 %v6094_v54, %v935_v19  ;;  %v6097_v36 = vadd.f32 %v9730_v10, %v9212_v58  ;;  %v6088_v38 = vpop.f32.mrb[219].mxu1 }
0x1b95   : > { %v6100_v52 = vadd.f32 %v6086_v18, %v923_v34  ;;  %v6089_v25 = vadd.f32 %v9206_v49, %v6088_v38 }
0x1b96   : > { %10692 = vtanh.f32 %v6102_v40  ;;  %v6103_v42 = vadd.f32 %v6097_v36, %v941_v26 }
0x1b97   : > { %10694 = vtanh.f32 %v6100_v52  ;;  %v6101_v9 = vadd.f32 %v6089_v25, %v929_v27 }
0x1b98   : > { %10696 = vtanh.f32 %v6103_v42 }
0x1b99   : > { %10698 = vtanh.f32 %v6101_v9 }
0x1ba0   : > { %v10693_v7 = vpop.eup %10692 }
0x1ba1   : > { %v10695_v24 = vpop.eup %10694  ;;  %v6110_v33 = vmul.f32 0.5, %v10693_v7 }
0x1ba2   : > { %v10697_v31 = vpop.eup %10696  ;;  %v6108_v47 = vmul.f32 0.5, %v10695_v24 }
0x1ba3   : > { %v10699_v39 = vpop.eup %10698  ;;  %v6111_v58 = vmul.f32 0.5, %v10697_v31  ;;  %v6114_v49 = vadd.f32 0.5, %v6110_v33 }
0x1ba4   : > { %v6112_v32 = vadd.f32 0.5, %v6108_v47  ;;  %v6109_v16 = vmul.f32 0.5, %v10699_v39 }
0x1ba5   : > { %v6115_v4 = vadd.f32 0.5, %v6111_v58  ;;  %v6118_v27 = vmul.f32 %v6114_v49, %v13968_v8  ;;  %v14467_v58 = vld [vmem:[#allocation3 + $0x18] ss:$36 sps:$4 sm:$0xff]  }
0x1ba6   : > { %6124 = vrot.lane.b32.xlu0 %v6112_v32, %s11338_s21  ;;  %v6113_v41 = vadd.f32 0.5, %v6109_v16  ;;  %v6116_v40 = vmul.f32 %v6112_v32, %v13960_v2 }
0x1ba7   : > { %v6119_v42 = vmul.f32 %v6115_v4, %v13972_v35 }
0x1ba8   : > { %6126 = vrot.lane.b32.xlu1 %v6113_v41, %s11338_s21  ;;  %v6117_v36 = vmul.f32 %v6113_v41, %v13964_v17  ;;  %v14464_v41 = vld [vmem:[#allocation3 + $0x10] ss:$36 sps:$4 sm:$0xff]  }
0x1baa   : > { %6128 = vrot.lane.b32.xlu0 %v6114_v49, %s11338_s21  ;;  %v14470_v49 = vld [vmem:[#allocation3 + $0x5c] ss:$36 sps:$4 sm:$0xff]  }
0x1bac   : > { %6130 = vrot.lane.b32.xlu1 %v6115_v4, %s11338_s21  ;;  %v14473_v4 = vld [vmem:[#allocation3 + $0x64] ss:$36 sps:$4 sm:$0xff]  }
0x1c18   : > { %v6125_v53 = vpop.permute.xlu0 %6124 }
0x1c19   : > { %v6136_v19 = vmul.f32 %v10695_v24, %v6125_v53 }
0x1c1a   : > { %v6127_v54 = vpop.permute.xlu1 %6126 }
0x1c1b   : > { %v6137_v63 = vmul.f32 %v10699_v39, %v6127_v54  ;;  %6144 = vrot.lane.b32.xlu0 %v6136_v19, %s11339_s18  ;;  %v14479_v19 = vld [vmem:[#allocation3 + $0x60] ss:$36 sps:$4 sm:$0xff]  }
0x1c1c   : > { %v6129_v50 = vpop.permute.xlu0 %6128  ;;  %16258 = vst [vmem:[#allocation14_spill] sm:$0xff] %v14479_v19 }
0x1c1d   : > { %v6138_v34 = vmul.f32 %v10693_v7, %v6129_v50  ;;  %6146 = vrot.lane.b32.xlu1 %v6137_v63, %s11339_s18  ;;  %v14482_v63 = vld [vmem:[#allocation3 + $0x20] ss:$36 sps:$4 sm:$0xff]  }
0x1c1e   : > { %v6131_v18 = vpop.permute.xlu1 %6130  ;;  %16259 = vst [vmem:[#allocation15_spill] sm:$0xff] %v14482_v63 }
0x1c1f   : > { %v6139_v10 = vmul.f32 %v10697_v31, %v6131_v18  ;;  %6148 = vrot.lane.b32.xlu0 %v6138_v34, %s11339_s18  ;;  %v14503_v34 = vld [vmem:[%s15589_s5] ss:$12 sps:$4 sm:$0xff]  }
0x1c20   : > { %16261 = vst [vmem:[#allocation16_spill] sm:$0xff] %v14503_v34 }
0x1c21   : > { %6150 = vrot.lane.b32.xlu1 %v6139_v10, %s11339_s18  ;;  %v14512_v10 = vld [vmem:[%s15589_s5 + $0x1c] ss:$12 sps:$4 sm:$0xff]  }
0x1c22   : > { %16263 = vst [vmem:[#allocation33_spill] sm:$0xff] %v14512_v10 }
0x1c8d   : > { %v6145_v59 = vpop.permute.xlu0 %6144 }
0x1c8e   : > { %v14443_v26 = vadd.f32 %v6145_v59, %v6116_v40  ;;  %v14519_v40 = vld [vmem:[%s15589_s5 + $0x18] ss:$12 sps:$4 sm:$0xff]   ;;  %v14525_v59 = vld [vmem:[%s15589_s5 + $0x34] ss:$12 sps:$4 sm:$0xff]  }
0x1c8f   : > { %v6147_v38 = vpop.permute.xlu1 %6146  ;;  %16264 = vst [vmem:[#allocation45_spill] sm:$0xff] %v14519_v40  ;;  %16265 = vst [vmem:[#allocation37_spill] sm:$0xff] %v14525_v59 }
0x1c90   : > { %10700 = vtanh.f32 %v14443_v26  ;;  %v14447_v37 = vadd.f32 %v6147_v38, %v6117_v36  ;;  %v14531_v36 = vld [vmem:[%s15589_s5 + $0x8] ss:$12 sps:$4 sm:$0xff]   ;;  %v14541_v38 = vld [vmem:[%s15589_s5 + $0x30] ss:$12 sps:$4 sm:$0xff]  }
0x1c91   : > { %v6149_v52 = vpop.permute.xlu0 %6148  ;;  %16266 = vst [vmem:[#allocation35_spill] sm:$0xff] %v14531_v36  ;;  %16267 = vst [vmem:[#allocation38_spill] sm:$0xff] %v14541_v38 }
0x1c92   : > { %10702 = vtanh.f32 %v14447_v37  ;;  %v14451_v25 = vadd.f32 %v6149_v52, %v6118_v27  ;;  %v14547_v27 = vld [vmem:[%s15589_s5 + $0x4c] ss:$12 sps:$4 sm:$0xff]   ;;  %v14553_v52 = vld [vmem:[%s15589_s5 + $0x48] ss:$12 sps:$4 sm:$0xff]  }
0x1c93   : > { %v6151_v2 = vpop.permute.xlu1 %6150  ;;  %16268 = vst [vmem:[#allocation36_spill] sm:$0xff] %v14547_v27  ;;  %16269 = vst [vmem:[#allocation39_spill] sm:$0xff] %v14553_v52 }
0x1c94   : > { %10704 = vtanh.f32 %v14451_v25  ;;  %v14455_v9 = vadd.f32 %v6151_v2, %v6119_v42  ;;  %v14559_v42 = vld [vmem:[%s15589_s5 + $0x64] ss:$12 sps:$4 sm:$0xff]   ;;  %v14567_v2 = vld [vmem:[%s15589_s5 + $0x20] ss:$12 sps:$4 sm:$0xff]  }
0x1c95   : > { %16270 = vst [vmem:[#allocation42_spill] sm:$0xff] %v14559_v42  ;;  %16271 = vst [vmem:[#allocation40_spill] sm:$0xff] %v14567_v2 }
0x1c96   : > { %10706 = vtanh.f32 %v14455_v9 }
0x1c9a   : > { %v10701_v17 = vpop.eup %10700 }
0x1c9b   : > { %v6164_v24 = vmul.f32 %v10701_v17, %v6125_v53  ;;  %v14476_v53 = vld [vmem:[#allocation3 + $0x58] ss:$36 sps:$4 sm:$0xff]   ;;  %v14573_v17 = vld [vmem:[%s15589_s5 + $0x60] ss:$12 sps:$4 sm:$0xff]  }
0x1c9c   : > { %v10703_v7 = vpop.eup %10702  ;;  %16272 = vst [vmem:[#allocation43_spill] sm:$0xff] %v14573_v17 }
0x1c9d   : > { %v6165_v31 = vmul.f32 %v10703_v7, %v6127_v54  ;;  %v14579_v7 = vld [vmem:[%s15589_s5 + $0x7c] ss:$12 sps:$4 sm:$0xff]  }
0x1c9e   : > { %v10705_v47 = vpop.eup %10704  ;;  %16273 = vst [vmem:[#allocation46_spill] sm:$0xff] %v14579_v7 }
0x1c9f   : > { %v6168_v8 = vpack.c.bf16 %v6165_v31, %v6164_v24  ;;  %v6166_v32 = vmul.f32 %v10705_v47, %v6129_v50  ;;  %v14488_v50 = vld [vmem:[%s15589_s5 + $0x4] ss:$12 sps:$4 sm:$0xff]   ;;  %v14598_v47 = vld [vmem:[%s15589_s5 + $0x94] ss:$12 sps:$4 sm:$0xff]  }
0x1ca0   : > { %v10707_v39 = vpop.eup %10706  ;;  %16260 = vst [vmem:[#allocation18_spill] sm:$0xff] %v14488_v50  ;;  %v14586_v24 = vld [vmem:[%s15589_s5 + $0x38] ss:$12 sps:$4 sm:$0xff]   ;;  %16276 = vst [vmem:[#allocation50_spill] sm:$0xff] %v14598_v47 }
0x1ca1   : > { %6172 = vrot.lane.b32.xlu0 %v6168_v8, %s11339_s18  ;;  %v6167_v16 = vmul.f32 %v10707_v39, %v6131_v18  ;;  %v14506_v18 = vld [vmem:[#allocation3 + $0x68] ss:$36 sps:$4 sm:$0xff]   ;;  %16274 = vst [vmem:[#allocation44_spill] sm:$0xff] %v14586_v24  ;;  %v14592_v31 = vld [vmem:[%s15589_s5 + $0x78] ss:$12 sps:$4 sm:$0xff]  }
0x1ca2   : > { %16262 = vst [vmem:[#allocation41_spill] sm:$0xff] %v14506_v18  ;;  %16275 = vst [vmem:[#allocation47_spill] sm:$0xff] %v14592_v31  ;;  %v14605_v8 = vld [vmem:[%s15589_s5 + $0x50] ss:$12 sps:$4 sm:$0xff]  }
0x1ca3   : > { %v6169_v33 = vpack.c.bf16 %v6167_v16, %v6166_v32  ;;  %16277 = vst [vmem:[#allocation48_spill] sm:$0xff] %v14605_v8  ;;  %v14611_v39 = vld [vmem:[%s15589_s5 + $0x90] ss:$12 sps:$4 sm:$0xff]   ;;  %v14617_v32 = vld [vmem:[%s15589_s5 + $0xac] ss:$12 sps:$4 sm:$0xff]  }
0x1ca4   : > { %16278 = vst [vmem:[#allocation112_spill] sm:$0xff] %v14611_v39  ;;  %16279 = vst [vmem:[#allocation113_spill] sm:$0xff] %v14617_v32  ;;  %v14624_v16 = vld [vmem:[%s15589_s5 + $0x68] ss:$12 sps:$4 sm:$0xff]  }
0x1ca5   : > { %6174 = vrot.lane.b32.xlu1 %v6169_v33, %s11339_s18  ;;  %16280 = vst [vmem:[#allocation114_spill] sm:$0xff] %v14624_v16  ;;  %v14630_v33 = vld [vmem:[%s15589_s5 + $0xa8] ss:$12 sps:$4 sm:$0xff]  }
0x1ca6   : > { %16281 = vst [vmem:[#allocation115_spill] sm:$0xff] %v14630_v33 }
0x1d13   : > { %v6173_v35 = vpop.permute.xlu0 %6172 }
0x1d14   : > { %8842 = vmatmul.mubr.msk.bf16.vlgmr.msra.gmra.mrb[224].mxu0 %vm1804_vm2, %v6173_v35  ;;  %8844 = vmatmul.mubr.msk.bf16.vlgmr.msra.gmra.mrb[220].mxu1 %vm1804_vm2, %v6173_v35 }
0x1d15   : > { %6224 = vmatprep.mubr.bf16.mxu0 %v15957_v56  ;;  %6277 = vmatprep.mubr.bf16.mxu1 %v15957_v56 }
0x1d16   : > { %6289 = vmatpush1.bf16.msra.mxu0 %v14464_v41  ;;  %6342 = vmatpush1.bf16.msra.mxu1 %v14467_v58 }
0x1d17   : > { %6290 = vmatprep.subr.bf16.mxu0 %v14470_v49  ;;  %6343 = vmatprep.subr.bf16.mxu1 %v14473_v4  ;;  %v6175_v54 = vpop.permute.xlu1 %6174 }
0x1d1a   : > { %6291 = vmatpush1.bf16.msra.mxu0 %v14476_v53  ;;  %6344 = vmatpush1.bf16.msra.mxu1 %v14479_v19 }
0x1d1b   : > { %9731 = vmatprep.subr.bf16.mxu0 %v14482_v63  ;;  %6501 = vmatprep.subr.bf16.mxu1 %v14488_v50 }
0x1d1c   : > { %8843 = vmatmul.mubr.msk.bf16.gmra.mrb[228].mxu0 %vm1804_vm2, %v6175_v54  ;;  %8845 = vmatmul.mubr.msk.bf16.gmra.mrb[224].mxu1 %vm1804_vm2, %v6175_v54 }
0x1d1d   : > { %6320 = vmatprep.mubr.bf16.mxu0 %v15957_v56  ;;  %6373 = vmatprep.mubr.bf16.mxu1 %v15957_v56 }
0x1d24   : > { %8846 = vmatmul.mubr.msk.bf16.vlgmr.msra.gmra.mrb[232].mxu0 %vm1804_vm2, %v6173_v35  ;;  %8848 = vmatmul.mubr.msk.bf16.vlgmr.msra.gmra.mrb[228].mxu1 %vm1804_vm2, %v6173_v35 }
0x1d25   : > { %6330 = vmatprep.mubr.bf16.mxu0 %v15957_v56  ;;  %6383 = vmatprep.mubr.bf16.mxu1 %v15957_v56 }
0x1d26   : > { %9732 = vmatpush3.bf16.msra.mxu0 %v14482_v63  ;;  %6502 = vmatpush1.bf16.msra.mxu1 %v14503_v34 }
0x1d27   : > { %9733 = vmatprep.subr.bf16.mxu0 %v14506_v18  ;;  %6503 = vmatprep.subr.bf16.mxu1 %v14512_v10 }
0x1d2a   : > { %9734 = vmatpush3.bf16.msra.mxu0 %v14506_v18  ;;  %6504 = vmatpush1.bf16.msra.mxu1 %v14519_v40 }
0x1d2b   : > { %6505 = vmatprep.subr.bf16.mxu1 %v14525_v59  ;;  %9739 = vmatprep.subr.bf16.mxu0 %v14531_v36 }
0x1d2c   : > { %8847 = vmatmul.mubr.msk.bf16.gmra.mrb[236].mxu0 %vm1804_vm2, %v6175_v54  ;;  %8849 = vmatmul.mubr.msk.bf16.gmra.mrb[232].mxu1 %vm1804_vm2, %v6175_v54 }
0x1d2d   : > { %9735 = vmatprep.mubr.msk.bf16.mxu0 %vm1804_vm2, %v6173_v35  ;;  %6533 = vmatprep.mubr.bf16.mxu1 %v15957_v56  ;;  %v14638_v35 = vld [vmem:[%s15589_s5 + $0x80] ss:$12 sps:$4 sm:$0xff]  }
0x1d2e   : > { %6506 = vmatpush1.bf16.msra.mxu1 %v14541_v38  ;;  %16282 = vst [vmem:[#allocation116_spill] sm:$0xff] %v14638_v35 }
0x1d2f   : > { %6507 = vmatprep.subr.bf16.mxu1 %v14547_v27 }
0x1d32   : > { %6508 = vmatpush1.bf16.msra.mxu1 %v14553_v52 }
0x1d33   : > { %6509 = vmatprep.subr.bf16.mxu1 %v14559_v42  ;;  %v16289_v42 = vld [vmem:[#allocation74_spill] sm:$0xff] }
0x1d34   : > { %9736 = vmatmul.mubr.msk.bf16.vlgmr.msra.gmra.mrb[240].mxu0 %vm1804_vm2, %v6175_v54  ;;  %v14645_v54 = vld [vmem:[%s15589_s5 + $0x98] ss:$12 sps:$4 sm:$0xff]   ;;  %v1188_v52 = vadd.f32 %v16289_v42, %v16221_v55 }
0x1d35   : > { %9740 = vmatpush3.bf16.msra.mxu0 %v14531_v36  ;;  %16283 = vst [vmem:[#allocation117_spill] sm:$0xff] %v14645_v54 }
0x1d36   : > { %9741 = vmatprep.subr.bf16.mxu0 %v14567_v2  ;;  %6510 = vmatpush1.bf16.msra.mxu1 %v14573_v17 }
0x1d37   : > { %6511 = vmatprep.subr.bf16.mxu1 %v14579_v7 }
0x1d39   : > { %9742 = vmatpush3.bf16.msra.mxu0 %v14567_v2 }
0x1d3a   : > { %9743 = vmatprep.subr.bf16.mxu0 %v14586_v24  ;;  %6512 = vmatpush1.bf16.msra.mxu1 %v14592_v31 }
0x1d3b   : > { %6513 = vmatprep.subr.bf16.mxu1 %v14598_v47 }
0x1d3d   : > { %9744 = vmatpush3.bf16.msra.mxu0 %v14586_v24 }
0x1d3e   : > { %9745 = vmatprep.subr.bf16.mxu0 %v14605_v8  ;;  %6514 = vmatpush1.bf16.msra.mxu1 %v14611_v39 }
0x1d3f   : > { %6515 = vmatprep.subr.bf16.mxu1 %v14617_v32 }
0x1d41   : > { %9746 = vmatpush3.bf16.msra.mxu0 %v14605_v8 }
0x1d42   : > { %9747 = vmatprep.subr.bf16.mxu0 %v14624_v16  ;;  %6516 = vmatpush1.bf16.msra.mxu1 %v14630_v33 }
0x1d43   : > { %6661 = vmatprep.subr.bf16.mxu1 %v14032_v60  ;;  %v14652_v60 = vld [vmem:[%s15589_s5 + $0xb0] ss:$12 sps:$4 sm:$0xff]  }
0x1d44   : > { %16284 = vst [vmem:[#allocation119_spill] sm:$0xff] %v14652_v60 }
0x1d45   : > { %9748 = vmatpush3.bf16.msra.mxu0 %v14624_v16  ;;  %v16286_v16 = vld [vmem:[#allocation70_spill] sm:$0xff] }
0x1d46   : > { %9749 = vmatprep.subr.bf16.mxu0 %v14638_v35  ;;  %v1182_v32 = vadd.f32 %v16286_v16, %v16221_v55  ;;  %v16290_v16 = vld [vmem:[#allocation72_spill] sm:$0xff] }
0x1d47   : > { %v1186_v36 = vadd.f32 %v16290_v16, %v16223_v0 }
0x1d49   : > { %9750 = vmatpush3.bf16.msra.mxu0 %v14638_v35  ;;  %v16285_v35 = vld [vmem:[#allocation67_spill] sm:$0xff] }
0x1d4a   : > { %9751 = vmatprep.subr.bf16.mxu0 %v14645_v54  ;;  %v925_v33 = vadd.f32 %v16285_v35, %v16219_v46 }
0x1d4d   : > { %9752 = vmatpush3.bf16.msra.mxu0 %v14645_v54  ;;  %v16287_v54 = vld [vmem:[#allocation68_spill] sm:$0xff] }
0x1d4e   : > { %9753 = vmatprep.subr.bf16.mxu0 %v14652_v60  ;;  %v1180_v47 = vadd.f32 %v16287_v54, %v16223_v0 }
0x1d51   : > { %9754 = vmatpush3.bf16.msra.mxu0 %v14652_v60  ;;  %v16288_v60 = vld [vmem:[#allocation71_spill] sm:$0xff] }
0x1d52   : > { %9759 = vmatprep.subr.bf16.mxu0 %v14112_v51  ;;  %v931_v2 = vadd.f32 %v16288_v60, %v16219_v46 }
0x1de7   : > { %v6216_v39 = vpop.f32.mrb[224].mxu0  ;;  %v6269_v8 = vpop.f32.mrb[220].mxu1 }
0x1de8   : > { %v6443_v31 = vadd.f32 %v6216_v39, %v925_v33  ;;  %v6445_v24 = vadd.f32 %v6269_v8, %v1182_v32  ;;  %v6218_v7 = vpop.f32.mrb[225].mxu0  ;;  %v14663_v17 = vpop.f32.mrb[221].mxu1  ;;  %v16291_v33 = vld [vmem:[#allocation75_spill] sm:$0xff] }
0x1de9   : > { %v6444_v35 = vadd.f32 %v6218_v7, %v1180_v47  ;;  %v6220_v27 = vpop.f32.mrb[226].mxu0  ;;  %v6273_v38 = vpop.f32.mrb[222].mxu1  ;;  %v937_v42 = vadd.f32 %v16291_v33, %v16219_v46  ;;  %v16292_v7 = vld [vmem:[#allocation78_spill] sm:$0xff] }
0x1dea   : > { %10708 = vtanh.f32 %v6443_v31  ;;  %v6446_v59 = vadd.f32 %v6220_v27, %v931_v2  ;;  %v6448_v54 = vadd.f32 %v6273_v38, %v1188_v52  ;;  %v6222_v39 = vpop.f32.mrb[227].mxu0  ;;  %v14671_v8 = vpop.f32.mrb[223].mxu1  ;;  %v1194_v47 = vadd.f32 %v16292_v7, %v16221_v55  ;;  %v16293_v27 = vld [vmem:[#allocation76_spill] sm:$0xff]  ;;  %v16294_v52 = vld [vmem:[#allocation82_spill] sm:$0xff] }
0x1deb   : > { %10710 = vtanh.f32 %v6445_v24  ;;  %v6447_v32 = vadd.f32 %v6222_v39, %v1186_v36  ;;  %v1192_v38 = vadd.f32 %v16293_v27, %v16223_v0  ;;  %v1200_v2 = vadd.f32 %v16294_v52, %v16221_v55  ;;  %v16296_v39 = vld [vmem:[#allocation80_spill] sm:$0xff] }
0x1dec   : > { %10712 = vtanh.f32 %v6444_v35  ;;  %v16295_v35 = vld [vmem:[#allocation79_spill] sm:$0xff]  ;;  %v1198_v33 = vadd.f32 %v16296_v39, %v16223_v0 }
0x1ded   : > { %10714 = vtanh.f32 %v6446_v59 }
0x1dee   : > { %10716 = vtanh.f32 %v6448_v54  ;;  %v943_v54 = vadd.f32 %v16295_v35, %v16219_v46 }
0x1def   : > { %10718 = vtanh.f32 %v6447_v32  ;;  %v6226_v60 = vpop.f32.mrb[228].mxu0  ;;  %v6279_v16 = vpop.f32.mrb[224].mxu1 }
0x1df0   : > { %v6449_v24 = vadd.f32 %v6226_v60, %v937_v42  ;;  %v6451_v36 = vadd.f32 %v6279_v16, %v1194_v47  ;;  %v6228_v31 = vpop.f32.mrb[229].mxu0  ;;  %v14681_v59 = vpop.f32.mrb[225].mxu1 }
0x1df1   : > { %v6450_v32 = vadd.f32 %v6228_v31, %v1192_v38  ;;  %v6230_v7 = vpop.f32.mrb[230].mxu0  ;;  %v6283_v40 = vpop.f32.mrb[226].mxu1 }
0x1df2   : > { %10720 = vtanh.f32 %v6449_v24  ;;  %v6452_v10 = vadd.f32 %v6230_v7, %v943_v54  ;;  %v6454_v27 = vadd.f32 %v6283_v40, %v1200_v2  ;;  %v6232_v18 = vpop.f32.mrb[231].mxu0  ;;  %v14687_v34 = vpop.f32.mrb[227].mxu1 }
0x1df3   : > { %10722 = vtanh.f32 %v6451_v36  ;;  %v6453_v42 = vadd.f32 %v6232_v18, %v1198_v33 }
0x1df4   : > { %v10709_v47 = vpop.eup %10708  ;;  %10724 = vtanh.f32 %v6450_v32 }
0x1df5   : > { %v10711_v60 = vpop.eup %10710  ;;  %10726 = vtanh.f32 %v6452_v10 }
0x1df6   : > { %v10713_v16 = vpop.eup %10712  ;;  %v6467_v52 = vmul.f32 0.5, %v10711_v60  ;;  %10728 = vtanh.f32 %v6454_v27 }
0x1df7   : > { %v10715_v35 = vpop.eup %10714  ;;  %v6475_v39 = vsub.f32 %v10713_v16, %v10709_v47  ;;  %10730 = vtanh.f32 %v6453_v42  ;;  %v14689_v38 = vpop.f32.mrb[232].mxu0 }
0x1df8   : > { %v10717_v24 = vpop.eup %10716  ;;  %v6471_v31 = vadd.f32 0.5, %v6467_v52  ;;  %v14691_v40 = vpop.f32.mrb[233].mxu0 }
0x1df9   : > { %v10719_v2 = vpop.eup %10718  ;;  %v6468_v54 = vmul.f32 0.5, %v10717_v24  ;;  %v14693_v36 = vpop.f32.mrb[234].mxu0 }
0x1dfa   : > { %v6479_v18 = vmul.f32 %v6475_v39, %v6471_v31  ;;  %v6476_v33 = vsub.f32 %v10719_v2, %v10715_v35  ;;  %v14695_v32 = vpop.f32.mrb[235].mxu0 }
0x1dfb   : > { %v6472_v10 = vadd.f32 0.5, %v6468_v54 }
0x1dfc   : > { %v10721_v7 = vpop.eup %10720  ;;  %v6483_v27 = vadd.f32 %v10709_v47, %v6479_v18 }
0x1dfd   : > { %v10723_v60 = vpop.eup %10722  ;;  %v6480_v16 = vmul.f32 %v6476_v33, %v6472_v10 }
0x1dfe   : > { %v10725_v42 = vpop.eup %10724  ;;  %v6469_v0 = vmul.f32 0.5, %v10723_v60 }
0x1dff   : > { %v10727_v46 = vpop.eup %10726  ;;  %v14697_v55 = vpop.f32.mrb[236].mxu0  ;;  %v6484_v52 = vadd.f32 %v10715_v35, %v6480_v16  ;;  %v6477_v50 = vsub.f32 %v10725_v42, %v10721_v7  ;;  %v16305_v16 = vld [vmem:[#allocation130_spill] sm:$0xff] }
0x1e00   : > { %v10729_v63 = vpop.eup %10728  ;;  %v6473_v24 = vadd.f32 0.5, %v6469_v0  ;;  %v14699_v19 = vpop.f32.mrb[237].mxu0  ;;  %v6488_v42 = vadd.f32 %v14689_v38, %v16305_v16  ;;  %v16306_v38 = vld [vmem:[#allocation131_spill] sm:$0xff] }
0x1e01   : > { %v10731_v39 = vpop.eup %10730  ;;  %v6470_v31 = vmul.f32 0.5, %v10729_v63  ;;  %v14701_v2 = vpop.f32.mrb[238].mxu0  ;;  %v14703_v54 = vpack.c.bf16 %v6484_v52, %v6483_v27  ;;  %v14713_v63 = vld [vmem:[%s15591_s7] ss:$12 sps:$4 sm:$0xff]  }
0x1e02   : > { %v14705_v47 = vpop.f32.mrb[239].mxu0  ;;  %v6478_v18 = vsub.f32 %v10731_v39, %v10727_v46  ;;  %v6481_v33 = vmul.f32 %v6477_v50, %v6473_v24  ;;  %v14719_v50 = vld [vmem:[%s15591_s7 + $0x1c] ss:$12 sps:$4 sm:$0xff]  }
0x1e03   : > { %v6474_v10 = vadd.f32 0.5, %v6470_v31  ;;  %6534 = vmatmul.mubr.bf16.vlgmr.msra.gmra.mrb[236].mxu1 %v14703_v54  ;;  %9755 = vmatprep.mubr.bf16.mxu0 %v14703_v54 }
0x1e04   : > { %6543 = vmatprep.mubr.bf16.mxu1 %v15957_v56  ;;  %v6485_v0 = vadd.f32 %v10721_v7, %v6481_v33  ;;  %6662 = vmatpush1.bf16.msra.mxu1 %v14713_v63  ;;  %v14725_v7 = vld [vmem:[%s15591_s7 + $0x18] ss:$12 sps:$4 sm:$0xff]  }
0x1e05   : > { %v6482_v35 = vmul.f32 %v6478_v18, %v6474_v10  ;;  %6663 = vmatprep.subr.bf16.mxu1 %v14719_v50  ;;  %v6491_v18 = vadd.f32 %v14693_v36, %v16305_v16  ;;  %v6494_v36 = vadd.f32 %v14697_v55, %v16305_v16 }
0x1e07   : > { %v6486_v27 = vadd.f32 %v10727_v46, %v6482_v35  ;;  %v14738_v46 = vld [vmem:[%s15591_s7 + $0x20] ss:$12 sps:$4 sm:$0xff]  }
0x1e08   : > { %6664 = vmatpush1.bf16.msra.mxu1 %v14725_v7 }
0x1e09   : > { %v14728_v60 = vpack.c.bf16 %v6486_v27, %v6485_v0  ;;  %6665 = vmatprep.subr.bf16.mxu1 %v14104_v22  ;;  %v14748_v22 = vld [vmem:[%s15591_s7 + $0x38] ss:$12 sps:$4 sm:$0xff]  }
0x1e0b   : > { %6544 = vmatmul.mubr.bf16.gmra.mrb[240].mxu1 %v14728_v60  ;;  %9756 = vmatmul.mubr.bf16.vlgmr.msra.gmra.mrb[244].mxu0 %v14728_v60 }
0x1e0c   : > { %9760 = vmatpush3.bf16.msra.mxu0 %v14112_v51  ;;  %6666 = vmatpush1.bf16.msra.mxu1 %v14118_v57  ;;  %v14757_v51 = vld [vmem:[%s15591_s7 + $0x50] ss:$12 sps:$4 sm:$0xff]  }
0x1e0d   : > { %9761 = vmatprep.subr.bf16.mxu0 %v14738_v46  ;;  %6667 = vmatprep.subr.bf16.mxu1 %v14125_v12  ;;  %v16297_v57 = vld [vmem:[#allocation159_spill] sm:$0xff]  ;;  %v16298_v12 = vld [vmem:[#allocation160_spill] sm:$0xff] }
0x1e0e   : > { %6693 = vmatprep.mubr.bf16.mxu1 %v15957_v56 }
0x1e10   : > { %9762 = vmatpush3.bf16.msra.mxu0 %v14738_v46  ;;  %6668 = vmatpush1.bf16.msra.mxu1 %v14133_v13  ;;  %v16299_v13 = vld [vmem:[#allocation161_spill] sm:$0xff] }
0x1e11   : > { %9763 = vmatprep.subr.bf16.mxu0 %v14748_v22  ;;  %6669 = vmatprep.subr.bf16.mxu1 %v14140_v43  ;;  %v16300_v43 = vld [vmem:[#allocation162_spill] sm:$0xff] }
0x1e14   : > { %9764 = vmatpush3.bf16.msra.mxu0 %v14748_v22  ;;  %6670 = vmatpush1.bf16.msra.mxu1 %v14147_v11  ;;  %v16301_v11 = vld [vmem:[#allocation13_spill] sm:$0xff] }
0x1e15   : > { %9765 = vmatprep.subr.bf16.mxu0 %v14757_v51  ;;  %6671 = vmatprep.subr.bf16.mxu1 %v14154_v21  ;;  %v16302_v21 = vld [vmem:[#allocation19_spill] sm:$0xff] }
0x1e18   : > { %9766 = vmatpush3.bf16.msra.mxu0 %v14757_v51  ;;  %6672 = vmatpush1.bf16.msra.mxu1 %v14161_v15  ;;  %v16303_v15 = vld [vmem:[#allocation22_spill] sm:$0xff] }
0x1e19   : > { %9767 = vmatprep.subr.bf16.mxu0 %v14167_v48  ;;  %6673 = vmatprep.subr.bf16.mxu1 %v14173_v44 }
0x1e1c   : > { %9768 = vmatpush3.bf16.msra.mxu0 %v14167_v48  ;;  %6674 = vmatpush1.bf16.msra.mxu1 %v16297_v57  ;;  %v16304_v48 = vld [vmem:[#allocation129_spill] sm:$0xff]  ;;  %v6489_v57 = vadd.f32 %v14691_v40, %v16306_v38  ;;  %v6497_v40 = vadd.f32 %v14701_v2, %v16305_v16 }
0x1e1d   : > { %9769 = vmatprep.subr.bf16.mxu0 %v16298_v12  ;;  %6675 = vmatprep.subr.bf16.mxu1 %v16299_v13  ;;  %v6487_v44 = vadd.f32 %v14663_v17, %v16304_v48  ;;  %v6490_v24 = vadd.f32 %v14671_v8, %v16304_v48  ;;  %v6493_v17 = vadd.f32 %v14681_v59, %v16304_v48 }
0x1e1e   : > { %v6495_v8 = vadd.f32 %v14699_v19, %v16306_v38  ;;  %v6492_v19 = vadd.f32 %v14695_v32, %v16306_v38 }
0x1e20   : > { %9770 = vmatpush3.bf16.msra.mxu0 %v16298_v12  ;;  %6676 = vmatpush1.bf16.msra.mxu1 %v16300_v43  ;;  %v6496_v43 = vadd.f32 %v14687_v34, %v16304_v48 }
0x1e21   : > { %9771 = vmatprep.subr.bf16.mxu0 %v16301_v11  ;;  %9247 = vmatprep.subr.bf16.mxu1 %v16302_v21 }
0x1e24   : > { %9772 = vmatpush3.bf16.msra.mxu0 %v16301_v11  ;;  %v6498_v11 = vadd.f32 %v14705_v47, %v16306_v38 }
0x1e25   : > { %9773 = vmatprep.subr.bf16.mxu0 %v16303_v15 }
0x1e28   : > { %9774 = vmatpush3.bf16.msra.mxu0 %v16303_v15 }
0x1e29   : > { %9779 = vmatprep.subr.bf16.mxu0 %v14266_v61 }
0x1ed6   : > { %v6535_v52 = vpop.f32.mrb[236].mxu1 }
0x1ed7   : > { %v6603_v39 = vadd.f32 %v6535_v52, %v6487_v44  ;;  %v6537_v31 = vpop.f32.mrb[237].mxu1 }
0x1ed8   : > { %v6604_v33 = vadd.f32 %v6537_v31, %v6488_v42  ;;  %v6539_v10 = vpop.f32.mrb[238].mxu1 }
0x1ed9   : > { %10732 = vtanh.f32 %v6603_v39  ;;  %v6606_v0 = vadd.f32 %v6539_v10, %v6490_v24  ;;  %v6541_v35 = vpop.f32.mrb[239].mxu1 }
0x1eda   : > { %10734 = vtanh.f32 %v6604_v33  ;;  %v6607_v27 = vadd.f32 %v6541_v35, %v6491_v18 }
0x1edb   : > { %10736 = vtanh.f32 %v6606_v0 }
0x1edc   : > { %10738 = vtanh.f32 %v6607_v27 }
0x1ede   : > { %v6545_v12 = vpop.f32.mrb[240].mxu1  ;;  %v9757_v13 = vpop.f32.mrb[244].mxu0 }
0x1edf   : > { %v6609_v21 = vadd.f32 %v6545_v12, %v6493_v17  ;;  %v6611_v15 = vadd.f32 %v9757_v13, %v6495_v8  ;;  %v6547_v59 = vpop.f32.mrb[241].mxu1  ;;  %v6588_v44 = vpop.f32.mrb[245].mxu0 }
0x1ee0   : > { %v6610_v42 = vadd.f32 %v6547_v59, %v6494_v36  ;;  %v6605_v55 = vadd.f32 %v6588_v44, %v6489_v57  ;;  %v6549_v52 = vpop.f32.mrb[242].mxu1  ;;  %v9758_v24 = vpop.f32.mrb[246].mxu0 }
0x1ee1   : > { %10740 = vtanh.f32 %v6609_v21  ;;  %v6612_v39 = vadd.f32 %v6549_v52, %v6496_v43  ;;  %v6614_v34 = vadd.f32 %v9758_v24, %v6498_v11  ;;  %v6551_v31 = vpop.f32.mrb[243].mxu1  ;;  %v6591_v18 = vpop.f32.mrb[247].mxu0 }
0x1ee2   : > { %10742 = vtanh.f32 %v6611_v15  ;;  %v6613_v47 = vadd.f32 %v6551_v31, %v6497_v40  ;;  %v6608_v33 = vadd.f32 %v6591_v18, %v6492_v19 }
0x1ee3   : > { %v10733_v10 = vpop.eup %10732  ;;  %10744 = vtanh.f32 %v6610_v42 }
0x1ee4   : > { %v10735_v0 = vpop.eup %10734  ;;  %10746 = vtanh.f32 %v6605_v55 }
0x1ee5   : > { %v10737_v32 = vpop.eup %10736  ;;  %v6635_v35 = vsub.f32 %v10735_v0, %v10733_v10  ;;  %10748 = vtanh.f32 %v6612_v39 }
0x1ee6   : > { %v10739_v2 = vpop.eup %10738  ;;  %10750 = vtanh.f32 %v6614_v34 }
0x1ee7   : > { %10752 = vtanh.f32 %v6613_v47  ;;  %v6636_v27 = vsub.f32 %v10739_v2, %v10737_v32 }
0x1ee8   : > { %10754 = vtanh.f32 %v6608_v33 }
0x1eeb   : > { %v10741_v17 = vpop.eup %10740 }
0x1eec   : > { %v10743_v8 = vpop.eup %10742 }
0x1eed   : > { %v10745_v57 = vpop.eup %10744  ;;  %v6629_v36 = vmul.f32 0.5, %v10743_v8 }
0x1eee   : > { %v10747_v12 = vpop.eup %10746  ;;  %v6637_v13 = vsub.f32 %v10745_v57, %v10741_v17 }
0x1eef   : > { %v10749_v43 = vpop.eup %10748  ;;  %v6633_v11 = vadd.f32 0.5, %v6629_v36  ;;  %v6627_v21 = vmul.f32 0.5, %v10747_v12  ;;  %v14845_v36 = vld [vmem:[#allocation3 + $0x48] ss:$36 sps:$4 sm:$0xff]   ;;  %v14848_v12 = vld [vmem:[#allocation3 + $0x14] ss:$36 sps:$4 sm:$0xff]  }
0x1ef0   : > { %v10751_v15 = vpop.eup %10750 }
0x1ef1   : > { %v10753_v59 = vpop.eup %10752  ;;  %v6631_v44 = vadd.f32 0.5, %v6627_v21  ;;  %v6630_v19 = vmul.f32 0.5, %v10751_v15  ;;  %v6641_v40 = vmul.f32 %v6637_v13, %v6633_v11  ;;  %v16319_v13 = vld [vmem:[#allocation143_spill] sm:$0xff]  ;;  %v16320_v15 = vld [vmem:[#allocation144_spill] sm:$0xff] }
0x1ef2   : > { %v10755_v42 = vpop.eup %10754  ;;  %v6638_v55 = vsub.f32 %v10753_v59, %v10749_v43 }
0x1ef3   : > { %v6639_v52 = vmul.f32 %v6635_v35, %v6631_v44  ;;  %v6634_v24 = vadd.f32 0.5, %v6630_v19  ;;  %v6628_v39 = vmul.f32 0.5, %v10755_v42  ;;  %v6645_v34 = vadd.f32 %v10741_v17, %v6641_v40  ;;  %v14836_v35 = vld [vmem:[#allocation3 + $0xc] ss:$36 sps:$4 sm:$0xff]  }
0x1ef4   : > { %v14842_v17 = vld [vmem:[#allocation3 + $0x4c] ss:$36 sps:$4 sm:$0xff]  }
0x1ef5   : > { %v6643_v31 = vadd.f32 %v10733_v10, %v6639_v52  ;;  %v6632_v18 = vadd.f32 0.5, %v6628_v39  ;;  %v6642_v47 = vmul.f32 %v6638_v55, %v6634_v24  ;;  %v16318_v10 = vld [vmem:[#allocation12_spill] sm:$0xff]  ;;  %v16321_v44 = vld [vmem:[#allocation145_spill] sm:$0xff] }
0x1ef7   : > { %v6640_v33 = vmul.f32 %v6636_v27, %v6632_v18  ;;  %v6646_v0 = vadd.f32 %v10749_v43, %v6642_v47  ;;  %v14839_v27 = vld [vmem:[#allocation3] ss:$36 sps:$4 sm:$0xff]  }
0x1ef9   : > { %v6644_v2 = vadd.f32 %v10737_v32, %v6640_v33  ;;  %v6660_v8 = vpack.c.bf16 %v6646_v0, %v6645_v34  ;;  %v14831_v32 = vld [vmem:[#allocation3 + $0x4] ss:$36 sps:$4 sm:$0xff]  }
0x1efb   : > { %v6659_v57 = vpack.c.bf16 %v6644_v2, %v6643_v31 }
0x1efd   : > { %6694 = vmatmul.mubr.bf16.vlgmr.msra.gmra.mrb[228].mxu1 %v6659_v57  ;;  %9775 = vmatprep.mubr.bf16.mxu0 %v6659_v57 }
0x1efe   : > { %9248 = vmatpush3.bf16.msra.mxu1 %v14252_v28  ;;  %9776 = vmatmul.mubr.bf16.vlgmr.msra.gmra.mrb[240].mxu0 %v6660_v8  ;;  %v16307_v28 = vld [vmem:[#allocation20_spill] sm:$0xff] }
0x1eff   : > { %9249 = vmatprep.subr.bf16.mxu1 %v14259_v30  ;;  %6703 = vmatprep.mubr.bf16.mxu1 %v15957_v56  ;;  %v16308_v30 = vld [vmem:[#allocation23_spill] sm:$0xff] }
0x1f00   : > { %9780 = vmatpush3.bf16.msra.mxu0 %v14266_v61  ;;  %v16309_v61 = vld [vmem:[#allocation26_spill] sm:$0xff] }
0x1f01   : > { %9781 = vmatprep.subr.bf16.mxu0 %v14272_v6 }
0x1f02   : > { %9250 = vmatpush3.bf16.msra.mxu1 %v14278_v45  ;;  %v16311_v45 = vld [vmem:[#allocation27_spill] sm:$0xff] }
0x1f03   : > { %9251 = vmatprep.subr.bf16.mxu1 %v14284_v62  ;;  %v16312_v62 = vld [vmem:[#allocation30_spill] sm:$0xff] }
0x1f04   : > { %9782 = vmatpush3.bf16.msra.mxu0 %v14272_v6  ;;  %v16310_v6 = vld [vmem:[#allocation24_spill] sm:$0xff] }
0x1f05   : > { %6704 = vmatmul.mubr.bf16.gmra.mrb[232].mxu1 %v6660_v8  ;;  %9783 = vmatprep.subr.bf16.mxu0 %v14292_v14 }
0x1f06   : > { %9252 = vmatpush3.bf16.msra.mxu1 %v14298_v29  ;;  %6857 = vmatprep.mubr.bf16.mxu1 %v6659_v57  ;;  %v16314_v29 = vld [vmem:[#allocation31_spill] sm:$0xff] }
0x1f07   : > { %9253 = vmatprep.subr.bf16.mxu1 %v14304_v20  ;;  %v16315_v20 = vld [vmem:[#allocation34_spill] sm:$0xff] }
0x1f08   : > { %9784 = vmatpush3.bf16.msra.mxu0 %v14292_v14  ;;  %v16313_v14 = vld [vmem:[#allocation28_spill] sm:$0xff] }
0x1f09   : > { %9785 = vmatprep.subr.bf16.mxu0 %v14311_v5 }
0x1f0a   : > { %9254 = vmatpush3.bf16.msra.mxu1 %v14317_v23  ;;  %v16317_v23 = vld [vmem:[#allocation11_spill] sm:$0xff] }
0x1f0b   : > { %9255 = vmatprep.subr.bf16.mxu1 %v16307_v28 }
0x1f0c   : > { %9786 = vmatpush3.bf16.msra.mxu0 %v14311_v5  ;;  %v16316_v5 = vld [vmem:[#allocation32_spill] sm:$0xff] }
0x1f0d   : > { %9787 = vmatprep.subr.bf16.mxu0 %v16308_v30 }
0x1f0e   : > { %9256 = vmatpush3.bf16.msra.mxu1 %v16309_v61 }
0x1f0f   : > { %9257 = vmatprep.subr.bf16.mxu1 %v16310_v6 }
0x1f10   : > { %9788 = vmatpush3.bf16.msra.mxu0 %v16308_v30 }
0x1f11   : > { %9789 = vmatprep.subr.bf16.mxu0 %v16311_v45 }
0x1f12   : > { %9258 = vmatpush3.bf16.msra.mxu1 %v16312_v62 }
0x1f13   : > { %9259 = vmatprep.subr.bf16.mxu1 %v16313_v14 }
0x1f14   : > { %9790 = vmatpush3.bf16.msra.mxu0 %v16311_v45 }
0x1f15   : > { %9791 = vmatprep.subr.bf16.mxu0 %v16314_v29 }
0x1f16   : > { %9260 = vmatpush3.bf16.msra.mxu1 %v16315_v20 }
0x1f17   : > { %9261 = vmatprep.subr.bf16.mxu1 %v16316_v5 }
0x1f18   : > { %9792 = vmatpush3.bf16.msra.mxu0 %v16314_v29 }
0x1f19   : > { %9793 = vmatprep.subr.bf16.mxu0 %v16317_v23 }
0x1f1a   : > { %9262 = vmatpush3.bf16.msra.mxu1 %v16318_v10 }
0x1f1b   : > { %7005 = vmatprep.subr.bf16.mxu1 %v14831_v32 }
0x1f1c   : > { %9794 = vmatpush3.bf16.msra.mxu0 %v16317_v23 }
0x1f1d   : > { %6858 = vmatmul.mubr.bf16.vlgmr.msra.gmra.mrb[244].mxu1 %v14703_v54  ;;  %7058 = vmatprep.subr.bf16.mxu0 %v14836_v35 }
0x1f1e   : > { %6865 = vmatprep.mubr.bf16.mxu1 %v6660_v8  ;;  %7006 = vmatpush1.bf16.msra.mxu1 %v14839_v27 }
0x1f1f   : > { %7007 = vmatprep.subr.bf16.mxu1 %v14842_v17 }
0x1f22   : > { %7008 = vmatpush1.bf16.msra.mxu1 %v14845_v36 }
0x1f23   : > { %7111 = vmatprep.subr.bf16.mxu1 %v14848_v12 }
0x1f25   : > { %6866 = vmatmul.mubr.bf16.gmra.mrb[248].mxu1 %v14728_v60 }
0x1f26   : > { %7037 = vmatprep.mubr.bf16.mxu1 %v15957_v56 }
0x1fd0   : > { %v6695_v54 = vpop.f32.mrb[228].mxu1 }
0x1fd1   : > { %v9977_v43 = vadd.f32 %v6695_v54, %v16319_v13  ;;  %v6697_v11 = vpop.f32.mrb[229].mxu1  ;;  %v9777_v21 = vpop.f32.mrb[240].mxu0 }
0x1fd2   : > { %v9978_v59 = vadd.f32 %v6697_v11, %v16320_v15  ;;  %v9985_v19 = vadd.f32 %v9777_v21, %v16321_v44  ;;  %v6699_v40 = vpop.f32.mrb[230].mxu1  ;;  %v6748_v42 = vpop.f32.mrb[241].mxu0 }
0x1fd3   : > { %10756 = vtanh.f32 %v9977_v43  ;;  %v9979_v55 = vadd.f32 %v6699_v40, %v16319_v13  ;;  %v9986_v52 = vadd.f32 %v6748_v42, %v16321_v44  ;;  %v6701_v24 = vpop.f32.mrb[231].mxu1  ;;  %v9778_v60 = vpop.f32.mrb[242].mxu0 }
0x1fd4   : > { %10758 = vtanh.f32 %v9978_v59  ;;  %v9980_v39 = vadd.f32 %v6701_v24, %v16320_v15  ;;  %v6751_v34 = vpop.f32.mrb[243].mxu0  ;;  %v9987_v31 = vadd.f32 %v9778_v60, %v16321_v44 }
0x1fd5   : > { %10760 = vtanh.f32 %v9985_v19  ;;  %v9988_v18 = vadd.f32 %v6751_v34, %v16321_v44 }
0x1fd6   : > { %10762 = vtanh.f32 %v9979_v55 }
0x1fd7   : > { %10764 = vtanh.f32 %v9986_v52 }
0x1fd8   : > { %10766 = vtanh.f32 %v9980_v39  ;;  %v6705_v47 = vpop.f32.mrb[232].mxu1 }
0x1fd9   : > { %10768 = vtanh.f32 %v9987_v31  ;;  %v9981_v33 = vadd.f32 %v6705_v47, %v16319_v13  ;;  %v6707_v0 = vpop.f32.mrb[233].mxu1 }
0x1fda   : > { %10770 = vtanh.f32 %v9988_v18  ;;  %v9982_v2 = vadd.f32 %v6707_v0, %v16320_v15  ;;  %v6709_v8 = vpop.f32.mrb[234].mxu1 }
0x1fdb   : > { %10772 = vtanh.f32 %v9981_v33  ;;  %v9983_v57 = vadd.f32 %v6709_v8, %v16319_v13  ;;  %v6711_v28 = vpop.f32.mrb[235].mxu1 }
0x1fdc   : > { %10774 = vtanh.f32 %v9982_v2  ;;  %v9984_v30 = vadd.f32 %v6711_v28, %v16320_v15 }
0x1fdd   : > { %v10757_v61 = vpop.eup %10756  ;;  %10776 = vtanh.f32 %v9983_v57 }
0x1fde   : > { %v10759_v6 = vpop.eup %10758  ;;  %10778 = vtanh.f32 %v9984_v30 }
0x1fdf   : > { %v10761_v45 = vpop.eup %10760  ;;  %v6795_v62 = vsub.f32 %v10759_v6, %v10757_v61 }
0x1fe0   : > { %v10763_v14 = vpop.eup %10762  ;;  %v6789_v10 = vmul.f32 0.5, %v10761_v45 }
0x1fe1   : > { %v10765_v29 = vpop.eup %10764 }
0x1fe2   : > { %v10767_v20 = vpop.eup %10766  ;;  %v6787_v5 = vmul.f32 0.5, %v10765_v29  ;;  %v6793_v52 = vadd.f32 0.5, %v6789_v10 }
0x1fe3   : > { %v10769_v23 = vpop.eup %10768  ;;  %v6796_v54 = vsub.f32 %v10767_v20, %v10763_v14  ;;  %v14865_v20 = vld [vmem:[#allocation3 + $0x8] ss:$36 sps:$4 sm:$0xff]  }
0x1fe4   : > { %v10771_v43 = vpop.eup %10770  ;;  %v6791_v11 = vadd.f32 0.5, %v6787_v5  ;;  %v6790_v59 = vmul.f32 0.5, %v10769_v23  ;;  %v14870_v5 = vld [vmem:[#allocation3 + $0x50] ss:$36 sps:$4 sm:$0xff]   ;;  %v14873_v23 = vld [vmem:[#allocation3 + $0x1c] ss:$36 sps:$4 sm:$0xff]  }
0x1fe5   : > { %v10773_v21 = vpop.eup %10772  ;;  %v6788_v19 = vmul.f32 0.5, %v10771_v43 }
0x1fe6   : > { %v10775_v40 = vpop.eup %10774  ;;  %v6799_v42 = vmul.f32 %v6795_v62, %v6791_v11  ;;  %v6794_v31 = vadd.f32 0.5, %v6790_v59 }
0x1fe7   : > { %v10777_v55 = vpop.eup %10776  ;;  %v6792_v24 = vadd.f32 0.5, %v6788_v19  ;;  %v6797_v60 = vsub.f32 %v10775_v40, %v10773_v21  ;;  %v16322_v40 = vld [vmem:[#allocation89_spill] sm:$0xff] }
0x1fe8   : > { %v10779_v39 = vpop.eup %10778  ;;  %v6803_v34 = vadd.f32 %v10757_v61, %v6799_v42  ;;  %v959_v42 = vadd.f32 %v16322_v40, %v11989_v3 }
0x1fe9   : > { %v6800_v18 = vmul.f32 %v6796_v54, %v6792_v24  ;;  %v6798_v47 = vsub.f32 %v10779_v39, %v10777_v55  ;;  %v6801_v33 = vmul.f32 %v6797_v60, %v6793_v52  ;;  %v16323_v52 = vld [vmem:[#allocation81_spill] sm:$0xff] }
0x1fea   : > { %v947_v24 = vadd.f32 %v16323_v52, %v11989_v3 }
0x1feb   : > { %v6804_v0 = vadd.f32 %v10763_v14, %v6800_v18  ;;  %v6802_v2 = vmul.f32 %v6798_v47, %v6794_v31  ;;  %v6805_v8 = vadd.f32 %v10773_v21, %v6801_v33 }
0x1fed   : > { %v6807_v57 = vpack.c.bf16 %v6804_v0, %v6803_v34  ;;  %v6806_v28 = vadd.f32 %v10777_v55, %v6802_v2  ;;  %v16324_v34 = vld [vmem:[#allocation93_spill] sm:$0xff] }
0x1fee   : > { %v965_v31 = vadd.f32 %v16324_v34, %v11989_v3  ;;  %v16325_v0 = vld [vmem:[#allocation85_spill] sm:$0xff] }
0x1fef   : > { %9795 = vmatprep.mubr.bf16.mxu0 %v6807_v57  ;;  %v6808_v30 = vpack.c.bf16 %v6806_v28, %v6805_v8  ;;  %v953_v2 = vadd.f32 %v16325_v0, %v11989_v3 }
0x1ff0   : > { %v9263_v6 = vpop.f32.mrb[244].mxu1 }
0x1ff1   : > { %v9264_v45 = vpop.f32.mrb[245].mxu1  ;;  %9796 = vmatmul.mubr.bf16.vlgmr.msra.gmra.mrb[248].mxu0 %v6808_v30 }
0x1ff2   : > { %v9265_v62 = vadd.f32 %v9264_v45, %v9263_v6  ;;  %v9266_v29 = vpop.f32.mrb[246].mxu1  ;;  %7059 = vmatpush1.bf16.msra.mxu0 %v14865_v20  ;;  %7090 = vmatprep.mubr.bf16.mxu0 %v15957_v56 }
0x1ff3   : > { %v9267_v61 = vpop.f32.mrb[247].mxu1  ;;  %7060 = vmatprep.subr.bf16.mxu0 %v14421_v1 }
0x1ff4   : > { %v9268_v14 = vadd.f32 %v9267_v61, %v9266_v29 }
0x1ff6   : > { %7061 = vmatpush1.bf16.msra.mxu0 %v14870_v5 }
0x1ff7   : > { %7164 = vmatprep.subr.bf16.mxu0 %v14873_v23 }
0x1ff8   : > { %v9269_v10 = vpop.f32.mrb[248].mxu1 }
0x1ff9   : > { %v9270_v54 = vpop.f32.mrb[249].mxu1 }
0x1ffa   : > { %v9271_v43 = vadd.f32 %v9270_v54, %v9269_v10  ;;  %v9272_v11 = vpop.f32.mrb[250].mxu1 }
0x1ffb   : > { %v9273_v21 = vpop.f32.mrb[251].mxu1 }
0x1ffc   : > { %v9274_v59 = vadd.f32 %v9273_v21, %v9272_v11 }
0x20c4   : > { %v9797_v19 = vpop.f32.mrb[248].mxu0 }
0x20c5   : > { %v6917_v1 = vadd.f32 %v9797_v19, %v9271_v43  ;;  %v6908_v55 = vpop.f32.mrb[249].mxu0 }
0x20c6   : > { %v6909_v60 = vadd.f32 %v9265_v62, %v6908_v55  ;;  %v9798_v39 = vpop.f32.mrb[250].mxu0 }
0x20c7   : > { %v6925_v18 = vadd.f32 %v6917_v1, %v959_v42  ;;  %v6920_v47 = vadd.f32 %v9798_v39, %v9274_v59  ;;  %v6911_v33 = vpop.f32.mrb[251].mxu0 }
0x20c8   : > { %v6923_v8 = vadd.f32 %v6909_v60, %v947_v24  ;;  %v6912_v57 = vadd.f32 %v9268_v14, %v6911_v33 }
0x20c9   : > { %10780 = vtanh.f32 %v6925_v18  ;;  %v6926_v28 = vadd.f32 %v6920_v47, %v965_v31 }
0x20ca   : > { %10782 = vtanh.f32 %v6923_v8  ;;  %v6924_v30 = vadd.f32 %v6912_v57, %v953_v2 }
0x20cb   : > { %10784 = vtanh.f32 %v6926_v28 }
0x20cc   : > { %10786 = vtanh.f32 %v6924_v30 }
0x20d3   : > { %v10781_v6 = vpop.eup %10780 }
0x20d4   : > { %v10783_v45 = vpop.eup %10782  ;;  %v6933_v43 = vmul.f32 0.5, %v10781_v6 }
0x20d5   : > { %v10785_v62 = vpop.eup %10784  ;;  %v6931_v29 = vmul.f32 0.5, %v10783_v45 }
0x20d6   : > { %v10787_v61 = vpop.eup %10786  ;;  %v6934_v21 = vmul.f32 0.5, %v10785_v62  ;;  %v6937_v14 = vadd.f32 0.5, %v6933_v43  ;;  %v16326_v43 = vld [vmem:[#allocation14_spill] sm:$0xff] }
0x20d7   : > { %v6935_v10 = vadd.f32 0.5, %v6931_v29  ;;  %v6932_v54 = vmul.f32 0.5, %v10787_v61 }
0x20d8   : > { %v6938_v59 = vadd.f32 0.5, %v6934_v21  ;;  %v6941_v0 = vmul.f32 %v6937_v14, %v14451_v25  ;;  %v16327_v21 = vld [vmem:[#allocation15_spill] sm:$0xff] }
0x20d9   : > { %6947 = vrot.lane.b32.xlu0 %v6935_v10, %s11338_s21  ;;  %v6936_v11 = vadd.f32 0.5, %v6932_v54  ;;  %v6939_v39 = vmul.f32 %v6935_v10, %v14443_v26 }
0x20da   : > { %v6942_v57 = vmul.f32 %v6938_v59, %v14455_v9 }
0x20db   : > { %6949 = vrot.lane.b32.xlu1 %v6936_v11, %s11338_s21  ;;  %v6940_v18 = vmul.f32 %v6936_v11, %v14447_v37 }
0x20dd   : > { %6951 = vrot.lane.b32.xlu0 %v6937_v14, %s11338_s21  ;;  %v16328_v14 = vld [vmem:[#allocation18_spill] sm:$0xff] }
0x20df   : > { %6953 = vrot.lane.b32.xlu1 %v6938_v59, %s11338_s21  ;;  %v16334_v59 = vld [vmem:[#allocation35_spill] sm:$0xff] }
0x214b   : > { %v6948_v19 = vpop.permute.xlu0 %6947 }
0x214c   : > { %v6959_v40 = vmul.f32 %v10783_v45, %v6948_v19 }
0x214d   : > { %v6950_v42 = vpop.permute.xlu1 %6949 }
0x214e   : > { %v6960_v1 = vmul.f32 %v10787_v61, %v6950_v42  ;;  %6967 = vrot.lane.b32.xlu0 %v6959_v40, %s11339_s18  ;;  %v16336_v40 = vld [vmem:[#allocation36_spill] sm:$0xff] }
0x214f   : > { %v6952_v55 = vpop.permute.xlu0 %6951 }
0x2150   : > { %v6961_v52 = vmul.f32 %v10781_v6, %v6952_v55  ;;  %6969 = vrot.lane.b32.xlu1 %v6960_v1, %s11339_s18  ;;  %v16338_v1 = vld [vmem:[#allocation42_spill] sm:$0xff] }
0x2151   : > { %v6954_v24 = vpop.permute.xlu1 %6953 }
0x2152   : > { %v6962_v60 = vmul.f32 %v10785_v62, %v6954_v24  ;;  %6971 = vrot.lane.b32.xlu0 %v6961_v52, %s11339_s18  ;;  %v16340_v52 = vld [vmem:[#allocation43_spill] sm:$0xff] }
0x2154   : > { %6973 = vrot.lane.b32.xlu1 %v6962_v60, %s11339_s18  ;;  %v16342_v60 = vld [vmem:[#allocation44_spill] sm:$0xff] }
0x21c0   : > { %v6968_v34 = vpop.permute.xlu0 %6967 }
0x21c1   : > { %v14893_v31 = vadd.f32 %v6968_v34, %v6939_v39  ;;  %v16343_v39 = vld [vmem:[#allocation47_spill] sm:$0xff]  ;;  %v16344_v34 = vld [vmem:[#allocation50_spill] sm:$0xff] }
0x21c2   : > { %v6970_v47 = vpop.permute.xlu1 %6969 }
0x21c3   : > { %10788 = vtanh.f32 %v14893_v31  ;;  %v14897_v33 = vadd.f32 %v6970_v47, %v6940_v18  ;;  %v16345_v18 = vld [vmem:[#allocation48_spill] sm:$0xff] }
0x21c4   : > { %v6972_v2 = vpop.permute.xlu0 %6971  ;;  %v16346_v47 = vld [vmem:[#allocation112_spill] sm:$0xff] }
0x21c5   : > { %10790 = vtanh.f32 %v14897_v33  ;;  %v14901_v8 = vadd.f32 %v6972_v2, %v6941_v0  ;;  %v16347_v0 = vld [vmem:[#allocation113_spill] sm:$0xff]  ;;  %v16348_v2 = vld [vmem:[#allocation114_spill] sm:$0xff] }
0x21c6   : > { %v6974_v26 = vpop.permute.xlu1 %6973 }
0x21c7   : > { %10792 = vtanh.f32 %v14901_v8  ;;  %v14905_v28 = vadd.f32 %v6974_v26, %v6942_v57  ;;  %v16349_v57 = vld [vmem:[#allocation115_spill] sm:$0xff]  ;;  %v14965_v26 = vld [vmem:[%s15591_s7 + $0x4] ss:$12 sps:$4 sm:$0xff]  }
0x21c9   : > { %10794 = vtanh.f32 %v14905_v28 }
0x21cd   : > { %v10789_v37 = vpop.eup %10788 }
0x21ce   : > { %v6987_v6 = vmul.f32 %v10789_v37, %v6948_v19  ;;  %v16335_v19 = vld [vmem:[#allocation38_spill] sm:$0xff]  ;;  %v16350_v37 = vld [vmem:[#allocation116_spill] sm:$0xff] }
0x21cf   : > { %v10791_v30 = vpop.eup %10790 }
0x21d0   : > { %v6988_v45 = vmul.f32 %v10791_v30, %v6950_v42  ;;  %v16337_v42 = vld [vmem:[#allocation39_spill] sm:$0xff]  ;;  %v16351_v30 = vld [vmem:[#allocation117_spill] sm:$0xff] }
0x21d1   : > { %v10793_v62 = vpop.eup %10792 }
0x21d2   : > { %v6991_v25 = vpack.c.bf16 %v6988_v45, %v6987_v6  ;;  %v6989_v61 = vmul.f32 %v10793_v62, %v6952_v55  ;;  %v16339_v55 = vld [vmem:[#allocation40_spill] sm:$0xff]  ;;  %v16352_v6 = vld [vmem:[#allocation119_spill] sm:$0xff]  ;;  %v14978_v45 = vld [vmem:[%s15591_s7 + $0x8] ss:$12 sps:$4 sm:$0xff]  }
0x21d3   : > { %v10795_v29 = vpop.eup %10794  ;;  %v16353_v62 = vld [vmem:[#allocation8_spill] sm:$0xff] }
0x21d4   : > { %6995 = vrot.lane.b32.xlu0 %v6991_v25, %s11339_s18  ;;  %v6990_v10 = vmul.f32 %v10795_v29, %v6954_v24  ;;  %v16341_v24 = vld [vmem:[#allocation46_spill] sm:$0xff] }
0x21d5   : > { %v16354_v25 = vld [vmem:[#allocation86_spill] sm:$0xff] }
0x21d6   : > { %v6992_v54 = vpack.c.bf16 %v6990_v10, %v6989_v61  ;;  %v1206_v29 = vadd.f32 %v16354_v25, %v16353_v62  ;;  %v16355_v61 = vld [vmem:[#allocation6_spill] sm:$0xff]  ;;  %v16356_v10 = vld [vmem:[#allocation83_spill] sm:$0xff] }
0x21d8   : > { %6997 = vrot.lane.b32.xlu1 %v6992_v54, %s11339_s18  ;;  %v949_v54 = vadd.f32 %v16356_v10, %v16355_v61  ;;  %v16365_v10 = vld [vmem:[#allocation98_spill] sm:$0xff] }
0x2246   : > { %v6996_v9 = vpop.permute.xlu0 %6995 }
0x2247   : > { %8852 = vmatmul.mubr.msk.bf16.vlgmr.msra.gmra.mrb[252].mxu1 %vm1804_vm2, %v6996_v9  ;;  %8854 = vmatmul.mubr.msk.bf16.vlgmr.msra.gmra.mrb[252].mxu0 %vm1804_vm2, %v6996_v9 }
0x2248   : > { %7047 = vmatprep.mubr.bf16.mxu1 %v15957_v56  ;;  %7100 = vmatprep.mubr.bf16.mxu0 %v15957_v56 }
0x2249   : > { %7112 = vmatpush1.bf16.msra.mxu1 %v14464_v41  ;;  %7165 = vmatpush1.bf16.msra.mxu0 %v14467_v58  ;;  %v16329_v41 = vld [vmem:[#allocation16_spill] sm:$0xff]  ;;  %v16330_v58 = vld [vmem:[#allocation41_spill] sm:$0xff] }
0x224a   : > { %7113 = vmatprep.subr.bf16.mxu1 %v14470_v49  ;;  %7166 = vmatprep.subr.bf16.mxu0 %v14473_v4  ;;  %v6998_v11 = vpop.permute.xlu1 %6997  ;;  %v16331_v49 = vld [vmem:[#allocation33_spill] sm:$0xff] }
0x224b   : > { %v16332_v4 = vld [vmem:[#allocation45_spill] sm:$0xff] }
0x224d   : > { %7114 = vmatpush1.bf16.msra.mxu1 %v14476_v53  ;;  %7167 = vmatpush1.bf16.msra.mxu0 %v16326_v43  ;;  %v16333_v53 = vld [vmem:[#allocation37_spill] sm:$0xff]  ;;  %v16358_v43 = vld [vmem:[#allocation84_spill] sm:$0xff] }
0x224e   : > { %9799 = vmatprep.subr.bf16.mxu1 %v16327_v21  ;;  %7324 = vmatprep.subr.bf16.mxu0 %v16328_v14 }
0x224f   : > { %8853 = vmatmul.mubr.msk.bf16.gmra.mrb[0].mxu1 %vm1804_vm2, %v6998_v11  ;;  %8855 = vmatmul.mubr.msk.bf16.gmra.mrb[0].mxu0 %vm1804_vm2, %v6998_v11 }
0x2250   : > { %7143 = vmatprep.mubr.bf16.mxu1 %v15957_v56  ;;  %7196 = vmatprep.mubr.bf16.mxu0 %v15957_v56 }
0x2257   : > { %8856 = vmatmul.mubr.msk.bf16.vlgmr.msra.gmra.mrb[4].mxu1 %vm1804_vm2, %v6996_v9  ;;  %8858 = vmatmul.mubr.msk.bf16.vlgmr.msra.gmra.mrb[4].mxu0 %vm1804_vm2, %v6996_v9 }
0x2258   : > { %7153 = vmatprep.mubr.bf16.mxu1 %v15957_v56  ;;  %7206 = vmatprep.mubr.bf16.mxu0 %v15957_v56 }
0x2259   : > { %9800 = vmatpush3.bf16.msra.mxu1 %v16327_v21  ;;  %7325 = vmatpush1.bf16.msra.mxu0 %v16329_v41  ;;  %v16359_v41 = vld [vmem:[#allocation90_spill] sm:$0xff] }
0x225a   : > { %9801 = vmatprep.subr.bf16.mxu1 %v16330_v58  ;;  %7326 = vmatprep.subr.bf16.mxu0 %v16331_v49 }
0x225d   : > { %9802 = vmatpush3.bf16.msra.mxu1 %v16330_v58  ;;  %7327 = vmatpush1.bf16.msra.mxu0 %v16332_v4  ;;  %v1212_v58 = vadd.f32 %v16359_v41, %v16353_v62 }
0x225e   : > { %7328 = vmatprep.subr.bf16.mxu0 %v16333_v53  ;;  %9807 = vmatprep.subr.bf16.mxu1 %v16334_v59 }
0x225f   : > { %8857 = vmatmul.mubr.msk.bf16.gmra.mrb[8].mxu1 %vm1804_vm2, %v6998_v11  ;;  %8859 = vmatmul.mubr.msk.bf16.gmra.mrb[8].mxu0 %vm1804_vm2, %v6998_v11 }
0x2260   : > { %9803 = vmatprep.mubr.msk.bf16.mxu1 %vm1804_vm2, %v6996_v9  ;;  %7356 = vmatprep.mubr.bf16.mxu0 %v15957_v56  ;;  %v16357_v9 = vld [vmem:[#allocation7_spill] sm:$0xff] }
0x2261   : > { %7329 = vmatpush1.bf16.msra.mxu0 %v16335_v19  ;;  %v16360_v19 = vld [vmem:[#allocation87_spill] sm:$0xff] }
0x2262   : > { %7330 = vmatprep.subr.bf16.mxu0 %v16336_v40  ;;  %v955_v40 = vadd.f32 %v16360_v19, %v16355_v61 }
0x2265   : > { %7331 = vmatpush1.bf16.msra.mxu0 %v16337_v42  ;;  %v16361_v42 = vld [vmem:[#allocation88_spill] sm:$0xff] }
0x2266   : > { %7332 = vmatprep.subr.bf16.mxu0 %v16338_v1  ;;  %v1210_v1 = vadd.f32 %v16361_v42, %v16357_v9 }
0x2267   : > { %9804 = vmatmul.mubr.msk.bf16.vlgmr.msra.gmra.mrb[12].mxu1 %vm1804_vm2, %v6998_v11  ;;  %v1204_v11 = vadd.f32 %v16358_v43, %v16357_v9  ;;  %v16366_v43 = vld [vmem:[#allocation95_spill] sm:$0xff] }
0x2268   : > { %9808 = vmatpush3.bf16.msra.mxu1 %v16334_v59 }
0x2269   : > { %9809 = vmatprep.subr.bf16.mxu1 %v16339_v55  ;;  %7333 = vmatpush1.bf16.msra.mxu0 %v16340_v52 }
0x226a   : > { %7334 = vmatprep.subr.bf16.mxu0 %v16341_v24 }
0x226c   : > { %9810 = vmatpush3.bf16.msra.mxu1 %v16339_v55 }
0x226d   : > { %9811 = vmatprep.subr.bf16.mxu1 %v16342_v60  ;;  %7335 = vmatpush1.bf16.msra.mxu0 %v16343_v39 }
0x226e   : > { %7336 = vmatprep.subr.bf16.mxu0 %v16344_v34 }
0x2270   : > { %9812 = vmatpush3.bf16.msra.mxu1 %v16342_v60 }
0x2271   : > { %9813 = vmatprep.subr.bf16.mxu1 %v16345_v18  ;;  %7337 = vmatpush1.bf16.msra.mxu0 %v16346_v47 }
0x2272   : > { %7338 = vmatprep.subr.bf16.mxu0 %v16347_v0  ;;  %v16362_v0 = vld [vmem:[#allocation94_spill] sm:$0xff] }
0x2274   : > { %9814 = vmatpush3.bf16.msra.mxu1 %v16345_v18 }
0x2275   : > { %9815 = vmatprep.subr.bf16.mxu1 %v16348_v2  ;;  %7339 = vmatpush1.bf16.msra.mxu0 %v16349_v57  ;;  %v16363_v57 = vld [vmem:[#allocation91_spill] sm:$0xff] }
0x2276   : > { %7484 = vmatprep.subr.bf16.mxu0 %v14965_v26 }
0x2278   : > { %9816 = vmatpush3.bf16.msra.mxu1 %v16348_v2  ;;  %v1218_v2 = vadd.f32 %v16362_v0, %v16353_v62 }
0x2279   : > { %9817 = vmatprep.subr.bf16.mxu1 %v16350_v37 }
0x227c   : > { %9818 = vmatpush3.bf16.msra.mxu1 %v16350_v37  ;;  %v961_v37 = vadd.f32 %v16363_v57, %v16355_v61 }
0x227d   : > { %9819 = vmatprep.subr.bf16.mxu1 %v16351_v30 }
0x2280   : > { %9820 = vmatpush3.bf16.msra.mxu1 %v16351_v30  ;;  %v16364_v30 = vld [vmem:[#allocation92_spill] sm:$0xff] }
0x2281   : > { %9821 = vmatprep.subr.bf16.mxu1 %v16352_v6 }
0x2284   : > { %9822 = vmatpush3.bf16.msra.mxu1 %v16352_v6  ;;  %v1216_v6 = vadd.f32 %v16364_v30, %v16357_v9 }
0x2285   : > { %9827 = vmatprep.subr.bf16.mxu1 %v14978_v45 }
0x231a   : > { %v7039_v21 = vpop.f32.mrb[252].mxu1  ;;  %v7092_v14 = vpop.f32.mrb[252].mxu0 }
0x231b   : > { %v7266_v49 = vadd.f32 %v7039_v21, %v949_v54  ;;  %v7268_v4 = vadd.f32 %v7092_v14, %v1206_v29  ;;  %v7041_v53 = vpop.f32.mrb[253].mxu1  ;;  %v14989_v59 = vpop.f32.mrb[253].mxu0  ;;  %v1224_v54 = vadd.f32 %v16365_v10, %v16353_v62 }
0x231c   : > { %v7267_v55 = vadd.f32 %v7041_v53, %v1204_v11  ;;  %v7043_v52 = vpop.f32.mrb[254].mxu1  ;;  %v7096_v24 = vpop.f32.mrb[254].mxu0  ;;  %v967_v11 = vadd.f32 %v16366_v43, %v16355_v61 }
0x231d   : > { %10796 = vtanh.f32 %v7266_v49  ;;  %v7269_v60 = vadd.f32 %v7043_v52, %v955_v40  ;;  %v7271_v39 = vadd.f32 %v7096_v24, %v1212_v58  ;;  %v7045_v34 = vpop.f32.mrb[255].mxu1  ;;  %v14995_v18 = vpop.f32.mrb[255].mxu0  ;;  %v16367_v49 = vld [vmem:[#allocation96_spill] sm:$0xff] }
0x231e   : > { %10798 = vtanh.f32 %v7268_v4  ;;  %v7270_v47 = vadd.f32 %v7045_v34, %v1210_v1  ;;  %v1222_v4 = vadd.f32 %v16367_v49, %v16357_v9 }
0x231f   : > { %10800 = vtanh.f32 %v7267_v55 }
0x2320   : > { %10802 = vtanh.f32 %v7269_v60 }
0x2321   : > { %10804 = vtanh.f32 %v7271_v39 }
0x2322   : > { %10806 = vtanh.f32 %v7270_v47  ;;  %v7049_v25 = vpop.f32.mrb[0].mxu1  ;;  %v7102_v29 = vpop.f32.mrb[0].mxu0 }
0x2323   : > { %v7272_v21 = vadd.f32 %v7049_v25, %v961_v37  ;;  %v7274_v14 = vadd.f32 %v7102_v29, %v1218_v2  ;;  %v7051_v41 = vpop.f32.mrb[1].mxu1  ;;  %v15007_v58 = vpop.f32.mrb[1].mxu0 }
0x2324   : > { %v7273_v53 = vadd.f32 %v7051_v41, %v1216_v6  ;;  %v7053_v19 = vpop.f32.mrb[2].mxu1  ;;  %v7106_v40 = vpop.f32.mrb[2].mxu0 }
0x2325   : > { %10808 = vtanh.f32 %v7272_v21  ;;  %v7275_v42 = vadd.f32 %v7053_v19, %v967_v11  ;;  %v7277_v1 = vadd.f32 %v7106_v40, %v1224_v54  ;;  %v7055_v55 = vpop.f32.mrb[3].mxu1  ;;  %v15011_v52 = vpop.f32.mrb[3].mxu0 }
0x2326   : > { %10810 = vtanh.f32 %v7274_v14  ;;  %v7276_v24 = vadd.f32 %v7055_v55, %v1222_v4 }
0x2327   : > { %v10797_v60 = vpop.eup %10796  ;;  %10812 = vtanh.f32 %v7273_v53 }
0x2328   : > { %v10799_v39 = vpop.eup %10798  ;;  %10814 = vtanh.f32 %v7275_v42 }
0x2329   : > { %v10801_v34 = vpop.eup %10800  ;;  %v7290_v47 = vmul.f32 0.5, %v10799_v39  ;;  %10816 = vtanh.f32 %v7277_v1 }
0x232a   : > { %v10803_v0 = vpop.eup %10802  ;;  %v7298_v2 = vsub.f32 %v10801_v34, %v10797_v60  ;;  %10818 = vtanh.f32 %v7276_v24  ;;  %v15013_v57 = vpop.f32.mrb[4].mxu1 }
0x232b   : > { %v10805_v37 = vpop.eup %10804  ;;  %v7294_v30 = vadd.f32 0.5, %v7290_v47  ;;  %v15015_v6 = vpop.f32.mrb[5].mxu1 }
0x232c   : > { %v10807_v25 = vpop.eup %10806  ;;  %v7291_v29 = vmul.f32 0.5, %v10805_v37  ;;  %v15017_v10 = vpop.f32.mrb[6].mxu1 }
0x232d   : > { %v7302_v54 = vmul.f32 %v7298_v2, %v7294_v30  ;;  %v7299_v43 = vsub.f32 %v10807_v25, %v10803_v0  ;;  %v15019_v11 = vpop.f32.mrb[7].mxu1 }
0x232e   : > { %v7295_v21 = vadd.f32 0.5, %v7291_v29 }
0x232f   : > { %v10809_v14 = vpop.eup %10808  ;;  %v7306_v41 = vadd.f32 %v10797_v60, %v7302_v54 }
0x2330   : > { %v10811_v49 = vpop.eup %10810  ;;  %v7303_v4 = vmul.f32 %v7299_v43, %v7295_v21 }
0x2331   : > { %v10813_v53 = vpop.eup %10812  ;;  %v7292_v19 = vmul.f32 0.5, %v10811_v49  ;;  %v15042_v49 = vld [vmem:[%s15591_s7 + $0x34] ss:$12 sps:$4 sm:$0xff]  }
0x2332   : > { %v10815_v40 = vpop.eup %10814  ;;  %v7307_v42 = vadd.f32 %v10803_v0, %v7303_v4  ;;  %v7300_v1 = vsub.f32 %v10813_v53, %v10809_v14  ;;  %v15021_v55 = vpop.f32.mrb[8].mxu1  ;;  %v15087_v4 = vld [vmem:[%s15591_s7 + $0x7c] ss:$12 sps:$4 sm:$0xff]  }
0x2333   : > { %v10817_v24 = vpop.eup %10816  ;;  %v7296_v39 = vadd.f32 0.5, %v7292_v19  ;;  %v15023_v34 = vpop.f32.mrb[9].mxu1  ;;  %v15100_v53 = vld [vmem:[%s15591_s7 + $0x68] ss:$12 sps:$4 sm:$0xff]  }
0x2334   : > { %v10819_v47 = vpop.eup %10818  ;;  %v15025_v2 = vpack.c.bf16 %v7307_v42, %v7306_v41  ;;  %v7293_v37 = vmul.f32 0.5, %v10817_v24  ;;  %v15027_v30 = vpop.f32.mrb[10].mxu1  ;;  %v15106_v19 = vld [vmem:[%s15591_s7 + $0x94] ss:$12 sps:$4 sm:$0xff]   ;;  %v15125_v42 = vld [vmem:[%s15591_s7 + $0xac] ss:$12 sps:$4 sm:$0xff]  }
0x2335   : > { %v7304_v60 = vmul.f32 %v7300_v1, %v7296_v39  ;;  %v7301_v25 = vsub.f32 %v10819_v47, %v10815_v40  ;;  %v15029_v29 = vpop.f32.mrb[11].mxu1  ;;  %16370 = vst [vmem:[#allocation122_spill] sm:$0xff] %v15125_v42  ;;  %v15132_v1 = vld [vmem:[%s15591_s7 + $0xa8] ss:$12 sps:$4 sm:$0xff]   ;;  %v15138_v24 = vld [vmem:[%s15591_s7 + $0x98] ss:$12 sps:$4 sm:$0xff]  }
0x2336   : > { %v7297_v54 = vadd.f32 0.5, %v7293_v37  ;;  %7357 = vmatmul.mubr.bf16.vlgmr.msra.gmra.mrb[12].mxu0 %v15025_v2  ;;  %9823 = vmatprep.mubr.bf16.mxu1 %v15025_v2  ;;  %16371 = vst [vmem:[#allocation123_spill] sm:$0xff] %v15132_v1  ;;  %16372 = vst [vmem:[#allocation121_spill] sm:$0xff] %v15138_v24  ;;  %v11227_v39 = vld [vmem:[%s15587_s3 + $0x40] sm:$0xff]   ;;  %v15148_v47 = vld [vmem:[%s15591_s7 + $0xb0] ss:$12 sps:$4 sm:$0xff]  }
0x2337   : > { %v7308_v0 = vadd.f32 %v10809_v14, %v7304_v60  ;;  %7366 = vmatprep.mubr.bf16.mxu0 %v15957_v56  ;;  %7485 = vmatpush1.bf16.msra.mxu0 %v14713_v63  ;;  %v15051_v63 = vld [vmem:[%s15591_s7 + $0x30] ss:$12 sps:$4 sm:$0xff]   ;;  %16373 = vst [vmem:[#allocation125_spill] sm:$0xff] %v15148_v47  ;;  %v15155_v37 = vld [vmem:[%s15587_s3 + $0x80] sm:$0xff]   ;;  %v7310_v60 = vadd.f32 %v14989_v59, %v16304_v48 }
0x2338   : > { %v7305_v43 = vmul.f32 %v7301_v25, %v7297_v54  ;;  %7486 = vmatprep.subr.bf16.mxu0 %v14719_v50  ;;  %v15058_v50 = vld [vmem:[%s15591_s7 + $0x4c] ss:$12 sps:$4 sm:$0xff]   ;;  %v15073_v14 = vld [vmem:[%s15591_s7 + $0x64] ss:$12 sps:$4 sm:$0xff]   ;;  %v7311_v25 = vadd.f32 %v15013_v57, %v16305_v16  ;;  %v7316_v59 = vadd.f32 %v15007_v58, %v16304_v48  ;;  %v7312_v57 = vadd.f32 %v15015_v6, %v16306_v38 }
0x2339   : > { %v7320_v6 = vadd.f32 %v15027_v30, %v16305_v16 }
0x233a   : > { %v7309_v21 = vadd.f32 %v10815_v40, %v7305_v43  ;;  %v15119_v40 = vld [vmem:[%s15591_s7 + $0x80] ss:$12 sps:$4 sm:$0xff]  }
0x233b   : > { %7487 = vmatpush1.bf16.msra.mxu0 %v14725_v7  ;;  %v15066_v7 = vld [vmem:[%s15591_s7 + $0x48] ss:$12 sps:$4 sm:$0xff]   ;;  %16369 = vst [vmem:[#allocation118_spill] sm:$0xff] %v15119_v40 }
0x233c   : > { %v15037_v41 = vpack.c.bf16 %v7309_v21, %v7308_v0  ;;  %7488 = vmatprep.subr.bf16.mxu0 %v15042_v49  ;;  %v7313_v0 = vadd.f32 %v14995_v18, %v16304_v48  ;;  %v7318_v18 = vadd.f32 %v15023_v34, %v16306_v38  ;;  %v7315_v34 = vadd.f32 %v15019_v11, %v16306_v38 }
0x233e   : > { %7367 = vmatmul.mubr.bf16.gmra.mrb[16].mxu0 %v15037_v41  ;;  %9824 = vmatmul.mubr.bf16.vlgmr.msra.gmra.mrb[16].mxu1 %v15037_v41 }
0x233f   : > { %9828 = vmatpush3.bf16.msra.mxu1 %v14978_v45  ;;  %7489 = vmatpush1.bf16.msra.mxu0 %v15051_v63 }
0x2340   : > { %9829 = vmatprep.subr.bf16.mxu1 %v14738_v46  ;;  %7490 = vmatprep.subr.bf16.mxu0 %v15058_v50 }
0x2341   : > { %7516 = vmatprep.mubr.bf16.mxu0 %v15957_v56 }
0x2343   : > { %9830 = vmatpush3.bf16.msra.mxu1 %v14738_v46  ;;  %7491 = vmatpush1.bf16.msra.mxu0 %v15066_v7  ;;  %v15080_v46 = vld [vmem:[%s15591_s7 + $0x60] ss:$12 sps:$4 sm:$0xff]  }
0x2344   : > { %9831 = vmatprep.subr.bf16.mxu1 %v14748_v22  ;;  %7492 = vmatprep.subr.bf16.mxu0 %v15073_v14 }
0x2347   : > { %9832 = vmatpush3.bf16.msra.mxu1 %v14748_v22  ;;  %7493 = vmatpush1.bf16.msra.mxu0 %v15080_v46  ;;  %v15094_v22 = vld [vmem:[%s15591_s7 + $0x78] ss:$12 sps:$4 sm:$0xff]  }
0x2348   : > { %9833 = vmatprep.subr.bf16.mxu1 %v14757_v51  ;;  %7494 = vmatprep.subr.bf16.mxu0 %v15087_v4 }
0x234b   : > { %9834 = vmatpush3.bf16.msra.mxu1 %v14757_v51  ;;  %7495 = vmatpush1.bf16.msra.mxu0 %v15094_v22  ;;  %v15113_v51 = vld [vmem:[%s15591_s7 + $0x90] ss:$12 sps:$4 sm:$0xff]  }
0x234c   : > { %9835 = vmatprep.subr.bf16.mxu1 %v15100_v53  ;;  %7496 = vmatprep.subr.bf16.mxu0 %v15106_v19  ;;  %16368 = vst [vmem:[#allocation120_spill] sm:$0xff] %v15113_v51 }
0x234f   : > { %9836 = vmatpush3.bf16.msra.mxu1 %v15100_v53  ;;  %7497 = vmatpush1.bf16.msra.mxu0 %v15113_v51 }
0x2350   : > { %9837 = vmatprep.subr.bf16.mxu1 %v15119_v40  ;;  %7498 = vmatprep.subr.bf16.mxu0 %v15125_v42 }
0x2353   : > { %9838 = vmatpush3.bf16.msra.mxu1 %v15119_v40  ;;  %7499 = vmatpush1.bf16.msra.mxu0 %v15132_v1 }
0x2354   : > { %9839 = vmatprep.subr.bf16.mxu1 %v15138_v24  ;;  %9309 = vmatprep.subr.bf16.mxu0 %v11227_v39  ;;  %v7314_v39 = vadd.f32 %v15017_v10, %v16305_v16  ;;  %v7317_v10 = vadd.f32 %v15021_v55, %v16305_v16 }
0x2357   : > { %9840 = vmatpush3.bf16.msra.mxu1 %v15138_v24 }
0x2358   : > { %9841 = vmatprep.subr.bf16.mxu1 %v15148_v47 }
0x235b   : > { %9842 = vmatpush3.bf16.msra.mxu1 %v15148_v47 }
0x235c   : > { %9847 = vmatprep.subr.bf16.mxu1 %v15155_v37 }
0x2409   : > { %v7358_v54 = vpop.f32.mrb[12].mxu0 }
0x240a   : > { %v7426_v43 = vadd.f32 %v7358_v54, %v7310_v60  ;;  %v7360_v21 = vpop.f32.mrb[13].mxu0 }
0x240b   : > { %v7427_v47 = vadd.f32 %v7360_v21, %v7311_v25  ;;  %v7362_v24 = vpop.f32.mrb[14].mxu0 }
0x240c   : > { %10820 = vtanh.f32 %v7426_v43  ;;  %v7429_v1 = vadd.f32 %v7362_v24, %v7313_v0  ;;  %v7364_v42 = vpop.f32.mrb[15].mxu0  ;;  %v7319_v24 = vadd.f32 %v15011_v52, %v16304_v48 }
0x240d   : > { %10822 = vtanh.f32 %v7427_v47  ;;  %v7430_v40 = vadd.f32 %v7364_v42, %v7314_v39 }
0x240e   : > { %10824 = vtanh.f32 %v7429_v1 }
0x240f   : > { %10826 = vtanh.f32 %v7430_v40  ;;  %v7321_v40 = vadd.f32 %v15029_v29, %v16306_v38 }
0x2411   : > { %v7368_v60 = vpop.f32.mrb[16].mxu0  ;;  %v9825_v25 = vpop.f32.mrb[16].mxu1 }
0x2412   : > { %v7432_v42 = vadd.f32 %v7368_v60, %v7316_v59  ;;  %v7434_v1 = vadd.f32 %v9825_v25, %v7318_v18  ;;  %v7370_v58 = vpop.f32.mrb[17].mxu0  ;;  %v7411_v47 = vpop.f32.mrb[17].mxu1 }
0x2413   : > { %v7433_v54 = vadd.f32 %v7370_v58, %v7317_v10  ;;  %v7428_v55 = vadd.f32 %v7411_v47, %v7312_v57  ;;  %v7372_v0 = vpop.f32.mrb[18].mxu0  ;;  %v9826_v43 = vpop.f32.mrb[18].mxu1 }
0x2414   : > { %10828 = vtanh.f32 %v7432_v42  ;;  %v7435_v21 = vadd.f32 %v7372_v0, %v7319_v24  ;;  %v7437_v52 = vadd.f32 %v9826_v43, %v7321_v40  ;;  %v7374_v39 = vpop.f32.mrb[19].mxu0  ;;  %v7414_v48 = vpop.f32.mrb[19].mxu1 }
0x2415   : > { %10830 = vtanh.f32 %v7434_v1  ;;  %v7436_v29 = vadd.f32 %v7374_v39, %v7320_v6  ;;  %v7431_v59 = vadd.f32 %v7414_v48, %v7315_v34 }
0x2416   : > { %v10821_v18 = vpop.eup %10820  ;;  %10832 = vtanh.f32 %v7433_v54 }
0x2417   : > { %v10823_v60 = vpop.eup %10822  ;;  %10834 = vtanh.f32 %v7428_v55 }
0x2418   : > { %v10825_v11 = vpop.eup %10824  ;;  %v7458_v25 = vsub.f32 %v10823_v60, %v10821_v18  ;;  %10836 = vtanh.f32 %v7435_v21 }
0x2419   : > { %v10827_v30 = vpop.eup %10826  ;;  %10838 = vtanh.f32 %v7437_v52 }
0x241a   : > { %10840 = vtanh.f32 %v7436_v29  ;;  %v7459_v57 = vsub.f32 %v10827_v30, %v10825_v11 }
0x241b   : > { %10842 = vtanh.f32 %v7431_v59 }
0x241e   : > { %v10829_v10 = vpop.eup %10828 }
0x241f   : > { %v10831_v24 = vpop.eup %10830 }
0x2420   : > { %v10833_v40 = vpop.eup %10832  ;;  %v7452_v42 = vmul.f32 0.5, %v10831_v24 }
0x2421   : > { %v10835_v58 = vpop.eup %10834  ;;  %v7460_v1 = vsub.f32 %v10833_v40, %v10829_v10 }
0x2422   : > { %v10837_v47 = vpop.eup %10836  ;;  %v7456_v48 = vadd.f32 0.5, %v7452_v42  ;;  %v7450_v34 = vmul.f32 0.5, %v10835_v58 }
0x2423   : > { %v10839_v6 = vpop.eup %10838 }
0x2424   : > { %v10841_v54 = vpop.eup %10840  ;;  %v7464_v55 = vmul.f32 %v7460_v1, %v7456_v48  ;;  %v7454_v0 = vadd.f32 0.5, %v7450_v34  ;;  %v7453_v43 = vmul.f32 0.5, %v10839_v6  ;;  %v11230_v1 = vld [vmem:[%s15587_s3] sm:$0xff]   ;;  %v11243_v6 = vld [vmem:[%s15587_s3 + $0x68] sm:$0xff]  }
0x2425   : > { %v10843_v21 = vpop.eup %10842  ;;  %v7461_v39 = vsub.f32 %v10841_v54, %v10837_v47  ;;  %v11241_v48 = vld [vmem:[%s15587_s3 + $0xa0] sm:$0xff]   ;;  %v11244_v54 = vld [vmem:[%s15587_s3 + $0xa8] sm:$0xff]  }
0x2426   : > { %v7468_v52 = vadd.f32 %v10829_v10, %v7464_v55  ;;  %v7462_v29 = vmul.f32 %v7458_v25, %v7454_v0  ;;  %v7457_v60 = vadd.f32 0.5, %v7453_v43  ;;  %v7451_v59 = vmul.f32 0.5, %v10843_v21  ;;  %v11237_v25 = vld [vmem:[%s15587_s3 + $0x58] sm:$0xff]   ;;  %v11242_v34 = vld [vmem:[%s15587_s3 + $0x20] sm:$0xff]   ;;  %v11245_v55 = vld [vmem:[%s15587_s3 + $0x28] sm:$0xff]  }
0x2427   : > { %v11239_v10 = vld [vmem:[%s15587_s3 + $0x18] sm:$0xff]   ;;  %v11246_v0 = vld [vmem:[%s15587_s3 + $0x70] sm:$0xff]  }
0x2428   : > { %v7466_v30 = vadd.f32 %v10821_v18, %v7462_v29  ;;  %v7465_v38 = vmul.f32 %v7461_v39, %v7457_v60  ;;  %v7455_v16 = vadd.f32 0.5, %v7451_v59  ;;  %v11231_v18 = vld [vmem:[%s15587_s3 + $0x48] sm:$0xff]   ;;  %v11247_v43 = vld [vmem:[%s15587_s3 + $0xb0] sm:$0xff]   ;;  %v11249_v39 = vld [vmem:[%s15587_s3 + $0x78] sm:$0xff]  }
0x2429   : > { %v11248_v21 = vld [vmem:[%s15587_s3 + $0x30] sm:$0xff]   ;;  %v11251_v29 = vld [vmem:[%s15587_s3 + $0x38] sm:$0xff]  }
0x242a   : > { %v7469_v24 = vadd.f32 %v10837_v47, %v7465_v38  ;;  %v7463_v51 = vmul.f32 %v7459_v57, %v7455_v16  ;;  %v11232_v16 = vld [vmem:[%s15587_s3 + $0x88] sm:$0xff]   ;;  %v11238_v57 = vld [vmem:[%s15587_s3 + $0x98] sm:$0xff]   ;;  %v11240_v47 = vld [vmem:[%s15587_s3 + $0x60] sm:$0xff]  }
0x242b   : > { %v11233_v38 = vld [vmem:[%s15587_s3 + $0x8] sm:$0xff]  }
0x242c   : > { %v15182_v40 = vpack.c.bf16 %v7469_v24, %v7468_v52  ;;  %v7467_v42 = vadd.f32 %v10825_v11, %v7463_v51  ;;  %v11234_v51 = vld [vmem:[%s15587_s3 + $0x50] sm:$0xff]   ;;  %v11250_v52 = vld [vmem:[%s15587_s3 + $0xb8] sm:$0xff]  }
0x242d   : > { %v11236_v11 = vld [vmem:[%s15587_s3 + $0x10] sm:$0xff]  }
0x242e   : > { %v7482_v58 = vpack.c.bf16 %v7467_v42, %v7466_v30 }
0x2430   : > { %7517 = vmatmul.mubr.bf16.vlgmr.msra.gmra.mrb[4].mxu0 %v7482_v58  ;;  %9843 = vmatprep.mubr.bf16.mxu1 %v7482_v58 }
0x2431   : > { %9310 = vmatpush3.bf16.msra.mxu0 %v11230_v1  ;;  %9844 = vmatmul.mubr.bf16.vlgmr.msra.gmra.mrb[12].mxu1 %v15182_v40 }
0x2432   : > { %9311 = vmatprep.subr.bf16.mxu0 %v11231_v18  ;;  %7526 = vmatprep.mubr.bf16.mxu0 %v15957_v56 }
0x2433   : > { %9848 = vmatpush3.bf16.msra.mxu1 %v15155_v37  ;;  %v11235_v37 = vld [vmem:[%s15587_s3 + $0x90] sm:$0xff]  }
0x2434   : > { %9849 = vmatprep.subr.bf16.mxu1 %v11232_v16 }
0x2435   : > { %9312 = vmatpush3.bf16.msra.mxu0 %v11233_v38 }
0x2436   : > { %9313 = vmatprep.subr.bf16.mxu0 %v11234_v51 }
0x2437   : > { %9850 = vmatpush3.bf16.msra.mxu1 %v11232_v16 }
0x2438   : > { %7527 = vmatmul.mubr.bf16.gmra.mrb[8].mxu0 %v15182_v40  ;;  %9851 = vmatprep.subr.bf16.mxu1 %v11235_v37 }
0x2439   : > { %9314 = vmatpush3.bf16.msra.mxu0 %v11236_v11  ;;  %7680 = vmatprep.mubr.bf16.mxu0 %v7482_v58 }
0x243a   : > { %9315 = vmatprep.subr.bf16.mxu0 %v11237_v25 }
0x243b   : > { %9852 = vmatpush3.bf16.msra.mxu1 %v11235_v37 }
0x243c   : > { %9853 = vmatprep.subr.bf16.mxu1 %v11238_v57 }
0x243d   : > { %9316 = vmatpush3.bf16.msra.mxu0 %v11239_v10 }
0x243e   : > { %9317 = vmatprep.subr.bf16.mxu0 %v11240_v47 }
0x243f   : > { %9854 = vmatpush3.bf16.msra.mxu1 %v11238_v57 }
0x2440   : > { %9855 = vmatprep.subr.bf16.mxu1 %v11241_v48 }
0x2441   : > { %9318 = vmatpush3.bf16.msra.mxu0 %v11242_v34 }
0x2442   : > { %9319 = vmatprep.subr.bf16.mxu0 %v11243_v6 }
0x2443   : > { %9856 = vmatpush3.bf16.msra.mxu1 %v11241_v48 }
0x2444   : > { %9857 = vmatprep.subr.bf16.mxu1 %v11244_v54 }
0x2445   : > { %9320 = vmatpush3.bf16.msra.mxu0 %v11245_v55 }
0x2446   : > { %9321 = vmatprep.subr.bf16.mxu0 %v11246_v0 }
0x2447   : > { %9858 = vmatpush3.bf16.msra.mxu1 %v11244_v54 }
0x2448   : > { %9859 = vmatprep.subr.bf16.mxu1 %v11247_v43 }
0x2449   : > { %9322 = vmatpush3.bf16.msra.mxu0 %v11248_v21 }
0x244a   : > { %9323 = vmatprep.subr.bf16.mxu0 %v11249_v39 }
0x244b   : > { %9860 = vmatpush3.bf16.msra.mxu1 %v11247_v43 }
0x244c   : > { %9861 = vmatprep.subr.bf16.mxu1 %v11250_v52 }
0x244d   : > { %9324 = vmatpush3.bf16.msra.mxu0 %v11251_v29 }
0x244e   : > { %7828 = vmatprep.subr.bf16.mxu0 %v14831_v32 }
0x244f   : > { %9862 = vmatpush3.bf16.msra.mxu1 %v11250_v52 }
0x2450   : > { %7681 = vmatmul.mubr.bf16.vlgmr.msra.gmra.mrb[20].mxu0 %v15025_v2  ;;  %7881 = vmatprep.subr.bf16.mxu1 %v14836_v35 }
0x2451   : > { %7688 = vmatprep.mubr.bf16.mxu0 %v15182_v40  ;;  %7829 = vmatpush1.bf16.msra.mxu0 %v14839_v27 }
0x2452   : > { %7830 = vmatprep.subr.bf16.mxu0 %v14842_v17 }
0x2455   : > { %7831 = vmatpush1.bf16.msra.mxu0 %v14845_v36 }
0x2456   : > { %7934 = vmatprep.subr.bf16.mxu0 %v14848_v12 }
0x2458   : > { %7689 = vmatmul.mubr.bf16.gmra.mrb[24].mxu0 %v15037_v41 }
0x2459   : > { %7860 = vmatprep.mubr.bf16.mxu0 %v15957_v56 }
0x2503   : > { %v7518_v32 = vpop.f32.mrb[4].mxu0 }
0x2504   : > { %v9989_v60 = vadd.f32 %v7518_v32, %v16319_v13  ;;  %v7520_v2 = vpop.f32.mrb[5].mxu0  ;;  %v9845_v59 = vpop.f32.mrb[12].mxu1 }
0x2505   : > { %v9990_v35 = vadd.f32 %v7520_v2, %v16320_v15  ;;  %v9997_v30 = vadd.f32 %v9845_v59, %v16321_v44  ;;  %v7522_v27 = vpop.f32.mrb[6].mxu0  ;;  %v7571_v24 = vpop.f32.mrb[13].mxu1 }
0x2506   : > { %10844 = vtanh.f32 %v9989_v60  ;;  %v9991_v17 = vadd.f32 %v7522_v27, %v16319_v13  ;;  %v9998_v36 = vadd.f32 %v7571_v24, %v16321_v44  ;;  %v7524_v12 = vpop.f32.mrb[7].mxu0  ;;  %v9846_v41 = vpop.f32.mrb[14].mxu1 }
0x2507   : > { %10846 = vtanh.f32 %v9990_v35  ;;  %v9992_v40 = vadd.f32 %v7524_v12, %v16320_v15  ;;  %v7574_v42 = vpop.f32.mrb[15].mxu1  ;;  %v9999_v58 = vadd.f32 %v9846_v41, %v16321_v44 }
0x2508   : > { %10848 = vtanh.f32 %v9997_v30  ;;  %v10000_v1 = vadd.f32 %v7574_v42, %v16321_v44 }
0x2509   : > { %10850 = vtanh.f32 %v9991_v17 }
0x250a   : > { %10852 = vtanh.f32 %v9998_v36 }
0x250b   : > { %10854 = vtanh.f32 %v9992_v40  ;;  %v7528_v18 = vpop.f32.mrb[8].mxu0 }
0x250c   : > { %10856 = vtanh.f32 %v9999_v58  ;;  %v9993_v16 = vadd.f32 %v7528_v18, %v16319_v13  ;;  %v7530_v38 = vpop.f32.mrb[9].mxu0 }
0x250d   : > { %10858 = vtanh.f32 %v10000_v1  ;;  %v9994_v51 = vadd.f32 %v7530_v38, %v16320_v15  ;;  %v7532_v37 = vpop.f32.mrb[10].mxu0 }
0x250e   : > { %10860 = vtanh.f32 %v9993_v16  ;;  %v9995_v11 = vadd.f32 %v7532_v37, %v16319_v13  ;;  %v7534_v25 = vpop.f32.mrb[11].mxu0 }
0x250f   : > { %10862 = vtanh.f32 %v9994_v51  ;;  %v9996_v57 = vadd.f32 %v7534_v25, %v16320_v15 }
0x2510   : > { %v10845_v10 = vpop.eup %10844  ;;  %10864 = vtanh.f32 %v9995_v11 }
0x2511   : > { %v10847_v47 = vpop.eup %10846  ;;  %10866 = vtanh.f32 %v9996_v57 }
0x2512   : > { %v10849_v48 = vpop.eup %10848  ;;  %v7618_v34 = vsub.f32 %v10847_v47, %v10845_v10 }
0x2513   : > { %v10851_v6 = vpop.eup %10850  ;;  %v7612_v21 = vmul.f32 0.5, %v10849_v48  ;;  %v11252_v48 = vld [vmem:[#allocation3 + $0x54] ss:$36 sps:$4 sm:$0xff]  }
0x2514   : > { %v10853_v54 = vpop.eup %10852 }
0x2515   : > { %v10855_v55 = vpop.eup %10854  ;;  %v7610_v0 = vmul.f32 0.5, %v10853_v54  ;;  %v7616_v27 = vadd.f32 0.5, %v7612_v21 }
0x2516   : > { %v10857_v43 = vpop.eup %10856  ;;  %v7619_v39 = vsub.f32 %v10855_v55, %v10851_v6 }
0x2517   : > { %v10859_v52 = vpop.eup %10858  ;;  %v7614_v29 = vadd.f32 0.5, %v7610_v0  ;;  %v7613_v60 = vmul.f32 0.5, %v10857_v43 }
0x2518   : > { %v10861_v32 = vpop.eup %10860  ;;  %v7611_v2 = vmul.f32 0.5, %v10859_v52  ;;  %v16374_v52 = vld [vmem:[#allocation105_spill] sm:$0xff] }
0x2519   : > { %v10863_v59 = vpop.eup %10862  ;;  %v7622_v35 = vmul.f32 %v7618_v34, %v7614_v29  ;;  %v7617_v41 = vadd.f32 0.5, %v7613_v60  ;;  %v16375_v60 = vld [vmem:[#allocation97_spill] sm:$0xff] }
0x251a   : > { %v10865_v30 = vpop.eup %10864  ;;  %v7615_v24 = vadd.f32 0.5, %v7611_v2  ;;  %v7620_v17 = vsub.f32 %v10863_v59, %v10861_v32  ;;  %v971_v2 = vadd.f32 %v16375_v60, %v11989_v3 }
0x251b   : > { %v10867_v36 = vpop.eup %10866  ;;  %v7626_v12 = vadd.f32 %v10845_v10, %v7622_v35 }
0x251c   : > { %v7623_v40 = vmul.f32 %v7619_v39, %v7615_v24  ;;  %v7624_v42 = vmul.f32 %v7620_v17, %v7616_v27  ;;  %v7621_v58 = vsub.f32 %v10867_v36, %v10865_v30  ;;  %v16377_v17 = vld [vmem:[#allocation101_spill] sm:$0xff] }
0x251d   : > { %v977_v36 = vadd.f32 %v16377_v17, %v11989_v3 }
0x251e   : > { %v7628_v1 = vadd.f32 %v10861_v32, %v7624_v42  ;;  %v7625_v18 = vmul.f32 %v7621_v58, %v7617_v41  ;;  %v7627_v16 = vadd.f32 %v10851_v6, %v7623_v40 }
0x2520   : > { %v7629_v38 = vadd.f32 %v10865_v30, %v7625_v18  ;;  %v7630_v51 = vpack.c.bf16 %v7627_v16, %v7626_v12 }
0x2522   : > { %v7631_v37 = vpack.c.bf16 %v7629_v38, %v7628_v1  ;;  %9863 = vmatprep.mubr.bf16.mxu1 %v7630_v51 }
0x2523   : > { %v9325_v11 = vpop.f32.mrb[20].mxu0 }
0x2524   : > { %v9326_v25 = vpop.f32.mrb[21].mxu0  ;;  %9864 = vmatmul.mubr.bf16.vlgmr.msra.gmra.mrb[20].mxu1 %v7631_v37 }
0x2525   : > { %v9327_v57 = vadd.f32 %v9326_v25, %v9325_v11  ;;  %v9328_v47 = vpop.f32.mrb[22].mxu0  ;;  %7882 = vmatpush1.bf16.msra.mxu1 %v14865_v20  ;;  %7913 = vmatprep.mubr.bf16.mxu1 %v15957_v56  ;;  %v983_v20 = vadd.f32 %v16374_v52, %v11989_v3 }
0x2526   : > { %v9329_v10 = vpop.f32.mrb[23].mxu0  ;;  %7883 = vmatprep.subr.bf16.mxu1 %v11252_v48 }
0x2527   : > { %v9330_v34 = vadd.f32 %v9329_v10, %v9328_v47 }
0x2529   : > { %7884 = vmatpush1.bf16.msra.mxu1 %v14870_v5  ;;  %v16376_v5 = vld [vmem:[#allocation9_spill] sm:$0xff] }
0x252a   : > { %7987 = vmatprep.subr.bf16.mxu1 %v14873_v23  ;;  %v989_v23 = vadd.f32 %v16376_v5, %v11989_v3 }
0x252b   : > { %v9331_v6 = vpop.f32.mrb[24].mxu0 }
0x252c   : > { %v9332_v54 = vpop.f32.mrb[25].mxu0 }
0x252d   : > { %v9333_v55 = vadd.f32 %v9332_v54, %v9331_v6  ;;  %v9334_v0 = vpop.f32.mrb[26].mxu0 }
0x252e   : > { %v9335_v43 = vpop.f32.mrb[27].mxu0 }
0x252f   : > { %v9336_v21 = vadd.f32 %v9335_v43, %v9334_v0 }
0x25f7   : > { %v9865_v39 = vpop.f32.mrb[20].mxu1 }
0x25f8   : > { %v7740_v29 = vadd.f32 %v9865_v39, %v9333_v55  ;;  %v7731_v32 = vpop.f32.mrb[21].mxu1 }
0x25f9   : > { %v7732_v59 = vadd.f32 %v9327_v57, %v7731_v32  ;;  %v9866_v35 = vpop.f32.mrb[22].mxu1 }
0x25fa   : > { %v7748_v30 = vadd.f32 %v7740_v29, %v983_v20  ;;  %v7743_v27 = vadd.f32 %v9866_v35, %v9336_v21  ;;  %v7734_v24 = vpop.f32.mrb[23].mxu1 }
0x25fb   : > { %v7746_v12 = vadd.f32 %v7732_v59, %v971_v2  ;;  %v7735_v41 = vadd.f32 %v9330_v34, %v7734_v24 }
0x25fc   : > { %10868 = vtanh.f32 %v7748_v30  ;;  %v7749_v40 = vadd.f32 %v7743_v27, %v989_v23 }
0x25fd   : > { %10870 = vtanh.f32 %v7746_v12  ;;  %v7747_v42 = vadd.f32 %v7735_v41, %v977_v36 }
0x25fe   : > { %10872 = vtanh.f32 %v7749_v40  ;;  %v11253_v40 = vld [vmem:[#allocation3 + $0x10] ss:$36 sps:$4 sm:$0xff]  }
0x25ff   : > { %10874 = vtanh.f32 %v7747_v42  ;;  %v11254_v42 = vld [vmem:[#allocation3 + $0x18] ss:$36 sps:$4 sm:$0xff]  }
0x2606   : > { %v10869_v58 = vpop.eup %10868 }
0x2607   : > { %v10871_v1 = vpop.eup %10870  ;;  %v7756_v11 = vmul.f32 0.5, %v10869_v58 }
0x2608   : > { %v10873_v18 = vpop.eup %10872  ;;  %v7754_v16 = vmul.f32 0.5, %v10871_v1 }
0x2609   : > { %v10875_v38 = vpop.eup %10874  ;;  %v7757_v3 = vmul.f32 0.5, %v10873_v18  ;;  %v7760_v57 = vadd.f32 0.5, %v7756_v11  ;;  %v11260_v11 = vld [vmem:[%s15589_s5 + $0x4] ss:$12 sps:$4 sm:$0xff]  }
0x260a   : > { %v7758_v51 = vadd.f32 0.5, %v7754_v16  ;;  %v7755_v37 = vmul.f32 0.5, %v10875_v38  ;;  %v11257_v16 = vld [vmem:[#allocation3 + $0x58] ss:$36 sps:$4 sm:$0xff]  }
0x260b   : > { %v7761_v47 = vadd.f32 0.5, %v7757_v3  ;;  %v7764_v60 = vmul.f32 %v7760_v57, %v14901_v8  ;;  %v11261_v3 = vld [vmem:[%s15589_s5] ss:$12 sps:$4 sm:$0xff]  }
0x260c   : > { %7770 = vrot.lane.b32.xlu0 %v7758_v51, %s11338_s21  ;;  %v7759_v25 = vadd.f32 0.5, %v7755_v37  ;;  %v7762_v21 = vmul.f32 %v7758_v51, %v14893_v31  ;;  %v11259_v37 = vld [vmem:[#allocation3 + $0x20] ss:$36 sps:$4 sm:$0xff]  }
0x260d   : > { %v7765_v35 = vmul.f32 %v7761_v47, %v14905_v28 }
0x260e   : > { %7772 = vrot.lane.b32.xlu1 %v7759_v25, %s11338_s21  ;;  %v7763_v20 = vmul.f32 %v7759_v25, %v14897_v33 }
0x2610   : > { %7774 = vrot.lane.b32.xlu0 %v7760_v57, %s11338_s21  ;;  %v11262_v57 = vld [vmem:[#allocation3 + $0x68] ss:$36 sps:$4 sm:$0xff]  }
0x2612   : > { %7776 = vrot.lane.b32.xlu1 %v7761_v47, %s11338_s21  ;;  %s8630_s21 = sshll.u32 %s11403_s14, 2  ;;  %v11263_v47 = vld [vmem:[%s15589_s5 + $0x1c] ss:$12 sps:$4 sm:$0xff]  }
0x2613   : > { %p379_p3 = scmp.lt.s32.totalorder %s8630_s21, 7 }
0x2615   : > { %s16400_s21 = smov (!%p379_p3, %s8630_s21), 7 }
0x2616   : > { %s8631_s28 = sshll.u32 %s16400_s21, 3 }
0x2617   : > { %s15323_s30 = scalar_lea.vmem %s15594_s10, %s8631_s28  ;;  %s382_s20 = scalar_lea.vmem %s15593_s9, %s8631_s28 }
0x267e   : > { %v7771_v10 = vpop.permute.xlu0 %7770 }
0x267f   : > { %v7782_v48 = vmul.f32 %v10871_v1, %v7771_v10  ;;  %v11255_v1 = vld [vmem:[#allocation3 + $0x5c] ss:$36 sps:$4 sm:$0xff]  }
0x2680   : > { %v7773_v34 = vpop.permute.xlu1 %7772 }
0x2681   : > { %v7783_v6 = vmul.f32 %v10875_v38, %v7773_v34  ;;  %7790 = vrot.lane.b32.xlu0 %v7782_v48, %s11339_s18  ;;  %v11258_v38 = vld [vmem:[#allocation3 + $0x60] ss:$36 sps:$4 sm:$0xff]  }
0x2682   : > { %v7775_v54 = vpop.permute.xlu0 %7774  ;;  %v11265_v48 = vld [vmem:[%s15589_s5 + $0x34] ss:$12 sps:$4 sm:$0xff]  }
0x2683   : > { %v7784_v55 = vmul.f32 %v10869_v58, %v7775_v54  ;;  %7792 = vrot.lane.b32.xlu1 %v7783_v6, %s11339_s18  ;;  %v11267_v6 = vld [vmem:[%s15589_s5 + $0x30] ss:$12 sps:$4 sm:$0xff]  }
0x2684   : > { %v7777_v0 = vpop.permute.xlu1 %7776 }
0x2685   : > { %v7785_v43 = vmul.f32 %v10873_v18, %v7777_v0  ;;  %7794 = vrot.lane.b32.xlu0 %v7784_v55, %s11339_s18  ;;  %v11256_v18 = vld [vmem:[#allocation3 + $0x64] ss:$36 sps:$4 sm:$0xff]  }
0x2686   : > { %v11269_v55 = vld [vmem:[%s15589_s5 + $0x48] ss:$12 sps:$4 sm:$0xff]  }
0x2687   : > { %7796 = vrot.lane.b32.xlu1 %v7785_v43, %s11339_s18  ;;  %v11271_v43 = vld [vmem:[%s15589_s5 + $0x20] ss:$12 sps:$4 sm:$0xff]  }
0x26f3   : > { %v7791_v39 = vpop.permute.xlu0 %7790 }
0x26f4   : > { %v7802_v52 = vadd.f32 %v7791_v39, %v7762_v21  ;;  %v11272_v21 = vld [vmem:[%s15589_s5 + $0x60] ss:$12 sps:$4 sm:$0xff]   ;;  %v11273_v39 = vld [vmem:[%s15589_s5 + $0x7c] ss:$12 sps:$4 sm:$0xff]  }
0x26f5   : > { %v7793_v29 = vpop.permute.xlu1 %7792 }
0x26f6   : > { %10876 = vtanh.f32 %v7802_v52  ;;  %v7803_v32 = vadd.f32 %v7793_v29, %v7763_v20  ;;  %v11275_v20 = vld [vmem:[%s15589_s5 + $0x78] ss:$12 sps:$4 sm:$0xff]   ;;  %v11276_v29 = vld [vmem:[%s15589_s5 + $0x94] ss:$12 sps:$4 sm:$0xff]  }
0x26f7   : > { %v7795_v2 = vpop.permute.xlu0 %7794 }
0x26f8   : > { %10878 = vtanh.f32 %v7803_v32  ;;  %v15299_v59 = vadd.f32 %v7795_v2, %v7764_v60  ;;  %v11278_v60 = vld [vmem:[%s15589_s5 + $0x90] ss:$12 sps:$4 sm:$0xff]   ;;  %v11279_v2 = vld [vmem:[%s15589_s5 + $0xac] ss:$12 sps:$4 sm:$0xff]  }
0x26f9   : > { %v7797_v5 = vpop.permute.xlu1 %7796 }
0x26fa   : > { %10880 = vtanh.f32 %v15299_v59  ;;  %v15303_v23 = vadd.f32 %v7797_v5, %v7765_v35  ;;  %v11280_v35 = vld [vmem:[%s15589_s5 + $0x68] ss:$12 sps:$4 sm:$0xff]  }
0x26fb   : > { %v11281_v5 = vld [vmem:[%s15589_s5 + $0xa8] ss:$12 sps:$4 sm:$0xff]  }
0x26fc   : > { %10882 = vtanh.f32 %v15303_v23 }
0x2700   : > { %v10877_v31 = vpop.eup %10876 }
0x2701   : > { %v7810_v30 = vmul.f32 %v10877_v31, %v7771_v10  ;;  %v11264_v10 = vld [vmem:[%s15589_s5 + $0x18] ss:$12 sps:$4 sm:$0xff]   ;;  %v11282_v31 = vld [vmem:[%s15589_s5 + $0x80] ss:$12 sps:$4 sm:$0xff]  }
0x2702   : > { %v10879_v33 = vpop.eup %10878 }
0x2703   : > { %v7811_v27 = vmul.f32 %v10879_v33, %v7773_v34  ;;  %v11266_v34 = vld [vmem:[%s15589_s5 + $0x8] ss:$12 sps:$4 sm:$0xff]   ;;  %v11283_v33 = vld [vmem:[%s15589_s5 + $0x98] ss:$12 sps:$4 sm:$0xff]  }
0x2704   : > { %v10881_v24 = vpop.eup %10880 }
0x2705   : > { %v7814_v8 = vpack.c.bf16 %v7811_v27, %v7810_v30  ;;  %v7812_v36 = vmul.f32 %v10881_v24, %v7775_v54  ;;  %v11268_v54 = vld [vmem:[%s15589_s5 + $0x4c] ss:$12 sps:$4 sm:$0xff]   ;;  %v11284_v30 = vld [vmem:[%s15589_s5 + $0xb0] ss:$12 sps:$4 sm:$0xff]  }
0x2706   : > { %v10883_v17 = vpop.eup %10882  ;;  %v16379_v24 = vld [vmem:[#allocation99_spill] sm:$0xff] }
0x2707   : > { %7818 = vrot.lane.b32.xlu0 %v7814_v8, %s11339_s18  ;;  %v7813_v12 = vmul.f32 %v10883_v17, %v7777_v0  ;;  %v11270_v0 = vld [vmem:[%s15589_s5 + $0x64] ss:$12 sps:$4 sm:$0xff]   ;;  %v973_v8 = vadd.f32 %v16379_v24, %v16355_v61 }
0x2708   : > { %v16380_v17 = vld [vmem:[#allocation100_spill] sm:$0xff] }
0x2709   : > { %v7815_v28 = vpack.c.bf16 %v7813_v12, %v7812_v36  ;;  %v1228_v36 = vadd.f32 %v16380_v17, %v16357_v9 }
0x270b   : > { %7820 = vrot.lane.b32.xlu1 %v7815_v28, %s11339_s18  ;;  %8505 = vrot.lane.b32.xlu0 %v7803_v32, %s11339_s18  ;;  %v11277_v32 = vld [vmem:[%s15589_s5 + $0x50] ss:$12 sps:$4 sm:$0xff]  }
0x270f   : > { %8503 = vrot.lane.b32.xlu1 %v7802_v52, %s11339_s18  ;;  %v11274_v52 = vld [vmem:[%s15589_s5 + $0x38] ss:$12 sps:$4 sm:$0xff]  }
0x2779   : > { %v7819_v41 = vpop.permute.xlu0 %7818 }
0x277a   : > { %8862 = vmatmul.mubr.msk.bf16.vlgmr.msra.gmra.mrb[28].mxu0 %vm1804_vm2, %v7819_v41  ;;  %8864 = vmatmul.mubr.msk.bf16.vlgmr.msra.gmra.mrb[24].mxu1 %vm1804_vm2, %v7819_v41 }
0x277b   : > { %7870 = vmatprep.mubr.bf16.mxu0 %v15957_v56  ;;  %7923 = vmatprep.mubr.bf16.mxu1 %v15957_v56 }
0x277c   : > { %7935 = vmatpush1.bf16.msra.mxu0 %v11253_v40  ;;  %7988 = vmatpush1.bf16.msra.mxu1 %v11254_v42  ;;  %v16382_v42 = vld [vmem:[#allocation103_spill] sm:$0xff] }
0x277d   : > { %v7821_v58 = vpop.permute.xlu1 %7820  ;;  %7936 = vmatprep.subr.bf16.mxu0 %v11255_v1  ;;  %7989 = vmatprep.subr.bf16.mxu1 %v11256_v18  ;;  %v8506_v25 = vpop.permute.xlu0 %8505 }
0x277e   : > { %8516 = vst.msk [vmem:[%s15323_s30 + $0x8] sm:$0xff] %vm1804_vm2, %v8506_v25 }
0x2780   : > { %7937 = vmatpush1.bf16.msra.mxu0 %v11257_v16  ;;  %7990 = vmatpush1.bf16.msra.mxu1 %v11258_v38  ;;  %v16383_v38 = vld [vmem:[#allocation104_spill] sm:$0xff] }
0x2781   : > { %v8504_v51 = vpop.permute.xlu1 %8503  ;;  %9867 = vmatprep.subr.bf16.mxu0 %v11259_v37  ;;  %8147 = vmatprep.subr.bf16.mxu1 %v11260_v11 }
0x2782   : > { %8515 = vst.msk [vmem:[%s15323_s30] sm:$0xff] %vm1804_vm2, %v8504_v51  ;;  %8863 = vmatmul.mubr.msk.bf16.gmra.mrb[32].mxu0 %vm1804_vm2, %v7821_v58  ;;  %8865 = vmatmul.mubr.msk.bf16.gmra.mrb[28].mxu1 %vm1804_vm2, %v7821_v58  ;;  %v1234_v51 = vadd.f32 %v16383_v38, %v16357_v9 }
0x2783   : > { %7966 = vmatprep.mubr.bf16.mxu0 %v15957_v56  ;;  %8019 = vmatprep.mubr.bf16.mxu1 %v15957_v56 }
0x278a   : > { %8866 = vmatmul.mubr.msk.bf16.vlgmr.msra.gmra.mrb[36].mxu0 %vm1804_vm2, %v7819_v41  ;;  %8868 = vmatmul.mubr.msk.bf16.vlgmr.msra.gmra.mrb[32].mxu1 %vm1804_vm2, %v7819_v41 }
0x278b   : > { %7976 = vmatprep.mubr.bf16.mxu0 %v15957_v56  ;;  %8029 = vmatprep.mubr.bf16.mxu1 %v15957_v56 }
0x278c   : > { %9868 = vmatpush3.bf16.msra.mxu0 %v11259_v37  ;;  %8148 = vmatpush1.bf16.msra.mxu1 %v11261_v3 }
0x278d   : > { %9869 = vmatprep.subr.bf16.mxu0 %v11262_v57  ;;  %8149 = vmatprep.subr.bf16.mxu1 %v11263_v47 }
0x2790   : > { %9870 = vmatpush3.bf16.msra.mxu0 %v11262_v57  ;;  %8150 = vmatpush1.bf16.msra.mxu1 %v11264_v10 }
0x2791   : > { %8151 = vmatprep.subr.bf16.mxu1 %v11265_v48  ;;  %9875 = vmatprep.subr.bf16.mxu0 %v11266_v34 }
0x2792   : > { %8867 = vmatmul.mubr.msk.bf16.gmra.mrb[40].mxu0 %vm1804_vm2, %v7821_v58  ;;  %8869 = vmatmul.mubr.msk.bf16.gmra.mrb[36].mxu1 %vm1804_vm2, %v7821_v58 }
0x2793   : > { %9871 = vmatprep.mubr.msk.bf16.mxu0 %vm1804_vm2, %v7819_v41  ;;  %8179 = vmatprep.mubr.bf16.mxu1 %v15957_v56  ;;  %v16381_v41 = vld [vmem:[#allocation106_spill] sm:$0xff] }
0x2794   : > { %8152 = vmatpush1.bf16.msra.mxu1 %v11267_v6  ;;  %v1236_v40 = vadd.f32 %v16381_v41, %v16353_v62 }
0x2795   : > { %8153 = vmatprep.subr.bf16.mxu1 %v11268_v54  ;;  %v16385_v54 = vld [vmem:[#allocation107_spill] sm:$0xff] }
0x2798   : > { %8154 = vmatpush1.bf16.msra.mxu1 %v11269_v55  ;;  %v985_v55 = vadd.f32 %v16385_v54, %v16355_v61 }
0x2799   : > { %8155 = vmatprep.subr.bf16.mxu1 %v11270_v0  ;;  %v16386_v0 = vld [vmem:[#allocation108_spill] sm:$0xff] }
0x279a   : > { %9872 = vmatmul.mubr.msk.bf16.vlgmr.msra.gmra.mrb[44].mxu0 %vm1804_vm2, %v7821_v58  ;;  %v979_v58 = vadd.f32 %v16382_v42, %v16355_v61 }
0x279b   : > { %9876 = vmatpush3.bf16.msra.mxu0 %v11266_v34  ;;  %v16384_v34 = vld [vmem:[#allocation109_spill] sm:$0xff] }
0x279c   : > { %9877 = vmatprep.subr.bf16.mxu0 %v11271_v43  ;;  %8156 = vmatpush1.bf16.msra.mxu1 %v11272_v21  ;;  %v1242_v6 = vadd.f32 %v16384_v34, %v16353_v62 }
0x279d   : > { %8157 = vmatprep.subr.bf16.mxu1 %v11273_v39 }
0x279f   : > { %9878 = vmatpush3.bf16.msra.mxu0 %v11271_v43  ;;  %v1240_v43 = vadd.f32 %v16386_v0, %v16357_v9 }
0x27a0   : > { %9879 = vmatprep.subr.bf16.mxu0 %v11274_v52  ;;  %8158 = vmatpush1.bf16.msra.mxu1 %v11275_v20 }
0x27a1   : > { %8159 = vmatprep.subr.bf16.mxu1 %v11276_v29 }
0x27a3   : > { %9880 = vmatpush3.bf16.msra.mxu0 %v11274_v52  ;;  %v16387_v52 = vld [vmem:[#allocation111_spill] sm:$0xff] }
0x27a4   : > { %9881 = vmatprep.subr.bf16.mxu0 %v11277_v32  ;;  %8160 = vmatpush1.bf16.msra.mxu1 %v11278_v60  ;;  %v1248_v20 = vadd.f32 %v16387_v52, %v16353_v62 }
0x27a5   : > { %8161 = vmatprep.subr.bf16.mxu1 %v11279_v2 }
0x27a7   : > { %9882 = vmatpush3.bf16.msra.mxu0 %v11277_v32 }
0x27a8   : > { %9883 = vmatprep.subr.bf16.mxu0 %v11280_v35  ;;  %8162 = vmatpush1.bf16.msra.mxu1 %v11281_v5 }
0x27a9   : > { %8307 = vmatprep.subr.bf16.mxu1 %v14965_v26  ;;  %v16378_v26 = vld [vmem:[#allocation102_spill] sm:$0xff] }
0x27aa   : > { %v1230_v27 = vadd.f32 %v16378_v26, %v16353_v62 }
0x27ab   : > { %9884 = vmatpush3.bf16.msra.mxu0 %v11280_v35  ;;  %v16388_v35 = vld [vmem:[#allocation10_spill] sm:$0xff] }
0x27ac   : > { %9885 = vmatprep.subr.bf16.mxu0 %v11282_v31  ;;  %v991_v5 = vadd.f32 %v16388_v35, %v16355_v61 }
0x27af   : > { %9886 = vmatpush3.bf16.msra.mxu0 %v11282_v31  ;;  %v16389_v31 = vld [vmem:[#allocation110_spill] sm:$0xff] }
0x27b0   : > { %9887 = vmatprep.subr.bf16.mxu0 %v11283_v33 }
0x27b3   : > { %9888 = vmatpush3.bf16.msra.mxu0 %v11283_v33  ;;  %v1246_v33 = vadd.f32 %v16389_v31, %v16357_v9 }
0x27b4   : > { %9889 = vmatprep.subr.bf16.mxu0 %v11284_v30 }
0x27b7   : > { %9890 = vmatpush3.bf16.msra.mxu0 %v11284_v30 }
0x27b8   : > { %9895 = vmatprep.subr.bf16.mxu0 %v14978_v45 }
0x284d   : > { %v7862_v12 = vpop.f32.mrb[28].mxu0  ;;  %v7915_v28 = vpop.f32.mrb[24].mxu1 }
0x284e   : > { %v8089_v1 = vadd.f32 %v7862_v12, %v973_v8  ;;  %v8091_v18 = vadd.f32 %v7915_v28, %v1230_v27  ;;  %v7864_v45 = vpop.f32.mrb[29].mxu0  ;;  %v15426_v16 = vpop.f32.mrb[25].mxu1 }
0x284f   : > { %v8090_v37 = vadd.f32 %v7864_v45, %v1228_v36  ;;  %v7866_v11 = vpop.f32.mrb[30].mxu0  ;;  %v7919_v25 = vpop.f32.mrb[26].mxu1 }
0x2850   : > { %10884 = vtanh.f32 %v8089_v1  ;;  %v8092_v3 = vadd.f32 %v7866_v11, %v979_v58  ;;  %v8094_v57 = vadd.f32 %v7919_v25, %v1236_v40  ;;  %v7868_v47 = vpop.f32.mrb[31].mxu0  ;;  %v15430_v10 = vpop.f32.mrb[27].mxu1 }
0x2851   : > { %10886 = vtanh.f32 %v8091_v18  ;;  %v8093_v48 = vadd.f32 %v7868_v47, %v1234_v51 }
0x2852   : > { %10888 = vtanh.f32 %v8090_v37 }
0x2853   : > { %10890 = vtanh.f32 %v8092_v3 }
0x2854   : > { %10892 = vtanh.f32 %v8094_v57 }
0x2855   : > { %10894 = vtanh.f32 %v8093_v48  ;;  %v7872_v21 = vpop.f32.mrb[32].mxu0  ;;  %v7925_v39 = vpop.f32.mrb[28].mxu1 }
0x2856   : > { %v8095_v29 = vadd.f32 %v7872_v21, %v985_v55  ;;  %v8097_v32 = vadd.f32 %v7925_v39, %v1242_v6  ;;  %v7874_v60 = vpop.f32.mrb[33].mxu0  ;;  %v15440_v2 = vpop.f32.mrb[29].mxu1 }
0x2857   : > { %v8096_v30 = vadd.f32 %v7874_v60, %v1240_v43  ;;  %v7876_v26 = vpop.f32.mrb[34].mxu0  ;;  %v7929_v27 = vpop.f32.mrb[30].mxu1 }
0x2858   : > { %10896 = vtanh.f32 %v8095_v29  ;;  %v8098_v24 = vadd.f32 %v7876_v26, %v991_v5  ;;  %v8100_v8 = vadd.f32 %v7929_v27, %v1248_v20  ;;  %v7878_v17 = vpop.f32.mrb[35].mxu0  ;;  %v15446_v36 = vpop.f32.mrb[31].mxu1  ;;  %v11285_v27 = vld [vmem:[%s15591_s7] ss:$12 sps:$4 sm:$0xff]  }
0x2859   : > { %10898 = vtanh.f32 %v8097_v32  ;;  %v8099_v62 = vadd.f32 %v7878_v17, %v1246_v33 }
0x285a   : > { %v10885_v12 = vpop.eup %10884  ;;  %10900 = vtanh.f32 %v8096_v30 }
0x285b   : > { %v10887_v28 = vpop.eup %10886  ;;  %10902 = vtanh.f32 %v8098_v24 }
0x285c   : > { %v10889_v41 = vpop.eup %10888  ;;  %v8113_v61 = vmul.f32 0.5, %v10887_v28  ;;  %10904 = vtanh.f32 %v8100_v8  ;;  %v11286_v8 = vld [vmem:[%s15591_s7 + $0x1c] ss:$12 sps:$4 sm:$0xff]  }
0x285d   : > { %v10891_v40 = vpop.eup %10890  ;;  %v8121_v9 = vsub.f32 %v10889_v41, %v10885_v12  ;;  %10906 = vtanh.f32 %v8099_v62  ;;  %v15448_v42 = vpop.f32.mrb[36].mxu0  ;;  %v11287_v62 = vld [vmem:[%s15591_s7 + $0x18] ss:$12 sps:$4 sm:$0xff]   ;;  %v11288_v28 = vld [vmem:[%s15591_s7 + $0x8] ss:$12 sps:$4 sm:$0xff]  }
0x285e   : > { %v10893_v58 = vpop.eup %10892  ;;  %v8117_v1 = vadd.f32 0.5, %v8113_v61  ;;  %v15450_v18 = vpop.f32.mrb[37].mxu0  ;;  %v11289_v41 = vld [vmem:[%s15591_s7 + $0x20] ss:$12 sps:$4 sm:$0xff]   ;;  %v16397_v61 = vld [vmem:[#allocation130_spill] sm:$0xff] }
0x285f   : > { %v10895_v45 = vpop.eup %10894  ;;  %v8114_v38 = vmul.f32 0.5, %v10893_v58  ;;  %v15452_v51 = vpop.f32.mrb[38].mxu0 }
0x2860   : > { %v8125_v37 = vmul.f32 %v8121_v9, %v8117_v1  ;;  %v8122_v11 = vsub.f32 %v10895_v45, %v10891_v40  ;;  %v15454_v25 = vpop.f32.mrb[39].mxu0 }
0x2861   : > { %v8118_v3 = vadd.f32 0.5, %v8114_v38  ;;  %v8137_v38 = vadd.f32 %v15452_v51, %v16397_v61 }
0x2862   : > { %v10897_v57 = vpop.eup %10896  ;;  %v15456_v47 = vadd.f32 %v10885_v12, %v8125_v37 }
0x2863   : > { %v10899_v48 = vpop.eup %10898  ;;  %v8126_v34 = vmul.f32 %v8122_v11, %v8118_v3 }
0x2864   : > { %v10901_v6 = vpop.eup %10900  ;;  %v8115_v54 = vmul.f32 0.5, %v10899_v48 }
0x2865   : > { %v10903_v55 = vpop.eup %10902  ;;  %v15458_v0 = vadd.f32 %v10891_v40, %v8126_v34  ;;  %v8123_v43 = vsub.f32 %v10901_v6, %v10897_v57  ;;  %v15460_v21 = vpop.f32.mrb[40].mxu0  ;;  %v8134_v40 = vadd.f32 %v15448_v42, %v16397_v61  ;;  %v16398_v42 = vld [vmem:[#allocation131_spill] sm:$0xff] }
0x2866   : > { %v10905_v39 = vpop.eup %10904  ;;  %v8119_v52 = vadd.f32 0.5, %v8115_v54  ;;  %v15462_v20 = vpop.f32.mrb[41].mxu0  ;;  %v8135_v34 = vadd.f32 %v15450_v18, %v16398_v42  ;;  %v8140_v51 = vadd.f32 %v15460_v21, %v16397_v61 }
0x2867   : > { %v10907_v29 = vpop.eup %10906  ;;  %v8145_v32 = vpack.c.bf16 %v15458_v0, %v15456_v47  ;;  %v8116_v60 = vmul.f32 0.5, %v10905_v39  ;;  %v15466_v35 = vpop.f32.mrb[42].mxu0 }
0x2868   : > { %v8127_v5 = vmul.f32 %v8123_v43, %v8119_v52  ;;  %v8124_v31 = vsub.f32 %v10907_v29, %v10903_v55  ;;  %v15468_v33 = vpop.f32.mrb[43].mxu0  ;;  %v8143_v18 = vadd.f32 %v15466_v35, %v16397_v61 }
0x2869   : > { %v8120_v30 = vadd.f32 0.5, %v8116_v60  ;;  %8180 = vmatmul.mubr.bf16.vlgmr.msra.gmra.mrb[40].mxu1 %v8145_v32  ;;  %9891 = vmatprep.mubr.bf16.mxu0 %v8145_v32  ;;  %v8144_v43 = vadd.f32 %v15468_v33, %v16398_v42 }
0x286a   : > { %v15470_v26 = vadd.f32 %v10897_v57, %v8127_v5  ;;  %8189 = vmatprep.mubr.bf16.mxu1 %v15957_v56  ;;  %8308 = vmatpush1.bf16.msra.mxu1 %v11285_v27 }
0x286b   : > { %v8128_v24 = vmul.f32 %v8124_v31, %v8120_v30  ;;  %8309 = vmatprep.subr.bf16.mxu1 %v11286_v8 }
0x286d   : > { %v15479_v17 = vadd.f32 %v10903_v55, %v8128_v24 }
0x286e   : > { %8310 = vmatpush1.bf16.msra.mxu1 %v11287_v62 }
0x286f   : > { %v8146_v12 = vpack.c.bf16 %v15479_v17, %v15470_v26  ;;  %8311 = vmatprep.subr.bf16.mxu1 %v15042_v49  ;;  %v11290_v49 = vld [vmem:[%s15591_s7 + $0x38] ss:$12 sps:$4 sm:$0xff]  }
0x2871   : > { %8190 = vmatmul.mubr.bf16.gmra.mrb[44].mxu1 %v8146_v12  ;;  %9892 = vmatmul.mubr.bf16.vlgmr.msra.gmra.mrb[48].mxu0 %v8146_v12 }
0x2872   : > { %9896 = vmatpush3.bf16.msra.mxu0 %v11288_v28  ;;  %8312 = vmatpush1.bf16.msra.mxu1 %v15051_v63  ;;  %v11291_v63 = vld [vmem:[%s15591_s7 + $0x50] ss:$12 sps:$4 sm:$0xff]  }
0x2873   : > { %9897 = vmatprep.subr.bf16.mxu0 %v11289_v41  ;;  %8313 = vmatprep.subr.bf16.mxu1 %v15058_v50  ;;  %v16390_v50 = vld [vmem:[#allocation120_spill] sm:$0xff] }
0x2874   : > { %8339 = vmatprep.mubr.bf16.mxu1 %v15957_v56 }
0x2876   : > { %9898 = vmatpush3.bf16.msra.mxu0 %v11289_v41  ;;  %8314 = vmatpush1.bf16.msra.mxu1 %v15066_v7  ;;  %v16391_v7 = vld [vmem:[#allocation118_spill] sm:$0xff] }
0x2877   : > { %9899 = vmatprep.subr.bf16.mxu0 %v11290_v49  ;;  %8315 = vmatprep.subr.bf16.mxu1 %v15073_v14  ;;  %v16392_v14 = vld [vmem:[#allocation122_spill] sm:$0xff] }
0x287a   : > { %9900 = vmatpush3.bf16.msra.mxu0 %v11290_v49  ;;  %8316 = vmatpush1.bf16.msra.mxu1 %v15080_v46  ;;  %v16393_v46 = vld [vmem:[#allocation123_spill] sm:$0xff] }
0x287b   : > { %9901 = vmatprep.subr.bf16.mxu0 %v11291_v63  ;;  %8317 = vmatprep.subr.bf16.mxu1 %v15087_v4  ;;  %v16394_v4 = vld [vmem:[#allocation121_spill] sm:$0xff] }
0x287e   : > { %9902 = vmatpush3.bf16.msra.mxu0 %v11291_v63  ;;  %8318 = vmatpush1.bf16.msra.mxu1 %v15094_v22  ;;  %v16395_v22 = vld [vmem:[#allocation125_spill] sm:$0xff] }
0x287f   : > { %9903 = vmatprep.subr.bf16.mxu0 %v15100_v53  ;;  %8319 = vmatprep.subr.bf16.mxu1 %v15106_v19  ;;  %v16396_v19 = vld [vmem:[#allocation129_spill] sm:$0xff] }
0x2880   : > { %v8136_v58 = vadd.f32 %v15430_v10, %v16396_v19  ;;  %v8141_v10 = vadd.f32 %v15462_v20, %v16398_v42  ;;  %v8142_v55 = vadd.f32 %v15446_v36, %v16396_v19  ;;  %v8138_v20 = vadd.f32 %v15454_v25, %v16398_v42 }
0x2882   : > { %9904 = vmatpush3.bf16.msra.mxu0 %v15100_v53  ;;  %8320 = vmatpush1.bf16.msra.mxu1 %v16390_v50  ;;  %v8133_v53 = vadd.f32 %v15426_v16, %v16396_v19  ;;  %v8139_v16 = vadd.f32 %v15440_v2, %v16396_v19 }
0x2883   : > { %9905 = vmatprep.subr.bf16.mxu0 %v16391_v7  ;;  %8321 = vmatprep.subr.bf16.mxu1 %v16392_v14 }
0x2886   : > { %9906 = vmatpush3.bf16.msra.mxu0 %v16391_v7  ;;  %8322 = vmatpush1.bf16.msra.mxu1 %v16393_v46 }
0x2887   : > { %9907 = vmatprep.subr.bf16.mxu0 %v16394_v4 }
0x288a   : > { %9908 = vmatpush3.bf16.msra.mxu0 %v16394_v4 }
0x288b   : > { %9909 = vmatprep.subr.bf16.mxu0 %v16395_v22 }
0x288e   : > { %9910 = vmatpush3.bf16.msra.mxu0 %v16395_v22 }
0x293c   : > { %v8181_v9 = vpop.f32.mrb[40].mxu1 }
0x293d   : > { %v8249_v1 = vadd.f32 %v8181_v9, %v8133_v53  ;;  %v8183_v45 = vpop.f32.mrb[41].mxu1 }
0x293e   : > { %v8250_v37 = vadd.f32 %v8183_v45, %v8134_v40  ;;  %v8185_v11 = vpop.f32.mrb[42].mxu1 }
0x293f   : > { %10908 = vtanh.f32 %v8249_v1  ;;  %v8252_v3 = vadd.f32 %v8185_v11, %v8136_v58  ;;  %v8187_v57 = vpop.f32.mrb[43].mxu1 }
0x2940   : > { %10910 = vtanh.f32 %v8250_v37  ;;  %v8253_v48 = vadd.f32 %v8187_v57, %v8137_v38 }
0x2941   : > { %10912 = vtanh.f32 %v8252_v3 }
0x2942   : > { %10914 = vtanh.f32 %v8253_v48 }
0x2944   : > { %v8191_v6 = vpop.f32.mrb[44].mxu1  ;;  %v9893_v54 = vpop.f32.mrb[48].mxu0 }
0x2945   : > { %v8255_v39 = vadd.f32 %v8191_v6, %v8139_v16  ;;  %v8257_v52 = vadd.f32 %v9893_v54, %v8141_v10  ;;  %v8193_v2 = vpop.f32.mrb[45].mxu1  ;;  %v8234_v29 = vpop.f32.mrb[49].mxu0 }
0x2946   : > { %v8256_v32 = vadd.f32 %v8193_v2, %v8140_v51  ;;  %v8251_v21 = vadd.f32 %v8234_v29, %v8135_v34  ;;  %v8195_v60 = vpop.f32.mrb[46].mxu1  ;;  %v9894_v5 = vpop.f32.mrb[50].mxu0 }
0x2947   : > { %10916 = vtanh.f32 %v8255_v39  ;;  %v8258_v31 = vadd.f32 %v8195_v60, %v8142_v55  ;;  %v8260_v36 = vadd.f32 %v9894_v5, %v8144_v43  ;;  %v8197_v30 = vpop.f32.mrb[47].mxu1  ;;  %v8237_v27 = vpop.f32.mrb[51].mxu0 }
0x2948   : > { %10918 = vtanh.f32 %v8257_v52  ;;  %v8259_v33 = vadd.f32 %v8197_v30, %v8143_v18  ;;  %v8254_v24 = vadd.f32 %v8237_v27, %v8138_v20 }
0x2949   : > { %v10909_v8 = vpop.eup %10908  ;;  %10920 = vtanh.f32 %v8256_v32 }
0x294a   : > { %v10911_v62 = vpop.eup %10910  ;;  %10922 = vtanh.f32 %v8251_v21 }
0x294b   : > { %v10913_v25 = vpop.eup %10912  ;;  %10924 = vtanh.f32 %v8258_v31  ;;  %v8281_v12 = vsub.f32 %v10911_v62, %v10909_v8 }
0x294c   : > { %v10915_v35 = vpop.eup %10914  ;;  %10926 = vtanh.f32 %v8260_v36 }
0x294d   : > { %10928 = vtanh.f32 %v8259_v33  ;;  %v8282_v28 = vsub.f32 %v10915_v35, %v10913_v25 }
0x294e   : > { %10930 = vtanh.f32 %v8254_v24 }
0x2951   : > { %v10917_v41 = vpop.eup %10916 }
0x2952   : > { %v10919_v49 = vpop.eup %10918 }
0x2953   : > { %v10921_v63 = vpop.eup %10920  ;;  %v8275_v50 = vmul.f32 0.5, %v10919_v49 }
0x2954   : > { %v10923_v7 = vpop.eup %10922  ;;  %v8283_v14 = vsub.f32 %v10921_v63, %v10917_v41 }
0x2955   : > { %v10925_v46 = vpop.eup %10924  ;;  %v8279_v4 = vadd.f32 0.5, %v8275_v50  ;;  %v8273_v22 = vmul.f32 0.5, %v10923_v7 }
0x2956   : > { %v10927_v19 = vpop.eup %10926 }
0x2957   : > { %v10929_v53 = vpop.eup %10928  ;;  %v8277_v61 = vadd.f32 0.5, %v8273_v22  ;;  %v8276_v40 = vmul.f32 0.5, %v10927_v19  ;;  %v8287_v9 = vmul.f32 %v8283_v14, %v8279_v4 }
0x2958   : > { %v10931_v58 = vpop.eup %10930  ;;  %v8284_v1 = vsub.f32 %v10929_v53, %v10925_v46 }
0x2959   : > { %v8280_v45 = vadd.f32 0.5, %v8276_v40  ;;  %v8274_v38 = vmul.f32 0.5, %v10931_v58  ;;  %v8291_v37 = vadd.f32 %v10917_v41, %v8287_v9  ;;  %v8285_v11 = vmul.f32 %v8281_v12, %v8277_v61 }
0x295b   : > { %v8278_v3 = vadd.f32 0.5, %v8274_v38  ;;  %8461 = vrot.lane.b32.xlu1 %v8291_v37, %s11340_s15  ;;  %v8289_v57 = vadd.f32 %v10909_v8, %v8285_v11  ;;  %v8288_v48 = vmul.f32 %v8284_v1, %v8280_v45 }
0x295d   : > { %8457 = vrot.lane.b32.xlu0 %v8289_v57, %s11340_s15  ;;  %v8286_v16 = vmul.f32 %v8282_v28, %v8278_v3  ;;  %v8292_v42 = vadd.f32 %v10925_v46, %v8288_v48 }
0x295f   : > { %v8290_v10 = vadd.f32 %v10913_v25, %v8286_v16  ;;  %v8306_v34 = vpack.c.bf16 %v8292_v42, %v8291_v37 }
0x2961   : > { %8459 = vrot.lane.b32.xlu1 %v8290_v10, %s11340_s15  ;;  %v8305_v51 = vpack.c.bf16 %v8290_v10, %v8289_v57  ;;  %8463 = vrot.lane.b32.xlu0 %v8292_v42, %s11340_s15 }
0x2963   : > { %8340 = vmatmul.mubr.bf16.vlgmr.msra.gmra.mrb[32].mxu1 %v8305_v51  ;;  %9911 = vmatprep.mubr.bf16.mxu0 %v8305_v51 }
0x2964   : > { %9912 = vmatmul.mubr.bf16.vlgmr.msra.gmra.mrb[44].mxu0 %v8306_v34  ;;  %8349 = vmatprep.mubr.bf16.mxu1 %v15957_v56 }
0x296b   : > { %8350 = vmatmul.mubr.bf16.gmra.mrb[36].mxu1 %v8306_v34 }
0x29cd   : > { %v8462_v51 = vpop.permute.xlu1 %8461 }
0x29cf   : > { %v8458_v34 = vpop.permute.xlu0 %8457 }
0x2a36   : > { %v8341_v6 = vpop.f32.mrb[32].mxu1 }
0x2a37   : > { %v10001_v54 = vadd.f32 %v8341_v6, %v16319_v13  ;;  %v8343_v55 = vpop.f32.mrb[33].mxu1  ;;  %v9913_v43 = vpop.f32.mrb[44].mxu0 }
0x2a38   : > { %v10002_v39 = vadd.f32 %v8343_v55, %v16320_v15  ;;  %v10009_v52 = vadd.f32 %v9913_v43, %v16321_v44  ;;  %v8345_v2 = vpop.f32.mrb[34].mxu1  ;;  %v8394_v29 = vpop.f32.mrb[45].mxu0  ;;  %v8486_v55 = vsel %vm8485_vm3, %v15456_v47, %v8458_v34 }
0x2a39   : > { %10932 = vtanh.f32 %v10001_v54  ;;  %v10003_v20 = vadd.f32 %v8345_v2, %v16319_v13  ;;  %v10010_v18 = vadd.f32 %v8394_v29, %v16321_v44  ;;  %v8347_v32 = vpop.f32.mrb[35].mxu1  ;;  %v9914_v21 = vpop.f32.mrb[46].mxu0 }
0x2a3a   : > { %10934 = vtanh.f32 %v10002_v39  ;;  %v10004_v56 = vadd.f32 %v8347_v32, %v16320_v15  ;;  %v8397_v60 = vpop.f32.mrb[47].mxu0  ;;  %v10011_v5 = vadd.f32 %v9914_v21, %v16321_v44  ;;  %v8464_v6 = vpop.permute.xlu0 %8463 }
0x2a3b   : > { %10936 = vtanh.f32 %v10009_v52  ;;  %v10012_v31 = vadd.f32 %v8397_v60, %v16321_v44  ;;  %v8460_v54 = vpop.permute.xlu1 %8459  ;;  %v8489_v47 = vsel %vm8485_vm3, %v15479_v17, %v8464_v6 }
0x2a3c   : > { %10938 = vtanh.f32 %v10003_v20  ;;  %v8487_v52 = vsel %vm8485_vm3, %v15458_v0, %v8460_v54 }
0x2a3d   : > { %10940 = vtanh.f32 %v10010_v18 }
0x2a3e   : > { %10942 = vtanh.f32 %v10004_v56  ;;  %v8351_v36 = vpop.f32.mrb[36].mxu1 }
0x2a3f   : > { %10944 = vtanh.f32 %v10011_v5  ;;  %v10005_v30 = vadd.f32 %v8351_v36, %v16319_v13  ;;  %v8353_v27 = vpop.f32.mrb[37].mxu1 }
0x2a40   : > { %10946 = vtanh.f32 %v10012_v31  ;;  %v10006_v33 = vadd.f32 %v8353_v27, %v16320_v15  ;;  %v8355_v24 = vpop.f32.mrb[38].mxu1 }
0x2a41   : > { %10948 = vtanh.f32 %v10005_v30  ;;  %v10007_v8 = vadd.f32 %v8355_v24, %v16319_v13  ;;  %v8357_v62 = vpop.f32.mrb[39].mxu1 }
0x2a42   : > { %10950 = vtanh.f32 %v10006_v33  ;;  %v10008_v25 = vadd.f32 %v8357_v62, %v16320_v15 }
0x2a43   : > { %v10933_v12 = vpop.eup %10932  ;;  %10952 = vtanh.f32 %v10007_v8 }
0x2a44   : > { %v10935_v44 = vpop.eup %10934  ;;  %10954 = vtanh.f32 %v10008_v25 }
0x2a45   : > { %v10937_v35 = vpop.eup %10936  ;;  %v8441_v28 = vsub.f32 %v10935_v44, %v10933_v12 }
0x2a46   : > { %v10939_v41 = vpop.eup %10938  ;;  %v8435_v14 = vmul.f32 0.5, %v10937_v35 }
0x2a47   : > { %v10941_v49 = vpop.eup %10940 }
0x2a48   : > { %v10943_v63 = vpop.eup %10942  ;;  %v8433_v50 = vmul.f32 0.5, %v10941_v49  ;;  %v8439_v9 = vadd.f32 0.5, %v8435_v14 }
0x2a49   : > { %v10945_v7 = vpop.eup %10944  ;;  %v8442_v46 = vsub.f32 %v10943_v63, %v10939_v41 }
0x2a4a   : > { %v10947_v4 = vpop.eup %10946  ;;  %v8437_v22 = vadd.f32 0.5, %v8433_v50  ;;  %v8436_v19 = vmul.f32 0.5, %v10945_v7 }
0x2a4b   : > { %v10949_v13 = vpop.eup %10948  ;;  %v8434_v53 = vmul.f32 0.5, %v10947_v4 }
0x2a4c   : > { %v10951_v61 = vpop.eup %10950  ;;  %v8445_v15 = vmul.f32 %v8441_v28, %v8437_v22  ;;  %v8440_v37 = vadd.f32 0.5, %v8436_v19 }
0x2a4d   : > { %v10953_v40 = vpop.eup %10952  ;;  %v8438_v58 = vadd.f32 0.5, %v8434_v53  ;;  %v8443_v1 = vsub.f32 %v10951_v61, %v10949_v13 }
0x2a4e   : > { %v10955_v45 = vpop.eup %10954  ;;  %v8449_v38 = vadd.f32 %v10933_v12, %v8445_v15 }
0x2a4f   : > { %v8446_v11 = vmul.f32 %v8442_v46, %v8438_v58  ;;  %v8447_v3 = vmul.f32 %v8443_v1, %v8439_v9  ;;  %v8444_v57 = vsub.f32 %v10955_v45, %v10953_v40 }
0x2a50   : > { %8473 = vrot.lane.b32.xlu0 %v8449_v38, %s11341_s16 }
0x2a51   : > { %v8450_v48 = vadd.f32 %v10939_v41, %v8446_v11  ;;  %v8451_v16 = vadd.f32 %v10949_v13, %v8447_v3  ;;  %v8448_v42 = vmul.f32 %v8444_v57, %v8440_v37 }
0x2a53   : > { %8477 = vrot.lane.b32.xlu1 %v8451_v16, %s11341_s16  ;;  %v8452_v10 = vadd.f32 %v10953_v40, %v8448_v42 }
0x2a54   : > { %8475 = vrot.lane.b32.xlu0 %v8450_v48, %s11341_s16 }
0x2a57   : > { %8479 = vrot.lane.b32.xlu1 %v8452_v10, %s11341_s16 }
0x2a58   : > { %8507 = vrot.lane.b32.xlu0 %v15299_v59, %s11339_s18 }
0x2a5b   : > { %8509 = vrot.lane.b32.xlu1 %v15303_v23, %s11339_s18  ;;  %v8488_v23 = vsel %vm8485_vm3, %v15470_v26, %v8462_v51 }
0x2ac2   : > { %v8474_v43 = vpop.permute.xlu0 %8473 }
0x2ac3   : > { %v8491_v59 = vsel %vm8490_vm4, %v8486_v55, %v8474_v43 }
0x2ac4   : > { %8495 = vst.msk [vmem:[%s382_s20] sm:$0xff] %vm1804_vm2, %v8491_v59 }
0x2ac5   : > { %v8478_v39 = vpop.permute.xlu1 %8477 }
0x2ac6   : > { %v8476_v2 = vpop.permute.xlu0 %8475  ;;  %v8493_v29 = vsel %vm8490_vm4, %v8488_v23, %v8478_v39 }
0x2ac7   : > { %v8492_v20 = vsel %vm8490_vm4, %v8487_v52, %v8476_v2  ;;  %8497 = vst.msk [vmem:[%s382_s20 + $0x10] sm:$0xff] %vm1804_vm2, %v8493_v29 }
0x2ac8   : > { %8496 = vst.msk [vmem:[%s382_s20 + $0x8] sm:$0xff] %vm1804_vm2, %v8492_v20 }
0x2ac9   : > { %v8480_v18 = vpop.permute.xlu1 %8479 }
0x2aca   : > { %v8508_v32 = vpop.permute.xlu0 %8507  ;;  %v8494_v21 = vsel %vm8490_vm4, %v8489_v47, %v8480_v18 }
0x2acb   : > { %8517 = vst.msk [vmem:[%s15323_s30 + $0x10] sm:$0xff] %vm1804_vm2, %v8508_v32  ;;  %8498 = vst.msk [vmem:[%s382_s20 + $0x18] sm:$0xff] %vm1804_vm2, %v8494_v21 }
0x2acd   : > { %v8510_v0 = vpop.permute.xlu1 %8509 }
0x2ace   : > { %8518 = vst.msk [vmem:[%s15323_s30 + $0x18] sm:$0xff] %vm1804_vm2, %v8510_v0 }
0x2acf PF: > { %s22_s13 = sadd.s32 1, %s11330_s13  }
0x2ad0   : > { %p19_p5 = scmp.ge.s32.totalorder %s22_s13, 4  }
0x2ad2   :  { %21 = sbr.rel (!%p19_p5) target bundleno = 1 (0x1), region = 103 }
0x2ad9   :  { %8558 = vsyncpa [#allocation4], 1 }
0x2ada   :  { %8560 = vsyncpa [#allocation4 + $0x1], 1 }

</bundles_post_ra>
